<compile_context>
chip_gen: v7x
topology: tpu7x:2x2x1
jax: 0.10.0
libtpu: 0.0.40
codegen_flags: <defaults>
</compile_context>

<pallas_src>
from functools import partial, lru_cache

import numpy as np
import jax
import jax.numpy as jnp
from jax.experimental import pallas as pl
from jax.experimental.pallas import tpu as pltpu


# ------------------------------ Pallas kernels ------------------------------

def _conv_kernel(x_ref, w_ref, b_ref, o_ref):
    """One GEMM per sample: (Cout, K*Cin) @ (K*Cin, H*W) + bias."""
    o_ref[...] = (jnp.dot(w_ref[...], x_ref[...],
                          preferred_element_type=jnp.float32) + b_ref[...])


def _conv_sigmoid_kernel(x_ref, w_ref, b_ref, o_ref):
    """Final conv: GEMM + bias + sigmoid fused."""
    y = jnp.dot(w_ref[...], x_ref[...],
                preferred_element_type=jnp.float32) + b_ref[...]
    o_ref[...] = jax.nn.sigmoid(y)


def _conv_residual_kernel(x_ref, w_ref, b_ref, r_ref, o_ref):
    """ResBlock tail: GEMM + bias + residual add fused."""
    o_ref[...] = (jnp.dot(w_ref[...], x_ref[...],
                          preferred_element_type=jnp.float32)
                  + b_ref[...] + r_ref[...])


def _conv_gn_lrelu_kernel(x_ref, w_ref, b_ref, g_ref, be_ref, o_ref, *, eps, slope):
    """GEMM + bias, then GroupNorm(num_groups=1, biased var) + LeakyReLU fused.

    The grid iterates over batch samples and the block holds the full per-sample
    (Cout, H*W) result, so in-block statistics == per-sample GroupNorm statistics.
    """
    y = jnp.dot(w_ref[...], x_ref[...],
                preferred_element_type=jnp.float32) + b_ref[...]
    m = jnp.mean(y, axis=(0, 1), keepdims=True)
    m2 = jnp.mean(y * y, axis=(0, 1), keepdims=True)
    var = jnp.maximum(m2 - m * m, 0.0)            # single-pass biased variance
    yn = (y - m) * jax.lax.rsqrt(var + eps)
    yn = yn * g_ref[...] + be_ref[...]
    o_ref[...] = jnp.where(yn >= 0, yn, slope * yn)


def _gn_lrelu_kernel(x_ref, g_ref, b_ref, o_ref, *, eps, slope):
    """Standalone GroupNorm(num_groups=1)+LeakyReLU on a per-sample (C, H*W) block."""
    x = x_ref[...]
    m = jnp.mean(x, axis=(0, 1), keepdims=True)
    m2 = jnp.mean(x * x, axis=(0, 1), keepdims=True)
    var = jnp.maximum(m2 - m * m, 0.0)
    xn = (x - m) * jax.lax.rsqrt(var + eps)
    y = xn * g_ref[...] + b_ref[...]
    o_ref[...] = jnp.where(y >= 0, y, slope * y)


def _upsample_add_kernel(x_ref, awt_ref, ah_ref, s_ref, o_ref):
    """Separable bilinear x2 (align_corners=True): out = A_h @ x @ A_w^T + skip.

    x: (C, h, w); awt: (C, w, 2w); ah: (C, 2h, h); skip/out: (C, 2h, 2w).
    Both steps are canonical batched matmuls (batch = channels).
    """
    t = jax.lax.dot_general(
        x_ref[...], awt_ref[...],
        dimension_numbers=(((2,), (1,)), ((0,), (0,))),
        preferred_element_type=jnp.float32)            # (C, h, 2w)
    up = jax.lax.dot_general(
        ah_ref[...], t,
        dimension_numbers=(((2,), (1,)), ((0,), (0,))),
        preferred_element_type=jnp.float32)            # (C, 2h, 2w)
    o_ref[...] = up + s_ref[...]


# ------------------------------ layer wrappers ------------------------------

_PARALLEL = pltpu.CompilerParams(dimension_semantics=("parallel",))


def conv2d(x, w, b, *, stride=1, padding=0, epilogue="none",
           gamma=None, beta=None, residual=None, eps=1e-5, slope=0.2):
    """x: (N, Cin, H, W) f32, w: (KH, KW, Cin, Cout), b: (Cout,).

    Lowered to ONE GEMM per sample: the kernel taps are folded into the contraction
    dimension (im2col built in XLA glue; in-kernel contraction depth = K*Cin).
    Optional fused epilogues: 'gn_lrelu', 'residual', 'sigmoid'.
    """
    N, Cin, H, W = x.shape
    KH, KW, _, Cout = w.shape
    Ho = (H + 2 * padding - KH) // stride + 1
    Wo = (W + 2 * padding - KW) // stride + 1
    HW = Ho * Wo
    KC = KH * KW * Cin

    xp = jnp.pad(x, ((0, 0), (0, 0), (padding, padding), (padding, padding))) \
        if padding else x
    # TODO(synk): im2col still materializes K*Cin rows per output pixel in HBM; at large
    # resolutions switch to in-kernel shifted-window reads to cut conv input traffic ~9x.
    taps = [xp[:, :, kh:kh + stride * Ho:stride, kw:kw + stride * Wo:stride]
            for kh in range(KH) for kw in range(KW)]
    xt = jnp.stack(taps, axis=1).reshape(N, KC, HW)         # (N, K*Cin, Ho*Wo)
    wt = jnp.transpose(w, (3, 0, 1, 2)).reshape(Cout, KC)   # (Cout, K*Cin)
    b2 = b.reshape(Cout, 1)

    in_specs = [
        pl.BlockSpec((None, KC, HW), lambda n: (n, 0, 0)),
        pl.BlockSpec((Cout, KC), lambda n: (0, 0)),
        pl.BlockSpec((Cout, 1), lambda n: (0, 0)),
    ]
    args = [xt, wt, b2]

    if epilogue == "gn_lrelu":
        kernel = partial(_conv_gn_lrelu_kernel, eps=eps, slope=slope)
        in_specs += [pl.BlockSpec((Cout, 1), lambda n: (0, 0)),
                     pl.BlockSpec((Cout, 1), lambda n: (0, 0))]
        args += [gamma.reshape(Cout, 1), beta.reshape(Cout, 1)]
    elif epilogue == "residual":
        kernel = _conv_residual_kernel
        in_specs += [pl.BlockSpec((None, Cout, HW), lambda n: (n, 0, 0))]
        args += [residual.reshape(N, Cout, HW)]
    elif epilogue == "sigmoid":
        kernel = _conv_sigmoid_kernel
    else:
        kernel = _conv_kernel

    out = pl.pallas_call(
        kernel,
        out_shape=jax.ShapeDtypeStruct((N, Cout, HW), jnp.float32),
        grid=(N,),
        in_specs=in_specs,
        out_specs=pl.BlockSpec((None, Cout, HW), lambda n: (n, 0, 0)),
        compiler_params=_PARALLEL,
    )(*args)
    return out.reshape(N, Cout, Ho, Wo)


def group_norm_lrelu(x, gamma, beta, *, eps=1e-5, slope=0.2):
    N, C, H, W = x.shape
    xr = x.reshape(N, C, H * W)
    out = pl.pallas_call(
        partial(_gn_lrelu_kernel, eps=eps, slope=slope),
        out_shape=jax.ShapeDtypeStruct((N, C, H * W), jnp.float32),
        grid=(N,),
        in_specs=[pl.BlockSpec((None, C, H * W), lambda n: (n, 0, 0)),
                  pl.BlockSpec((C, 1), lambda n: (0, 0)),
                  pl.BlockSpec((C, 1), lambda n: (0, 0))],
        out_specs=pl.BlockSpec((None, C, H * W), lambda n: (n, 0, 0)),
        compiler_params=_PARALLEL,
    )(xr, gamma.reshape(C, 1), beta.reshape(C, 1))
    return out.reshape(N, C, H, W)


@lru_cache(maxsize=None)
def _interp_matrix_align_corners(s):
    """1-D bilinear x2 upsample matrix with align_corners=True (out = 2*s). Memoized."""
    out = 2 * s
    A = np.zeros((out, s), np.float32)
    for o in range(out):
        src = o * (s - 1) / (out - 1)
        i0 = min(int(np.floor(src)), s - 1)
        i1 = min(i0 + 1, s - 1)
        f = src - i0
        A[o, i0] += 1.0 - f
        A[o, i1] += f
    return A


def upsample2x_add(x, skip):
    """F.interpolate(scale_factor=2, mode='bilinear', align_corners=True)(x) + skip."""
    N, C, h, w = x.shape
    ah = jnp.asarray(_interp_matrix_align_corners(h))      # (2h, h)
    awt = jnp.asarray(_interp_matrix_align_corners(w).T)   # (w, 2w)
    ah_b = jnp.broadcast_to(ah[None], (C, 2 * h, h))
    awt_b = jnp.broadcast_to(awt[None], (C, w, 2 * w))
    return pl.pallas_call(
        _upsample_add_kernel,
        out_shape=jax.ShapeDtypeStruct((N, C, 2 * h, 2 * w), jnp.float32),
        grid=(N,),
        in_specs=[pl.BlockSpec((None, C, h, w), lambda n: (n, 0, 0, 0)),
                  pl.BlockSpec((C, w, 2 * w), lambda n: (0, 0, 0)),
                  pl.BlockSpec((C, 2 * h, h), lambda n: (0, 0, 0)),
                  pl.BlockSpec((None, C, 2 * h, 2 * w), lambda n: (n, 0, 0, 0))],
        out_specs=pl.BlockSpec((None, C, 2 * h, 2 * w), lambda n: (n, 0, 0, 0)),
        compiler_params=_PARALLEL,
    )(x, awt_b, ah_b, skip)


# ------------------------------ parameters ------------------------------

N_LEVELS = 4
BLOCKS_PER_LEVEL = [1, 2, 2, 4]          # Encoder default: [1] + [2]*(n-2) + [4]
DEC_LEVELS = 3
DEC_BLOCKS_PER_LEVEL = [1, 1, 1]         # SemanticDecoder default


def init_conv_params(key, kh, kw, cin, cout):
    k1, k2 = jax.random.split(key)
    fan_in = kh * kw * cin
    w = jax.random.normal(k1, (kh, kw, cin, cout), jnp.float32) / np.sqrt(fan_in)
    b = 0.01 * jax.random.normal(k2, (cout,), jnp.float32)
    return {'w': w, 'b': b}


def init_resblock_params(key, c):
    k1, k2 = jax.random.split(key)
    return {
        'gn1_g': jnp.ones((c,), jnp.float32), 'gn1_b': jnp.zeros((c,), jnp.float32),
        'conv1': init_conv_params(k1, 3, 3, c, c),
        'gn2_g': jnp.ones((c,), jnp.float32), 'gn2_b': jnp.zeros((c,), jnp.float32),
        'conv2': init_conv_params(k2, 3, 3, c, c),
    }


def init_vnet_params(key, input_channels=1, initial_channels=8, output_channels=1):
    keys = iter(jax.random.split(key, 64))
    P = {'initial_conv': init_conv_params(next(keys), 3, 3,
                                          input_channels, initial_channels)}
    ch = initial_channels
    enc_blocks, downs = [], []
    for lvl in range(N_LEVELS):
        enc_blocks.append([init_resblock_params(next(keys), ch)
                           for _ in range(BLOCKS_PER_LEVEL[lvl])])
        if lvl == N_LEVELS - 1:
            break
        downs.append(init_conv_params(next(keys), 3, 3, ch, 2 * ch))
        ch *= 2
    P['enc_blocks'] = enc_blocks
    P['downs'] = downs
    dec = []
    for lvl in range(DEC_LEVELS):
        d = {'conv1x1': init_conv_params(next(keys), 1, 1, ch, ch // 2)}
        ch //= 2
        d['res'] = [init_resblock_params(next(keys), ch)
                    for _ in range(DEC_BLOCKS_PER_LEVEL[lvl])]
        dec.append(d)
    P['dec'] = dec
    P['final_conv'] = init_conv_params(next(keys), 3, 3, ch, output_channels)
    return P


# ------------------------------ forward pass ------------------------------

def apply_resblock(x, p):
    # GN1 -> LReLU -> conv1 (+fused GN2+LReLU) -> conv2 (+fused residual add)
    h = group_norm_lrelu(x, p['gn1_g'], p['gn1_b'])
    h = conv2d(h, p['conv1']['w'], p['conv1']['b'], stride=1, padding=1,
               epilogue="gn_lrelu", gamma=p['gn2_g'], beta=p['gn2_b'])
    return conv2d(h, p['conv2']['w'], p['conv2']['b'], stride=1, padding=1,
                  epilogue="residual", residual=x)


def vnet_forward(params, x_nchw):
    x = x_nchw.astype(jnp.float32)            # NCHW throughout (channels -> sublanes)

    # ---- Encoder ----
    out = conv2d(x, params['initial_conv']['w'], params['initial_conv']['b'],
                 stride=1, padding=1)
    skips = []
    for lvl in range(N_LEVELS):
        for bp in params['enc_blocks'][lvl]:
            out = apply_resblock(out, bp)
        if lvl == N_LEVELS - 1:
            break
        skips.append(out)                     # last resblock of the level is the skip
        d = params['downs'][lvl]
        out = conv2d(out, d['w'], d['b'], stride=2, padding=1)

    # TODO(synk): nn.Dropout3d(p=0.2) acts only in train mode; eval-mode identity here.
    # TODO(synk): the VAEDecoder branch (latent sampling + reconstruction head) of
    #             ParallelVVAENet is not implemented; only Encoder + SemanticDecoder.

    # ---- Semantic decoder ----
    for lvl in range(DEC_LEVELS):
        d = params['dec'][lvl]
        out = conv2d(out, d['conv1x1']['w'], d['conv1x1']['b'], stride=1, padding=0)
        out = upsample2x_add(out, skips.pop())   # upsample is flagged is_skip_connection
        for bp in d['res']:
            out = apply_resblock(out, bp)

    return conv2d(out, params['final_conv']['w'], params['final_conv']['b'],
                  stride=1, padding=1, epilogue="sigmoid")   # already NCHW


# ------------------------------ main ------------------------------

if __name__ == "__main__":
    key = jax.random.PRNGKey(0)
    kp, kx = jax.random.split(key)

    params = init_vnet_params(kp, input_channels=1, initial_channels=8,
                              output_channels=1)
    # PyTorch-style NCHW input: batch=2, channels=1, 16x16 spatial.
    x = jax.random.normal(kx, (2, 1, 16, 16), jnp.float32)

    fwd = jax.jit(vnet_forward)
    y = fwd(params, x)
    jax.block_until_ready(y)

    assert y.shape == (2, 1, 16, 16), y.shape
    assert bool(jnp.all(jnp.isfinite(y)))
    assert bool(jnp.all((y >= 0.0) & (y <= 1.0)))   # sigmoid output range
    print("KERNEL_OK")
</pallas_src>

<mosaic_0001>
module attributes {stable_mosaic.version = 11 : i64} {
  func.func @_conv_kernel(%arg0: i32, %arg1: memref<1x9x256xf32, #tpu.memory_space<vmem>>, %arg2: memref<8x9xf32, #tpu.memory_space<vmem>>, %arg3: memref<8x1xf32, #tpu.memory_space<vmem>>, %arg4: memref<1x8x256xf32, #tpu.memory_space<vmem>>) attributes {dimension_semantics = [#tpu.dimension_semantics<parallel>], iteration_bounds = array<i64: 2>, scalar_prefetch = 0 : i64, scratch_operands = 0 : i64, tpu.core_type = #tpu.core_type<tc>, window_params = [{transform_indices = @transform_0, window_bounds = array<i64: 1, 9, 256>}, {pipeline_mode = #tpu.pipeline_mode<synchronous>, transform_indices = @transform_1, window_bounds = array<i64: 8, 9>}, {pipeline_mode = #tpu.pipeline_mode<synchronous>, transform_indices = @transform_2, window_bounds = array<i64: 8, 1>}, {transform_indices = @transform_3, window_bounds = array<i64: 1, 8, 256>}]} {
    %c0 = arith.constant 0 : index
    %c0_0 = arith.constant 0 : index
    %0 = vector.load %arg2[%c0, %c0_0] : memref<8x9xf32, #tpu.memory_space<vmem>>, vector<8x9xf32>
    %c0_1 = arith.constant 0 : index
    %c0_2 = arith.constant 0 : index
    %c0_3 = arith.constant 0 : index
    %1 = vector.load %arg1[%c0_1, %c0_2, %c0_3] : memref<1x9x256xf32, #tpu.memory_space<vmem>>, vector<1x9x256xf32>
    %2 = vector.shape_cast %1 : vector<1x9x256xf32> to vector<9x256xf32>
    %cst = arith.constant dense<0.000000e+00> : vector<8x256xf32>
    %3 = tpu.matmul %0, %2, %cst {dimension_numbers = #tpu.dot_dimension_numbers<[1], [0], [0], [1], [0, 0, 1, 1], [], []>} : vector<8x9xf32>, vector<9x256xf32>, vector<8x256xf32> -> vector<8x256xf32>
    %c0_4 = arith.constant 0 : index
    %c0_5 = arith.constant 0 : index
    %4 = vector.load %arg3[%c0_4, %c0_5] : memref<8x1xf32, #tpu.memory_space<vmem>>, vector<8x1xf32>
    %5 = vector.broadcast %4 : vector<8x1xf32> to vector<8x256xf32>
    %6 = arith.addf %3, %5 : vector<8x256xf32>
    %c0_6 = arith.constant 0 : index
    %c0_7 = arith.constant 0 : index
    %c0_8 = arith.constant 0 : index
    %7 = vector.load %arg4[%c0_6, %c0_7, %c0_8] : memref<1x8x256xf32, #tpu.memory_space<vmem>>, vector<1x8x256xf32>
    %8 = vector.shape_cast %7 : vector<1x8x256xf32> to vector<8x256xf32>
    %9 = vector.shape_cast %6 : vector<8x256xf32> to vector<1x8x256xf32>
    tpu.vector_store %arg4[%c0_6, %c0_7, %c0_8], %9 {strides = array<i32>} : memref<1x8x256xf32, #tpu.memory_space<vmem>>, vector<1x8x256xf32>,
    return
  }
  func.func @transform_0(%arg0: i32) -> (i32, i32, i32) {
    %c0_i32 = arith.constant 0 : i32
    %c0_i32_0 = arith.constant 0 : i32
    %c0_i32_1 = arith.constant 0 : i32
    return %arg0, %c0_i32, %c0_i32_0 : i32, i32, i32
  }
  func.func @transform_1(%arg0: i32) -> (i32, i32) {
    %c0_i32 = arith.constant 0 : i32
    %c0_i32_0 = arith.constant 0 : i32
    %c0_i32_1 = arith.constant 0 : i32
    return %c0_i32, %c0_i32_0 : i32, i32
  }
  func.func @transform_2(%arg0: i32) -> (i32, i32) {
    %c0_i32 = arith.constant 0 : i32
    %c0_i32_0 = arith.constant 0 : i32
    %c0_i32_1 = arith.constant 0 : i32
    return %c0_i32, %c0_i32_0 : i32, i32
  }
  func.func @transform_3(%arg0: i32) -> (i32, i32, i32) {
    %c0_i32 = arith.constant 0 : i32
    %c0_i32_0 = arith.constant 0 : i32
    %c0_i32_1 = arith.constant 0 : i32
    return %arg0, %c0_i32, %c0_i32_0 : i32, i32, i32
  }
}

module attributes {stable_mosaic.version = 11 : i64} {
  func.func @_gn_lrelu_kernel(%arg0: i32, %arg1: memref<1x8x256xf32, #tpu.memory_space<vmem>>, %arg2: memref<8x1xf32, #tpu.memory_space<vmem>>, %arg3: memref<8x1xf32, #tpu.memory_space<vmem>>, %arg4: memref<1x8x256xf32, #tpu.memory_space<vmem>>) attributes {dimension_semantics = [#tpu.dimension_semantics<parallel>], iteration_bounds = array<i64: 2>, scalar_prefetch = 0 : i64, scratch_operands = 0 : i64, tpu.core_type = #tpu.core_type<tc>, window_params = [{transform_indices = @transform_0, window_bounds = array<i64: 1, 8, 256>}, {pipeline_mode = #tpu.pipeline_mode<synchronous>, transform_indices = @transform_1, window_bounds = array<i64: 8, 1>}, {pipeline_mode = #tpu.pipeline_mode<synchronous>, transform_indices = @transform_2, window_bounds = array<i64: 8, 1>}, {transform_indices = @transform_3, window_bounds = array<i64: 1, 8, 256>}]} {
    %c0 = arith.constant 0 : index
    %c0_0 = arith.constant 0 : index
    %c0_1 = arith.constant 0 : index
    %0 = vector.load %arg1[%c0, %c0_0, %c0_1] : memref<1x8x256xf32, #tpu.memory_space<vmem>>, vector<1x8x256xf32>
    %1 = vector.shape_cast %0 : vector<1x8x256xf32> to vector<8x256xf32>
    %2 = vector.shape_cast %1 : vector<8x256xf32> to vector<1x8x256xf32>
    %cst = arith.constant dense<0.000000e+00> : vector<1xf32>
    %3 = vector.multi_reduction <add>, %2, %cst [1, 2] : vector<1x8x256xf32> to vector<1xf32>
    %4 = vector.shape_cast %3 : vector<1xf32> to vector<1x1x1xf32>
    %5 = vector.extract %4[0, 0, 0] : f32 from vector<1x1x1xf32>
    %6 = vector.broadcast %5 : f32 to vector<1x1xf32>
    %cst_2 = arith.constant 2.048000e+03 : f32
    %7 = vector.broadcast %cst_2 : f32 to vector<1x1xf32>
    %8 = arith.divf %6, %7 : vector<1x1xf32>
    %9 = arith.mulf %1, %1 : vector<8x256xf32>
    %10 = vector.shape_cast %9 : vector<8x256xf32> to vector<1x8x256xf32>
    %cst_3 = arith.constant dense<0.000000e+00> : vector<1xf32>
    %11 = vector.multi_reduction <add>, %10, %cst_3 [1, 2] : vector<1x8x256xf32> to vector<1xf32>
    %12 = vector.shape_cast %11 : vector<1xf32> to vector<1x1x1xf32>
    %13 = vector.extract %12[0, 0, 0] : f32 from vector<1x1x1xf32>
    %14 = vector.broadcast %13 : f32 to vector<1x1xf32>
    %cst_4 = arith.constant 2.048000e+03 : f32
    %15 = vector.broadcast %cst_4 : f32 to vector<1x1xf32>
    %16 = arith.divf %14, %15 : vector<1x1xf32>
    %17 = arith.mulf %8, %8 : vector<1x1xf32>
    %18 = arith.subf %16, %17 : vector<1x1xf32>
    %cst_5 = arith.constant 0.000000e+00 : f32
    %19 = vector.broadcast %cst_5 : f32 to vector<1x1xf32>
    %20 = arith.maximumf %18, %19 : vector<1x1xf32>
    %21 = vector.broadcast %8 : vector<1x1xf32> to vector<8x256xf32>
    %22 = arith.subf %1, %21 : vector<8x256xf32>
    %cst_6 = arith.constant 9.99999974E-6 : f32
    %23 = vector.broadcast %cst_6 : f32 to vector<1x1xf32>
    %24 = arith.addf %20, %23 : vector<1x1xf32>
    %25 = math.rsqrt %24 : vector<1x1xf32>
    %26 = vector.broadcast %25 : vector<1x1xf32> to vector<8x256xf32>
    %27 = arith.mulf %22, %26 : vector<8x256xf32>
    %c0_7 = arith.constant 0 : index
    %c0_8 = arith.constant 0 : index
    %28 = vector.load %arg2[%c0_7, %c0_8] : memref<8x1xf32, #tpu.memory_space<vmem>>, vector<8x1xf32>
    %29 = vector.broadcast %28 : vector<8x1xf32> to vector<8x256xf32>
    %30 = arith.mulf %27, %29 : vector<8x256xf32>
    %c0_9 = arith.constant 0 : index
    %c0_10 = arith.constant 0 : index
    %31 = vector.load %arg3[%c0_9, %c0_10] : memref<8x1xf32, #tpu.memory_space<vmem>>, vector<8x1xf32>
    %32 = vector.broadcast %31 : vector<8x1xf32> to vector<8x256xf32>
    %33 = arith.addf %30, %32 : vector<8x256xf32>
    %cst_11 = arith.constant 0.000000e+00 : f32
    %34 = vector.broadcast %cst_11 : f32 to vector<8x256xf32>
    %35 = arith.cmpf oge, %33, %34 : vector<8x256xf32>
    %cst_12 = arith.constant 2.000000e-01 : f32
    %36 = vector.broadcast %cst_12 : f32 to vector<8x256xf32>
    %37 = arith.mulf %36, %33 : vector<8x256xf32>
    %38 = arith.select %35, %33, %37 : vector<8x256xi1>, vector<8x256xf32>
    %c0_13 = arith.constant 0 : index
    %c0_14 = arith.constant 0 : index
    %c0_15 = arith.constant 0 : index
    %39 = vector.load %arg4[%c0_13, %c0_14, %c0_15] : memref<1x8x256xf32, #tpu.memory_space<vmem>>, vector<1x8x256xf32>
    %40 = vector.shape_cast %39 : vector<1x8x256xf32> to vector<8x256xf32>
    %41 = vector.shape_cast %38 : vector<8x256xf32> to vector<1x8x256xf32>
    tpu.vector_store %arg4[%c0_13, %c0_14, %c0_15], %41 {strides = array<i32>} : memref<1x8x256xf32, #tpu.memory_space<vmem>>, vector<1x8x256xf32>,
    return
  }
  func.func @transform_0(%arg0: i32) -> (i32, i32, i32) {
    %c0_i32 = arith.constant 0 : i32
    %c0_i32_0 = arith.constant 0 : i32
    %c0_i32_1 = arith.constant 0 : i32
    return %arg0, %c0_i32, %c0_i32_0 : i32, i32, i32
  }
  func.func @transform_1(%arg0: i32) -> (i32, i32) {
    %c0_i32 = arith.constant 0 : i32
    %c0_i32_0 = arith.constant 0 : i32
    %c0_i32_1 = arith.constant 0 : i32
    return %c0_i32, %c0_i32_0 : i32, i32
  }
  func.func @transform_2(%arg0: i32) -> (i32, i32) {
    %c0_i32 = arith.constant 0 : i32
    %c0_i32_0 = arith.constant 0 : i32
    %c0_i32_1 = arith.constant 0 : i32
    return %c0_i32, %c0_i32_0 : i32, i32
  }
  func.func @transform_3(%arg0: i32) -> (i32, i32, i32) {
    %c0_i32 = arith.constant 0 : i32
    %c0_i32_0 = arith.constant 0 : i32
    %c0_i32_1 = arith.constant 0 : i32
    return %arg0, %c0_i32, %c0_i32_0 : i32, i32, i32
  }
}

module attributes {stable_mosaic.version = 11 : i64} {
  func.func @_conv_residual_kernel(%arg0: i32, %arg1: memref<1x72x256xf32, #tpu.memory_space<vmem>>, %arg2: memref<8x72xf32, #tpu.memory_space<vmem>>, %arg3: memref<8x1xf32, #tpu.memory_space<vmem>>, %arg4: memref<1x8x256xf32, #tpu.memory_space<vmem>>, %arg5: memref<1x8x256xf32, #tpu.memory_space<vmem>>) attributes {dimension_semantics = [#tpu.dimension_semantics<parallel>], iteration_bounds = array<i64: 2>, scalar_prefetch = 0 : i64, scratch_operands = 0 : i64, tpu.core_type = #tpu.core_type<tc>, window_params = [{transform_indices = @transform_0, window_bounds = array<i64: 1, 72, 256>}, {pipeline_mode = #tpu.pipeline_mode<synchronous>, transform_indices = @transform_1, window_bounds = array<i64: 8, 72>}, {pipeline_mode = #tpu.pipeline_mode<synchronous>, transform_indices = @transform_2, window_bounds = array<i64: 8, 1>}, {transform_indices = @transform_3, window_bounds = array<i64: 1, 8, 256>}, {transform_indices = @transform_4, window_bounds = array<i64: 1, 8, 256>}]} {
    %c0 = arith.constant 0 : index
    %c0_0 = arith.constant 0 : index
    %0 = vector.load %arg2[%c0, %c0_0] : memref<8x72xf32, #tpu.memory_space<vmem>>, vector<8x72xf32>
    %c0_1 = arith.constant 0 : index
    %c0_2 = arith.constant 0 : index
    %c0_3 = arith.constant 0 : index
    %1 = vector.load %arg1[%c0_1, %c0_2, %c0_3] : memref<1x72x256xf32, #tpu.memory_space<vmem>>, vector<1x72x256xf32>
    %2 = vector.shape_cast %1 : vector<1x72x256xf32> to vector<72x256xf32>
    %cst = arith.constant dense<0.000000e+00> : vector<8x256xf32>
    %3 = tpu.matmul %0, %2, %cst {dimension_numbers = #tpu.dot_dimension_numbers<[1], [0], [0], [1], [0, 0, 1, 1], [], []>} : vector<8x72xf32>, vector<72x256xf32>, vector<8x256xf32> -> vector<8x256xf32>
    %c0_4 = arith.constant 0 : index
    %c0_5 = arith.constant 0 : index
    %4 = vector.load %arg3[%c0_4, %c0_5] : memref<8x1xf32, #tpu.memory_space<vmem>>, vector<8x1xf32>
    %5 = vector.broadcast %4 : vector<8x1xf32> to vector<8x256xf32>
    %6 = arith.addf %3, %5 : vector<8x256xf32>
    %c0_6 = arith.constant 0 : index
    %c0_7 = arith.constant 0 : index
    %c0_8 = arith.constant 0 : index
    %7 = vector.load %arg4[%c0_6, %c0_7, %c0_8] : memref<1x8x256xf32, #tpu.memory_space<vmem>>, vector<1x8x256xf32>
    %8 = vector.shape_cast %7 : vector<1x8x256xf32> to vector<8x256xf32>
    %9 = arith.addf %6, %8 : vector<8x256xf32>
    %c0_9 = arith.constant 0 : index
    %c0_10 = arith.constant 0 : index
    %c0_11 = arith.constant 0 : index
    %10 = vector.load %arg5[%c0_9, %c0_10, %c0_11] : memref<1x8x256xf32, #tpu.memory_space<vmem>>, vector<1x8x256xf32>
    %11 = vector.shape_cast %10 : vector<1x8x256xf32> to vector<8x256xf32>
    %12 = vector.shape_cast %9 : vector<8x256xf32> to vector<1x8x256xf32>
    tpu.vector_store %arg5[%c0_9, %c0_10, %c0_11], %12 {strides = array<i32>} : memref<1x8x256xf32, #tpu.memory_space<vmem>>, vector<1x8x256xf32>,
    return
  }
  func.func @transform_0(%arg0: i32) -> (i32, i32, i32) {
    %c0_i32 = arith.constant 0 : i32
    %c0_i32_0 = arith.constant 0 : i32
    %c0_i32_1 = arith.constant 0 : i32
    return %arg0, %c0_i32, %c0_i32_0 : i32, i32, i32
  }
  func.func @transform_1(%arg0: i32) -> (i32, i32) {
    %c0_i32 = arith.constant 0 : i32
    %c0_i32_0 = arith.constant 0 : i32
    %c0_i32_1 = arith.constant 0 : i32
    return %c0_i32, %c0_i32_0 : i32, i32
  }
  func.func @transform_2(%arg0: i32) -> (i32, i32) {
    %c0_i32 = arith.constant 0 : i32
    %c0_i32_0 = arith.constant 0 : i32
    %c0_i32_1 = arith.constant 0 : i32
    return %c0_i32, %c0_i32_0 : i32, i32
  }
  func.func @transform_3(%arg0: i32) -> (i32, i32, i32) {
    %c0_i32 = arith.constant 0 : i32
    %c0_i32_0 = arith.constant 0 : i32
    %c0_i32_1 = arith.constant 0 : i32
    return %arg0, %c0_i32, %c0_i32_0 : i32, i32, i32
  }
  func.func @transform_4(%arg0: i32) -> (i32, i32, i32) {
    %c0_i32 = arith.constant 0 : i32
    %c0_i32_0 = arith.constant 0 : i32
    %c0_i32_1 = arith.constant 0 : i32
    return %arg0, %c0_i32, %c0_i32_0 : i32, i32, i32
  }
}

module attributes {stable_mosaic.version = 11 : i64} {
  func.func @_conv_gn_lrelu_kernel(%arg0: i32, %arg1: memref<1x72x256xf32, #tpu.memory_space<vmem>>, %arg2: memref<8x72xf32, #tpu.memory_space<vmem>>, %arg3: memref<8x1xf32, #tpu.memory_space<vmem>>, %arg4: memref<8x1xf32, #tpu.memory_space<vmem>>, %arg5: memref<8x1xf32, #tpu.memory_space<vmem>>, %arg6: memref<1x8x256xf32, #tpu.memory_space<vmem>>) attributes {dimension_semantics = [#tpu.dimension_semantics<parallel>], iteration_bounds = array<i64: 2>, scalar_prefetch = 0 : i64, scratch_operands = 0 : i64, tpu.core_type = #tpu.core_type<tc>, window_params = [{transform_indices = @transform_0, window_bounds = array<i64: 1, 72, 256>}, {pipeline_mode = #tpu.pipeline_mode<synchronous>, transform_indices = @transform_1, window_bounds = array<i64: 8, 72>}, {pipeline_mode = #tpu.pipeline_mode<synchronous>, transform_indices = @transform_2, window_bounds = array<i64: 8, 1>}, {pipeline_mode = #tpu.pipeline_mode<synchronous>, transform_indices = @transform_3, window_bounds = array<i64: 8, 1>}, {pipeline_mode = #tpu.pipeline_mode<synchronous>, transform_indices = @transform_4, window_bounds = array<i64: 8, 1>}, {transform_indices = @transform_5, window_bounds = array<i64: 1, 8, 256>}]} {
    %c0 = arith.constant 0 : index
    %c0_0 = arith.constant 0 : index
    %0 = vector.load %arg2[%c0, %c0_0] : memref<8x72xf32, #tpu.memory_space<vmem>>, vector<8x72xf32>
    %c0_1 = arith.constant 0 : index
    %c0_2 = arith.constant 0 : index
    %c0_3 = arith.constant 0 : index
    %1 = vector.load %arg1[%c0_1, %c0_2, %c0_3] : memref<1x72x256xf32, #tpu.memory_space<vmem>>, vector<1x72x256xf32>
    %2 = vector.shape_cast %1 : vector<1x72x256xf32> to vector<72x256xf32>
    %cst = arith.constant dense<0.000000e+00> : vector<8x256xf32>
    %3 = tpu.matmul %0, %2, %cst {dimension_numbers = #tpu.dot_dimension_numbers<[1], [0], [0], [1], [0, 0, 1, 1], [], []>} : vector<8x72xf32>, vector<72x256xf32>, vector<8x256xf32> -> vector<8x256xf32>
    %c0_4 = arith.constant 0 : index
    %c0_5 = arith.constant 0 : index
    %4 = vector.load %arg3[%c0_4, %c0_5] : memref<8x1xf32, #tpu.memory_space<vmem>>, vector<8x1xf32>
    %5 = vector.broadcast %4 : vector<8x1xf32> to vector<8x256xf32>
    %6 = arith.addf %3, %5 : vector<8x256xf32>
    %7 = vector.shape_cast %6 : vector<8x256xf32> to vector<1x8x256xf32>
    %cst_6 = arith.constant dense<0.000000e+00> : vector<1xf32>
    %8 = vector.multi_reduction <add>, %7, %cst_6 [1, 2] : vector<1x8x256xf32> to vector<1xf32>
    %9 = vector.shape_cast %8 : vector<1xf32> to vector<1x1x1xf32>
    %10 = vector.extract %9[0, 0, 0] : f32 from vector<1x1x1xf32>
    %11 = vector.broadcast %10 : f32 to vector<1x1xf32>
    %cst_7 = arith.constant 2.048000e+03 : f32
    %12 = vector.broadcast %cst_7 : f32 to vector<1x1xf32>
    %13 = arith.divf %11, %12 : vector<1x1xf32>
    %14 = arith.mulf %6, %6 : vector<8x256xf32>
    %15 = vector.shape_cast %14 : vector<8x256xf32> to vector<1x8x256xf32>
    %cst_8 = arith.constant dense<0.000000e+00> : vector<1xf32>
    %16 = vector.multi_reduction <add>, %15, %cst_8 [1, 2] : vector<1x8x256xf32> to vector<1xf32>
    %17 = vector.shape_cast %16 : vector<1xf32> to vector<1x1x1xf32>
    %18 = vector.extract %17[0, 0, 0] : f32 from vector<1x1x1xf32>
    %19 = vector.broadcast %18 : f32 to vector<1x1xf32>
    %cst_9 = arith.constant 2.048000e+03 : f32
    %20 = vector.broadcast %cst_9 : f32 to vector<1x1xf32>
    %21 = arith.divf %19, %20 : vector<1x1xf32>
    %22 = arith.mulf %13, %13 : vector<1x1xf32>
    %23 = arith.subf %21, %22 : vector<1x1xf32>
    %cst_10 = arith.constant 0.000000e+00 : f32
    %24 = vector.broadcast %cst_10 : f32 to vector<1x1xf32>
    %25 = arith.maximumf %23, %24 : vector<1x1xf32>
    %26 = vector.broadcast %13 : vector<1x1xf32> to vector<8x256xf32>
    %27 = arith.subf %6, %26 : vector<8x256xf32>
    %cst_11 = arith.constant 9.99999974E-6 : f32
    %28 = vector.broadcast %cst_11 : f32 to vector<1x1xf32>
    %29 = arith.addf %25, %28 : vector<1x1xf32>
    %30 = math.rsqrt %29 : vector<1x1xf32>
    %31 = vector.broadcast %30 : vector<1x1xf32> to vector<8x256xf32>
    %32 = arith.mulf %27, %31 : vector<8x256xf32>
    %c0_12 = arith.constant 0 : index
    %c0_13 = arith.constant 0 : index
    %33 = vector.load %arg4[%c0_12, %c0_13] : memref<8x1xf32, #tpu.memory_space<vmem>>, vector<8x1xf32>
    %34 = vector.broadcast %33 : vector<8x1xf32> to vector<8x256xf32>
    %35 = arith.mulf %32, %34 : vector<8x256xf32>
    %c0_14 = arith.constant 0 : index
    %c0_15 = arith.constant 0 : index
    %36 = vector.load %arg5[%c0_14, %c0_15] : memref<8x1xf32, #tpu.memory_space<vmem>>, vector<8x1xf32>
    %37 = vector.broadcast %36 : vector<8x1xf32> to vector<8x256xf32>
    %38 = arith.addf %35, %37 : vector<8x256xf32>
    %cst_16 = arith.constant 0.000000e+00 : f32
    %39 = vector.broadcast %cst_16 : f32 to vector<8x256xf32>
    %40 = arith.cmpf oge, %38, %39 : vector<8x256xf32>
    %cst_17 = arith.constant 2.000000e-01 : f32
    %41 = vector.broadcast %cst_17 : f32 to vector<8x256xf32>
    %42 = arith.mulf %41, %38 : vector<8x256xf32>
    %43 = arith.select %40, %38, %42 : vector<8x256xi1>, vector<8x256xf32>
    %c0_18 = arith.constant 0 : index
    %c0_19 = arith.constant 0 : index
    %c0_20 = arith.constant 0 : index
    %44 = vector.load %arg6[%c0_18, %c0_19, %c0_20] : memref<1x8x256xf32, #tpu.memory_space<vmem>>, vector<1x8x256xf32>
    %45 = vector.shape_cast %44 : vector<1x8x256xf32> to vector<8x256xf32>
    %46 = vector.shape_cast %43 : vector<8x256xf32> to vector<1x8x256xf32>
    tpu.vector_store %arg6[%c0_18, %c0_19, %c0_20], %46 {strides = array<i32>} : memref<1x8x256xf32, #tpu.memory_space<vmem>>, vector<1x8x256xf32>,
    return
  }
  func.func @transform_0(%arg0: i32) -> (i32, i32, i32) {
    %c0_i32 = arith.constant 0 : i32
    %c0_i32_0 = arith.constant 0 : i32
    %c0_i32_1 = arith.constant 0 : i32
    return %arg0, %c0_i32, %c0_i32_0 : i32, i32, i32
  }
  func.func @transform_1(%arg0: i32) -> (i32, i32) {
    %c0_i32 = arith.constant 0 : i32
    %c0_i32_0 = arith.constant 0 : i32
    %c0_i32_1 = arith.constant 0 : i32
    return %c0_i32, %c0_i32_0 : i32, i32
  }
  func.func @transform_2(%arg0: i32) -> (i32, i32) {
    %c0_i32 = arith.constant 0 : i32
    %c0_i32_0 = arith.constant 0 : i32
    %c0_i32_1 = arith.constant 0 : i32
    return %c0_i32, %c0_i32_0 : i32, i32
  }
  func.func @transform_3(%arg0: i32) -> (i32, i32) {
    %c0_i32 = arith.constant 0 : i32
    %c0_i32_0 = arith.constant 0 : i32
    %c0_i32_1 = arith.constant 0 : i32
    return %c0_i32, %c0_i32_0 : i32, i32
  }
  func.func @transform_4(%arg0: i32) -> (i32, i32) {
    %c0_i32 = arith.constant 0 : i32
    %c0_i32_0 = arith.constant 0 : i32
    %c0_i32_1 = arith.constant 0 : i32
    return %c0_i32, %c0_i32_0 : i32, i32
  }
  func.func @transform_5(%arg0: i32) -> (i32, i32, i32) {
    %c0_i32 = arith.constant 0 : i32
    %c0_i32_0 = arith.constant 0 : i32
    %c0_i32_1 = arith.constant 0 : i32
    return %arg0, %c0_i32, %c0_i32_0 : i32, i32, i32
  }
}

module attributes {stable_mosaic.version = 11 : i64} {
  func.func @_gn_lrelu_kernel(%arg0: i32, %arg1: memref<1x16x64xf32, #tpu.memory_space<vmem>>, %arg2: memref<16x1xf32, #tpu.memory_space<vmem>>, %arg3: memref<16x1xf32, #tpu.memory_space<vmem>>, %arg4: memref<1x16x64xf32, #tpu.memory_space<vmem>>) attributes {dimension_semantics = [#tpu.dimension_semantics<parallel>], iteration_bounds = array<i64: 2>, scalar_prefetch = 0 : i64, scratch_operands = 0 : i64, tpu.core_type = #tpu.core_type<tc>, window_params = [{transform_indices = @transform_0, window_bounds = array<i64: 1, 16, 64>}, {pipeline_mode = #tpu.pipeline_mode<synchronous>, transform_indices = @transform_1, window_bounds = array<i64: 16, 1>}, {pipeline_mode = #tpu.pipeline_mode<synchronous>, transform_indices = @transform_2, window_bounds = array<i64: 16, 1>}, {transform_indices = @transform_3, window_bounds = array<i64: 1, 16, 64>}]} {
    %c0 = arith.constant 0 : index
    %c0_0 = arith.constant 0 : index
    %c0_1 = arith.constant 0 : index
    %0 = vector.load %arg1[%c0, %c0_0, %c0_1] : memref<1x16x64xf32, #tpu.memory_space<vmem>>, vector<1x16x64xf32>
    %1 = vector.shape_cast %0 : vector<1x16x64xf32> to vector<16x64xf32>
    %2 = vector.shape_cast %1 : vector<16x64xf32> to vector<1x16x64xf32>
    %cst = arith.constant dense<0.000000e+00> : vector<1xf32>
    %3 = vector.multi_reduction <add>, %2, %cst [1, 2] : vector<1x16x64xf32> to vector<1xf32>
    %4 = vector.shape_cast %3 : vector<1xf32> to vector<1x1x1xf32>
    %5 = vector.extract %4[0, 0, 0] : f32 from vector<1x1x1xf32>
    %6 = vector.broadcast %5 : f32 to vector<1x1xf32>
    %cst_2 = arith.constant 1.024000e+03 : f32
    %7 = vector.broadcast %cst_2 : f32 to vector<1x1xf32>
    %8 = arith.divf %6, %7 : vector<1x1xf32>
    %9 = arith.mulf %1, %1 : vector<16x64xf32>
    %10 = vector.shape_cast %9 : vector<16x64xf32> to vector<1x16x64xf32>
    %cst_3 = arith.constant dense<0.000000e+00> : vector<1xf32>
    %11 = vector.multi_reduction <add>, %10, %cst_3 [1, 2] : vector<1x16x64xf32> to vector<1xf32>
    %12 = vector.shape_cast %11 : vector<1xf32> to vector<1x1x1xf32>
    %13 = vector.extract %12[0, 0, 0] : f32 from vector<1x1x1xf32>
    %14 = vector.broadcast %13 : f32 to vector<1x1xf32>
    %cst_4 = arith.constant 1.024000e+03 : f32
    %15 = vector.broadcast %cst_4 : f32 to vector<1x1xf32>
    %16 = arith.divf %14, %15 : vector<1x1xf32>
    %17 = arith.mulf %8, %8 : vector<1x1xf32>
    %18 = arith.subf %16, %17 : vector<1x1xf32>
    %cst_5 = arith.constant 0.000000e+00 : f32
    %19 = vector.broadcast %cst_5 : f32 to vector<1x1xf32>
    %20 = arith.maximumf %18, %19 : vector<1x1xf32>
    %21 = vector.broadcast %8 : vector<1x1xf32> to vector<16x64xf32>
    %22 = arith.subf %1, %21 : vector<16x64xf32>
    %cst_6 = arith.constant 9.99999974E-6 : f32
    %23 = vector.broadcast %cst_6 : f32 to vector<1x1xf32>
    %24 = arith.addf %20, %23 : vector<1x1xf32>
    %25 = math.rsqrt %24 : vector<1x1xf32>
    %26 = vector.broadcast %25 : vector<1x1xf32> to vector<16x64xf32>
    %27 = arith.mulf %22, %26 : vector<16x64xf32>
    %c0_7 = arith.constant 0 : index
    %c0_8 = arith.constant 0 : index
    %28 = vector.load %arg2[%c0_7, %c0_8] : memref<16x1xf32, #tpu.memory_space<vmem>>, vector<16x1xf32>
    %29 = vector.broadcast %28 : vector<16x1xf32> to vector<16x64xf32>
    %30 = arith.mulf %27, %29 : vector<16x64xf32>
    %c0_9 = arith.constant 0 : index
    %c0_10 = arith.constant 0 : index
    %31 = vector.load %arg3[%c0_9, %c0_10] : memref<16x1xf32, #tpu.memory_space<vmem>>, vector<16x1xf32>
    %32 = vector.broadcast %31 : vector<16x1xf32> to vector<16x64xf32>
    %33 = arith.addf %30, %32 : vector<16x64xf32>
    %cst_11 = arith.constant 0.000000e+00 : f32
    %34 = vector.broadcast %cst_11 : f32 to vector<16x64xf32>
    %35 = arith.cmpf oge, %33, %34 : vector<16x64xf32>
    %cst_12 = arith.constant 2.000000e-01 : f32
    %36 = vector.broadcast %cst_12 : f32 to vector<16x64xf32>
    %37 = arith.mulf %36, %33 : vector<16x64xf32>
    %38 = arith.select %35, %33, %37 : vector<16x64xi1>, vector<16x64xf32>
    %c0_13 = arith.constant 0 : index
    %c0_14 = arith.constant 0 : index
    %c0_15 = arith.constant 0 : index
    %39 = vector.load %arg4[%c0_13, %c0_14, %c0_15] : memref<1x16x64xf32, #tpu.memory_space<vmem>>, vector<1x16x64xf32>
    %40 = vector.shape_cast %39 : vector<1x16x64xf32> to vector<16x64xf32>
    %41 = vector.shape_cast %38 : vector<16x64xf32> to vector<1x16x64xf32>
    tpu.vector_store %arg4[%c0_13, %c0_14, %c0_15], %41 {strides = array<i32>} : memref<1x16x64xf32, #tpu.memory_space<vmem>>, vector<1x16x64xf32>,
    return
  }
  func.func @transform_0(%arg0: i32) -> (i32, i32, i32) {
    %c0_i32 = arith.constant 0 : i32
    %c0_i32_0 = arith.constant 0 : i32
    %c0_i32_1 = arith.constant 0 : i32
    return %arg0, %c0_i32, %c0_i32_0 : i32, i32, i32
  }
  func.func @transform_1(%arg0: i32) -> (i32, i32) {
    %c0_i32 = arith.constant 0 : i32
    %c0_i32_0 = arith.constant 0 : i32
    %c0_i32_1 = arith.constant 0 : i32
    return %c0_i32, %c0_i32_0 : i32, i32
  }
  func.func @transform_2(%arg0: i32) -> (i32, i32) {
    %c0_i32 = arith.constant 0 : i32
    %c0_i32_0 = arith.constant 0 : i32
    %c0_i32_1 = arith.constant 0 : i32
    return %c0_i32, %c0_i32_0 : i32, i32
  }
  func.func @transform_3(%arg0: i32) -> (i32, i32, i32) {
    %c0_i32 = arith.constant 0 : i32
    %c0_i32_0 = arith.constant 0 : i32
    %c0_i32_1 = arith.constant 0 : i32
    return %arg0, %c0_i32, %c0_i32_0 : i32, i32, i32
  }
}

module attributes {stable_mosaic.version = 11 : i64} {
  func.func @_conv_kernel(%arg0: i32, %arg1: memref<1x72x64xf32, #tpu.memory_space<vmem>>, %arg2: memref<16x72xf32, #tpu.memory_space<vmem>>, %arg3: memref<16x1xf32, #tpu.memory_space<vmem>>, %arg4: memref<1x16x64xf32, #tpu.memory_space<vmem>>) attributes {dimension_semantics = [#tpu.dimension_semantics<parallel>], iteration_bounds = array<i64: 2>, scalar_prefetch = 0 : i64, scratch_operands = 0 : i64, tpu.core_type = #tpu.core_type<tc>, window_params = [{transform_indices = @transform_0, window_bounds = array<i64: 1, 72, 64>}, {pipeline_mode = #tpu.pipeline_mode<synchronous>, transform_indices = @transform_1, window_bounds = array<i64: 16, 72>}, {pipeline_mode = #tpu.pipeline_mode<synchronous>, transform_indices = @transform_2, window_bounds = array<i64: 16, 1>}, {transform_indices = @transform_3, window_bounds = array<i64: 1, 16, 64>}]} {
    %c0 = arith.constant 0 : index
    %c0_0 = arith.constant 0 : index
    %0 = vector.load %arg2[%c0, %c0_0] : memref<16x72xf32, #tpu.memory_space<vmem>>, vector<16x72xf32>
    %c0_1 = arith.constant 0 : index
    %c0_2 = arith.constant 0 : index
    %c0_3 = arith.constant 0 : index
    %1 = vector.load %arg1[%c0_1, %c0_2, %c0_3] : memref<1x72x64xf32, #tpu.memory_space<vmem>>, vector<1x72x64xf32>
    %2 = vector.shape_cast %1 : vector<1x72x64xf32> to vector<72x64xf32>
    %cst = arith.constant dense<0.000000e+00> : vector<16x64xf32>
    %3 = tpu.matmul %0, %2, %cst {dimension_numbers = #tpu.dot_dimension_numbers<[1], [0], [0], [1], [0, 0, 1, 1], [], []>} : vector<16x72xf32>, vector<72x64xf32>, vector<16x64xf32> -> vector<16x64xf32>
    %c0_4 = arith.constant 0 : index
    %c0_5 = arith.constant 0 : index
    %4 = vector.load %arg3[%c0_4, %c0_5] : memref<16x1xf32, #tpu.memory_space<vmem>>, vector<16x1xf32>
    %5 = vector.broadcast %4 : vector<16x1xf32> to vector<16x64xf32>
    %6 = arith.addf %3, %5 : vector<16x64xf32>
    %c0_6 = arith.constant 0 : index
    %c0_7 = arith.constant 0 : index
    %c0_8 = arith.constant 0 : index
    %7 = vector.load %arg4[%c0_6, %c0_7, %c0_8] : memref<1x16x64xf32, #tpu.memory_space<vmem>>, vector<1x16x64xf32>
    %8 = vector.shape_cast %7 : vector<1x16x64xf32> to vector<16x64xf32>
    %9 = vector.shape_cast %6 : vector<16x64xf32> to vector<1x16x64xf32>
    tpu.vector_store %arg4[%c0_6, %c0_7, %c0_8], %9 {strides = array<i32>} : memref<1x16x64xf32, #tpu.memory_space<vmem>>, vector<1x16x64xf32>,
    return
  }
  func.func @transform_0(%arg0: i32) -> (i32, i32, i32) {
    %c0_i32 = arith.constant 0 : i32
    %c0_i32_0 = arith.constant 0 : i32
    %c0_i32_1 = arith.constant 0 : i32
    return %arg0, %c0_i32, %c0_i32_0 : i32, i32, i32
  }
  func.func @transform_1(%arg0: i32) -> (i32, i32) {
    %c0_i32 = arith.constant 0 : i32
    %c0_i32_0 = arith.constant 0 : i32
    %c0_i32_1 = arith.constant 0 : i32
    return %c0_i32, %c0_i32_0 : i32, i32
  }
  func.func @transform_2(%arg0: i32) -> (i32, i32) {
    %c0_i32 = arith.constant 0 : i32
    %c0_i32_0 = arith.constant 0 : i32
    %c0_i32_1 = arith.constant 0 : i32
    return %c0_i32, %c0_i32_0 : i32, i32
  }
  func.func @transform_3(%arg0: i32) -> (i32, i32, i32) {
    %c0_i32 = arith.constant 0 : i32
    %c0_i32_0 = arith.constant 0 : i32
    %c0_i32_1 = arith.constant 0 : i32
    return %arg0, %c0_i32, %c0_i32_0 : i32, i32, i32
  }
}

module attributes {stable_mosaic.version = 11 : i64} {
  func.func @_conv_gn_lrelu_kernel(%arg0: i32, %arg1: memref<1x144x64xf32, #tpu.memory_space<vmem>>, %arg2: memref<16x144xf32, #tpu.memory_space<vmem>>, %arg3: memref<16x1xf32, #tpu.memory_space<vmem>>, %arg4: memref<16x1xf32, #tpu.memory_space<vmem>>, %arg5: memref<16x1xf32, #tpu.memory_space<vmem>>, %arg6: memref<1x16x64xf32, #tpu.memory_space<vmem>>) attributes {dimension_semantics = [#tpu.dimension_semantics<parallel>], iteration_bounds = array<i64: 2>, scalar_prefetch = 0 : i64, scratch_operands = 0 : i64, tpu.core_type = #tpu.core_type<tc>, window_params = [{transform_indices = @transform_0, window_bounds = array<i64: 1, 144, 64>}, {pipeline_mode = #tpu.pipeline_mode<synchronous>, transform_indices = @transform_1, window_bounds = array<i64: 16, 144>}, {pipeline_mode = #tpu.pipeline_mode<synchronous>, transform_indices = @transform_2, window_bounds = array<i64: 16, 1>}, {pipeline_mode = #tpu.pipeline_mode<synchronous>, transform_indices = @transform_3, window_bounds = array<i64: 16, 1>}, {pipeline_mode = #tpu.pipeline_mode<synchronous>, transform_indices = @transform_4, window_bounds = array<i64: 16, 1>}, {transform_indices = @transform_5, window_bounds = array<i64: 1, 16, 64>}]} {
    %c0 = arith.constant 0 : index
    %c0_0 = arith.constant 0 : index
    %0 = vector.load %arg2[%c0, %c0_0] : memref<16x144xf32, #tpu.memory_space<vmem>>, vector<16x144xf32>
    %c0_1 = arith.constant 0 : index
    %c0_2 = arith.constant 0 : index
    %c0_3 = arith.constant 0 : index
    %1 = vector.load %arg1[%c0_1, %c0_2, %c0_3] : memref<1x144x64xf32, #tpu.memory_space<vmem>>, vector<1x144x64xf32>
    %2 = vector.shape_cast %1 : vector<1x144x64xf32> to vector<144x64xf32>
    %cst = arith.constant dense<0.000000e+00> : vector<16x64xf32>
    %3 = tpu.matmul %0, %2, %cst {dimension_numbers = #tpu.dot_dimension_numbers<[1], [0], [0], [1], [0, 0, 1, 1], [], []>} : vector<16x144xf32>, vector<144x64xf32>, vector<16x64xf32> -> vector<16x64xf32>
    %c0_4 = arith.constant 0 : index
    %c0_5 = arith.constant 0 : index
    %4 = vector.load %arg3[%c0_4, %c0_5] : memref<16x1xf32, #tpu.memory_space<vmem>>, vector<16x1xf32>
    %5 = vector.broadcast %4 : vector<16x1xf32> to vector<16x64xf32>
    %6 = arith.addf %3, %5 : vector<16x64xf32>
    %7 = vector.shape_cast %6 : vector<16x64xf32> to vector<1x16x64xf32>
    %cst_6 = arith.constant dense<0.000000e+00> : vector<1xf32>
    %8 = vector.multi_reduction <add>, %7, %cst_6 [1, 2] : vector<1x16x64xf32> to vector<1xf32>
    %9 = vector.shape_cast %8 : vector<1xf32> to vector<1x1x1xf32>
    %10 = vector.extract %9[0, 0, 0] : f32 from vector<1x1x1xf32>
    %11 = vector.broadcast %10 : f32 to vector<1x1xf32>
    %cst_7 = arith.constant 1.024000e+03 : f32
    %12 = vector.broadcast %cst_7 : f32 to vector<1x1xf32>
    %13 = arith.divf %11, %12 : vector<1x1xf32>
    %14 = arith.mulf %6, %6 : vector<16x64xf32>
    %15 = vector.shape_cast %14 : vector<16x64xf32> to vector<1x16x64xf32>
    %cst_8 = arith.constant dense<0.000000e+00> : vector<1xf32>
    %16 = vector.multi_reduction <add>, %15, %cst_8 [1, 2] : vector<1x16x64xf32> to vector<1xf32>
    %17 = vector.shape_cast %16 : vector<1xf32> to vector<1x1x1xf32>
    %18 = vector.extract %17[0, 0, 0] : f32 from vector<1x1x1xf32>
    %19 = vector.broadcast %18 : f32 to vector<1x1xf32>
    %cst_9 = arith.constant 1.024000e+03 : f32
    %20 = vector.broadcast %cst_9 : f32 to vector<1x1xf32>
    %21 = arith.divf %19, %20 : vector<1x1xf32>
    %22 = arith.mulf %13, %13 : vector<1x1xf32>
    %23 = arith.subf %21, %22 : vector<1x1xf32>
    %cst_10 = arith.constant 0.000000e+00 : f32
    %24 = vector.broadcast %cst_10 : f32 to vector<1x1xf32>
    %25 = arith.maximumf %23, %24 : vector<1x1xf32>
    %26 = vector.broadcast %13 : vector<1x1xf32> to vector<16x64xf32>
    %27 = arith.subf %6, %26 : vector<16x64xf32>
    %cst_11 = arith.constant 9.99999974E-6 : f32
    %28 = vector.broadcast %cst_11 : f32 to vector<1x1xf32>
    %29 = arith.addf %25, %28 : vector<1x1xf32>
    %30 = math.rsqrt %29 : vector<1x1xf32>
    %31 = vector.broadcast %30 : vector<1x1xf32> to vector<16x64xf32>
    %32 = arith.mulf %27, %31 : vector<16x64xf32>
    %c0_12 = arith.constant 0 : index
    %c0_13 = arith.constant 0 : index
    %33 = vector.load %arg4[%c0_12, %c0_13] : memref<16x1xf32, #tpu.memory_space<vmem>>, vector<16x1xf32>
    %34 = vector.broadcast %33 : vector<16x1xf32> to vector<16x64xf32>
    %35 = arith.mulf %32, %34 : vector<16x64xf32>
    %c0_14 = arith.constant 0 : index
    %c0_15 = arith.constant 0 : index
    %36 = vector.load %arg5[%c0_14, %c0_15] : memref<16x1xf32, #tpu.memory_space<vmem>>, vector<16x1xf32>
    %37 = vector.broadcast %36 : vector<16x1xf32> to vector<16x64xf32>
    %38 = arith.addf %35, %37 : vector<16x64xf32>
    %cst_16 = arith.constant 0.000000e+00 : f32
    %39 = vector.broadcast %cst_16 : f32 to vector<16x64xf32>
    %40 = arith.cmpf oge, %38, %39 : vector<16x64xf32>
    %cst_17 = arith.constant 2.000000e-01 : f32
    %41 = vector.broadcast %cst_17 : f32 to vector<16x64xf32>
    %42 = arith.mulf %41, %38 : vector<16x64xf32>
    %43 = arith.select %40, %38, %42 : vector<16x64xi1>, vector<16x64xf32>
    %c0_18 = arith.constant 0 : index
    %c0_19 = arith.constant 0 : index
    %c0_20 = arith.constant 0 : index
    %44 = vector.load %arg6[%c0_18, %c0_19, %c0_20] : memref<1x16x64xf32, #tpu.memory_space<vmem>>, vector<1x16x64xf32>
    %45 = vector.shape_cast %44 : vector<1x16x64xf32> to vector<16x64xf32>
    %46 = vector.shape_cast %43 : vector<16x64xf32> to vector<1x16x64xf32>
    tpu.vector_store %arg6[%c0_18, %c0_19, %c0_20], %46 {strides = array<i32>} : memref<1x16x64xf32, #tpu.memory_space<vmem>>, vector<1x16x64xf32>,
    return
  }
  func.func @transform_0(%arg0: i32) -> (i32, i32, i32) {
    %c0_i32 = arith.constant 0 : i32
    %c0_i32_0 = arith.constant 0 : i32
    %c0_i32_1 = arith.constant 0 : i32
    return %arg0, %c0_i32, %c0_i32_0 : i32, i32, i32
  }
  func.func @transform_1(%arg0: i32) -> (i32, i32) {
    %c0_i32 = arith.constant 0 : i32
    %c0_i32_0 = arith.constant 0 : i32
    %c0_i32_1 = arith.constant 0 : i32
    return %c0_i32, %c0_i32_0 : i32, i32
  }
  func.func @transform_2(%arg0: i32) -> (i32, i32) {
    %c0_i32 = arith.constant 0 : i32
    %c0_i32_0 = arith.constant 0 : i32
    %c0_i32_1 = arith.constant 0 : i32
    return %c0_i32, %c0_i32_0 : i32, i32
  }
  func.func @transform_3(%arg0: i32) -> (i32, i32) {
    %c0_i32 = arith.constant 0 : i32
    %c0_i32_0 = arith.constant 0 : i32
    %c0_i32_1 = arith.constant 0 : i32
    return %c0_i32, %c0_i32_0 : i32, i32
  }
  func.func @transform_4(%arg0: i32) -> (i32, i32) {
    %c0_i32 = arith.constant 0 : i32
    %c0_i32_0 = arith.constant 0 : i32
    %c0_i32_1 = arith.constant 0 : i32
    return %c0_i32, %c0_i32_0 : i32, i32
  }
  func.func @transform_5(%arg0: i32) -> (i32, i32, i32) {
    %c0_i32 = arith.constant 0 : i32
    %c0_i32_0 = arith.constant 0 : i32
    %c0_i32_1 = arith.constant 0 : i32
    return %arg0, %c0_i32, %c0_i32_0 : i32, i32, i32
  }
}

module attributes {stable_mosaic.version = 11 : i64} {
  func.func @_conv_residual_kernel(%arg0: i32, %arg1: memref<1x144x64xf32, #tpu.memory_space<vmem>>, %arg2: memref<16x144xf32, #tpu.memory_space<vmem>>, %arg3: memref<16x1xf32, #tpu.memory_space<vmem>>, %arg4: memref<1x16x64xf32, #tpu.memory_space<vmem>>, %arg5: memref<1x16x64xf32, #tpu.memory_space<vmem>>) attributes {dimension_semantics = [#tpu.dimension_semantics<parallel>], iteration_bounds = array<i64: 2>, scalar_prefetch = 0 : i64, scratch_operands = 0 : i64, tpu.core_type = #tpu.core_type<tc>, window_params = [{transform_indices = @transform_0, window_bounds = array<i64: 1, 144, 64>}, {pipeline_mode = #tpu.pipeline_mode<synchronous>, transform_indices = @transform_1, window_bounds = array<i64: 16, 144>}, {pipeline_mode = #tpu.pipeline_mode<synchronous>, transform_indices = @transform_2, window_bounds = array<i64: 16, 1>}, {transform_indices = @transform_3, window_bounds = array<i64: 1, 16, 64>}, {transform_indices = @transform_4, window_bounds = array<i64: 1, 16, 64>}]} {
    %c0 = arith.constant 0 : index
    %c0_0 = arith.constant 0 : index
    %0 = vector.load %arg2[%c0, %c0_0] : memref<16x144xf32, #tpu.memory_space<vmem>>, vector<16x144xf32>
    %c0_1 = arith.constant 0 : index
    %c0_2 = arith.constant 0 : index
    %c0_3 = arith.constant 0 : index
    %1 = vector.load %arg1[%c0_1, %c0_2, %c0_3] : memref<1x144x64xf32, #tpu.memory_space<vmem>>, vector<1x144x64xf32>
    %2 = vector.shape_cast %1 : vector<1x144x64xf32> to vector<144x64xf32>
    %cst = arith.constant dense<0.000000e+00> : vector<16x64xf32>
    %3 = tpu.matmul %0, %2, %cst {dimension_numbers = #tpu.dot_dimension_numbers<[1], [0], [0], [1], [0, 0, 1, 1], [], []>} : vector<16x144xf32>, vector<144x64xf32>, vector<16x64xf32> -> vector<16x64xf32>
    %c0_4 = arith.constant 0 : index
    %c0_5 = arith.constant 0 : index
    %4 = vector.load %arg3[%c0_4, %c0_5] : memref<16x1xf32, #tpu.memory_space<vmem>>, vector<16x1xf32>
    %5 = vector.broadcast %4 : vector<16x1xf32> to vector<16x64xf32>
    %6 = arith.addf %3, %5 : vector<16x64xf32>
    %c0_6 = arith.constant 0 : index
    %c0_7 = arith.constant 0 : index
    %c0_8 = arith.constant 0 : index
    %7 = vector.load %arg4[%c0_6, %c0_7, %c0_8] : memref<1x16x64xf32, #tpu.memory_space<vmem>>, vector<1x16x64xf32>
    %8 = vector.shape_cast %7 : vector<1x16x64xf32> to vector<16x64xf32>
    %9 = arith.addf %6, %8 : vector<16x64xf32>
    %c0_9 = arith.constant 0 : index
    %c0_10 = arith.constant 0 : index
    %c0_11 = arith.constant 0 : index
    %10 = vector.load %arg5[%c0_9, %c0_10, %c0_11] : memref<1x16x64xf32, #tpu.memory_space<vmem>>, vector<1x16x64xf32>
    %11 = vector.shape_cast %10 : vector<1x16x64xf32> to vector<16x64xf32>
    %12 = vector.shape_cast %9 : vector<16x64xf32> to vector<1x16x64xf32>
    tpu.vector_store %arg5[%c0_9, %c0_10, %c0_11], %12 {strides = array<i32>} : memref<1x16x64xf32, #tpu.memory_space<vmem>>, vector<1x16x64xf32>,
    return
  }
  func.func @transform_0(%arg0: i32) -> (i32, i32, i32) {
    %c0_i32 = arith.constant 0 : i32
    %c0_i32_0 = arith.constant 0 : i32
    %c0_i32_1 = arith.constant 0 : i32
    return %arg0, %c0_i32, %c0_i32_0 : i32, i32, i32
  }
  func.func @transform_1(%arg0: i32) -> (i32, i32) {
    %c0_i32 = arith.constant 0 : i32
    %c0_i32_0 = arith.constant 0 : i32
    %c0_i32_1 = arith.constant 0 : i32
    return %c0_i32, %c0_i32_0 : i32, i32
  }
  func.func @transform_2(%arg0: i32) -> (i32, i32) {
    %c0_i32 = arith.constant 0 : i32
    %c0_i32_0 = arith.constant 0 : i32
    %c0_i32_1 = arith.constant 0 : i32
    return %c0_i32, %c0_i32_0 : i32, i32
  }
  func.func @transform_3(%arg0: i32) -> (i32, i32, i32) {
    %c0_i32 = arith.constant 0 : i32
    %c0_i32_0 = arith.constant 0 : i32
    %c0_i32_1 = arith.constant 0 : i32
    return %arg0, %c0_i32, %c0_i32_0 : i32, i32, i32
  }
  func.func @transform_4(%arg0: i32) -> (i32, i32, i32) {
    %c0_i32 = arith.constant 0 : i32
    %c0_i32_0 = arith.constant 0 : i32
    %c0_i32_1 = arith.constant 0 : i32
    return %arg0, %c0_i32, %c0_i32_0 : i32, i32, i32
  }
}

module attributes {stable_mosaic.version = 11 : i64} {
  func.func @_gn_lrelu_kernel(%arg0: i32, %arg1: memref<1x32x16xf32, #tpu.memory_space<vmem>>, %arg2: memref<32x1xf32, #tpu.memory_space<vmem>>, %arg3: memref<32x1xf32, #tpu.memory_space<vmem>>, %arg4: memref<1x32x16xf32, #tpu.memory_space<vmem>>) attributes {dimension_semantics = [#tpu.dimension_semantics<parallel>], iteration_bounds = array<i64: 2>, scalar_prefetch = 0 : i64, scratch_operands = 0 : i64, tpu.core_type = #tpu.core_type<tc>, window_params = [{transform_indices = @transform_0, window_bounds = array<i64: 1, 32, 16>}, {pipeline_mode = #tpu.pipeline_mode<synchronous>, transform_indices = @transform_1, window_bounds = array<i64: 32, 1>}, {pipeline_mode = #tpu.pipeline_mode<synchronous>, transform_indices = @transform_2, window_bounds = array<i64: 32, 1>}, {transform_indices = @transform_3, window_bounds = array<i64: 1, 32, 16>}]} {
    %c0 = arith.constant 0 : index
    %c0_0 = arith.constant 0 : index
    %c0_1 = arith.constant 0 : index
    %0 = vector.load %arg1[%c0, %c0_0, %c0_1] : memref<1x32x16xf32, #tpu.memory_space<vmem>>, vector<1x32x16xf32>
    %1 = vector.shape_cast %0 : vector<1x32x16xf32> to vector<32x16xf32>
    %2 = vector.shape_cast %1 : vector<32x16xf32> to vector<1x32x16xf32>
    %cst = arith.constant dense<0.000000e+00> : vector<1xf32>
    %3 = vector.multi_reduction <add>, %2, %cst [1, 2] : vector<1x32x16xf32> to vector<1xf32>
    %4 = vector.shape_cast %3 : vector<1xf32> to vector<1x1x1xf32>
    %5 = vector.extract %4[0, 0, 0] : f32 from vector<1x1x1xf32>
    %6 = vector.broadcast %5 : f32 to vector<1x1xf32>
    %cst_2 = arith.constant 5.120000e+02 : f32
    %7 = vector.broadcast %cst_2 : f32 to vector<1x1xf32>
    %8 = arith.divf %6, %7 : vector<1x1xf32>
    %9 = arith.mulf %1, %1 : vector<32x16xf32>
    %10 = vector.shape_cast %9 : vector<32x16xf32> to vector<1x32x16xf32>
    %cst_3 = arith.constant dense<0.000000e+00> : vector<1xf32>
    %11 = vector.multi_reduction <add>, %10, %cst_3 [1, 2] : vector<1x32x16xf32> to vector<1xf32>
    %12 = vector.shape_cast %11 : vector<1xf32> to vector<1x1x1xf32>
    %13 = vector.extract %12[0, 0, 0] : f32 from vector<1x1x1xf32>
    %14 = vector.broadcast %13 : f32 to vector<1x1xf32>
    %cst_4 = arith.constant 5.120000e+02 : f32
    %15 = vector.broadcast %cst_4 : f32 to vector<1x1xf32>
    %16 = arith.divf %14, %15 : vector<1x1xf32>
    %17 = arith.mulf %8, %8 : vector<1x1xf32>
    %18 = arith.subf %16, %17 : vector<1x1xf32>
    %cst_5 = arith.constant 0.000000e+00 : f32
    %19 = vector.broadcast %cst_5 : f32 to vector<1x1xf32>
    %20 = arith.maximumf %18, %19 : vector<1x1xf32>
    %21 = vector.broadcast %8 : vector<1x1xf32> to vector<32x16xf32>
    %22 = arith.subf %1, %21 : vector<32x16xf32>
    %cst_6 = arith.constant 9.99999974E-6 : f32
    %23 = vector.broadcast %cst_6 : f32 to vector<1x1xf32>
    %24 = arith.addf %20, %23 : vector<1x1xf32>
    %25 = math.rsqrt %24 : vector<1x1xf32>
    %26 = vector.broadcast %25 : vector<1x1xf32> to vector<32x16xf32>
    %27 = arith.mulf %22, %26 : vector<32x16xf32>
    %c0_7 = arith.constant 0 : index
    %c0_8 = arith.constant 0 : index
    %28 = vector.load %arg2[%c0_7, %c0_8] : memref<32x1xf32, #tpu.memory_space<vmem>>, vector<32x1xf32>
    %29 = vector.broadcast %28 : vector<32x1xf32> to vector<32x16xf32>
    %30 = arith.mulf %27, %29 : vector<32x16xf32>
    %c0_9 = arith.constant 0 : index
    %c0_10 = arith.constant 0 : index
    %31 = vector.load %arg3[%c0_9, %c0_10] : memref<32x1xf32, #tpu.memory_space<vmem>>, vector<32x1xf32>
    %32 = vector.broadcast %31 : vector<32x1xf32> to vector<32x16xf32>
    %33 = arith.addf %30, %32 : vector<32x16xf32>
    %cst_11 = arith.constant 0.000000e+00 : f32
    %34 = vector.broadcast %cst_11 : f32 to vector<32x16xf32>
    %35 = arith.cmpf oge, %33, %34 : vector<32x16xf32>
    %cst_12 = arith.constant 2.000000e-01 : f32
    %36 = vector.broadcast %cst_12 : f32 to vector<32x16xf32>
    %37 = arith.mulf %36, %33 : vector<32x16xf32>
    %38 = arith.select %35, %33, %37 : vector<32x16xi1>, vector<32x16xf32>
    %c0_13 = arith.constant 0 : index
    %c0_14 = arith.constant 0 : index
    %c0_15 = arith.constant 0 : index
    %39 = vector.load %arg4[%c0_13, %c0_14, %c0_15] : memref<1x32x16xf32, #tpu.memory_space<vmem>>, vector<1x32x16xf32>
    %40 = vector.shape_cast %39 : vector<1x32x16xf32> to vector<32x16xf32>
    %41 = vector.shape_cast %38 : vector<32x16xf32> to vector<1x32x16xf32>
    tpu.vector_store %arg4[%c0_13, %c0_14, %c0_15], %41 {strides = array<i32>} : memref<1x32x16xf32, #tpu.memory_space<vmem>>, vector<1x32x16xf32>,
    return
  }
  func.func @transform_0(%arg0: i32) -> (i32, i32, i32) {
    %c0_i32 = arith.constant 0 : i32
    %c0_i32_0 = arith.constant 0 : i32
    %c0_i32_1 = arith.constant 0 : i32
    return %arg0, %c0_i32, %c0_i32_0 : i32, i32, i32
  }
  func.func @transform_1(%arg0: i32) -> (i32, i32) {
    %c0_i32 = arith.constant 0 : i32
    %c0_i32_0 = arith.constant 0 : i32
    %c0_i32_1 = arith.constant 0 : i32
    return %c0_i32, %c0_i32_0 : i32, i32
  }
  func.func @transform_2(%arg0: i32) -> (i32, i32) {
    %c0_i32 = arith.constant 0 : i32
    %c0_i32_0 = arith.constant 0 : i32
    %c0_i32_1 = arith.constant 0 : i32
    return %c0_i32, %c0_i32_0 : i32, i32
  }
  func.func @transform_3(%arg0: i32) -> (i32, i32, i32) {
    %c0_i32 = arith.constant 0 : i32
    %c0_i32_0 = arith.constant 0 : i32
    %c0_i32_1 = arith.constant 0 : i32
    return %arg0, %c0_i32, %c0_i32_0 : i32, i32, i32
  }
}

module attributes {stable_mosaic.version = 11 : i64} {
  func.func @_conv_kernel(%arg0: i32, %arg1: memref<1x144x16xf32, #tpu.memory_space<vmem>>, %arg2: memref<32x144xf32, #tpu.memory_space<vmem>>, %arg3: memref<32x1xf32, #tpu.memory_space<vmem>>, %arg4: memref<1x32x16xf32, #tpu.memory_space<vmem>>) attributes {dimension_semantics = [#tpu.dimension_semantics<parallel>], iteration_bounds = array<i64: 2>, scalar_prefetch = 0 : i64, scratch_operands = 0 : i64, tpu.core_type = #tpu.core_type<tc>, window_params = [{transform_indices = @transform_0, window_bounds = array<i64: 1, 144, 16>}, {pipeline_mode = #tpu.pipeline_mode<synchronous>, transform_indices = @transform_1, window_bounds = array<i64: 32, 144>}, {pipeline_mode = #tpu.pipeline_mode<synchronous>, transform_indices = @transform_2, window_bounds = array<i64: 32, 1>}, {transform_indices = @transform_3, window_bounds = array<i64: 1, 32, 16>}]} {
    %c0 = arith.constant 0 : index
    %c0_0 = arith.constant 0 : index
    %0 = vector.load %arg2[%c0, %c0_0] : memref<32x144xf32, #tpu.memory_space<vmem>>, vector<32x144xf32>
    %c0_1 = arith.constant 0 : index
    %c0_2 = arith.constant 0 : index
    %c0_3 = arith.constant 0 : index
    %1 = vector.load %arg1[%c0_1, %c0_2, %c0_3] : memref<1x144x16xf32, #tpu.memory_space<vmem>>, vector<1x144x16xf32>
    %2 = vector.shape_cast %1 : vector<1x144x16xf32> to vector<144x16xf32>
    %cst = arith.constant dense<0.000000e+00> : vector<32x16xf32>
    %3 = tpu.matmul %0, %2, %cst {dimension_numbers = #tpu.dot_dimension_numbers<[1], [0], [0], [1], [0, 0, 1, 1], [], []>} : vector<32x144xf32>, vector<144x16xf32>, vector<32x16xf32> -> vector<32x16xf32>
    %c0_4 = arith.constant 0 : index
    %c0_5 = arith.constant 0 : index
    %4 = vector.load %arg3[%c0_4, %c0_5] : memref<32x1xf32, #tpu.memory_space<vmem>>, vector<32x1xf32>
    %5 = vector.broadcast %4 : vector<32x1xf32> to vector<32x16xf32>
    %6 = arith.addf %3, %5 : vector<32x16xf32>
    %c0_6 = arith.constant 0 : index
    %c0_7 = arith.constant 0 : index
    %c0_8 = arith.constant 0 : index
    %7 = vector.load %arg4[%c0_6, %c0_7, %c0_8] : memref<1x32x16xf32, #tpu.memory_space<vmem>>, vector<1x32x16xf32>
    %8 = vector.shape_cast %7 : vector<1x32x16xf32> to vector<32x16xf32>
    %9 = vector.shape_cast %6 : vector<32x16xf32> to vector<1x32x16xf32>
    tpu.vector_store %arg4[%c0_6, %c0_7, %c0_8], %9 {strides = array<i32>} : memref<1x32x16xf32, #tpu.memory_space<vmem>>, vector<1x32x16xf32>,
    return
  }
  func.func @transform_0(%arg0: i32) -> (i32, i32, i32) {
    %c0_i32 = arith.constant 0 : i32
    %c0_i32_0 = arith.constant 0 : i32
    %c0_i32_1 = arith.constant 0 : i32
    return %arg0, %c0_i32, %c0_i32_0 : i32, i32, i32
  }
  func.func @transform_1(%arg0: i32) -> (i32, i32) {
    %c0_i32 = arith.constant 0 : i32
    %c0_i32_0 = arith.constant 0 : i32
    %c0_i32_1 = arith.constant 0 : i32
    return %c0_i32, %c0_i32_0 : i32, i32
  }
  func.func @transform_2(%arg0: i32) -> (i32, i32) {
    %c0_i32 = arith.constant 0 : i32
    %c0_i32_0 = arith.constant 0 : i32
    %c0_i32_1 = arith.constant 0 : i32
    return %c0_i32, %c0_i32_0 : i32, i32
  }
  func.func @transform_3(%arg0: i32) -> (i32, i32, i32) {
    %c0_i32 = arith.constant 0 : i32
    %c0_i32_0 = arith.constant 0 : i32
    %c0_i32_1 = arith.constant 0 : i32
    return %arg0, %c0_i32, %c0_i32_0 : i32, i32, i32
  }
}

module attributes {stable_mosaic.version = 11 : i64} {
  func.func @_conv_gn_lrelu_kernel(%arg0: i32, %arg1: memref<1x288x16xf32, #tpu.memory_space<vmem>>, %arg2: memref<32x288xf32, #tpu.memory_space<vmem>>, %arg3: memref<32x1xf32, #tpu.memory_space<vmem>>, %arg4: memref<32x1xf32, #tpu.memory_space<vmem>>, %arg5: memref<32x1xf32, #tpu.memory_space<vmem>>, %arg6: memref<1x32x16xf32, #tpu.memory_space<vmem>>) attributes {dimension_semantics = [#tpu.dimension_semantics<parallel>], iteration_bounds = array<i64: 2>, scalar_prefetch = 0 : i64, scratch_operands = 0 : i64, tpu.core_type = #tpu.core_type<tc>, window_params = [{transform_indices = @transform_0, window_bounds = array<i64: 1, 288, 16>}, {pipeline_mode = #tpu.pipeline_mode<synchronous>, transform_indices = @transform_1, window_bounds = array<i64: 32, 288>}, {pipeline_mode = #tpu.pipeline_mode<synchronous>, transform_indices = @transform_2, window_bounds = array<i64: 32, 1>}, {pipeline_mode = #tpu.pipeline_mode<synchronous>, transform_indices = @transform_3, window_bounds = array<i64: 32, 1>}, {pipeline_mode = #tpu.pipeline_mode<synchronous>, transform_indices = @transform_4, window_bounds = array<i64: 32, 1>}, {transform_indices = @transform_5, window_bounds = array<i64: 1, 32, 16>}]} {
    %c0 = arith.constant 0 : index
    %c0_0 = arith.constant 0 : index
    %0 = vector.load %arg2[%c0, %c0_0] : memref<32x288xf32, #tpu.memory_space<vmem>>, vector<32x288xf32>
    %c0_1 = arith.constant 0 : index
    %c0_2 = arith.constant 0 : index
    %c0_3 = arith.constant 0 : index
    %1 = vector.load %arg1[%c0_1, %c0_2, %c0_3] : memref<1x288x16xf32, #tpu.memory_space<vmem>>, vector<1x288x16xf32>
    %2 = vector.shape_cast %1 : vector<1x288x16xf32> to vector<288x16xf32>
    %cst = arith.constant dense<0.000000e+00> : vector<32x16xf32>
    %3 = tpu.matmul %0, %2, %cst {dimension_numbers = #tpu.dot_dimension_numbers<[1], [0], [0], [1], [0, 0, 1, 1], [], []>} : vector<32x288xf32>, vector<288x16xf32>, vector<32x16xf32> -> vector<32x16xf32>
    %c0_4 = arith.constant 0 : index
    %c0_5 = arith.constant 0 : index
    %4 = vector.load %arg3[%c0_4, %c0_5] : memref<32x1xf32, #tpu.memory_space<vmem>>, vector<32x1xf32>
    %5 = vector.broadcast %4 : vector<32x1xf32> to vector<32x16xf32>
    %6 = arith.addf %3, %5 : vector<32x16xf32>
    %7 = vector.shape_cast %6 : vector<32x16xf32> to vector<1x32x16xf32>
    %cst_6 = arith.constant dense<0.000000e+00> : vector<1xf32>
    %8 = vector.multi_reduction <add>, %7, %cst_6 [1, 2] : vector<1x32x16xf32> to vector<1xf32>
    %9 = vector.shape_cast %8 : vector<1xf32> to vector<1x1x1xf32>
    %10 = vector.extract %9[0, 0, 0] : f32 from vector<1x1x1xf32>
    %11 = vector.broadcast %10 : f32 to vector<1x1xf32>
    %cst_7 = arith.constant 5.120000e+02 : f32
    %12 = vector.broadcast %cst_7 : f32 to vector<1x1xf32>
    %13 = arith.divf %11, %12 : vector<1x1xf32>
    %14 = arith.mulf %6, %6 : vector<32x16xf32>
    %15 = vector.shape_cast %14 : vector<32x16xf32> to vector<1x32x16xf32>
    %cst_8 = arith.constant dense<0.000000e+00> : vector<1xf32>
    %16 = vector.multi_reduction <add>, %15, %cst_8 [1, 2] : vector<1x32x16xf32> to vector<1xf32>
    %17 = vector.shape_cast %16 : vector<1xf32> to vector<1x1x1xf32>
    %18 = vector.extract %17[0, 0, 0] : f32 from vector<1x1x1xf32>
    %19 = vector.broadcast %18 : f32 to vector<1x1xf32>
    %cst_9 = arith.constant 5.120000e+02 : f32
    %20 = vector.broadcast %cst_9 : f32 to vector<1x1xf32>
    %21 = arith.divf %19, %20 : vector<1x1xf32>
    %22 = arith.mulf %13, %13 : vector<1x1xf32>
    %23 = arith.subf %21, %22 : vector<1x1xf32>
    %cst_10 = arith.constant 0.000000e+00 : f32
    %24 = vector.broadcast %cst_10 : f32 to vector<1x1xf32>
    %25 = arith.maximumf %23, %24 : vector<1x1xf32>
    %26 = vector.broadcast %13 : vector<1x1xf32> to vector<32x16xf32>
    %27 = arith.subf %6, %26 : vector<32x16xf32>
    %cst_11 = arith.constant 9.99999974E-6 : f32
    %28 = vector.broadcast %cst_11 : f32 to vector<1x1xf32>
    %29 = arith.addf %25, %28 : vector<1x1xf32>
    %30 = math.rsqrt %29 : vector<1x1xf32>
    %31 = vector.broadcast %30 : vector<1x1xf32> to vector<32x16xf32>
    %32 = arith.mulf %27, %31 : vector<32x16xf32>
    %c0_12 = arith.constant 0 : index
    %c0_13 = arith.constant 0 : index
    %33 = vector.load %arg4[%c0_12, %c0_13] : memref<32x1xf32, #tpu.memory_space<vmem>>, vector<32x1xf32>
    %34 = vector.broadcast %33 : vector<32x1xf32> to vector<32x16xf32>
    %35 = arith.mulf %32, %34 : vector<32x16xf32>
    %c0_14 = arith.constant 0 : index
    %c0_15 = arith.constant 0 : index
    %36 = vector.load %arg5[%c0_14, %c0_15] : memref<32x1xf32, #tpu.memory_space<vmem>>, vector<32x1xf32>
    %37 = vector.broadcast %36 : vector<32x1xf32> to vector<32x16xf32>
    %38 = arith.addf %35, %37 : vector<32x16xf32>
    %cst_16 = arith.constant 0.000000e+00 : f32
    %39 = vector.broadcast %cst_16 : f32 to vector<32x16xf32>
    %40 = arith.cmpf oge, %38, %39 : vector<32x16xf32>
    %cst_17 = arith.constant 2.000000e-01 : f32
    %41 = vector.broadcast %cst_17 : f32 to vector<32x16xf32>
    %42 = arith.mulf %41, %38 : vector<32x16xf32>
    %43 = arith.select %40, %38, %42 : vector<32x16xi1>, vector<32x16xf32>
    %c0_18 = arith.constant 0 : index
    %c0_19 = arith.constant 0 : index
    %c0_20 = arith.constant 0 : index
    %44 = vector.load %arg6[%c0_18, %c0_19, %c0_20] : memref<1x32x16xf32, #tpu.memory_space<vmem>>, vector<1x32x16xf32>
    %45 = vector.shape_cast %44 : vector<1x32x16xf32> to vector<32x16xf32>
    %46 = vector.shape_cast %43 : vector<32x16xf32> to vector<1x32x16xf32>
    tpu.vector_store %arg6[%c0_18, %c0_19, %c0_20], %46 {strides = array<i32>} : memref<1x32x16xf32, #tpu.memory_space<vmem>>, vector<1x32x16xf32>,
    return
  }
  func.func @transform_0(%arg0: i32) -> (i32, i32, i32) {
    %c0_i32 = arith.constant 0 : i32
    %c0_i32_0 = arith.constant 0 : i32
    %c0_i32_1 = arith.constant 0 : i32
    return %arg0, %c0_i32, %c0_i32_0 : i32, i32, i32
  }
  func.func @transform_1(%arg0: i32) -> (i32, i32) {
    %c0_i32 = arith.constant 0 : i32
    %c0_i32_0 = arith.constant 0 : i32
    %c0_i32_1 = arith.constant 0 : i32
    return %c0_i32, %c0_i32_0 : i32, i32
  }
  func.func @transform_2(%arg0: i32) -> (i32, i32) {
    %c0_i32 = arith.constant 0 : i32
    %c0_i32_0 = arith.constant 0 : i32
    %c0_i32_1 = arith.constant 0 : i32
    return %c0_i32, %c0_i32_0 : i32, i32
  }
  func.func @transform_3(%arg0: i32) -> (i32, i32) {
    %c0_i32 = arith.constant 0 : i32
    %c0_i32_0 = arith.constant 0 : i32
    %c0_i32_1 = arith.constant 0 : i32
    return %c0_i32, %c0_i32_0 : i32, i32
  }
  func.func @transform_4(%arg0: i32) -> (i32, i32) {
    %c0_i32 = arith.constant 0 : i32
    %c0_i32_0 = arith.constant 0 : i32
    %c0_i32_1 = arith.constant 0 : i32
    return %c0_i32, %c0_i32_0 : i32, i32
  }
  func.func @transform_5(%arg0: i32) -> (i32, i32, i32) {
    %c0_i32 = arith.constant 0 : i32
    %c0_i32_0 = arith.constant 0 : i32
    %c0_i32_1 = arith.constant 0 : i32
    return %arg0, %c0_i32, %c0_i32_0 : i32, i32, i32
  }
}

module attributes {stable_mosaic.version = 11 : i64} {
  func.func @_conv_residual_kernel(%arg0: i32, %arg1: memref<1x288x16xf32, #tpu.memory_space<vmem>>, %arg2: memref<32x288xf32, #tpu.memory_space<vmem>>, %arg3: memref<32x1xf32, #tpu.memory_space<vmem>>, %arg4: memref<1x32x16xf32, #tpu.memory_space<vmem>>, %arg5: memref<1x32x16xf32, #tpu.memory_space<vmem>>) attributes {dimension_semantics = [#tpu.dimension_semantics<parallel>], iteration_bounds = array<i64: 2>, scalar_prefetch = 0 : i64, scratch_operands = 0 : i64, tpu.core_type = #tpu.core_type<tc>, window_params = [{transform_indices = @transform_0, window_bounds = array<i64: 1, 288, 16>}, {pipeline_mode = #tpu.pipeline_mode<synchronous>, transform_indices = @transform_1, window_bounds = array<i64: 32, 288>}, {pipeline_mode = #tpu.pipeline_mode<synchronous>, transform_indices = @transform_2, window_bounds = array<i64: 32, 1>}, {transform_indices = @transform_3, window_bounds = array<i64: 1, 32, 16>}, {transform_indices = @transform_4, window_bounds = array<i64: 1, 32, 16>}]} {
    %c0 = arith.constant 0 : index
    %c0_0 = arith.constant 0 : index
    %0 = vector.load %arg2[%c0, %c0_0] : memref<32x288xf32, #tpu.memory_space<vmem>>, vector<32x288xf32>
    %c0_1 = arith.constant 0 : index
    %c0_2 = arith.constant 0 : index
    %c0_3 = arith.constant 0 : index
    %1 = vector.load %arg1[%c0_1, %c0_2, %c0_3] : memref<1x288x16xf32, #tpu.memory_space<vmem>>, vector<1x288x16xf32>
    %2 = vector.shape_cast %1 : vector<1x288x16xf32> to vector<288x16xf32>
    %cst = arith.constant dense<0.000000e+00> : vector<32x16xf32>
    %3 = tpu.matmul %0, %2, %cst {dimension_numbers = #tpu.dot_dimension_numbers<[1], [0], [0], [1], [0, 0, 1, 1], [], []>} : vector<32x288xf32>, vector<288x16xf32>, vector<32x16xf32> -> vector<32x16xf32>
    %c0_4 = arith.constant 0 : index
    %c0_5 = arith.constant 0 : index
    %4 = vector.load %arg3[%c0_4, %c0_5] : memref<32x1xf32, #tpu.memory_space<vmem>>, vector<32x1xf32>
    %5 = vector.broadcast %4 : vector<32x1xf32> to vector<32x16xf32>
    %6 = arith.addf %3, %5 : vector<32x16xf32>
    %c0_6 = arith.constant 0 : index
    %c0_7 = arith.constant 0 : index
    %c0_8 = arith.constant 0 : index
    %7 = vector.load %arg4[%c0_6, %c0_7, %c0_8] : memref<1x32x16xf32, #tpu.memory_space<vmem>>, vector<1x32x16xf32>
    %8 = vector.shape_cast %7 : vector<1x32x16xf32> to vector<32x16xf32>
    %9 = arith.addf %6, %8 : vector<32x16xf32>
    %c0_9 = arith.constant 0 : index
    %c0_10 = arith.constant 0 : index
    %c0_11 = arith.constant 0 : index
    %10 = vector.load %arg5[%c0_9, %c0_10, %c0_11] : memref<1x32x16xf32, #tpu.memory_space<vmem>>, vector<1x32x16xf32>
    %11 = vector.shape_cast %10 : vector<1x32x16xf32> to vector<32x16xf32>
    %12 = vector.shape_cast %9 : vector<32x16xf32> to vector<1x32x16xf32>
    tpu.vector_store %arg5[%c0_9, %c0_10, %c0_11], %12 {strides = array<i32>} : memref<1x32x16xf32, #tpu.memory_space<vmem>>, vector<1x32x16xf32>,
    return
  }
  func.func @transform_0(%arg0: i32) -> (i32, i32, i32) {
    %c0_i32 = arith.constant 0 : i32
    %c0_i32_0 = arith.constant 0 : i32
    %c0_i32_1 = arith.constant 0 : i32
    return %arg0, %c0_i32, %c0_i32_0 : i32, i32, i32
  }
  func.func @transform_1(%arg0: i32) -> (i32, i32) {
    %c0_i32 = arith.constant 0 : i32
    %c0_i32_0 = arith.constant 0 : i32
    %c0_i32_1 = arith.constant 0 : i32
    return %c0_i32, %c0_i32_0 : i32, i32
  }
  func.func @transform_2(%arg0: i32) -> (i32, i32) {
    %c0_i32 = arith.constant 0 : i32
    %c0_i32_0 = arith.constant 0 : i32
    %c0_i32_1 = arith.constant 0 : i32
    return %c0_i32, %c0_i32_0 : i32, i32
  }
  func.func @transform_3(%arg0: i32) -> (i32, i32, i32) {
    %c0_i32 = arith.constant 0 : i32
    %c0_i32_0 = arith.constant 0 : i32
    %c0_i32_1 = arith.constant 0 : i32
    return %arg0, %c0_i32, %c0_i32_0 : i32, i32, i32
  }
  func.func @transform_4(%arg0: i32) -> (i32, i32, i32) {
    %c0_i32 = arith.constant 0 : i32
    %c0_i32_0 = arith.constant 0 : i32
    %c0_i32_1 = arith.constant 0 : i32
    return %arg0, %c0_i32, %c0_i32_0 : i32, i32, i32
  }
}

module attributes {stable_mosaic.version = 11 : i64} {
  func.func @_gn_lrelu_kernel(%arg0: i32, %arg1: memref<1x64x4xf32, #tpu.memory_space<vmem>>, %arg2: memref<64x1xf32, #tpu.memory_space<vmem>>, %arg3: memref<64x1xf32, #tpu.memory_space<vmem>>, %arg4: memref<1x64x4xf32, #tpu.memory_space<vmem>>) attributes {dimension_semantics = [#tpu.dimension_semantics<parallel>], iteration_bounds = array<i64: 2>, scalar_prefetch = 0 : i64, scratch_operands = 0 : i64, tpu.core_type = #tpu.core_type<tc>, window_params = [{transform_indices = @transform_0, window_bounds = array<i64: 1, 64, 4>}, {pipeline_mode = #tpu.pipeline_mode<synchronous>, transform_indices = @transform_1, window_bounds = array<i64: 64, 1>}, {pipeline_mode = #tpu.pipeline_mode<synchronous>, transform_indices = @transform_2, window_bounds = array<i64: 64, 1>}, {transform_indices = @transform_3, window_bounds = array<i64: 1, 64, 4>}]} {
    %c0 = arith.constant 0 : index
    %c0_0 = arith.constant 0 : index
    %c0_1 = arith.constant 0 : index
    %0 = vector.load %arg1[%c0, %c0_0, %c0_1] : memref<1x64x4xf32, #tpu.memory_space<vmem>>, vector<1x64x4xf32>
    %1 = vector.shape_cast %0 : vector<1x64x4xf32> to vector<64x4xf32>
    %2 = vector.shape_cast %1 : vector<64x4xf32> to vector<1x64x4xf32>
    %cst = arith.constant dense<0.000000e+00> : vector<1xf32>
    %3 = vector.multi_reduction <add>, %2, %cst [1, 2] : vector<1x64x4xf32> to vector<1xf32>
    %4 = vector.shape_cast %3 : vector<1xf32> to vector<1x1x1xf32>
    %5 = vector.extract %4[0, 0, 0] : f32 from vector<1x1x1xf32>
    %6 = vector.broadcast %5 : f32 to vector<1x1xf32>
    %cst_2 = arith.constant 2.560000e+02 : f32
    %7 = vector.broadcast %cst_2 : f32 to vector<1x1xf32>
    %8 = arith.divf %6, %7 : vector<1x1xf32>
    %9 = arith.mulf %1, %1 : vector<64x4xf32>
    %10 = vector.shape_cast %9 : vector<64x4xf32> to vector<1x64x4xf32>
    %cst_3 = arith.constant dense<0.000000e+00> : vector<1xf32>
    %11 = vector.multi_reduction <add>, %10, %cst_3 [1, 2] : vector<1x64x4xf32> to vector<1xf32>
    %12 = vector.shape_cast %11 : vector<1xf32> to vector<1x1x1xf32>
    %13 = vector.extract %12[0, 0, 0] : f32 from vector<1x1x1xf32>
    %14 = vector.broadcast %13 : f32 to vector<1x1xf32>
    %cst_4 = arith.constant 2.560000e+02 : f32
    %15 = vector.broadcast %cst_4 : f32 to vector<1x1xf32>
    %16 = arith.divf %14, %15 : vector<1x1xf32>
    %17 = arith.mulf %8, %8 : vector<1x1xf32>
    %18 = arith.subf %16, %17 : vector<1x1xf32>
    %cst_5 = arith.constant 0.000000e+00 : f32
    %19 = vector.broadcast %cst_5 : f32 to vector<1x1xf32>
    %20 = arith.maximumf %18, %19 : vector<1x1xf32>
    %21 = vector.broadcast %8 : vector<1x1xf32> to vector<64x4xf32>
    %22 = arith.subf %1, %21 : vector<64x4xf32>
    %cst_6 = arith.constant 9.99999974E-6 : f32
    %23 = vector.broadcast %cst_6 : f32 to vector<1x1xf32>
    %24 = arith.addf %20, %23 : vector<1x1xf32>
    %25 = math.rsqrt %24 : vector<1x1xf32>
    %26 = vector.broadcast %25 : vector<1x1xf32> to vector<64x4xf32>
    %27 = arith.mulf %22, %26 : vector<64x4xf32>
    %c0_7 = arith.constant 0 : index
    %c0_8 = arith.constant 0 : index
    %28 = vector.load %arg2[%c0_7, %c0_8] : memref<64x1xf32, #tpu.memory_space<vmem>>, vector<64x1xf32>
    %29 = vector.broadcast %28 : vector<64x1xf32> to vector<64x4xf32>
    %30 = arith.mulf %27, %29 : vector<64x4xf32>
    %c0_9 = arith.constant 0 : index
    %c0_10 = arith.constant 0 : index
    %31 = vector.load %arg3[%c0_9, %c0_10] : memref<64x1xf32, #tpu.memory_space<vmem>>, vector<64x1xf32>
    %32 = vector.broadcast %31 : vector<64x1xf32> to vector<64x4xf32>
    %33 = arith.addf %30, %32 : vector<64x4xf32>
    %cst_11 = arith.constant 0.000000e+00 : f32
    %34 = vector.broadcast %cst_11 : f32 to vector<64x4xf32>
    %35 = arith.cmpf oge, %33, %34 : vector<64x4xf32>
    %cst_12 = arith.constant 2.000000e-01 : f32
    %36 = vector.broadcast %cst_12 : f32 to vector<64x4xf32>
    %37 = arith.mulf %36, %33 : vector<64x4xf32>
    %38 = arith.select %35, %33, %37 : vector<64x4xi1>, vector<64x4xf32>
    %c0_13 = arith.constant 0 : index
    %c0_14 = arith.constant 0 : index
    %c0_15 = arith.constant 0 : index
    %39 = vector.load %arg4[%c0_13, %c0_14, %c0_15] : memref<1x64x4xf32, #tpu.memory_space<vmem>>, vector<1x64x4xf32>
    %40 = vector.shape_cast %39 : vector<1x64x4xf32> to vector<64x4xf32>
    %41 = vector.shape_cast %38 : vector<64x4xf32> to vector<1x64x4xf32>
    tpu.vector_store %arg4[%c0_13, %c0_14, %c0_15], %41 {strides = array<i32>} : memref<1x64x4xf32, #tpu.memory_space<vmem>>, vector<1x64x4xf32>,
    return
  }
  func.func @transform_0(%arg0: i32) -> (i32, i32, i32) {
    %c0_i32 = arith.constant 0 : i32
    %c0_i32_0 = arith.constant 0 : i32
    %c0_i32_1 = arith.constant 0 : i32
    return %arg0, %c0_i32, %c0_i32_0 : i32, i32, i32
  }
  func.func @transform_1(%arg0: i32) -> (i32, i32) {
    %c0_i32 = arith.constant 0 : i32
    %c0_i32_0 = arith.constant 0 : i32
    %c0_i32_1 = arith.constant 0 : i32
    return %c0_i32, %c0_i32_0 : i32, i32
  }
  func.func @transform_2(%arg0: i32) -> (i32, i32) {
    %c0_i32 = arith.constant 0 : i32
    %c0_i32_0 = arith.constant 0 : i32
    %c0_i32_1 = arith.constant 0 : i32
    return %c0_i32, %c0_i32_0 : i32, i32
  }
  func.func @transform_3(%arg0: i32) -> (i32, i32, i32) {
    %c0_i32 = arith.constant 0 : i32
    %c0_i32_0 = arith.constant 0 : i32
    %c0_i32_1 = arith.constant 0 : i32
    return %arg0, %c0_i32, %c0_i32_0 : i32, i32, i32
  }
}

module attributes {stable_mosaic.version = 11 : i64} {
  func.func @_conv_kernel(%arg0: i32, %arg1: memref<1x288x4xf32, #tpu.memory_space<vmem>>, %arg2: memref<64x288xf32, #tpu.memory_space<vmem>>, %arg3: memref<64x1xf32, #tpu.memory_space<vmem>>, %arg4: memref<1x64x4xf32, #tpu.memory_space<vmem>>) attributes {dimension_semantics = [#tpu.dimension_semantics<parallel>], iteration_bounds = array<i64: 2>, scalar_prefetch = 0 : i64, scratch_operands = 0 : i64, tpu.core_type = #tpu.core_type<tc>, window_params = [{transform_indices = @transform_0, window_bounds = array<i64: 1, 288, 4>}, {pipeline_mode = #tpu.pipeline_mode<synchronous>, transform_indices = @transform_1, window_bounds = array<i64: 64, 288>}, {pipeline_mode = #tpu.pipeline_mode<synchronous>, transform_indices = @transform_2, window_bounds = array<i64: 64, 1>}, {transform_indices = @transform_3, window_bounds = array<i64: 1, 64, 4>}]} {
    %c0 = arith.constant 0 : index
    %c0_0 = arith.constant 0 : index
    %0 = vector.load %arg2[%c0, %c0_0] : memref<64x288xf32, #tpu.memory_space<vmem>>, vector<64x288xf32>
    %c0_1 = arith.constant 0 : index
    %c0_2 = arith.constant 0 : index
    %c0_3 = arith.constant 0 : index
    %1 = vector.load %arg1[%c0_1, %c0_2, %c0_3] : memref<1x288x4xf32, #tpu.memory_space<vmem>>, vector<1x288x4xf32>
    %2 = vector.shape_cast %1 : vector<1x288x4xf32> to vector<288x4xf32>
    %cst = arith.constant dense<0.000000e+00> : vector<64x4xf32>
    %3 = tpu.matmul %0, %2, %cst {dimension_numbers = #tpu.dot_dimension_numbers<[1], [0], [0], [1], [0, 0, 1, 1], [], []>} : vector<64x288xf32>, vector<288x4xf32>, vector<64x4xf32> -> vector<64x4xf32>
    %c0_4 = arith.constant 0 : index
    %c0_5 = arith.constant 0 : index
    %4 = vector.load %arg3[%c0_4, %c0_5] : memref<64x1xf32, #tpu.memory_space<vmem>>, vector<64x1xf32>
    %5 = vector.broadcast %4 : vector<64x1xf32> to vector<64x4xf32>
    %6 = arith.addf %3, %5 : vector<64x4xf32>
    %c0_6 = arith.constant 0 : index
    %c0_7 = arith.constant 0 : index
    %c0_8 = arith.constant 0 : index
    %7 = vector.load %arg4[%c0_6, %c0_7, %c0_8] : memref<1x64x4xf32, #tpu.memory_space<vmem>>, vector<1x64x4xf32>
    %8 = vector.shape_cast %7 : vector<1x64x4xf32> to vector<64x4xf32>
    %9 = vector.shape_cast %6 : vector<64x4xf32> to vector<1x64x4xf32>
    tpu.vector_store %arg4[%c0_6, %c0_7, %c0_8], %9 {strides = array<i32>} : memref<1x64x4xf32, #tpu.memory_space<vmem>>, vector<1x64x4xf32>,
    return
  }
  func.func @transform_0(%arg0: i32) -> (i32, i32, i32) {
    %c0_i32 = arith.constant 0 : i32
    %c0_i32_0 = arith.constant 0 : i32
    %c0_i32_1 = arith.constant 0 : i32
    return %arg0, %c0_i32, %c0_i32_0 : i32, i32, i32
  }
  func.func @transform_1(%arg0: i32) -> (i32, i32) {
    %c0_i32 = arith.constant 0 : i32
    %c0_i32_0 = arith.constant 0 : i32
    %c0_i32_1 = arith.constant 0 : i32
    return %c0_i32, %c0_i32_0 : i32, i32
  }
  func.func @transform_2(%arg0: i32) -> (i32, i32) {
    %c0_i32 = arith.constant 0 : i32
    %c0_i32_0 = arith.constant 0 : i32
    %c0_i32_1 = arith.constant 0 : i32
    return %c0_i32, %c0_i32_0 : i32, i32
  }
  func.func @transform_3(%arg0: i32) -> (i32, i32, i32) {
    %c0_i32 = arith.constant 0 : i32
    %c0_i32_0 = arith.constant 0 : i32
    %c0_i32_1 = arith.constant 0 : i32
    return %arg0, %c0_i32, %c0_i32_0 : i32, i32, i32
  }
}

module attributes {stable_mosaic.version = 11 : i64} {
  func.func @_conv_gn_lrelu_kernel(%arg0: i32, %arg1: memref<1x576x4xf32, #tpu.memory_space<vmem>>, %arg2: memref<64x576xf32, #tpu.memory_space<vmem>>, %arg3: memref<64x1xf32, #tpu.memory_space<vmem>>, %arg4: memref<64x1xf32, #tpu.memory_space<vmem>>, %arg5: memref<64x1xf32, #tpu.memory_space<vmem>>, %arg6: memref<1x64x4xf32, #tpu.memory_space<vmem>>) attributes {dimension_semantics = [#tpu.dimension_semantics<parallel>], iteration_bounds = array<i64: 2>, scalar_prefetch = 0 : i64, scratch_operands = 0 : i64, tpu.core_type = #tpu.core_type<tc>, window_params = [{transform_indices = @transform_0, window_bounds = array<i64: 1, 576, 4>}, {pipeline_mode = #tpu.pipeline_mode<synchronous>, transform_indices = @transform_1, window_bounds = array<i64: 64, 576>}, {pipeline_mode = #tpu.pipeline_mode<synchronous>, transform_indices = @transform_2, window_bounds = array<i64: 64, 1>}, {pipeline_mode = #tpu.pipeline_mode<synchronous>, transform_indices = @transform_3, window_bounds = array<i64: 64, 1>}, {pipeline_mode = #tpu.pipeline_mode<synchronous>, transform_indices = @transform_4, window_bounds = array<i64: 64, 1>}, {transform_indices = @transform_5, window_bounds = array<i64: 1, 64, 4>}]} {
    %c0 = arith.constant 0 : index
    %c0_0 = arith.constant 0 : index
    %0 = vector.load %arg2[%c0, %c0_0] : memref<64x576xf32, #tpu.memory_space<vmem>>, vector<64x576xf32>
    %c0_1 = arith.constant 0 : index
    %c0_2 = arith.constant 0 : index
    %c0_3 = arith.constant 0 : index
    %1 = vector.load %arg1[%c0_1, %c0_2, %c0_3] : memref<1x576x4xf32, #tpu.memory_space<vmem>>, vector<1x576x4xf32>
    %2 = vector.shape_cast %1 : vector<1x576x4xf32> to vector<576x4xf32>
    %cst = arith.constant dense<0.000000e+00> : vector<64x4xf32>
    %3 = tpu.matmul %0, %2, %cst {dimension_numbers = #tpu.dot_dimension_numbers<[1], [0], [0], [1], [0, 0, 1, 1], [], []>} : vector<64x576xf32>, vector<576x4xf32>, vector<64x4xf32> -> vector<64x4xf32>
    %c0_4 = arith.constant 0 : index
    %c0_5 = arith.constant 0 : index
    %4 = vector.load %arg3[%c0_4, %c0_5] : memref<64x1xf32, #tpu.memory_space<vmem>>, vector<64x1xf32>
    %5 = vector.broadcast %4 : vector<64x1xf32> to vector<64x4xf32>
    %6 = arith.addf %3, %5 : vector<64x4xf32>
    %7 = vector.shape_cast %6 : vector<64x4xf32> to vector<1x64x4xf32>
    %cst_6 = arith.constant dense<0.000000e+00> : vector<1xf32>
    %8 = vector.multi_reduction <add>, %7, %cst_6 [1, 2] : vector<1x64x4xf32> to vector<1xf32>
    %9 = vector.shape_cast %8 : vector<1xf32> to vector<1x1x1xf32>
    %10 = vector.extract %9[0, 0, 0] : f32 from vector<1x1x1xf32>
    %11 = vector.broadcast %10 : f32 to vector<1x1xf32>
    %cst_7 = arith.constant 2.560000e+02 : f32
    %12 = vector.broadcast %cst_7 : f32 to vector<1x1xf32>
    %13 = arith.divf %11, %12 : vector<1x1xf32>
    %14 = arith.mulf %6, %6 : vector<64x4xf32>
    %15 = vector.shape_cast %14 : vector<64x4xf32> to vector<1x64x4xf32>
    %cst_8 = arith.constant dense<0.000000e+00> : vector<1xf32>
    %16 = vector.multi_reduction <add>, %15, %cst_8 [1, 2] : vector<1x64x4xf32> to vector<1xf32>
    %17 = vector.shape_cast %16 : vector<1xf32> to vector<1x1x1xf32>
    %18 = vector.extract %17[0, 0, 0] : f32 from vector<1x1x1xf32>
    %19 = vector.broadcast %18 : f32 to vector<1x1xf32>
    %cst_9 = arith.constant 2.560000e+02 : f32
    %20 = vector.broadcast %cst_9 : f32 to vector<1x1xf32>
    %21 = arith.divf %19, %20 : vector<1x1xf32>
    %22 = arith.mulf %13, %13 : vector<1x1xf32>
    %23 = arith.subf %21, %22 : vector<1x1xf32>
    %cst_10 = arith.constant 0.000000e+00 : f32
    %24 = vector.broadcast %cst_10 : f32 to vector<1x1xf32>
    %25 = arith.maximumf %23, %24 : vector<1x1xf32>
    %26 = vector.broadcast %13 : vector<1x1xf32> to vector<64x4xf32>
    %27 = arith.subf %6, %26 : vector<64x4xf32>
    %cst_11 = arith.constant 9.99999974E-6 : f32
    %28 = vector.broadcast %cst_11 : f32 to vector<1x1xf32>
    %29 = arith.addf %25, %28 : vector<1x1xf32>
    %30 = math.rsqrt %29 : vector<1x1xf32>
    %31 = vector.broadcast %30 : vector<1x1xf32> to vector<64x4xf32>
    %32 = arith.mulf %27, %31 : vector<64x4xf32>
    %c0_12 = arith.constant 0 : index
    %c0_13 = arith.constant 0 : index
    %33 = vector.load %arg4[%c0_12, %c0_13] : memref<64x1xf32, #tpu.memory_space<vmem>>, vector<64x1xf32>
    %34 = vector.broadcast %33 : vector<64x1xf32> to vector<64x4xf32>
    %35 = arith.mulf %32, %34 : vector<64x4xf32>
    %c0_14 = arith.constant 0 : index
    %c0_15 = arith.constant 0 : index
    %36 = vector.load %arg5[%c0_14, %c0_15] : memref<64x1xf32, #tpu.memory_space<vmem>>, vector<64x1xf32>
    %37 = vector.broadcast %36 : vector<64x1xf32> to vector<64x4xf32>
    %38 = arith.addf %35, %37 : vector<64x4xf32>
    %cst_16 = arith.constant 0.000000e+00 : f32
    %39 = vector.broadcast %cst_16 : f32 to vector<64x4xf32>
    %40 = arith.cmpf oge, %38, %39 : vector<64x4xf32>
    %cst_17 = arith.constant 2.000000e-01 : f32
    %41 = vector.broadcast %cst_17 : f32 to vector<64x4xf32>
    %42 = arith.mulf %41, %38 : vector<64x4xf32>
    %43 = arith.select %40, %38, %42 : vector<64x4xi1>, vector<64x4xf32>
    %c0_18 = arith.constant 0 : index
    %c0_19 = arith.constant 0 : index
    %c0_20 = arith.constant 0 : index
    %44 = vector.load %arg6[%c0_18, %c0_19, %c0_20] : memref<1x64x4xf32, #tpu.memory_space<vmem>>, vector<1x64x4xf32>
    %45 = vector.shape_cast %44 : vector<1x64x4xf32> to vector<64x4xf32>
    %46 = vector.shape_cast %43 : vector<64x4xf32> to vector<1x64x4xf32>
    tpu.vector_store %arg6[%c0_18, %c0_19, %c0_20], %46 {strides = array<i32>} : memref<1x64x4xf32, #tpu.memory_space<vmem>>, vector<1x64x4xf32>,
    return
  }
  func.func @transform_0(%arg0: i32) -> (i32, i32, i32) {
    %c0_i32 = arith.constant 0 : i32
    %c0_i32_0 = arith.constant 0 : i32
    %c0_i32_1 = arith.constant 0 : i32
    return %arg0, %c0_i32, %c0_i32_0 : i32, i32, i32
  }
  func.func @transform_1(%arg0: i32) -> (i32, i32) {
    %c0_i32 = arith.constant 0 : i32
    %c0_i32_0 = arith.constant 0 : i32
    %c0_i32_1 = arith.constant 0 : i32
    return %c0_i32, %c0_i32_0 : i32, i32
  }
  func.func @transform_2(%arg0: i32) -> (i32, i32) {
    %c0_i32 = arith.constant 0 : i32
    %c0_i32_0 = arith.constant 0 : i32
    %c0_i32_1 = arith.constant 0 : i32
    return %c0_i32, %c0_i32_0 : i32, i32
  }
  func.func @transform_3(%arg0: i32) -> (i32, i32) {
    %c0_i32 = arith.constant 0 : i32
    %c0_i32_0 = arith.constant 0 : i32
    %c0_i32_1 = arith.constant 0 : i32
    return %c0_i32, %c0_i32_0 : i32, i32
  }
  func.func @transform_4(%arg0: i32) -> (i32, i32) {
    %c0_i32 = arith.constant 0 : i32
    %c0_i32_0 = arith.constant 0 : i32
    %c0_i32_1 = arith.constant 0 : i32
    return %c0_i32, %c0_i32_0 : i32, i32
  }
  func.func @transform_5(%arg0: i32) -> (i32, i32, i32) {
    %c0_i32 = arith.constant 0 : i32
    %c0_i32_0 = arith.constant 0 : i32
    %c0_i32_1 = arith.constant 0 : i32
    return %arg0, %c0_i32, %c0_i32_0 : i32, i32, i32
  }
}

module attributes {stable_mosaic.version = 11 : i64} {
  func.func @_conv_residual_kernel(%arg0: i32, %arg1: memref<1x576x4xf32, #tpu.memory_space<vmem>>, %arg2: memref<64x576xf32, #tpu.memory_space<vmem>>, %arg3: memref<64x1xf32, #tpu.memory_space<vmem>>, %arg4: memref<1x64x4xf32, #tpu.memory_space<vmem>>, %arg5: memref<1x64x4xf32, #tpu.memory_space<vmem>>) attributes {dimension_semantics = [#tpu.dimension_semantics<parallel>], iteration_bounds = array<i64: 2>, scalar_prefetch = 0 : i64, scratch_operands = 0 : i64, tpu.core_type = #tpu.core_type<tc>, window_params = [{transform_indices = @transform_0, window_bounds = array<i64: 1, 576, 4>}, {pipeline_mode = #tpu.pipeline_mode<synchronous>, transform_indices = @transform_1, window_bounds = array<i64: 64, 576>}, {pipeline_mode = #tpu.pipeline_mode<synchronous>, transform_indices = @transform_2, window_bounds = array<i64: 64, 1>}, {transform_indices = @transform_3, window_bounds = array<i64: 1, 64, 4>}, {transform_indices = @transform_4, window_bounds = array<i64: 1, 64, 4>}]} {
    %c0 = arith.constant 0 : index
    %c0_0 = arith.constant 0 : index
    %0 = vector.load %arg2[%c0, %c0_0] : memref<64x576xf32, #tpu.memory_space<vmem>>, vector<64x576xf32>
    %c0_1 = arith.constant 0 : index
    %c0_2 = arith.constant 0 : index
    %c0_3 = arith.constant 0 : index
    %1 = vector.load %arg1[%c0_1, %c0_2, %c0_3] : memref<1x576x4xf32, #tpu.memory_space<vmem>>, vector<1x576x4xf32>
    %2 = vector.shape_cast %1 : vector<1x576x4xf32> to vector<576x4xf32>
    %cst = arith.constant dense<0.000000e+00> : vector<64x4xf32>
    %3 = tpu.matmul %0, %2, %cst {dimension_numbers = #tpu.dot_dimension_numbers<[1], [0], [0], [1], [0, 0, 1, 1], [], []>} : vector<64x576xf32>, vector<576x4xf32>, vector<64x4xf32> -> vector<64x4xf32>
    %c0_4 = arith.constant 0 : index
    %c0_5 = arith.constant 0 : index
    %4 = vector.load %arg3[%c0_4, %c0_5] : memref<64x1xf32, #tpu.memory_space<vmem>>, vector<64x1xf32>
    %5 = vector.broadcast %4 : vector<64x1xf32> to vector<64x4xf32>
    %6 = arith.addf %3, %5 : vector<64x4xf32>
    %c0_6 = arith.constant 0 : index
    %c0_7 = arith.constant 0 : index
    %c0_8 = arith.constant 0 : index
    %7 = vector.load %arg4[%c0_6, %c0_7, %c0_8] : memref<1x64x4xf32, #tpu.memory_space<vmem>>, vector<1x64x4xf32>
    %8 = vector.shape_cast %7 : vector<1x64x4xf32> to vector<64x4xf32>
    %9 = arith.addf %6, %8 : vector<64x4xf32>
    %c0_9 = arith.constant 0 : index
    %c0_10 = arith.constant 0 : index
    %c0_11 = arith.constant 0 : index
    %10 = vector.load %arg5[%c0_9, %c0_10, %c0_11] : memref<1x64x4xf32, #tpu.memory_space<vmem>>, vector<1x64x4xf32>
    %11 = vector.shape_cast %10 : vector<1x64x4xf32> to vector<64x4xf32>
    %12 = vector.shape_cast %9 : vector<64x4xf32> to vector<1x64x4xf32>
    tpu.vector_store %arg5[%c0_9, %c0_10, %c0_11], %12 {strides = array<i32>} : memref<1x64x4xf32, #tpu.memory_space<vmem>>, vector<1x64x4xf32>,
    return
  }
  func.func @transform_0(%arg0: i32) -> (i32, i32, i32) {
    %c0_i32 = arith.constant 0 : i32
    %c0_i32_0 = arith.constant 0 : i32
    %c0_i32_1 = arith.constant 0 : i32
    return %arg0, %c0_i32, %c0_i32_0 : i32, i32, i32
  }
  func.func @transform_1(%arg0: i32) -> (i32, i32) {
    %c0_i32 = arith.constant 0 : i32
    %c0_i32_0 = arith.constant 0 : i32
    %c0_i32_1 = arith.constant 0 : i32
    return %c0_i32, %c0_i32_0 : i32, i32
  }
  func.func @transform_2(%arg0: i32) -> (i32, i32) {
    %c0_i32 = arith.constant 0 : i32
    %c0_i32_0 = arith.constant 0 : i32
    %c0_i32_1 = arith.constant 0 : i32
    return %c0_i32, %c0_i32_0 : i32, i32
  }
  func.func @transform_3(%arg0: i32) -> (i32, i32, i32) {
    %c0_i32 = arith.constant 0 : i32
    %c0_i32_0 = arith.constant 0 : i32
    %c0_i32_1 = arith.constant 0 : i32
    return %arg0, %c0_i32, %c0_i32_0 : i32, i32, i32
  }
  func.func @transform_4(%arg0: i32) -> (i32, i32, i32) {
    %c0_i32 = arith.constant 0 : i32
    %c0_i32_0 = arith.constant 0 : i32
    %c0_i32_1 = arith.constant 0 : i32
    return %arg0, %c0_i32, %c0_i32_0 : i32, i32, i32
  }
}

module attributes {stable_mosaic.version = 11 : i64} {
  func.func @_conv_kernel(%arg0: i32, %arg1: memref<1x64x4xf32, #tpu.memory_space<vmem>>, %arg2: memref<32x64xf32, #tpu.memory_space<vmem>>, %arg3: memref<32x1xf32, #tpu.memory_space<vmem>>, %arg4: memref<1x32x4xf32, #tpu.memory_space<vmem>>) attributes {dimension_semantics = [#tpu.dimension_semantics<parallel>], iteration_bounds = array<i64: 2>, scalar_prefetch = 0 : i64, scratch_operands = 0 : i64, tpu.core_type = #tpu.core_type<tc>, window_params = [{transform_indices = @transform_0, window_bounds = array<i64: 1, 64, 4>}, {pipeline_mode = #tpu.pipeline_mode<synchronous>, transform_indices = @transform_1, window_bounds = array<i64: 32, 64>}, {pipeline_mode = #tpu.pipeline_mode<synchronous>, transform_indices = @transform_2, window_bounds = array<i64: 32, 1>}, {transform_indices = @transform_3, window_bounds = array<i64: 1, 32, 4>}]} {
    %c0 = arith.constant 0 : index
    %c0_0 = arith.constant 0 : index
    %0 = vector.load %arg2[%c0, %c0_0] : memref<32x64xf32, #tpu.memory_space<vmem>>, vector<32x64xf32>
    %c0_1 = arith.constant 0 : index
    %c0_2 = arith.constant 0 : index
    %c0_3 = arith.constant 0 : index
    %1 = vector.load %arg1[%c0_1, %c0_2, %c0_3] : memref<1x64x4xf32, #tpu.memory_space<vmem>>, vector<1x64x4xf32>
    %2 = vector.shape_cast %1 : vector<1x64x4xf32> to vector<64x4xf32>
    %cst = arith.constant dense<0.000000e+00> : vector<32x4xf32>
    %3 = tpu.matmul %0, %2, %cst {dimension_numbers = #tpu.dot_dimension_numbers<[1], [0], [0], [1], [0, 0, 1, 1], [], []>} : vector<32x64xf32>, vector<64x4xf32>, vector<32x4xf32> -> vector<32x4xf32>
    %c0_4 = arith.constant 0 : index
    %c0_5 = arith.constant 0 : index
    %4 = vector.load %arg3[%c0_4, %c0_5] : memref<32x1xf32, #tpu.memory_space<vmem>>, vector<32x1xf32>
    %5 = vector.broadcast %4 : vector<32x1xf32> to vector<32x4xf32>
    %6 = arith.addf %3, %5 : vector<32x4xf32>
    %c0_6 = arith.constant 0 : index
    %c0_7 = arith.constant 0 : index
    %c0_8 = arith.constant 0 : index
    %7 = vector.load %arg4[%c0_6, %c0_7, %c0_8] : memref<1x32x4xf32, #tpu.memory_space<vmem>>, vector<1x32x4xf32>
    %8 = vector.shape_cast %7 : vector<1x32x4xf32> to vector<32x4xf32>
    %9 = vector.shape_cast %6 : vector<32x4xf32> to vector<1x32x4xf32>
    tpu.vector_store %arg4[%c0_6, %c0_7, %c0_8], %9 {strides = array<i32>} : memref<1x32x4xf32, #tpu.memory_space<vmem>>, vector<1x32x4xf32>,
    return
  }
  func.func @transform_0(%arg0: i32) -> (i32, i32, i32) {
    %c0_i32 = arith.constant 0 : i32
    %c0_i32_0 = arith.constant 0 : i32
    %c0_i32_1 = arith.constant 0 : i32
    return %arg0, %c0_i32, %c0_i32_0 : i32, i32, i32
  }
  func.func @transform_1(%arg0: i32) -> (i32, i32) {
    %c0_i32 = arith.constant 0 : i32
    %c0_i32_0 = arith.constant 0 : i32
    %c0_i32_1 = arith.constant 0 : i32
    return %c0_i32, %c0_i32_0 : i32, i32
  }
  func.func @transform_2(%arg0: i32) -> (i32, i32) {
    %c0_i32 = arith.constant 0 : i32
    %c0_i32_0 = arith.constant 0 : i32
    %c0_i32_1 = arith.constant 0 : i32
    return %c0_i32, %c0_i32_0 : i32, i32
  }
  func.func @transform_3(%arg0: i32) -> (i32, i32, i32) {
    %c0_i32 = arith.constant 0 : i32
    %c0_i32_0 = arith.constant 0 : i32
    %c0_i32_1 = arith.constant 0 : i32
    return %arg0, %c0_i32, %c0_i32_0 : i32, i32, i32
  }
}

module attributes {stable_mosaic.version = 11 : i64} {
  func.func @_upsample_add_kernel(%arg0: i32, %arg1: memref<1x32x2x2xf32, #tpu.memory_space<vmem>>, %arg2: memref<32x2x4xf32, #tpu.memory_space<vmem>>, %arg3: memref<32x4x2xf32, #tpu.memory_space<vmem>>, %arg4: memref<1x32x4x4xf32, #tpu.memory_space<vmem>>, %arg5: memref<1x32x4x4xf32, #tpu.memory_space<vmem>>) attributes {dimension_semantics = [#tpu.dimension_semantics<parallel>], iteration_bounds = array<i64: 2>, scalar_prefetch = 0 : i64, scratch_operands = 0 : i64, tpu.core_type = #tpu.core_type<tc>, window_params = [{transform_indices = @transform_0, window_bounds = array<i64: 1, 32, 2, 2>}, {pipeline_mode = #tpu.pipeline_mode<synchronous>, transform_indices = @transform_1, window_bounds = array<i64: 32, 2, 4>}, {pipeline_mode = #tpu.pipeline_mode<synchronous>, transform_indices = @transform_2, window_bounds = array<i64: 32, 4, 2>}, {transform_indices = @transform_3, window_bounds = array<i64: 1, 32, 4, 4>}, {transform_indices = @transform_4, window_bounds = array<i64: 1, 32, 4, 4>}]} {
    %c0 = arith.constant 0 : index
    %c0_0 = arith.constant 0 : index
    %c0_1 = arith.constant 0 : index
    %c0_2 = arith.constant 0 : index
    %0 = vector.load %arg1[%c0, %c0_0, %c0_1, %c0_2] : memref<1x32x2x2xf32, #tpu.memory_space<vmem>>, vector<1x32x2x2xf32>
    %1 = vector.shape_cast %0 : vector<1x32x2x2xf32> to vector<32x2x2xf32>
    %c0_3 = arith.constant 0 : index
    %c0_4 = arith.constant 0 : index
    %c0_5 = arith.constant 0 : index
    %2 = vector.load %arg2[%c0_3, %c0_4, %c0_5] : memref<32x2x4xf32, #tpu.memory_space<vmem>>, vector<32x2x4xf32>
    %cst = arith.constant dense<0.000000e+00> : vector<32x2x4xf32>
    %3 = tpu.matmul %1, %2, %cst {dimension_numbers = #tpu.dot_dimension_numbers<[2], [1], [1], [2], [0, 0, 0, 1, 1, 2], [0], [0]>} : vector<32x2x2xf32>, vector<32x2x4xf32>, vector<32x2x4xf32> -> vector<32x2x4xf32>
    %c0_6 = arith.constant 0 : index
    %c0_7 = arith.constant 0 : index
    %c0_8 = arith.constant 0 : index
    %4 = vector.load %arg3[%c0_6, %c0_7, %c0_8] : memref<32x4x2xf32, #tpu.memory_space<vmem>>, vector<32x4x2xf32>
    %cst_9 = arith.constant dense<0.000000e+00> : vector<32x4x4xf32>
    %5 = tpu.matmul %4, %3, %cst_9 {dimension_numbers = #tpu.dot_dimension_numbers<[2], [1], [1], [2], [0, 0, 0, 1, 1, 2], [0], [0]>} : vector<32x4x2xf32>, vector<32x2x4xf32>, vector<32x4x4xf32> -> vector<32x4x4xf32>
    %c0_10 = arith.constant 0 : index
    %c0_11 = arith.constant 0 : index
    %c0_12 = arith.constant 0 : index
    %c0_13 = arith.constant 0 : index
    %6 = vector.load %arg4[%c0_10, %c0_11, %c0_12, %c0_13] : memref<1x32x4x4xf32, #tpu.memory_space<vmem>>, vector<1x32x4x4xf32>
    %7 = vector.shape_cast %6 : vector<1x32x4x4xf32> to vector<32x4x4xf32>
    %8 = arith.addf %5, %7 : vector<32x4x4xf32>
    %c0_14 = arith.constant 0 : index
    %c0_15 = arith.constant 0 : index
    %c0_16 = arith.constant 0 : index
    %c0_17 = arith.constant 0 : index
    %9 = vector.load %arg5[%c0_14, %c0_15, %c0_16, %c0_17] : memref<1x32x4x4xf32, #tpu.memory_space<vmem>>, vector<1x32x4x4xf32>
    %10 = vector.shape_cast %9 : vector<1x32x4x4xf32> to vector<32x4x4xf32>
    %11 = vector.shape_cast %8 : vector<32x4x4xf32> to vector<1x32x4x4xf32>
    tpu.vector_store %arg5[%c0_14, %c0_15, %c0_16, %c0_17], %11 {strides = array<i32>} : memref<1x32x4x4xf32, #tpu.memory_space<vmem>>, vector<1x32x4x4xf32>,
    return
  }
  func.func @transform_0(%arg0: i32) -> (i32, i32, i32, i32) {
    %c0_i32 = arith.constant 0 : i32
    %c0_i32_0 = arith.constant 0 : i32
    %c0_i32_1 = arith.constant 0 : i32
    %c0_i32_2 = arith.constant 0 : i32
    return %arg0, %c0_i32, %c0_i32_0, %c0_i32_1 : i32, i32, i32, i32
  }
  func.func @transform_1(%arg0: i32) -> (i32, i32, i32) {
    %c0_i32 = arith.constant 0 : i32
    %c0_i32_0 = arith.constant 0 : i32
    %c0_i32_1 = arith.constant 0 : i32
    %c0_i32_2 = arith.constant 0 : i32
    return %c0_i32, %c0_i32_0, %c0_i32_1 : i32, i32, i32
  }
  func.func @transform_2(%arg0: i32) -> (i32, i32, i32) {
    %c0_i32 = arith.constant 0 : i32
    %c0_i32_0 = arith.constant 0 : i32
    %c0_i32_1 = arith.constant 0 : i32
    %c0_i32_2 = arith.constant 0 : i32
    return %c0_i32, %c0_i32_0, %c0_i32_1 : i32, i32, i32
  }
  func.func @transform_3(%arg0: i32) -> (i32, i32, i32, i32) {
    %c0_i32 = arith.constant 0 : i32
    %c0_i32_0 = arith.constant 0 : i32
    %c0_i32_1 = arith.constant 0 : i32
    %c0_i32_2 = arith.constant 0 : i32
    return %arg0, %c0_i32, %c0_i32_0, %c0_i32_1 : i32, i32, i32, i32
  }
  func.func @transform_4(%arg0: i32) -> (i32, i32, i32, i32) {
    %c0_i32 = arith.constant 0 : i32
    %c0_i32_0 = arith.constant 0 : i32
    %c0_i32_1 = arith.constant 0 : i32
    %c0_i32_2 = arith.constant 0 : i32
    return %arg0, %c0_i32, %c0_i32_0, %c0_i32_1 : i32, i32, i32, i32
  }
}

module attributes {stable_mosaic.version = 11 : i64} {
  func.func @_conv_kernel(%arg0: i32, %arg1: memref<1x32x16xf32, #tpu.memory_space<vmem>>, %arg2: memref<16x32xf32, #tpu.memory_space<vmem>>, %arg3: memref<16x1xf32, #tpu.memory_space<vmem>>, %arg4: memref<1x16x16xf32, #tpu.memory_space<vmem>>) attributes {dimension_semantics = [#tpu.dimension_semantics<parallel>], iteration_bounds = array<i64: 2>, scalar_prefetch = 0 : i64, scratch_operands = 0 : i64, tpu.core_type = #tpu.core_type<tc>, window_params = [{transform_indices = @transform_0, window_bounds = array<i64: 1, 32, 16>}, {pipeline_mode = #tpu.pipeline_mode<synchronous>, transform_indices = @transform_1, window_bounds = array<i64: 16, 32>}, {pipeline_mode = #tpu.pipeline_mode<synchronous>, transform_indices = @transform_2, window_bounds = array<i64: 16, 1>}, {transform_indices = @transform_3, window_bounds = array<i64: 1, 16, 16>}]} {
    %c0 = arith.constant 0 : index
    %c0_0 = arith.constant 0 : index
    %0 = vector.load %arg2[%c0, %c0_0] : memref<16x32xf32, #tpu.memory_space<vmem>>, vector<16x32xf32>
    %c0_1 = arith.constant 0 : index
    %c0_2 = arith.constant 0 : index
    %c0_3 = arith.constant 0 : index
    %1 = vector.load %arg1[%c0_1, %c0_2, %c0_3] : memref<1x32x16xf32, #tpu.memory_space<vmem>>, vector<1x32x16xf32>
    %2 = vector.shape_cast %1 : vector<1x32x16xf32> to vector<32x16xf32>
    %cst = arith.constant dense<0.000000e+00> : vector<16x16xf32>
    %3 = tpu.matmul %0, %2, %cst {dimension_numbers = #tpu.dot_dimension_numbers<[1], [0], [0], [1], [0, 0, 1, 1], [], []>} : vector<16x32xf32>, vector<32x16xf32>, vector<16x16xf32> -> vector<16x16xf32>
    %c0_4 = arith.constant 0 : index
    %c0_5 = arith.constant 0 : index
    %4 = vector.load %arg3[%c0_4, %c0_5] : memref<16x1xf32, #tpu.memory_space<vmem>>, vector<16x1xf32>
    %5 = vector.broadcast %4 : vector<16x1xf32> to vector<16x16xf32>
    %6 = arith.addf %3, %5 : vector<16x16xf32>
    %c0_6 = arith.constant 0 : index
    %c0_7 = arith.constant 0 : index
    %c0_8 = arith.constant 0 : index
    %7 = vector.load %arg4[%c0_6, %c0_7, %c0_8] : memref<1x16x16xf32, #tpu.memory_space<vmem>>, vector<1x16x16xf32>
    %8 = vector.shape_cast %7 : vector<1x16x16xf32> to vector<16x16xf32>
    %9 = vector.shape_cast %6 : vector<16x16xf32> to vector<1x16x16xf32>
    tpu.vector_store %arg4[%c0_6, %c0_7, %c0_8], %9 {strides = array<i32>} : memref<1x16x16xf32, #tpu.memory_space<vmem>>, vector<1x16x16xf32>,
    return
  }
  func.func @transform_0(%arg0: i32) -> (i32, i32, i32) {
    %c0_i32 = arith.constant 0 : i32
    %c0_i32_0 = arith.constant 0 : i32
    %c0_i32_1 = arith.constant 0 : i32
    return %arg0, %c0_i32, %c0_i32_0 : i32, i32, i32
  }
  func.func @transform_1(%arg0: i32) -> (i32, i32) {
    %c0_i32 = arith.constant 0 : i32
    %c0_i32_0 = arith.constant 0 : i32
    %c0_i32_1 = arith.constant 0 : i32
    return %c0_i32, %c0_i32_0 : i32, i32
  }
  func.func @transform_2(%arg0: i32) -> (i32, i32) {
    %c0_i32 = arith.constant 0 : i32
    %c0_i32_0 = arith.constant 0 : i32
    %c0_i32_1 = arith.constant 0 : i32
    return %c0_i32, %c0_i32_0 : i32, i32
  }
  func.func @transform_3(%arg0: i32) -> (i32, i32, i32) {
    %c0_i32 = arith.constant 0 : i32
    %c0_i32_0 = arith.constant 0 : i32
    %c0_i32_1 = arith.constant 0 : i32
    return %arg0, %c0_i32, %c0_i32_0 : i32, i32, i32
  }
}

module attributes {stable_mosaic.version = 11 : i64} {
  func.func @_upsample_add_kernel(%arg0: i32, %arg1: memref<1x16x4x4xf32, #tpu.memory_space<vmem>>, %arg2: memref<16x4x8xf32, #tpu.memory_space<vmem>>, %arg3: memref<16x8x4xf32, #tpu.memory_space<vmem>>, %arg4: memref<1x16x8x8xf32, #tpu.memory_space<vmem>>, %arg5: memref<1x16x8x8xf32, #tpu.memory_space<vmem>>) attributes {dimension_semantics = [#tpu.dimension_semantics<parallel>], iteration_bounds = array<i64: 2>, scalar_prefetch = 0 : i64, scratch_operands = 0 : i64, tpu.core_type = #tpu.core_type<tc>, window_params = [{transform_indices = @transform_0, window_bounds = array<i64: 1, 16, 4, 4>}, {pipeline_mode = #tpu.pipeline_mode<synchronous>, transform_indices = @transform_1, window_bounds = array<i64: 16, 4, 8>}, {pipeline_mode = #tpu.pipeline_mode<synchronous>, transform_indices = @transform_2, window_bounds = array<i64: 16, 8, 4>}, {transform_indices = @transform_3, window_bounds = array<i64: 1, 16, 8, 8>}, {transform_indices = @transform_4, window_bounds = array<i64: 1, 16, 8, 8>}]} {
    %c0 = arith.constant 0 : index
    %c0_0 = arith.constant 0 : index
    %c0_1 = arith.constant 0 : index
    %c0_2 = arith.constant 0 : index
    %0 = vector.load %arg1[%c0, %c0_0, %c0_1, %c0_2] : memref<1x16x4x4xf32, #tpu.memory_space<vmem>>, vector<1x16x4x4xf32>
    %1 = vector.shape_cast %0 : vector<1x16x4x4xf32> to vector<16x4x4xf32>
    %c0_3 = arith.constant 0 : index
    %c0_4 = arith.constant 0 : index
    %c0_5 = arith.constant 0 : index
    %2 = vector.load %arg2[%c0_3, %c0_4, %c0_5] : memref<16x4x8xf32, #tpu.memory_space<vmem>>, vector<16x4x8xf32>
    %cst = arith.constant dense<0.000000e+00> : vector<16x4x8xf32>
    %3 = tpu.matmul %1, %2, %cst {dimension_numbers = #tpu.dot_dimension_numbers<[2], [1], [1], [2], [0, 0, 0, 1, 1, 2], [0], [0]>} : vector<16x4x4xf32>, vector<16x4x8xf32>, vector<16x4x8xf32> -> vector<16x4x8xf32>
    %c0_6 = arith.constant 0 : index
    %c0_7 = arith.constant 0 : index
    %c0_8 = arith.constant 0 : index
    %4 = vector.load %arg3[%c0_6, %c0_7, %c0_8] : memref<16x8x4xf32, #tpu.memory_space<vmem>>, vector<16x8x4xf32>
    %cst_9 = arith.constant dense<0.000000e+00> : vector<16x8x8xf32>
    %5 = tpu.matmul %4, %3, %cst_9 {dimension_numbers = #tpu.dot_dimension_numbers<[2], [1], [1], [2], [0, 0, 0, 1, 1, 2], [0], [0]>} : vector<16x8x4xf32>, vector<16x4x8xf32>, vector<16x8x8xf32> -> vector<16x8x8xf32>
    %c0_10 = arith.constant 0 : index
    %c0_11 = arith.constant 0 : index
    %c0_12 = arith.constant 0 : index
    %c0_13 = arith.constant 0 : index
    %6 = vector.load %arg4[%c0_10, %c0_11, %c0_12, %c0_13] : memref<1x16x8x8xf32, #tpu.memory_space<vmem>>, vector<1x16x8x8xf32>
    %7 = vector.shape_cast %6 : vector<1x16x8x8xf32> to vector<16x8x8xf32>
    %8 = arith.addf %5, %7 : vector<16x8x8xf32>
    %c0_14 = arith.constant 0 : index
    %c0_15 = arith.constant 0 : index
    %c0_16 = arith.constant 0 : index
    %c0_17 = arith.constant 0 : index
    %9 = vector.load %arg5[%c0_14, %c0_15, %c0_16, %c0_17] : memref<1x16x8x8xf32, #tpu.memory_space<vmem>>, vector<1x16x8x8xf32>
    %10 = vector.shape_cast %9 : vector<1x16x8x8xf32> to vector<16x8x8xf32>
    %11 = vector.shape_cast %8 : vector<16x8x8xf32> to vector<1x16x8x8xf32>
    tpu.vector_store %arg5[%c0_14, %c0_15, %c0_16, %c0_17], %11 {strides = array<i32>} : memref<1x16x8x8xf32, #tpu.memory_space<vmem>>, vector<1x16x8x8xf32>,
    return
  }
  func.func @transform_0(%arg0: i32) -> (i32, i32, i32, i32) {
    %c0_i32 = arith.constant 0 : i32
    %c0_i32_0 = arith.constant 0 : i32
    %c0_i32_1 = arith.constant 0 : i32
    %c0_i32_2 = arith.constant 0 : i32
    return %arg0, %c0_i32, %c0_i32_0, %c0_i32_1 : i32, i32, i32, i32
  }
  func.func @transform_1(%arg0: i32) -> (i32, i32, i32) {
    %c0_i32 = arith.constant 0 : i32
    %c0_i32_0 = arith.constant 0 : i32
    %c0_i32_1 = arith.constant 0 : i32
    %c0_i32_2 = arith.constant 0 : i32
    return %c0_i32, %c0_i32_0, %c0_i32_1 : i32, i32, i32
  }
  func.func @transform_2(%arg0: i32) -> (i32, i32, i32) {
    %c0_i32 = arith.constant 0 : i32
    %c0_i32_0 = arith.constant 0 : i32
    %c0_i32_1 = arith.constant 0 : i32
    %c0_i32_2 = arith.constant 0 : i32
    return %c0_i32, %c0_i32_0, %c0_i32_1 : i32, i32, i32
  }
  func.func @transform_3(%arg0: i32) -> (i32, i32, i32, i32) {
    %c0_i32 = arith.constant 0 : i32
    %c0_i32_0 = arith.constant 0 : i32
    %c0_i32_1 = arith.constant 0 : i32
    %c0_i32_2 = arith.constant 0 : i32
    return %arg0, %c0_i32, %c0_i32_0, %c0_i32_1 : i32, i32, i32, i32
  }
  func.func @transform_4(%arg0: i32) -> (i32, i32, i32, i32) {
    %c0_i32 = arith.constant 0 : i32
    %c0_i32_0 = arith.constant 0 : i32
    %c0_i32_1 = arith.constant 0 : i32
    %c0_i32_2 = arith.constant 0 : i32
    return %arg0, %c0_i32, %c0_i32_0, %c0_i32_1 : i32, i32, i32, i32
  }
}

module attributes {stable_mosaic.version = 11 : i64} {
  func.func @_conv_kernel(%arg0: i32, %arg1: memref<1x16x64xf32, #tpu.memory_space<vmem>>, %arg2: memref<8x16xf32, #tpu.memory_space<vmem>>, %arg3: memref<8x1xf32, #tpu.memory_space<vmem>>, %arg4: memref<1x8x64xf32, #tpu.memory_space<vmem>>) attributes {dimension_semantics = [#tpu.dimension_semantics<parallel>], iteration_bounds = array<i64: 2>, scalar_prefetch = 0 : i64, scratch_operands = 0 : i64, tpu.core_type = #tpu.core_type<tc>, window_params = [{transform_indices = @transform_0, window_bounds = array<i64: 1, 16, 64>}, {pipeline_mode = #tpu.pipeline_mode<synchronous>, transform_indices = @transform_1, window_bounds = array<i64: 8, 16>}, {pipeline_mode = #tpu.pipeline_mode<synchronous>, transform_indices = @transform_2, window_bounds = array<i64: 8, 1>}, {transform_indices = @transform_3, window_bounds = array<i64: 1, 8, 64>}]} {
    %c0 = arith.constant 0 : index
    %c0_0 = arith.constant 0 : index
    %0 = vector.load %arg2[%c0, %c0_0] : memref<8x16xf32, #tpu.memory_space<vmem>>, vector<8x16xf32>
    %c0_1 = arith.constant 0 : index
    %c0_2 = arith.constant 0 : index
    %c0_3 = arith.constant 0 : index
    %1 = vector.load %arg1[%c0_1, %c0_2, %c0_3] : memref<1x16x64xf32, #tpu.memory_space<vmem>>, vector<1x16x64xf32>
    %2 = vector.shape_cast %1 : vector<1x16x64xf32> to vector<16x64xf32>
    %cst = arith.constant dense<0.000000e+00> : vector<8x64xf32>
    %3 = tpu.matmul %0, %2, %cst {dimension_numbers = #tpu.dot_dimension_numbers<[1], [0], [0], [1], [0, 0, 1, 1], [], []>} : vector<8x16xf32>, vector<16x64xf32>, vector<8x64xf32> -> vector<8x64xf32>
    %c0_4 = arith.constant 0 : index
    %c0_5 = arith.constant 0 : index
    %4 = vector.load %arg3[%c0_4, %c0_5] : memref<8x1xf32, #tpu.memory_space<vmem>>, vector<8x1xf32>
    %5 = vector.broadcast %4 : vector<8x1xf32> to vector<8x64xf32>
    %6 = arith.addf %3, %5 : vector<8x64xf32>
    %c0_6 = arith.constant 0 : index
    %c0_7 = arith.constant 0 : index
    %c0_8 = arith.constant 0 : index
    %7 = vector.load %arg4[%c0_6, %c0_7, %c0_8] : memref<1x8x64xf32, #tpu.memory_space<vmem>>, vector<1x8x64xf32>
    %8 = vector.shape_cast %7 : vector<1x8x64xf32> to vector<8x64xf32>
    %9 = vector.shape_cast %6 : vector<8x64xf32> to vector<1x8x64xf32>
    tpu.vector_store %arg4[%c0_6, %c0_7, %c0_8], %9 {strides = array<i32>} : memref<1x8x64xf32, #tpu.memory_space<vmem>>, vector<1x8x64xf32>,
    return
  }
  func.func @transform_0(%arg0: i32) -> (i32, i32, i32) {
    %c0_i32 = arith.constant 0 : i32
    %c0_i32_0 = arith.constant 0 : i32
    %c0_i32_1 = arith.constant 0 : i32
    return %arg0, %c0_i32, %c0_i32_0 : i32, i32, i32
  }
  func.func @transform_1(%arg0: i32) -> (i32, i32) {
    %c0_i32 = arith.constant 0 : i32
    %c0_i32_0 = arith.constant 0 : i32
    %c0_i32_1 = arith.constant 0 : i32
    return %c0_i32, %c0_i32_0 : i32, i32
  }
  func.func @transform_2(%arg0: i32) -> (i32, i32) {
    %c0_i32 = arith.constant 0 : i32
    %c0_i32_0 = arith.constant 0 : i32
    %c0_i32_1 = arith.constant 0 : i32
    return %c0_i32, %c0_i32_0 : i32, i32
  }
  func.func @transform_3(%arg0: i32) -> (i32, i32, i32) {
    %c0_i32 = arith.constant 0 : i32
    %c0_i32_0 = arith.constant 0 : i32
    %c0_i32_1 = arith.constant 0 : i32
    return %arg0, %c0_i32, %c0_i32_0 : i32, i32, i32
  }
}

module attributes {stable_mosaic.version = 11 : i64} {
  func.func @_upsample_add_kernel(%arg0: i32, %arg1: memref<1x8x8x8xf32, #tpu.memory_space<vmem>>, %arg2: memref<8x8x16xf32, #tpu.memory_space<vmem>>, %arg3: memref<8x16x8xf32, #tpu.memory_space<vmem>>, %arg4: memref<1x8x16x16xf32, #tpu.memory_space<vmem>>, %arg5: memref<1x8x16x16xf32, #tpu.memory_space<vmem>>) attributes {dimension_semantics = [#tpu.dimension_semantics<parallel>], iteration_bounds = array<i64: 2>, scalar_prefetch = 0 : i64, scratch_operands = 0 : i64, tpu.core_type = #tpu.core_type<tc>, window_params = [{transform_indices = @transform_0, window_bounds = array<i64: 1, 8, 8, 8>}, {pipeline_mode = #tpu.pipeline_mode<synchronous>, transform_indices = @transform_1, window_bounds = array<i64: 8, 8, 16>}, {pipeline_mode = #tpu.pipeline_mode<synchronous>, transform_indices = @transform_2, window_bounds = array<i64: 8, 16, 8>}, {transform_indices = @transform_3, window_bounds = array<i64: 1, 8, 16, 16>}, {transform_indices = @transform_4, window_bounds = array<i64: 1, 8, 16, 16>}]} {
    %c0 = arith.constant 0 : index
    %c0_0 = arith.constant 0 : index
    %c0_1 = arith.constant 0 : index
    %c0_2 = arith.constant 0 : index
    %0 = vector.load %arg1[%c0, %c0_0, %c0_1, %c0_2] : memref<1x8x8x8xf32, #tpu.memory_space<vmem>>, vector<1x8x8x8xf32>
    %1 = vector.shape_cast %0 : vector<1x8x8x8xf32> to vector<8x8x8xf32>
    %c0_3 = arith.constant 0 : index
    %c0_4 = arith.constant 0 : index
    %c0_5 = arith.constant 0 : index
    %2 = vector.load %arg2[%c0_3, %c0_4, %c0_5] : memref<8x8x16xf32, #tpu.memory_space<vmem>>, vector<8x8x16xf32>
    %cst = arith.constant dense<0.000000e+00> : vector<8x8x16xf32>
    %3 = tpu.matmul %1, %2, %cst {dimension_numbers = #tpu.dot_dimension_numbers<[2], [1], [1], [2], [0, 0, 0, 1, 1, 2], [0], [0]>} : vector<8x8x8xf32>, vector<8x8x16xf32>, vector<8x8x16xf32> -> vector<8x8x16xf32>
    %c0_6 = arith.constant 0 : index
    %c0_7 = arith.constant 0 : index
    %c0_8 = arith.constant 0 : index
    %4 = vector.load %arg3[%c0_6, %c0_7, %c0_8] : memref<8x16x8xf32, #tpu.memory_space<vmem>>, vector<8x16x8xf32>
    %cst_9 = arith.constant dense<0.000000e+00> : vector<8x16x16xf32>
    %5 = tpu.matmul %4, %3, %cst_9 {dimension_numbers = #tpu.dot_dimension_numbers<[2], [1], [1], [2], [0, 0, 0, 1, 1, 2], [0], [0]>} : vector<8x16x8xf32>, vector<8x8x16xf32>, vector<8x16x16xf32> -> vector<8x16x16xf32>
    %c0_10 = arith.constant 0 : index
    %c0_11 = arith.constant 0 : index
    %c0_12 = arith.constant 0 : index
    %c0_13 = arith.constant 0 : index
    %6 = vector.load %arg4[%c0_10, %c0_11, %c0_12, %c0_13] : memref<1x8x16x16xf32, #tpu.memory_space<vmem>>, vector<1x8x16x16xf32>
    %7 = vector.shape_cast %6 : vector<1x8x16x16xf32> to vector<8x16x16xf32>
    %8 = arith.addf %5, %7 : vector<8x16x16xf32>
    %c0_14 = arith.constant 0 : index
    %c0_15 = arith.constant 0 : index
    %c0_16 = arith.constant 0 : index
    %c0_17 = arith.constant 0 : index
    %9 = vector.load %arg5[%c0_14, %c0_15, %c0_16, %c0_17] : memref<1x8x16x16xf32, #tpu.memory_space<vmem>>, vector<1x8x16x16xf32>
    %10 = vector.shape_cast %9 : vector<1x8x16x16xf32> to vector<8x16x16xf32>
    %11 = vector.shape_cast %8 : vector<8x16x16xf32> to vector<1x8x16x16xf32>
    tpu.vector_store %arg5[%c0_14, %c0_15, %c0_16, %c0_17], %11 {strides = array<i32>} : memref<1x8x16x16xf32, #tpu.memory_space<vmem>>, vector<1x8x16x16xf32>,
    return
  }
  func.func @transform_0(%arg0: i32) -> (i32, i32, i32, i32) {
    %c0_i32 = arith.constant 0 : i32
    %c0_i32_0 = arith.constant 0 : i32
    %c0_i32_1 = arith.constant 0 : i32
    %c0_i32_2 = arith.constant 0 : i32
    return %arg0, %c0_i32, %c0_i32_0, %c0_i32_1 : i32, i32, i32, i32
  }
  func.func @transform_1(%arg0: i32) -> (i32, i32, i32) {
    %c0_i32 = arith.constant 0 : i32
    %c0_i32_0 = arith.constant 0 : i32
    %c0_i32_1 = arith.constant 0 : i32
    %c0_i32_2 = arith.constant 0 : i32
    return %c0_i32, %c0_i32_0, %c0_i32_1 : i32, i32, i32
  }
  func.func @transform_2(%arg0: i32) -> (i32, i32, i32) {
    %c0_i32 = arith.constant 0 : i32
    %c0_i32_0 = arith.constant 0 : i32
    %c0_i32_1 = arith.constant 0 : i32
    %c0_i32_2 = arith.constant 0 : i32
    return %c0_i32, %c0_i32_0, %c0_i32_1 : i32, i32, i32
  }
  func.func @transform_3(%arg0: i32) -> (i32, i32, i32, i32) {
    %c0_i32 = arith.constant 0 : i32
    %c0_i32_0 = arith.constant 0 : i32
    %c0_i32_1 = arith.constant 0 : i32
    %c0_i32_2 = arith.constant 0 : i32
    return %arg0, %c0_i32, %c0_i32_0, %c0_i32_1 : i32, i32, i32, i32
  }
  func.func @transform_4(%arg0: i32) -> (i32, i32, i32, i32) {
    %c0_i32 = arith.constant 0 : i32
    %c0_i32_0 = arith.constant 0 : i32
    %c0_i32_1 = arith.constant 0 : i32
    %c0_i32_2 = arith.constant 0 : i32
    return %arg0, %c0_i32, %c0_i32_0, %c0_i32_1 : i32, i32, i32, i32
  }
}

module attributes {stable_mosaic.version = 11 : i64} {
  func.func @_conv_sigmoid_kernel(%arg0: i32, %arg1: memref<1x72x256xf32, #tpu.memory_space<vmem>>, %arg2: memref<1x72xf32, #tpu.memory_space<vmem>>, %arg3: memref<1x1xf32, #tpu.memory_space<vmem>>, %arg4: memref<1x1x256xf32, #tpu.memory_space<vmem>>) attributes {dimension_semantics = [#tpu.dimension_semantics<parallel>], iteration_bounds = array<i64: 2>, scalar_prefetch = 0 : i64, scratch_operands = 0 : i64, tpu.core_type = #tpu.core_type<tc>, window_params = [{transform_indices = @transform_0, window_bounds = array<i64: 1, 72, 256>}, {pipeline_mode = #tpu.pipeline_mode<synchronous>, transform_indices = @transform_1, window_bounds = array<i64: 1, 72>}, {pipeline_mode = #tpu.pipeline_mode<synchronous>, transform_indices = @transform_2, window_bounds = array<i64: 1, 1>}, {transform_indices = @transform_3, window_bounds = array<i64: 1, 1, 256>}]} {
    %c0 = arith.constant 0 : index
    %c0_0 = arith.constant 0 : index
    %0 = vector.load %arg2[%c0, %c0_0] : memref<1x72xf32, #tpu.memory_space<vmem>>, vector<1x72xf32>
    %c0_1 = arith.constant 0 : index
    %c0_2 = arith.constant 0 : index
    %c0_3 = arith.constant 0 : index
    %1 = vector.load %arg1[%c0_1, %c0_2, %c0_3] : memref<1x72x256xf32, #tpu.memory_space<vmem>>, vector<1x72x256xf32>
    %2 = vector.shape_cast %1 : vector<1x72x256xf32> to vector<72x256xf32>
    %cst = arith.constant dense<0.000000e+00> : vector<1x256xf32>
    %3 = tpu.matmul %0, %2, %cst {dimension_numbers = #tpu.dot_dimension_numbers<[1], [0], [0], [1], [0, 0, 1, 1], [], []>} : vector<1x72xf32>, vector<72x256xf32>, vector<1x256xf32> -> vector<1x256xf32>
    %c0_4 = arith.constant 0 : index
    %c0_5 = arith.constant 0 : index
    %4 = vector.load %arg3[%c0_4, %c0_5] : memref<1x1xf32, #tpu.memory_space<vmem>>, vector<1x1xf32>
    %5 = vector.broadcast %4 : vector<1x1xf32> to vector<1x256xf32>
    %6 = arith.addf %3, %5 : vector<1x256xf32>
    %7 = arith.negf %6 : vector<1x256xf32>
    %8 = math.exp %7 : vector<1x256xf32>
    %cst_6 = arith.constant 1.000000e+00 : f32
    %9 = vector.broadcast %cst_6 : f32 to vector<1x256xf32>
    %10 = arith.addf %9, %8 : vector<1x256xf32>
    %11 = arith.divf %9, %10 : vector<1x256xf32>
    %c0_7 = arith.constant 0 : index
    %c0_8 = arith.constant 0 : index
    %c0_9 = arith.constant 0 : index
    %12 = vector.load %arg4[%c0_7, %c0_8, %c0_9] : memref<1x1x256xf32, #tpu.memory_space<vmem>>, vector<1x1x256xf32>
    %13 = vector.shape_cast %12 : vector<1x1x256xf32> to vector<1x256xf32>
    %14 = vector.shape_cast %11 : vector<1x256xf32> to vector<1x1x256xf32>
    tpu.vector_store %arg4[%c0_7, %c0_8, %c0_9], %14 {strides = array<i32>} : memref<1x1x256xf32, #tpu.memory_space<vmem>>, vector<1x1x256xf32>,
    return
  }
  func.func @transform_0(%arg0: i32) -> (i32, i32, i32) {
    %c0_i32 = arith.constant 0 : i32
    %c0_i32_0 = arith.constant 0 : i32
    %c0_i32_1 = arith.constant 0 : i32
    return %arg0, %c0_i32, %c0_i32_0 : i32, i32, i32
  }
  func.func @transform_1(%arg0: i32) -> (i32, i32) {
    %c0_i32 = arith.constant 0 : i32
    %c0_i32_0 = arith.constant 0 : i32
    %c0_i32_1 = arith.constant 0 : i32
    return %c0_i32, %c0_i32_0 : i32, i32
  }
  func.func @transform_2(%arg0: i32) -> (i32, i32) {
    %c0_i32 = arith.constant 0 : i32
    %c0_i32_0 = arith.constant 0 : i32
    %c0_i32_1 = arith.constant 0 : i32
    return %c0_i32, %c0_i32_0 : i32, i32
  }
  func.func @transform_3(%arg0: i32) -> (i32, i32, i32) {
    %c0_i32 = arith.constant 0 : i32
    %c0_i32_0 = arith.constant 0 : i32
    %c0_i32_1 = arith.constant 0 : i32
    return %arg0, %c0_i32, %c0_i32_0 : i32, i32, i32
  }
}

</mosaic_0001>

<bundles_post_ra>
// kernel: vnet_forward.48
= control target key start
LH: loop header
LB: loop body
LE: loop exit
PB: predicated region body
PF: predicated region fallthrough
CT: control target
= control target key end

     0   :  { %s347_s12 = smov 0   ;;  %s377_s0 = inlined_call_operand.vmem [shape: f32[2,8,256], index: 0, kind: input, shape index: {}]   ;;  %s378_s1 = inlined_call_operand.vmem [shape: f32[8,1], index: 1, kind: input, shape index: {}]   ;;  %s379_s2 = inlined_call_operand.vmem [shape: f32[8,1], index: 2, kind: input, shape index: {}]   ;;  %s380_s3 = inlined_call_operand.vmem [shape: f32[2,8,256], index: 3, kind: output, shape index: {}]  }
   0x1 LB: > { %s288_s13 = sadd.s32 4294967295, %s324_s12   ;;  %p292_p0 = scmp.ge.s32.totalorder %s324_s12, 1  ;;  %s324_s12 = sphi %s347_s12, %s13_s12  }
   0x2   : > { %p137_p1 = scmp.lt.s32.totalorder %s324_s12, 3 }
   0x4   : > { %p138_p2 = pnand %p292_p0, %p137_p1 }
   0x5   : > { %p161_p3 = scmp.lt.s32.totalorder (!%p138_p2), %s288_s13, 1  ;;  %v209_v0 = vld [vmem:[%s378_s1] sm:$0xff] (!%p138_p2)  ;;  %v326_v1 = vmov (!%p138_p2), 0  }
   0x6   : > { %141 = sbr.rel (%p138_p2) target bundleno = 257 (0x101), region = 32  ;;  %314 = vset.pattern.permute.xlu1 (!%p138_p2), %v326_v1  ;;  %315 = vset.pattern.permute.xlu0 (!%p138_p2), %v326_v1  ;;  %v217_v2 = vld [vmem:[%s379_s2] sm:$0xff] (!%p138_p2) }
   0x7   : > { %212 = vperm.xlu1 (!%p138_p2), %314, %v209_v0  }
   0xb   : > { %220 = vperm.xlu1 (!%p138_p2), %314, %v217_v2  }
   0xd   : > { %s382_s13 = smov (!%p161_p3, %s288_s13), 1 }
   0xe   : > { %s299_s18 = sshll.u32 %s382_s13, 4 }
   0xf   : > { %s165_s21 = scalar_lea.vmem %s377_s0, %s299_s18  ;;  %s170_s26 = scalar_lea.vmem %s380_s3, %s299_s18 }
  0x10   : > { %v171_v3 = vld [vmem:[%s165_s21] sm:$0xff]  ;;  %v172_v4 = vld [vmem:[%s165_s21 + $0x8] sm:$0xff] }
  0x11   : > { %v173_v5 = vadd.f32 %v172_v4, %v171_v3  ;;  %v186_v6 = vmul.f32 %v171_v3, %v171_v3  ;;  %v187_v7 = vmul.f32 %v172_v4, %v172_v4 }
  0x13   : > { %174 = vadd.xlane.f32.xlu0 %v173_v5  ;;  %v188_v8 = vadd.f32 %v187_v7, %v186_v6 }
  0x17   : > { %189 = vadd.xlane.f32.xlu0 %v188_v8 }
  0x86   : > { %v213_v31 = vpop.permute.xlu1 %212 }
  0x8a   : > { %v221_v39 = vpop.permute.xlu1 %220 }
  0xa0   : > { %v175_v9 = vpop.xlane.xlu0 %174 }
  0xa1   : > { %v176_v10 = vrot.slane %v175_v9, 4 }
  0xa3   : > { %v177_v11 = vadd.f32 %v176_v10, %v175_v9 }
  0xa4   : > { %v190_v12 = vpop.xlane.xlu0 %189 }
  0xa5   : > { %v178_v13 = vrot.slane %v177_v11, 2  ;;  %v191_v14 = vrot.slane %v190_v12, 4 }
  0xa7   : > { %v192_v15 = vadd.f32 %v191_v14, %v190_v12  ;;  %v179_v16 = vadd.f32 %v178_v13, %v177_v11 }
  0xa9   : > { %v193_v17 = vrot.slane %v192_v15, 2  ;;  %v180_v18 = vrot.slane %v179_v16, 1 }
  0xab   : > { %v194_v19 = vadd.f32 %v193_v17, %v192_v15  ;;  %v181_v20 = vadd.f32 %v180_v18, %v179_v16 }
  0xad   : > { %301 = vpush %v181_v20  ;;  %v195_v21 = vrot.slane %v194_v19, 1 }
  0xaf   : > { %v196_v22 = vadd.f32 %v195_v21, %v194_v19 }
  0xb1   : > { %303 = vpush %v196_v22 }
  0xde   : > { %s302_s22 = spop %301 }
  0xdf   : > { %v183_v23 = vstv %s302_s22 }
  0xe0   : > { %v185_v24 = vmul.f32 0.00048828125, %v183_v23 }
  0xe2   : > { %s304_s23 = spop %303  ;;  %v200_v27 = vmul.f32 %v185_v24, %v185_v24  ;;  %v203_v32 = vsub.f32 %v171_v3, %v185_v24  ;;  %v204_v33 = vsub.f32 %v172_v4, %v185_v24 }
  0xe3   : > { %v198_v25 = vstv %s304_s23 }
  0xe4   : > { %v199_v26 = vmul.f32 0.00048828125, %v198_v25 }
  0xe6   : > { %v201_v28 = vsub.f32 %v199_v26, %v200_v27 }
  0xe8   : > { %v202_v29 = vmax.f32 %v201_v28, 0.0 }
  0xea   : > { %v205_v30 = vadd.f32 1e-05, %v202_v29 }
  0xec   : > { %316 = vrsqrt.f32 %v205_v30 }
  0xf6   : > { %v317_v34 = vpop.eup %316 }
  0xf7   : > { %v207_v35 = vmul.f32 %v317_v34, %v203_v32  ;;  %v208_v36 = vmul.f32 %v317_v34, %v204_v33 }
  0xf9   : > { %v215_v37 = vmul.f32 %v213_v31, %v207_v35  ;;  %v216_v38 = vmul.f32 %v213_v31, %v208_v36 }
  0xfb   : > { %v223_v40 = vadd.f32 %v221_v39, %v215_v37  ;;  %v224_v41 = vadd.f32 %v221_v39, %v216_v38 }
  0xfd   : > { %vm225_vm0 = vcmp.ge.f32.partialorder %v223_v40, 0.0  ;;  %vm226_vm1 = vcmp.ge.f32.partialorder %v224_v41, 0.0  ;;  %v227_v42 = vmul.f32 0.2, %v223_v40  ;;  %v228_v43 = vmul.f32 0.2, %v224_v41 }
  0xff   : > { %v229_v44 = vsel %vm225_vm0, %v223_v40, %v227_v42  ;;  %v230_v45 = vsel %vm226_vm1, %v224_v41, %v228_v43 }
 0x100   : > { %231 = vst [vmem:[%s170_s26] sm:$0xff] %v229_v44  ;;  %232 = vst [vmem:[%s170_s26 + $0x8] sm:$0xff] %v230_v45 }
 0x101 PF: > { %s13_s12 = sadd.s32 1, %s324_s12  }
 0x102   : > { %p10_p4 = scmp.ge.s32.totalorder %s13_s12, 4  }
 0x104   :  { %12 = sbr.rel (!%p10_p4) target bundleno = 1 (0x1), region = 62 }

// kernel: vnet_forward.47
= control target key start
LH: loop header
LB: loop body
LE: loop exit
PB: predicated region body
PF: predicated region fallthrough
CT: control target
= control target key end

     0   :  { %s386_s12 = smov 0   ;;  %s409_s0 = inlined_call_operand.vmem [shape: f32[2,9,256], index: 0, kind: input, shape index: {}]   ;;  %s410_s1 = inlined_call_operand.vmem [shape: f32[8,9], index: 1, kind: input, shape index: {}]   ;;  %s411_s2 = inlined_call_operand.vmem [shape: f32[8,1], index: 2, kind: input, shape index: {}]   ;;  %s412_s3 = inlined_call_operand.vmem [shape: f32[2,8,256], index: 3, kind: output, shape index: {}]  }
   0x1 LB: > { %s321_s13 = sadd.s32 4294967295, %s361_s12   ;;  %p325_p0 = scmp.ge.s32.totalorder %s361_s12, 1  ;;  %s361_s12 = sphi %s386_s12, %s13_s12  }
   0x2   : > { %p137_p1 = scmp.lt.s32.totalorder %s361_s12, 3 }
   0x4   : > { %p138_p2 = pnand %p325_p0, %p137_p1 }
   0x5   : > { %p161_p3 = scmp.lt.s32.totalorder (!%p138_p2), %s321_s13, 1  ;;  %v363_v0 = vmov (!%p138_p2), 0.0   ;;  %v176_v1 = vld [vmem:[%s411_s2] sm:$0xff] (!%p138_p2)  ;;  %vm186_vm0 = vcmask (!%p138_p2), 1040384   ;;  %v364_v2 = vmov (!%p138_p2), 0   ;;  %vm365_vm1 = vmmov (!%p138_p2), 1  }
   0x6   : > { %141 = sbr.rel (%p138_p2) target bundleno = 239 (0xef), region = 32  ;;  %257 = vmatprep.mubr.f32.mxu0 (!%p138_p2), %v363_v0  ;;  %354 = vset.pattern.permute.xlu0 (!%p138_p2), %v364_v2  ;;  %vm338_vm2 = vmpackc.low (!%p138_p2), %vm186_vm0, %vm365_vm1  ;;  %v171_v9 = vld [vmem:[%s410_s1] sm:$0xff] (!%p138_p2)  ;;  %vm182_vm3 = vcmask (!%p138_p2), 72704  }
   0x7   : > { %179 = vperm.xlu0 (!%p138_p2), %354, %v176_v1  }
   0xd   : > { %s414_s13 = smov (!%p161_p3, %s321_s13), 1 }
   0xe   : > { %s335_s16 = sshll.u32 %s414_s13, 5  ;;  %s336_s22 = sshll.u32 %s414_s13, 4 }
   0xf   : > { %s165_s19 = scalar_lea.vmem %s409_s0, %s335_s16  ;;  %s170_s25 = scalar_lea.vmem %s412_s3, %s336_s22 }
  0x10   : > { %v173_v3 = vld [vmem:[%s165_s19 + $0x8] sm:$0xff]  ;;  %v175_v4 = vld [vmem:[%s165_s19 + $0x18] sm:$0x1]  ;;  %v172_v5 = vld [vmem:[%s165_s19] sm:$0xff] }
  0x11   : > { %v337_v6 = vpack.c.bf16 %v175_v4, %v173_v3  ;;  %v174_v7 = vld [vmem:[%s165_s19 + $0x10] sm:$0x1] }
  0x12   : > { %v340_v8 = vpack.c.bf16 %v174_v7, %v172_v5 }
  0x13   : > { %339 = vmatprep.subr.msk.bf16.mxu0 %vm338_vm2, %v337_v6 }
  0x14   : > { %342 = vmatpush1.bf16.msk.msra.mxu0 %vm338_vm2, %v340_v8 }
  0x17   : > { %332 = vmatmul.mubr.msk.f32.vlgmr.msra.gmra.mrb[0].mxu0 %vm182_vm3, %v171_v9 }
  0x86   : > { %v180_v10 = vpop.permute.xlu0 %179 }
  0xea   : > { %v259_v11 = vpop.f32.mrb[0].mxu0 }
  0xeb   : > { %v260_v12 = vadd.f32 %v259_v11, %v180_v10  ;;  %v261_v13 = vpop.f32.mrb[1].mxu0 }
  0xec   : > { %v262_v14 = vadd.f32 %v261_v13, %v180_v10 }
  0xed   : > { %264 = vst [vmem:[%s170_s25] sm:$0xff] %v260_v12 }
  0xee   : > { %265 = vst [vmem:[%s170_s25 + $0x8] sm:$0xff] %v262_v14 }
  0xef PF: > { %s13_s12 = sadd.s32 1, %s361_s12  }
  0xf0   : > { %p10_p4 = scmp.ge.s32.totalorder %s13_s12, 4  }
  0xf2   :  { %12 = sbr.rel (!%p10_p4) target bundleno = 1 (0x1), region = 62 }

// kernel: vnet_forward.50
= control target key start
LH: loop header
LB: loop body
LE: loop exit
PB: predicated region body
PF: predicated region fallthrough
CT: control target
= control target key end

     0   :  { %s469_s15 = smov 0   ;;  %s519_s0 = inlined_call_operand.vmem [shape: f32[2,72,256], index: 0, kind: input, shape index: {}]   ;;  %s520_s1 = inlined_call_operand.vmem [shape: f32[8,72], index: 1, kind: input, shape index: {}]   ;;  %s521_s2 = inlined_call_operand.vmem [shape: f32[8,1], index: 2, kind: input, shape index: {}]   ;;  %s522_s3 = inlined_call_operand.vmem [shape: f32[2,8,256], index: 3, kind: input, shape index: {}]   ;;  %s523_s4 = inlined_call_operand.vmem [shape: f32[2,8,256], index: 4, kind: output, shape index: {}]  }
   0x1 LB: > { %s391_s16 = sadd.s32 4294967295, %s440_s15   ;;  %p395_p0 = scmp.ge.s32.totalorder %s440_s15, 1  ;;  %s440_s15 = sphi %s469_s15, %s14_s15  }
   0x2   : > { %p172_p1 = scmp.lt.s32.totalorder %s440_s15, 3 }
   0x4   : > { %p173_p2 = pnand %p395_p0, %p172_p1 }
   0x5   : > { %p203_p3 = scmp.lt.s32.totalorder (!%p173_p2), %s391_s16, 1  ;;  %v237_v0 = vld [vmem:[%s521_s2] sm:$0xff] (!%p173_p2)  ;;  %v442_v1 = vmov (!%p173_p2), 0.0   ;;  %v443_v2 = vmov (!%p173_p2), 0   ;;  %vm243_vm0 = vcmask (!%p173_p2), 588800  }
   0x6   : > { %176 = sbr.rel (%p173_p2) target bundleno = 256 (0x100), region = 36  ;;  %311 = vmatprep.mubr.f32.mxu0 (!%p173_p2), %v442_v1  ;;  %433 = vset.pattern.permute.xlu0 (!%p173_p2), %v443_v2  ;;  %v218_v29 = vld [vmem:[%s520_s1] sm:$0xff] (!%p173_p2) }
   0x7   : > { %240 = vperm.xlu0 (!%p173_p2), %433, %v237_v0  }
   0xd   : > { %s525_s16 = smov (!%p203_p3, %s391_s16), 1 }
   0xe   : > { %s422_s19 = smul.u32 144, %s525_s16  ;;  %s404_s25 = sshll.u32 %s525_s16, 4 }
   0xf   : > { %s212_s28 = scalar_lea.vmem %s522_s3, %s404_s25  ;;  %s217_s5 = scalar_lea.vmem %s523_s4, %s404_s25 }
  0x10   : > { %s486_s22 = scalar_lea.vmem %s519_s0, %s422_s19  ;;  %v318_v32 = vld [vmem:[%s212_s28] sm:$0xff]  ;;  %v319_v35 = vld [vmem:[%s212_s28 + $0x8] sm:$0xff] }
  0x11   : > { %v220_v3 = vld [vmem:[%s486_s22 + $0x8] sm:$0xff]  ;;  %v222_v4 = vld [vmem:[%s486_s22 + $0x18] sm:$0xff]  ;;  %v219_v5 = vld [vmem:[%s486_s22] sm:$0xff] }
  0x12   : > { %v406_v6 = vpack.c.bf16 %v222_v4, %v220_v3  ;;  %v221_v7 = vld [vmem:[%s486_s22 + $0x10] sm:$0xff]  ;;  %v224_v8 = vld [vmem:[%s486_s22 + $0x28] sm:$0xff]  ;;  %v226_v9 = vld [vmem:[%s486_s22 + $0x38] sm:$0xff] }
  0x13   : > { %v408_v10 = vpack.c.bf16 %v221_v7, %v219_v5  ;;  %v410_v11 = vpack.c.bf16 %v226_v9, %v224_v8  ;;  %v223_v12 = vld [vmem:[%s486_s22 + $0x20] sm:$0xff]  ;;  %v225_v13 = vld [vmem:[%s486_s22 + $0x30] sm:$0xff]  ;;  %v228_v14 = vld [vmem:[%s486_s22 + $0x48] sm:$0xff] }
  0x14   : > { %407 = vmatprep.subr.bf16.mxu0 %v406_v6  ;;  %v230_v15 = vld [vmem:[%s486_s22 + $0x58] sm:$0xff]  ;;  %v412_v16 = vpack.c.bf16 %v225_v13, %v223_v12  ;;  %v227_v18 = vld [vmem:[%s486_s22 + $0x40] sm:$0xff]  ;;  %v229_v19 = vld [vmem:[%s486_s22 + $0x50] sm:$0xff] }
  0x15   : > { %409 = vmatpush1.bf16.msra.mxu0 %v408_v10  ;;  %v414_v17 = vpack.c.bf16 %v230_v15, %v228_v14  ;;  %v232_v20 = vld [vmem:[%s486_s22 + $0x68] sm:$0xff]  ;;  %v234_v21 = vld [vmem:[%s486_s22 + $0x78] sm:$0xff]  ;;  %v416_v22 = vpack.c.bf16 %v229_v19, %v227_v18  ;;  %v231_v24 = vld [vmem:[%s486_s22 + $0x60] sm:$0xff] }
  0x16   : > { %411 = vmatprep.subr.bf16.mxu0 %v410_v11  ;;  %v418_v23 = vpack.c.bf16 %v234_v21, %v232_v20  ;;  %v233_v25 = vld [vmem:[%s486_s22 + $0x70] sm:$0xff]  ;;  %v236_v27 = vld [vmem:[%s486_s22 + $0x88] sm:$0xff]  ;;  %v235_v28 = vld [vmem:[%s486_s22 + $0x80] sm:$0xff] }
  0x17   : > { %v420_v26 = vpack.c.bf16 %v233_v25, %v231_v24 }
  0x19   : > { %413 = vmatpush1.bf16.msra.mxu0 %v412_v16 }
  0x1a   : > { %415 = vmatprep.subr.bf16.mxu0 %v414_v17 }
  0x1d   : > { %417 = vmatpush1.bf16.msra.mxu0 %v416_v22 }
  0x1e   : > { %419 = vmatprep.subr.bf16.mxu0 %v418_v23 }
  0x21   : > { %421 = vmatpush1.bf16.msra.mxu0 %v420_v26 }
  0x22   : > { %263 = vmatprep.subr.mxu0 %v236_v27 }
  0x25   : > { %264 = vmatpush1.msra.mxu0 %v235_v28 }
  0x26   : > { %401 = vmatmul.mubr.msk.f32.vlgmr.msra.gmra.mrb[0].mxu0 %vm243_vm0, %v218_v29 }
  0x86   : > { %v241_v30 = vpop.permute.xlu0 %240 }
  0xf9   : > { %v313_v31 = vpop.f32.mrb[0].mxu0 }
  0xfa   : > { %v314_v33 = vadd.f32 %v313_v31, %v241_v30  ;;  %v315_v34 = vpop.f32.mrb[1].mxu0 }
  0xfb   : > { %v316_v36 = vadd.f32 %v315_v34, %v241_v30 }
  0xfc   : > { %v320_v37 = vadd.f32 %v318_v32, %v314_v33 }
  0xfd   : > { %v321_v38 = vadd.f32 %v319_v35, %v316_v36 }
  0xfe   : > { %322 = vst [vmem:[%s217_s5] sm:$0xff] %v320_v37 }
  0xff   : > { %323 = vst [vmem:[%s217_s5 + $0x8] sm:$0xff] %v321_v38 }
 0x100 PF: > { %s14_s15 = sadd.s32 1, %s440_s15  }
 0x101   : > { %p11_p4 = scmp.ge.s32.totalorder %s14_s15, 4  }
 0x103   :  { %13 = sbr.rel (!%p11_p4) target bundleno = 1 (0x1), region = 69 }

// kernel: vnet_forward.49
= control target key start
LH: loop header
LB: loop body
LE: loop exit
PB: predicated region body
PF: predicated region fallthrough
CT: control target
= control target key end

     0   :  { %s527_s18 = smov 0   ;;  %s580_s0 = inlined_call_operand.vmem [shape: f32[2,72,256], index: 0, kind: input, shape index: {}]   ;;  %s581_s1 = inlined_call_operand.vmem [shape: f32[8,72], index: 1, kind: input, shape index: {}]   ;;  %s582_s2 = inlined_call_operand.vmem [shape: f32[8,1], index: 2, kind: input, shape index: {}]   ;;  %s583_s3 = inlined_call_operand.vmem [shape: f32[8,1], index: 3, kind: input, shape index: {}]   ;;  %s584_s4 = inlined_call_operand.vmem [shape: f32[8,1], index: 4, kind: input, shape index: {}]   ;;  %s585_s5 = inlined_call_operand.vmem [shape: f32[2,8,256], index: 5, kind: output, shape index: {}]  }
   0x1 LB: > { %s440_s19 = sadd.s32 4294967295, %s493_s18   ;;  %p444_p0 = scmp.ge.s32.totalorder %s493_s18, 1  ;;  %s493_s18 = sphi %s527_s18, %s15_s18  }
   0x2   : > { %p187_p1 = scmp.lt.s32.totalorder %s493_s18, 3 }
   0x4   : > { %p188_p2 = pnand %p444_p0, %p187_p1 }
   0x5   : > { %p215_p3 = scmp.lt.s32.totalorder (!%p188_p2), %s440_s19, 1  ;;  %v244_v0 = vld [vmem:[%s582_s2] sm:$0xff] (!%p188_p2)  ;;  %v495_v1 = vmov (!%p188_p2), 0.0   ;;  %v496_v2 = vmov (!%p188_p2), 0   ;;  %vm250_vm0 = vcmask (!%p188_p2), 588800  }
   0x6   : > { %191 = sbr.rel (%p188_p2) target bundleno = 491 (0x1eb), region = 40  ;;  %318 = vmatprep.mubr.f32.mxu0 (!%p188_p2), %v495_v1  ;;  %483 = vset.pattern.permute.xlu0 (!%p188_p2), %v496_v2  ;;  %v225_v29 = vld [vmem:[%s581_s1] sm:$0xff] (!%p188_p2) }
   0x7   : > { %247 = vperm.xlu0 (!%p188_p2), %483, %v244_v0   ;;  %484 = vset.pattern.permute.xlu1 (!%p188_p2), %v496_v2  ;;  %v361_v39 = vld [vmem:[%s583_s3] sm:$0xff] (!%p188_p2) }
   0x8   : > { %v369_v40 = vld [vmem:[%s584_s4] sm:$0xff] (!%p188_p2) }
   0xd   : > { %s587_s19 = smov (!%p215_p3, %s440_s19), 1 }
   0xe   : > { %s468_s22 = smul.u32 144, %s587_s19  ;;  %s451_s9 = sshll.u32 %s587_s19, 4 }
   0xf   : > { %s224_s12 = scalar_lea.vmem %s585_s5, %s451_s9 }
  0x10   : > { %s544_s25 = scalar_lea.vmem %s580_s0, %s468_s22 }
  0x11   : > { %v227_v3 = vld [vmem:[%s544_s25 + $0x8] sm:$0xff]  ;;  %v229_v4 = vld [vmem:[%s544_s25 + $0x18] sm:$0xff]  ;;  %v226_v5 = vld [vmem:[%s544_s25] sm:$0xff] }
  0x12   : > { %v452_v6 = vpack.c.bf16 %v229_v4, %v227_v3  ;;  %v228_v7 = vld [vmem:[%s544_s25 + $0x10] sm:$0xff]  ;;  %v231_v8 = vld [vmem:[%s544_s25 + $0x28] sm:$0xff]  ;;  %v233_v9 = vld [vmem:[%s544_s25 + $0x38] sm:$0xff] }
  0x13   : > { %v454_v10 = vpack.c.bf16 %v228_v7, %v226_v5  ;;  %v456_v11 = vpack.c.bf16 %v233_v9, %v231_v8  ;;  %v230_v12 = vld [vmem:[%s544_s25 + $0x20] sm:$0xff]  ;;  %v232_v13 = vld [vmem:[%s544_s25 + $0x30] sm:$0xff]  ;;  %v235_v14 = vld [vmem:[%s544_s25 + $0x48] sm:$0xff] }
  0x14   : > { %453 = vmatprep.subr.bf16.mxu0 %v452_v6  ;;  %v237_v15 = vld [vmem:[%s544_s25 + $0x58] sm:$0xff]  ;;  %v458_v16 = vpack.c.bf16 %v232_v13, %v230_v12  ;;  %v234_v18 = vld [vmem:[%s544_s25 + $0x40] sm:$0xff]  ;;  %v236_v19 = vld [vmem:[%s544_s25 + $0x50] sm:$0xff] }
  0x15   : > { %455 = vmatpush1.bf16.msra.mxu0 %v454_v10  ;;  %v460_v17 = vpack.c.bf16 %v237_v15, %v235_v14  ;;  %v239_v20 = vld [vmem:[%s544_s25 + $0x68] sm:$0xff]  ;;  %v241_v21 = vld [vmem:[%s544_s25 + $0x78] sm:$0xff]  ;;  %v462_v22 = vpack.c.bf16 %v236_v19, %v234_v18  ;;  %v238_v24 = vld [vmem:[%s544_s25 + $0x60] sm:$0xff] }
  0x16   : > { %457 = vmatprep.subr.bf16.mxu0 %v456_v11  ;;  %v464_v23 = vpack.c.bf16 %v241_v21, %v239_v20  ;;  %v240_v25 = vld [vmem:[%s544_s25 + $0x70] sm:$0xff]  ;;  %v243_v27 = vld [vmem:[%s544_s25 + $0x88] sm:$0xff]  ;;  %v242_v28 = vld [vmem:[%s544_s25 + $0x80] sm:$0xff] }
  0x17   : > { %v466_v26 = vpack.c.bf16 %v240_v25, %v238_v24 }
  0x19   : > { %459 = vmatpush1.bf16.msra.mxu0 %v458_v16 }
  0x1a   : > { %461 = vmatprep.subr.bf16.mxu0 %v460_v17 }
  0x1d   : > { %463 = vmatpush1.bf16.msra.mxu0 %v462_v22 }
  0x1e   : > { %465 = vmatprep.subr.bf16.mxu0 %v464_v23 }
  0x21   : > { %467 = vmatpush1.bf16.msra.mxu0 %v466_v26 }
  0x22   : > { %270 = vmatprep.subr.mxu0 %v243_v27 }
  0x25   : > { %271 = vmatpush1.msra.mxu0 %v242_v28 }
  0x26   : > { %448 = vmatmul.mubr.msk.f32.vlgmr.msra.gmra.mrb[0].mxu0 %vm250_vm0, %v225_v29 }
  0x86   : > { %v248_v30 = vpop.permute.xlu0 %247 }
  0xf9   : > { %v320_v31 = vpop.f32.mrb[0].mxu0 }
  0xfa   : > { %v321_v32 = vadd.f32 %v320_v31, %v248_v30  ;;  %v322_v33 = vpop.f32.mrb[1].mxu0 }
  0xfb   : > { %v323_v34 = vadd.f32 %v322_v33, %v248_v30 }
  0xfc   : > { %v338_v35 = vmul.f32 %v321_v32, %v321_v32 }
  0xfd   : > { %v325_v36 = vadd.f32 %v323_v34, %v321_v32  ;;  %v339_v37 = vmul.f32 %v323_v34, %v323_v34 }
  0xff   : > { %326 = vadd.xlane.f32.xlu0 %v325_v36  ;;  %v340_v38 = vadd.f32 %v339_v37, %v338_v35 }
 0x101   : > { %341 = vadd.xlane.f32.xlu1 %v340_v38 }
 0x112   : > { %364 = vperm.xlu1 %484, %v361_v39  }
 0x116   : > { %372 = vperm.xlu1 %484, %v369_v40  }
 0x18c   : > { %v327_v41 = vpop.xlane.xlu0 %326 }
 0x18d   : > { %v328_v42 = vrot.slane %v327_v41, 4 }
 0x18e   : > { %v342_v43 = vpop.xlane.xlu1 %341 }
 0x18f   : > { %v329_v44 = vadd.f32 %v328_v42, %v327_v41  ;;  %v343_v45 = vrot.slane %v342_v43, 4 }
 0x191   : > { %v330_v46 = vrot.slane %v329_v44, 2  ;;  %v344_v47 = vadd.f32 %v343_v45, %v342_v43 }
 0x192   : > { %v365_v63 = vpop.permute.xlu1 %364 }
 0x193   : > { %v345_v48 = vrot.slane %v344_v47, 2  ;;  %v331_v49 = vadd.f32 %v330_v46, %v329_v44 }
 0x195   : > { %v332_v50 = vrot.slane %v331_v49, 1  ;;  %v346_v51 = vadd.f32 %v345_v48, %v344_v47 }
 0x196   : > { %v373_v7 = vpop.permute.xlu1 %372 }
 0x197   : > { %v333_v52 = vadd.f32 %v332_v50, %v331_v49  ;;  %v347_v53 = vrot.slane %v346_v51, 1 }
 0x199   : > { %469 = vpush %v333_v52  ;;  %v348_v54 = vadd.f32 %v347_v53, %v346_v51 }
 0x19b   : > { %471 = vpush %v348_v54 }
 0x1ca   : > { %s470_s7 = spop %469 }
 0x1cb   : > { %v335_v55 = vstv %s470_s7 }
 0x1cc   : > { %v337_v56 = vmul.f32 0.00048828125, %v335_v55  ;;  %s472_s8 = spop %471 }
 0x1cd   : > { %v350_v57 = vstv %s472_s8 }
 0x1ce   : > { %v351_v58 = vmul.f32 0.00048828125, %v350_v57  ;;  %v352_v59 = vmul.f32 %v337_v56, %v337_v56  ;;  %v355_v0 = vsub.f32 %v321_v32, %v337_v56  ;;  %v356_v1 = vsub.f32 %v323_v34, %v337_v56 }
 0x1d0   : > { %v353_v60 = vsub.f32 %v351_v58, %v352_v59 }
 0x1d2   : > { %v354_v61 = vmax.f32 %v353_v60, 0.0 }
 0x1d4   : > { %v357_v62 = vadd.f32 1e-05, %v354_v61 }
 0x1d6   : > { %485 = vrsqrt.f32 %v357_v62 }
 0x1e0   : > { %v486_v2 = vpop.eup %485 }
 0x1e1   : > { %v359_v3 = vmul.f32 %v486_v2, %v355_v0  ;;  %v360_v4 = vmul.f32 %v486_v2, %v356_v1 }
 0x1e3   : > { %v367_v5 = vmul.f32 %v365_v63, %v359_v3  ;;  %v368_v6 = vmul.f32 %v365_v63, %v360_v4 }
 0x1e5   : > { %v375_v8 = vadd.f32 %v373_v7, %v367_v5  ;;  %v376_v9 = vadd.f32 %v373_v7, %v368_v6 }
 0x1e7   : > { %vm377_vm1 = vcmp.ge.f32.partialorder %v375_v8, 0.0  ;;  %vm378_vm2 = vcmp.ge.f32.partialorder %v376_v9, 0.0  ;;  %v379_v10 = vmul.f32 0.2, %v375_v8  ;;  %v380_v11 = vmul.f32 0.2, %v376_v9 }
 0x1e9   : > { %v381_v12 = vsel %vm377_vm1, %v375_v8, %v379_v10  ;;  %v382_v13 = vsel %vm378_vm2, %v376_v9, %v380_v11 }
 0x1ea   : > { %383 = vst [vmem:[%s224_s12] sm:$0xff] %v381_v12  ;;  %384 = vst [vmem:[%s224_s12 + $0x8] sm:$0xff] %v382_v13 }
 0x1eb PF: > { %s15_s18 = sadd.s32 1, %s493_s18  }
 0x1ec   : > { %p12_p4 = scmp.ge.s32.totalorder %s15_s18, 4  }
 0x1ee   :  { %14 = sbr.rel (!%p12_p4) target bundleno = 1 (0x1), region = 70 }

// kernel: vnet_forward.52
= control target key start
LH: loop header
LB: loop body
LE: loop exit
PB: predicated region body
PF: predicated region fallthrough
CT: control target
= control target key end

     0   :  { %s364_s12 = smov 0   ;;  %s406_s0 = inlined_call_operand.vmem [shape: f32[2,16,64], index: 0, kind: input, shape index: {}]   ;;  %s407_s1 = inlined_call_operand.vmem [shape: f32[16,1], index: 1, kind: input, shape index: {}]   ;;  %s408_s2 = inlined_call_operand.vmem [shape: f32[16,1], index: 2, kind: input, shape index: {}]   ;;  %s409_s3 = inlined_call_operand.vmem [shape: f32[2,16,64], index: 3, kind: output, shape index: {}]  }
   0x1 LB: > { %s305_s13 = sadd.s32 4294967295, %s341_s12   ;;  %p309_p0 = scmp.ge.s32.totalorder %s341_s12, 1  ;;  %s341_s12 = sphi %s364_s12, %s13_s12  }
   0x2   : > { %p137_p1 = scmp.lt.s32.totalorder %s341_s12, 3 }
   0x4   : > { %p138_p2 = pnand %p309_p0, %p137_p1 }
   0x5   : > { %p161_p3 = scmp.lt.s32.totalorder (!%p138_p2), %s305_s13, 1  ;;  %v214_v0 = vld [vmem:[%s407_s1] sm:$0xff] (!%p138_p2)  ;;  %v343_v1 = vmov (!%p138_p2), 0   ;;  %v215_v2 = vld [vmem:[%s407_s1 + $0x8] sm:$0xff] (!%p138_p2)  ;;  %vm173_vm0 = vcmask (!%p138_p2), 523264  }
   0x6   : > { %141 = sbr.rel (%p138_p2) target bundleno = 258 (0x102), region = 32  ;;  %331 = vset.pattern.permute.xlu1 (!%p138_p2), %v343_v1  ;;  %332 = vset.pattern.permute.xlu0 (!%p138_p2), %v343_v1  ;;  %v229_v9 = vld [vmem:[%s408_s2 + $0x8] sm:$0xff] (!%p138_p2)  ;;  %v228_v14 = vld [vmem:[%s408_s2] sm:$0xff] (!%p138_p2) }
   0x7   : > { %218 = vperm.xlu1 (!%p138_p2), %331, %v214_v0  }
   0xb   : > { %223 = vperm.xlu1 (!%p138_p2), %331, %v215_v2  }
   0xd   : > { %s411_s13 = smov (!%p161_p3, %s305_s13), 1 }
   0xe   : > { %s316_s18 = sshll.u32 %s411_s13, 4 }
   0xf   : > { %s165_s21 = scalar_lea.vmem %s406_s0, %s316_s18  ;;  %237 = vperm.xlu1 %331, %v229_v9   ;;  %s170_s30 = scalar_lea.vmem %s409_s3, %s316_s18 }
  0x10   : > { %v171_v3 = vld [vmem:[%s165_s21] sm:$0xff]  ;;  %v172_v4 = vld [vmem:[%s165_s21 + $0x8] sm:$0xff] }
  0x11   : > { %v174_v5 = vsel %vm173_vm0, %v171_v3, 0.0  ;;  %v175_v6 = vsel %vm173_vm0, %v172_v4, 0.0  ;;  %v189_v7 = vmul.f32 %v171_v3, %v171_v3  ;;  %v190_v8 = vmul.f32 %v172_v4, %v172_v4 }
  0x12   : > { %v176_v10 = vadd.f32 %v175_v6, %v174_v5 }
  0x13   : > { %v191_v11 = vsel %vm173_vm0, %v189_v7, 0.0  ;;  %v192_v12 = vsel %vm173_vm0, %v190_v8, 0.0 }
  0x14   : > { %177 = vadd.xlane.f32.xlu0 %v176_v10  ;;  %v193_v13 = vadd.f32 %v192_v12, %v191_v11 }
  0x18   : > { %194 = vadd.xlane.f32.xlu0 %v193_v13 }
  0x2e   : > { %232 = vperm.xlu0 %332, %v228_v14  }
  0x86   : > { %v219_v37 = vpop.permute.xlu1 %218 }
  0x8a   : > { %v224_v38 = vpop.permute.xlu1 %223 }
  0x8e   : > { %v238_v47 = vpop.permute.xlu1 %237 }
  0xa1   : > { %v178_v15 = vpop.xlane.xlu0 %177 }
  0xa2   : > { %v179_v16 = vrot.slane %v178_v15, 4 }
  0xa4   : > { %v180_v17 = vadd.f32 %v179_v16, %v178_v15 }
  0xa5   : > { %v195_v18 = vpop.xlane.xlu0 %194 }
  0xa6   : > { %v181_v19 = vrot.slane %v180_v17, 2  ;;  %v196_v20 = vrot.slane %v195_v18, 4 }
  0xa8   : > { %v197_v21 = vadd.f32 %v196_v20, %v195_v18  ;;  %v182_v22 = vadd.f32 %v181_v19, %v180_v17 }
  0xaa   : > { %v198_v23 = vrot.slane %v197_v21, 2  ;;  %v183_v24 = vrot.slane %v182_v22, 1 }
  0xac   : > { %v184_v25 = vadd.f32 %v183_v24, %v182_v22  ;;  %v199_v26 = vadd.f32 %v198_v23, %v197_v21 }
  0xad   : > { %v233_v44 = vpop.permute.xlu0 %232 }
  0xae   : > { %318 = vpush %v184_v25  ;;  %v200_v27 = vrot.slane %v199_v26, 1 }
  0xb0   : > { %v201_v28 = vadd.f32 %v200_v27, %v199_v26 }
  0xb2   : > { %320 = vpush %v201_v28 }
  0xdf   : > { %s319_s26 = spop %318 }
  0xe0   : > { %v186_v29 = vstv %s319_s26 }
  0xe1   : > { %v188_v30 = vmul.f32 0.0009765625, %v186_v29 }
  0xe3   : > { %s321_s27 = spop %320  ;;  %v205_v33 = vmul.f32 %v188_v30, %v188_v30  ;;  %v208_v39 = vsub.f32 %v171_v3, %v188_v30  ;;  %v209_v40 = vsub.f32 %v172_v4, %v188_v30 }
  0xe4   : > { %v203_v31 = vstv %s321_s27 }
  0xe5   : > { %v204_v32 = vmul.f32 0.0009765625, %v203_v31 }
  0xe7   : > { %v206_v34 = vsub.f32 %v204_v32, %v205_v33 }
  0xe9   : > { %v207_v35 = vmax.f32 %v206_v34, 0.0 }
  0xeb   : > { %v210_v36 = vadd.f32 1e-05, %v207_v35 }
  0xed   : > { %333 = vrsqrt.f32 %v210_v36 }
  0xf7   : > { %v334_v41 = vpop.eup %333 }
  0xf8   : > { %v212_v42 = vmul.f32 %v334_v41, %v208_v39  ;;  %v213_v43 = vmul.f32 %v334_v41, %v209_v40 }
  0xfa   : > { %v226_v45 = vmul.f32 %v219_v37, %v212_v42  ;;  %v227_v46 = vmul.f32 %v224_v38, %v213_v43 }
  0xfc   : > { %v241_v48 = vadd.f32 %v238_v47, %v227_v46  ;;  %v240_v49 = vadd.f32 %v233_v44, %v226_v45 }
  0xfe   : > { %vm243_vm1 = vcmp.ge.f32.partialorder %v241_v48, 0.0  ;;  %v245_v50 = vmul.f32 0.2, %v241_v48  ;;  %vm242_vm2 = vcmp.ge.f32.partialorder %v240_v49, 0.0  ;;  %v244_v51 = vmul.f32 0.2, %v240_v49 }
 0x100   : > { %v247_v52 = vsel %vm243_vm1, %v241_v48, %v245_v50  ;;  %v246_v53 = vsel %vm242_vm2, %v240_v49, %v244_v51 }
 0x101   : > { %249 = vst.msk [vmem:[%s170_s30 + $0x8] sm:$0xff] %vm173_vm0, %v247_v52  ;;  %248 = vst.msk [vmem:[%s170_s30] sm:$0xff] %vm173_vm0, %v246_v53 }
 0x102 PF: > { %s13_s12 = sadd.s32 1, %s341_s12  }
 0x103   : > { %p10_p4 = scmp.ge.s32.totalorder %s13_s12, 4  }
 0x105   :  { %12 = sbr.rel (!%p10_p4) target bundleno = 1 (0x1), region = 62 }

// kernel: vnet_forward.51
= control target key start
LH: loop header
LB: loop body
LE: loop exit
PB: predicated region body
PF: predicated region fallthrough
CT: control target
= control target key end

     0   :  { %s435_s12 = smov 0   ;;  %s470_s0 = inlined_call_operand.vmem [shape: f32[2,72,64], index: 0, kind: input, shape index: {}]   ;;  %s471_s1 = inlined_call_operand.vmem [shape: f32[16,72], index: 1, kind: input, shape index: {}]   ;;  %s472_s2 = inlined_call_operand.vmem [shape: f32[16,1], index: 2, kind: input, shape index: {}]   ;;  %s473_s3 = inlined_call_operand.vmem [shape: f32[2,16,64], index: 3, kind: output, shape index: {}]  }
   0x1 LB: > { %s334_s13 = sadd.s32 4294967295, %s412_s12   ;;  %p338_p0 = scmp.ge.s32.totalorder %s412_s12, 1  ;;  %s412_s12 = sphi %s435_s12, %s13_s12  }
   0x2   : > { %p137_p1 = scmp.lt.s32.totalorder %s412_s12, 3 }
   0x4   : > { %p138_p2 = pnand %p338_p0, %p137_p1 }
   0x5   : > { %p161_p3 = scmp.lt.s32.totalorder (!%p138_p2), %s334_s13, 1  ;;  %v171_v0 = vld [vmem:[%s471_s1] sm:$0xff] (!%p138_p2)  ;;  %vm194_vm0 = vcmask (!%p138_p2), 588800   ;;  %v414_v2 = vmov (!%p138_p2), 0   ;;  %v183_v3 = vld [vmem:[%s472_s2 + $0x8] sm:$0xff] (!%p138_p2)  ;;  %vm276_vm1 = vcmask (!%p138_p2), 523264  }
   0x6   : > { %141 = sbr.rel (%p138_p2) target bundleno = 254 (0xfe), region = 32  ;;  %v182_v1 = vld [vmem:[%s472_s2] sm:$0xff] (!%p138_p2)  ;;  %376 = vmatprep.mubr.msk.f32.mxu0 (!%p138_p2), %vm194_vm0, %v171_v0  ;;  %405 = vset.pattern.permute.xlu0 (!%p138_p2), %v414_v2  ;;  %v172_v17 = vld [vmem:[%s471_s1 + $0x8] sm:$0xff] (!%p138_p2) }
   0x7   : > { %186 = vperm.xlu0 (!%p138_p2), %405, %v182_v1  }
   0xb   : > { %191 = vperm.xlu0 (!%p138_p2), %405, %v183_v3  }
   0xd   : > { %s475_s13 = smov (!%p161_p3, %s334_s13), 1 }
   0xe   : > { %s395_s20 = smul.u32 72, %s475_s13  ;;  %s346_s26 = sshll.u32 %s475_s13, 4 }
   0xf   : > { %s170_s29 = scalar_lea.vmem %s473_s3, %s346_s26 }
  0x10   : > { %s165_s23 = scalar_lea.vmem %s470_s0, %s395_s20 }
  0x11   : > { %v173_v4 = vld [vmem:[%s165_s23] sm:$0xff]  ;;  %v174_v5 = vld [vmem:[%s165_s23 + $0x8] sm:$0xff]  ;;  %v175_v6 = vld [vmem:[%s165_s23 + $0x10] sm:$0xff] }
  0x12   : > { %v379_v7 = vpack.c.bf16 %v174_v5, %v173_v4  ;;  %v176_v8 = vld [vmem:[%s165_s23 + $0x18] sm:$0xff]  ;;  %v177_v10 = vld [vmem:[%s165_s23 + $0x20] sm:$0xff]  ;;  %v178_v11 = vld [vmem:[%s165_s23 + $0x28] sm:$0xff] }
  0x13   : > { %v383_v9 = vpack.c.bf16 %v176_v8, %v175_v6  ;;  %v387_v12 = vpack.c.bf16 %v178_v11, %v177_v10  ;;  %v179_v13 = vld [vmem:[%s165_s23 + $0x30] sm:$0xff]  ;;  %v180_v14 = vld [vmem:[%s165_s23 + $0x38] sm:$0xff]  ;;  %v181_v16 = vld [vmem:[%s165_s23 + $0x40] sm:$0xff] }
  0x14   : > { %380 = vmatprep.subr.bf16.mxu0 %v379_v7  ;;  %v391_v15 = vpack.c.bf16 %v180_v14, %v179_v13 }
  0x15   : > { %382 = vmatpush3.bf16.msra.mxu0 %v379_v7 }
  0x16   : > { %384 = vmatprep.subr.bf16.mxu0 %v383_v9 }
  0x19   : > { %386 = vmatpush3.bf16.msra.mxu0 %v383_v9 }
  0x1a   : > { %388 = vmatprep.subr.bf16.mxu0 %v387_v12 }
  0x1d   : > { %390 = vmatpush3.bf16.msra.mxu0 %v387_v12 }
  0x1e   : > { %392 = vmatprep.subr.bf16.mxu0 %v391_v15 }
  0x21   : > { %394 = vmatpush3.bf16.msra.mxu0 %v391_v15 }
  0x22   : > { %374 = vmatprep.subr.mxu0 %v181_v16 }
  0x25   : > { %375 = vmatpush3.msra.mxu0 %v181_v16 }
  0x26   : > { %377 = vmatmul.mubr.msk.f32.vlgmr.msra.gmra.mrb[0].mxu0 %vm194_vm0, %v172_v17 }
  0x86   : > { %v187_v18 = vpop.permute.xlu0 %186 }
  0x8a   : > { %v192_v19 = vpop.permute.xlu0 %191 }
  0xf9   : > { %v378_v20 = vpop.f32.mrb[0].mxu0 }
  0xfa   : > { %v273_v21 = vadd.f32 %v378_v20, %v192_v19  ;;  %v267_v22 = vpop.f32.mrb[1].mxu0 }
  0xfb   : > { %v268_v23 = vadd.f32 %v267_v22, %v187_v18 }
  0xfc   : > { %278 = vst.msk [vmem:[%s170_s29 + $0x8] sm:$0xff] %vm276_vm1, %v273_v21 }
  0xfd   : > { %277 = vst.msk [vmem:[%s170_s29] sm:$0xff] %vm276_vm1, %v268_v23 }
  0xfe PF: > { %s13_s12 = sadd.s32 1, %s412_s12  }
  0xff   : > { %p10_p4 = scmp.ge.s32.totalorder %s13_s12, 4  }
 0x101   :  { %12 = sbr.rel (!%p10_p4) target bundleno = 1 (0x1), region = 62 }

// kernel: vnet_forward.54
= control target key start
LH: loop header
LB: loop body
LE: loop exit
PB: predicated region body
PF: predicated region fallthrough
CT: control target
= control target key end

     0   :  { %s516_s15 = smov 0   ;;  %s596_s0 = inlined_call_operand.vmem [shape: f32[2,144,64], index: 0, kind: input, shape index: {}]   ;;  %s597_s1 = inlined_call_operand.vmem [shape: f32[16,144], index: 1, kind: input, shape index: {}]   ;;  %s598_s2 = inlined_call_operand.vmem [shape: f32[16,1], index: 2, kind: input, shape index: {}]   ;;  %s599_s3 = inlined_call_operand.vmem [shape: f32[2,16,64], index: 3, kind: input, shape index: {}]   ;;  %s600_s4 = inlined_call_operand.vmem [shape: f32[2,16,64], index: 4, kind: output, shape index: {}]  }
   0x1 LB: > { %s408_s16 = sadd.s32 4294967295, %s487_s15   ;;  %p412_p0 = scmp.ge.s32.totalorder %s487_s15, 1  ;;  %s487_s15 = sphi %s516_s15, %s14_s15  }
   0x2   : > { %p172_p1 = scmp.lt.s32.totalorder %s487_s15, 3 }
   0x4   : > { %p173_p2 = pnand %p412_p0, %p172_p1 }
   0x5   : > { %p203_p3 = scmp.lt.s32.totalorder (!%p173_p2), %s408_s16, 1  ;;  %v219_v0 = vld [vmem:[%s597_s1 + $0x8] sm:$0xff] (!%p173_p2)  ;;  %vm252_vm0 = vcmask (!%p173_p2), 130048   ;;  %v221_v1 = vld [vmem:[%s597_s1 + $0x18] sm:$0xff] (!%p173_p2)  ;;  %v489_v2 = vmov (!%p173_p2), 0.0|0.0   ;;  %v240_v3 = vld [vmem:[%s598_s2] sm:$0xff] (!%p173_p2) }
   0x6   : > { %176 = sbr.rel (%p173_p2) target bundleno = 272 (0x110), region = 36  ;;  %424 = vmatprep.subr.bf16.mxu0 (!%p173_p2), %v489_v2  ;;  %451 = vmatprep.subr.bf16.mxu1 (!%p173_p2), %v489_v2  ;;  %v490_v4 = vmov (!%p173_p2), 0   ;;  %v241_v5 = vld [vmem:[%s598_s2 + $0x8] sm:$0xff] (!%p173_p2)  ;;  %v218_v33 = vld [vmem:[%s597_s1] sm:$0xff] (!%p173_p2)  ;;  %v220_v34 = vld [vmem:[%s597_s1 + $0x10] sm:$0xff] (!%p173_p2)  ;;  %vm338_vm1 = vcmask (!%p173_p2), 523264  }
   0x7   : > { %418 = vmatprep.mubr.msk.f32.mxu0 (!%p173_p2), %vm252_vm0, %v219_v0  ;;  %419 = vmatprep.mubr.msk.f32.mxu1 (!%p173_p2), %vm252_vm0, %v221_v1 }
   0x8   : > { %480 = vset.pattern.permute.xlu0 (!%p173_p2), %v490_v4 }
   0x9   : > { %244 = vperm.xlu0 (!%p173_p2), %480, %v240_v3  }
   0xd   : > { %s602_s16 = smov (!%p203_p3, %s408_s16), 1  ;;  %249 = vperm.xlu0 %480, %v241_v5  }
   0xe   : > { %s469_s23 = smul.u32 144, %s602_s16  ;;  %s422_s7 = sshll.u32 %s602_s16, 4 }
   0xf   : > { %s212_s10 = scalar_lea.vmem %s599_s3, %s422_s7  ;;  %s217_s13 = scalar_lea.vmem %s600_s4, %s422_s7 }
  0x10   : > { %s544_s28 = scalar_lea.vmem %s596_s0, %s469_s23  ;;  %v334_v38 = vld [vmem:[%s212_s10] sm:$0xff]  ;;  %v335_v40 = vld [vmem:[%s212_s10 + $0x8] sm:$0xff] }
  0x11   : > { %v222_v6 = vld [vmem:[%s544_s28] sm:$0xff]  ;;  %v223_v7 = vld [vmem:[%s544_s28 + $0x8] sm:$0xff]  ;;  %v224_v8 = vld [vmem:[%s544_s28 + $0x10] sm:$0xff] }
  0x12   : > { %v425_v9 = vpack.c.bf16 %v223_v7, %v222_v6  ;;  %v225_v10 = vld [vmem:[%s544_s28 + $0x18] sm:$0xff]  ;;  %v226_v12 = vld [vmem:[%s544_s28 + $0x20] sm:$0xff]  ;;  %v227_v13 = vld [vmem:[%s544_s28 + $0x28] sm:$0xff] }
  0x13   : > { %v428_v11 = vpack.c.bf16 %v225_v10, %v224_v8  ;;  %v431_v14 = vpack.c.bf16 %v227_v13, %v226_v12  ;;  %v228_v15 = vld [vmem:[%s544_s28 + $0x30] sm:$0xff]  ;;  %v229_v16 = vld [vmem:[%s544_s28 + $0x38] sm:$0xff]  ;;  %v230_v18 = vld [vmem:[%s544_s28 + $0x40] sm:$0xff] }
  0x14   : > { %426 = vmatpush1.bf16.msra.mxu0 %v425_v9  ;;  %460 = vmatpush1.bf16.msra.mxu1 %v425_v9  ;;  %v434_v17 = vpack.c.bf16 %v229_v16, %v228_v15  ;;  %v231_v19 = vld [vmem:[%s544_s28 + $0x48] sm:$0xff]  ;;  %v232_v21 = vld [vmem:[%s544_s28 + $0x50] sm:$0xff]  ;;  %v233_v22 = vld [vmem:[%s544_s28 + $0x58] sm:$0xff] }
  0x15   : > { %427 = vmatprep.subr.bf16.mxu0 %v489_v2  ;;  %452 = vmatprep.subr.bf16.mxu1 %v489_v2  ;;  %v437_v20 = vpack.c.bf16 %v231_v19, %v230_v18  ;;  %v440_v23 = vpack.c.bf16 %v233_v22, %v232_v21  ;;  %v234_v24 = vld [vmem:[%s544_s28 + $0x60] sm:$0xff]  ;;  %v235_v25 = vld [vmem:[%s544_s28 + $0x68] sm:$0xff]  ;;  %v236_v27 = vld [vmem:[%s544_s28 + $0x70] sm:$0xff] }
  0x16   : > { %v443_v26 = vpack.c.bf16 %v235_v25, %v234_v24  ;;  %v237_v28 = vld [vmem:[%s544_s28 + $0x78] sm:$0xff]  ;;  %v238_v30 = vld [vmem:[%s544_s28 + $0x80] sm:$0xff]  ;;  %v239_v31 = vld [vmem:[%s544_s28 + $0x88] sm:$0xff] }
  0x17   : > { %v446_v29 = vpack.c.bf16 %v237_v28, %v236_v27  ;;  %v449_v32 = vpack.c.bf16 %v239_v31, %v238_v30 }
  0x18   : > { %429 = vmatpush1.bf16.msra.mxu0 %v428_v11  ;;  %461 = vmatpush1.bf16.msra.mxu1 %v428_v11 }
  0x19   : > { %430 = vmatprep.subr.bf16.mxu0 %v489_v2  ;;  %453 = vmatprep.subr.bf16.mxu1 %v489_v2 }
  0x1c   : > { %432 = vmatpush1.bf16.msra.mxu0 %v431_v14  ;;  %462 = vmatpush1.bf16.msra.mxu1 %v431_v14 }
  0x1d   : > { %433 = vmatprep.subr.bf16.mxu0 %v489_v2  ;;  %454 = vmatprep.subr.bf16.mxu1 %v489_v2 }
  0x20   : > { %435 = vmatpush1.bf16.msra.mxu0 %v434_v17  ;;  %463 = vmatpush1.bf16.msra.mxu1 %v434_v17 }
  0x21   : > { %436 = vmatprep.subr.bf16.mxu0 %v489_v2  ;;  %455 = vmatprep.subr.bf16.mxu1 %v489_v2 }
  0x24   : > { %438 = vmatpush1.bf16.msra.mxu0 %v437_v20  ;;  %464 = vmatpush1.bf16.msra.mxu1 %v437_v20 }
  0x25   : > { %439 = vmatprep.subr.bf16.mxu0 %v489_v2  ;;  %456 = vmatprep.subr.bf16.mxu1 %v489_v2 }
  0x28   : > { %441 = vmatpush1.bf16.msra.mxu0 %v440_v23  ;;  %465 = vmatpush1.bf16.msra.mxu1 %v440_v23 }
  0x29   : > { %442 = vmatprep.subr.bf16.mxu0 %v489_v2  ;;  %457 = vmatprep.subr.bf16.mxu1 %v489_v2 }
  0x2c   : > { %444 = vmatpush1.bf16.msra.mxu0 %v443_v26  ;;  %466 = vmatpush1.bf16.msra.mxu1 %v443_v26 }
  0x2d   : > { %445 = vmatprep.subr.bf16.mxu0 %v489_v2  ;;  %458 = vmatprep.subr.bf16.mxu1 %v489_v2 }
  0x30   : > { %447 = vmatpush1.bf16.msra.mxu0 %v446_v29  ;;  %467 = vmatpush1.bf16.msra.mxu1 %v446_v29 }
  0x31   : > { %448 = vmatprep.subr.bf16.mxu0 %v489_v2  ;;  %459 = vmatprep.subr.bf16.mxu1 %v489_v2 }
  0x34   : > { %450 = vmatpush1.bf16.msra.mxu0 %v449_v32  ;;  %468 = vmatpush1.bf16.msra.mxu1 %v449_v32 }
  0x37   : > { %324 = vmatmul.mubr.f32.vlgmr.msra.gmra.mrb[0].mxu0 %v218_v33  ;;  %329 = vmatmul.mubr.f32.vlgmr.msra.gmra.mrb[0].mxu1 %v220_v34 }
  0x88   : > { %v245_v35 = vpop.permute.xlu0 %244 }
  0x8c   : > { %v250_v36 = vpop.permute.xlu0 %249 }
 0x10a   : > { %v325_v37 = vpop.f32.mrb[0].mxu0  ;;  %v330_v39 = vpop.f32.mrb[0].mxu1 }
 0x10b   : > { %v326_v41 = vadd.f32 %v325_v37, %v245_v35  ;;  %v331_v42 = vadd.f32 %v330_v39, %v250_v36  ;;  %v327_v43 = vpop.f32.mrb[1].mxu0  ;;  %v332_v44 = vpop.f32.mrb[1].mxu1 }
 0x10d   : > { %v336_v45 = vadd.f32 %v334_v38, %v326_v41  ;;  %v337_v46 = vadd.f32 %v335_v40, %v331_v42 }
 0x10f   : > { %339 = vst.msk [vmem:[%s217_s13] sm:$0xff] %vm338_vm1, %v336_v45  ;;  %340 = vst.msk [vmem:[%s217_s13 + $0x8] sm:$0xff] %vm338_vm1, %v337_v46 }
 0x110 PF: > { %s14_s15 = sadd.s32 1, %s487_s15  }
 0x111   : > { %p11_p4 = scmp.ge.s32.totalorder %s14_s15, 4  }
 0x113   :  { %13 = sbr.rel (!%p11_p4) target bundleno = 1 (0x1), region = 69 }

// kernel: vnet_forward.53
= control target key start
LH: loop header
LB: loop body
LE: loop exit
PB: predicated region body
PF: predicated region fallthrough
CT: control target
= control target key end

     0   :  { %s590_s18 = smov 0   ;;  %s685_s0 = inlined_call_operand.vmem [shape: f32[2,144,64], index: 0, kind: input, shape index: {}]   ;;  %s686_s1 = inlined_call_operand.vmem [shape: f32[16,144], index: 1, kind: input, shape index: {}]   ;;  %s687_s2 = inlined_call_operand.vmem [shape: f32[16,1], index: 2, kind: input, shape index: {}]   ;;  %s688_s3 = inlined_call_operand.vmem [shape: f32[16,1], index: 3, kind: input, shape index: {}]   ;;  %s689_s4 = inlined_call_operand.vmem [shape: f32[16,1], index: 4, kind: input, shape index: {}]   ;;  %s690_s5 = inlined_call_operand.vmem [shape: f32[2,16,64], index: 5, kind: output, shape index: {}]  }
   0x1 LB: > { %s473_s19 = sadd.s32 4294967295, %s556_s18   ;;  %p477_p0 = scmp.ge.s32.totalorder %s556_s18, 1  ;;  %s556_s18 = sphi %s590_s18, %s15_s18  }
   0x2   : > { %p187_p1 = scmp.lt.s32.totalorder %s556_s18, 3 }
   0x4   : > { %p188_p2 = pnand %p477_p0, %p187_p1 }
   0x5   : > { %p215_p3 = scmp.lt.s32.totalorder (!%p188_p2), %s473_s19, 1  ;;  %v226_v0 = vld [vmem:[%s686_s1 + $0x8] sm:$0xff] (!%p188_p2)  ;;  %vm259_vm0 = vcmask (!%p188_p2), 130048   ;;  %v228_v1 = vld [vmem:[%s686_s1 + $0x18] sm:$0xff] (!%p188_p2)  ;;  %v558_v2 = vmov (!%p188_p2), 0.0|0.0   ;;  %v247_v3 = vld [vmem:[%s687_s2] sm:$0xff] (!%p188_p2) }
   0x6   : > { %191 = sbr.rel (%p188_p2) target bundleno = 510 (0x1fe), region = 40  ;;  %486 = vmatprep.subr.bf16.mxu0 (!%p188_p2), %v558_v2  ;;  %513 = vmatprep.subr.bf16.mxu1 (!%p188_p2), %v558_v2  ;;  %v559_v4 = vmov (!%p188_p2), 0   ;;  %v248_v5 = vld [vmem:[%s687_s2 + $0x8] sm:$0xff] (!%p188_p2)  ;;  %v382_v11 = vld [vmem:[%s688_s3] sm:$0xff] (!%p188_p2)  ;;  %v227_v37 = vld [vmem:[%s686_s1 + $0x10] sm:$0xff] (!%p188_p2)  ;;  %vm341_vm1 = vcmask (!%p188_p2), 523264  }
   0x7   : > { %481 = vmatprep.mubr.msk.f32.mxu0 (!%p188_p2), %vm259_vm0, %v226_v0  ;;  %482 = vmatprep.mubr.msk.f32.mxu1 (!%p188_p2), %vm259_vm0, %v228_v1  ;;  %v396_v15 = vld [vmem:[%s689_s4] sm:$0xff] (!%p188_p2)  ;;  %v397_v19 = vld [vmem:[%s689_s4 + $0x8] sm:$0xff] (!%p188_p2) }
   0x8   : > { %546 = vset.pattern.permute.xlu0 (!%p188_p2), %v559_v4  ;;  %547 = vset.pattern.permute.xlu1 (!%p188_p2), %v559_v4  ;;  %v225_v36 = vld [vmem:[%s686_s1] sm:$0xff] (!%p188_p2)  ;;  %v383_v54 = vld [vmem:[%s688_s3 + $0x8] sm:$0xff] (!%p188_p2) }
   0x9   : > { %251 = vperm.xlu0 (!%p188_p2), %546, %v247_v3  }
   0xd   : > { %s692_s19 = smov (!%p215_p3, %s473_s19), 1  ;;  %256 = vperm.xlu0 %546, %v248_v5  }
   0xe   : > { %s531_s26 = smul.u32 144, %s692_s19  ;;  %s485_s23 = sshll.u32 %s692_s19, 4 }
  0x10   : > { %s618_s6 = scalar_lea.vmem %s685_s0, %s531_s26  ;;  %s224_s26 = scalar_lea.vmem %s690_s5, %s485_s23 }
  0x11   : > { %v229_v6 = vld [vmem:[%s618_s6] sm:$0xff]  ;;  %v230_v7 = vld [vmem:[%s618_s6 + $0x8] sm:$0xff]  ;;  %v231_v8 = vld [vmem:[%s618_s6 + $0x10] sm:$0xff]  ;;  %386 = vperm.xlu0 %546, %v382_v11  }
  0x12   : > { %v487_v9 = vpack.c.bf16 %v230_v7, %v229_v6  ;;  %v232_v10 = vld [vmem:[%s618_s6 + $0x18] sm:$0xff]  ;;  %v233_v13 = vld [vmem:[%s618_s6 + $0x20] sm:$0xff]  ;;  %v234_v14 = vld [vmem:[%s618_s6 + $0x28] sm:$0xff] }
  0x13   : > { %v490_v12 = vpack.c.bf16 %v232_v10, %v231_v8  ;;  %v493_v16 = vpack.c.bf16 %v234_v14, %v233_v13  ;;  %v235_v17 = vld [vmem:[%s618_s6 + $0x30] sm:$0xff]  ;;  %v236_v18 = vld [vmem:[%s618_s6 + $0x38] sm:$0xff]  ;;  %v237_v21 = vld [vmem:[%s618_s6 + $0x40] sm:$0xff] }
  0x14   : > { %488 = vmatpush1.bf16.msra.mxu0 %v487_v9  ;;  %522 = vmatpush1.bf16.msra.mxu1 %v487_v9  ;;  %v496_v20 = vpack.c.bf16 %v236_v18, %v235_v17  ;;  %v238_v22 = vld [vmem:[%s618_s6 + $0x48] sm:$0xff]  ;;  %v239_v24 = vld [vmem:[%s618_s6 + $0x50] sm:$0xff]  ;;  %v240_v25 = vld [vmem:[%s618_s6 + $0x58] sm:$0xff] }
  0x15   : > { %489 = vmatprep.subr.bf16.mxu0 %v558_v2  ;;  %514 = vmatprep.subr.bf16.mxu1 %v558_v2  ;;  %v499_v23 = vpack.c.bf16 %v238_v22, %v237_v21  ;;  %v502_v26 = vpack.c.bf16 %v240_v25, %v239_v24  ;;  %v241_v27 = vld [vmem:[%s618_s6 + $0x60] sm:$0xff]  ;;  %v242_v28 = vld [vmem:[%s618_s6 + $0x68] sm:$0xff]  ;;  %v243_v30 = vld [vmem:[%s618_s6 + $0x70] sm:$0xff] }
  0x16   : > { %400 = vperm.xlu0 %546, %v396_v15   ;;  %v505_v29 = vpack.c.bf16 %v242_v28, %v241_v27  ;;  %v244_v31 = vld [vmem:[%s618_s6 + $0x78] sm:$0xff]  ;;  %v245_v33 = vld [vmem:[%s618_s6 + $0x80] sm:$0xff]  ;;  %v246_v34 = vld [vmem:[%s618_s6 + $0x88] sm:$0xff] }
  0x17   : > { %v508_v32 = vpack.c.bf16 %v244_v31, %v243_v30  ;;  %v511_v35 = vpack.c.bf16 %v246_v34, %v245_v33 }
  0x18   : > { %491 = vmatpush1.bf16.msra.mxu0 %v490_v12  ;;  %523 = vmatpush1.bf16.msra.mxu1 %v490_v12 }
  0x19   : > { %492 = vmatprep.subr.bf16.mxu0 %v558_v2  ;;  %515 = vmatprep.subr.bf16.mxu1 %v558_v2 }
  0x1a   : > { %405 = vperm.xlu0 %546, %v397_v19  }
  0x1c   : > { %494 = vmatpush1.bf16.msra.mxu0 %v493_v16  ;;  %524 = vmatpush1.bf16.msra.mxu1 %v493_v16 }
  0x1d   : > { %495 = vmatprep.subr.bf16.mxu0 %v558_v2  ;;  %516 = vmatprep.subr.bf16.mxu1 %v558_v2 }
  0x20   : > { %497 = vmatpush1.bf16.msra.mxu0 %v496_v20  ;;  %525 = vmatpush1.bf16.msra.mxu1 %v496_v20 }
  0x21   : > { %498 = vmatprep.subr.bf16.mxu0 %v558_v2  ;;  %517 = vmatprep.subr.bf16.mxu1 %v558_v2 }
  0x24   : > { %500 = vmatpush1.bf16.msra.mxu0 %v499_v23  ;;  %526 = vmatpush1.bf16.msra.mxu1 %v499_v23 }
  0x25   : > { %501 = vmatprep.subr.bf16.mxu0 %v558_v2  ;;  %518 = vmatprep.subr.bf16.mxu1 %v558_v2 }
  0x28   : > { %503 = vmatpush1.bf16.msra.mxu0 %v502_v26  ;;  %527 = vmatpush1.bf16.msra.mxu1 %v502_v26 }
  0x29   : > { %504 = vmatprep.subr.bf16.mxu0 %v558_v2  ;;  %519 = vmatprep.subr.bf16.mxu1 %v558_v2 }
  0x2c   : > { %506 = vmatpush1.bf16.msra.mxu0 %v505_v29  ;;  %528 = vmatpush1.bf16.msra.mxu1 %v505_v29 }
  0x2d   : > { %507 = vmatprep.subr.bf16.mxu0 %v558_v2  ;;  %520 = vmatprep.subr.bf16.mxu1 %v558_v2 }
  0x30   : > { %509 = vmatpush1.bf16.msra.mxu0 %v508_v32  ;;  %529 = vmatpush1.bf16.msra.mxu1 %v508_v32 }
  0x31   : > { %510 = vmatprep.subr.bf16.mxu0 %v558_v2  ;;  %521 = vmatprep.subr.bf16.mxu1 %v558_v2 }
  0x34   : > { %512 = vmatpush1.bf16.msra.mxu0 %v511_v35  ;;  %530 = vmatpush1.bf16.msra.mxu1 %v511_v35 }
  0x37   : > { %331 = vmatmul.mubr.f32.vlgmr.msra.gmra.mrb[0].mxu0 %v225_v36  ;;  %336 = vmatmul.mubr.f32.vlgmr.msra.gmra.mrb[0].mxu1 %v227_v37 }
  0x88   : > { %v252_v38 = vpop.permute.xlu0 %251 }
  0x8c   : > { %v257_v39 = vpop.permute.xlu0 %256 }
  0x90   : > { %v387_v13 = vpop.permute.xlu0 %386 }
  0x95   : > { %v401_v14 = vpop.permute.xlu0 %400 }
  0x99   : > { %v406_v23 = vpop.permute.xlu0 %405 }
 0x10a   : > { %v332_v40 = vpop.f32.mrb[0].mxu0  ;;  %v337_v41 = vpop.f32.mrb[0].mxu1 }
 0x10b   : > { %v333_v42 = vadd.f32 %v332_v40, %v252_v38  ;;  %v338_v43 = vadd.f32 %v337_v41, %v257_v39  ;;  %v334_v44 = vpop.f32.mrb[1].mxu0  ;;  %v339_v45 = vpop.f32.mrb[1].mxu1 }
 0x10d   : > { %v342_v46 = vsel %vm341_vm1, %v333_v42, 0.0  ;;  %v343_v47 = vsel %vm341_vm1, %v338_v43, 0.0  ;;  %v357_v48 = vmul.f32 %v333_v42, %v333_v42  ;;  %v358_v49 = vmul.f32 %v338_v43, %v338_v43 }
 0x10e   : > { %v344_v50 = vadd.f32 %v343_v47, %v342_v46 }
 0x10f   : > { %v359_v51 = vsel %vm341_vm1, %v357_v48, 0.0  ;;  %v360_v52 = vsel %vm341_vm1, %v358_v49, 0.0 }
 0x110   : > { %345 = vadd.xlane.f32.xlu1 %v344_v50  ;;  %v361_v53 = vadd.f32 %v360_v52, %v359_v51 }
 0x114   : > { %362 = vadd.xlane.f32.xlu1 %v361_v53 }
 0x125   : > { %391 = vperm.xlu1 %547, %v383_v54  }
 0x19d   : > { %v346_v55 = vpop.xlane.xlu1 %345 }
 0x19e   : > { %v347_v56 = vrot.slane %v346_v55, 4 }
 0x1a0   : > { %v348_v57 = vadd.f32 %v347_v56, %v346_v55 }
 0x1a1   : > { %v363_v58 = vpop.xlane.xlu1 %362 }
 0x1a2   : > { %v349_v59 = vrot.slane %v348_v57, 2  ;;  %v364_v60 = vrot.slane %v363_v58, 4 }
 0x1a4   : > { %v365_v61 = vadd.f32 %v364_v60, %v363_v58  ;;  %v350_v62 = vadd.f32 %v349_v59, %v348_v57 }
 0x1a5   : > { %v392_v18 = vpop.permute.xlu1 %391 }
 0x1a6   : > { %v366_v63 = vrot.slane %v365_v61, 2  ;;  %v351_v0 = vrot.slane %v350_v62, 1 }
 0x1a8   : > { %v352_v1 = vadd.f32 %v351_v0, %v350_v62  ;;  %v367_v2 = vadd.f32 %v366_v63, %v365_v61 }
 0x1aa   : > { %532 = vpush %v352_v1  ;;  %v368_v3 = vrot.slane %v367_v2, 1 }
 0x1ac   : > { %v369_v4 = vadd.f32 %v368_v3, %v367_v2 }
 0x1ae   : > { %534 = vpush %v369_v4 }
 0x1db   : > { %s533_s21 = spop %532 }
 0x1dc   : > { %v354_v5 = vstv %s533_s21 }
 0x1dd   : > { %v356_v6 = vmul.f32 0.0009765625, %v354_v5 }
 0x1df   : > { %s535_s22 = spop %534  ;;  %v373_v9 = vmul.f32 %v356_v6, %v356_v6  ;;  %v376_v15 = vsub.f32 %v333_v42, %v356_v6  ;;  %v377_v16 = vsub.f32 %v338_v43, %v356_v6 }
 0x1e0   : > { %v371_v7 = vstv %s535_s22 }
 0x1e1   : > { %v372_v8 = vmul.f32 0.0009765625, %v371_v7 }
 0x1e3   : > { %v374_v10 = vsub.f32 %v372_v8, %v373_v9 }
 0x1e5   : > { %v375_v11 = vmax.f32 %v374_v10, 0.0 }
 0x1e7   : > { %v378_v12 = vadd.f32 1e-05, %v375_v11 }
 0x1e9   : > { %548 = vrsqrt.f32 %v378_v12 }
 0x1f3   : > { %v549_v17 = vpop.eup %548 }
 0x1f4   : > { %v380_v19 = vmul.f32 %v549_v17, %v376_v15  ;;  %v381_v20 = vmul.f32 %v549_v17, %v377_v16 }
 0x1f6   : > { %v394_v21 = vmul.f32 %v387_v13, %v380_v19  ;;  %v395_v22 = vmul.f32 %v392_v18, %v381_v20 }
 0x1f8   : > { %v408_v24 = vadd.f32 %v401_v14, %v394_v21  ;;  %v409_v25 = vadd.f32 %v406_v23, %v395_v22 }
 0x1fa   : > { %vm410_vm2 = vcmp.ge.f32.partialorder %v408_v24, 0.0  ;;  %v412_v26 = vmul.f32 0.2, %v408_v24  ;;  %vm411_vm3 = vcmp.ge.f32.partialorder %v409_v25, 0.0  ;;  %v413_v27 = vmul.f32 0.2, %v409_v25 }
 0x1fc   : > { %v414_v28 = vsel %vm410_vm2, %v408_v24, %v412_v26  ;;  %v415_v29 = vsel %vm411_vm3, %v409_v25, %v413_v27 }
 0x1fd   : > { %416 = vst.msk [vmem:[%s224_s26] sm:$0xff] %vm341_vm1, %v414_v28  ;;  %417 = vst.msk [vmem:[%s224_s26 + $0x8] sm:$0xff] %vm341_vm1, %v415_v29 }
 0x1fe PF: > { %s15_s18 = sadd.s32 1, %s556_s18  }
 0x1ff   : > { %p12_p4 = scmp.ge.s32.totalorder %s15_s18, 4  }
 0x201   :  { %14 = sbr.rel (!%p12_p4) target bundleno = 1 (0x1), region = 70 }

// kernel: vnet_forward.59
= control target key start
LH: loop header
LB: loop body
LE: loop exit
PB: predicated region body
PF: predicated region fallthrough
CT: control target
= control target key end

     0   :  { %s416_s12 = smov 0   ;;  %s500_s0 = inlined_call_operand.vmem [shape: f32[2,32,16], index: 0, kind: input, shape index: {}]   ;;  %s501_s1 = inlined_call_operand.vmem [shape: f32[32,1], index: 1, kind: input, shape index: {}]   ;;  %s502_s2 = inlined_call_operand.vmem [shape: f32[32,1], index: 2, kind: input, shape index: {}]   ;;  %s503_s3 = inlined_call_operand.vmem [shape: f32[2,32,16], index: 3, kind: output, shape index: {}]  }
   0x1 LB: > { %s357_s13 = sadd.s32 4294967295, %s393_s12   ;;  %p361_p0 = scmp.ge.s32.totalorder %s393_s12, 1  ;;  %s393_s12 = sphi %s416_s12, %s13_s12  }
   0x2   : > { %p137_p1 = scmp.lt.s32.totalorder %s393_s12, 3 }
   0x4   : > { %p138_p2 = pnand %p361_p0, %p137_p1 }
   0x5   : > { %p161_p3 = scmp.lt.s32.totalorder (!%p138_p2), %s357_s13, 1  ;;  %v230_v0 = vld [vmem:[%s501_s1] sm:$0xff] (!%p138_p2)  ;;  %v395_v1 = vmov (!%p138_p2), 0   ;;  %v231_v2 = vld [vmem:[%s501_s1 + $0x8] sm:$0xff] (!%p138_p2)  ;;  %vm175_vm0 = vcmask (!%p138_p2), 130048   ;;  %v233_v11 = vld [vmem:[%s501_s1 + $0x18] sm:$0xff] (!%p138_p2) }
   0x6   : > { %141 = sbr.rel (%p138_p2) target bundleno = 264 (0x108), region = 32  ;;  %383 = vset.pattern.permute.xlu1 (!%p138_p2), %v395_v1  ;;  %384 = vset.pattern.permute.xlu0 (!%p138_p2), %v395_v1  ;;  %v258_v22 = vld [vmem:[%s502_s2] sm:$0xff] (!%p138_p2)  ;;  %v259_v27 = vld [vmem:[%s502_s2 + $0x8] sm:$0xff] (!%p138_p2)  ;;  %v260_v28 = vld [vmem:[%s502_s2 + $0x10] sm:$0xff] (!%p138_p2) }
   0x7   : > { %236 = vperm.xlu1 (!%p138_p2), %383, %v230_v0   ;;  %v261_v29 = vld [vmem:[%s502_s2 + $0x18] sm:$0xff] (!%p138_p2)  ;;  %v232_v30 = vld [vmem:[%s501_s1 + $0x10] sm:$0xff] (!%p138_p2) }
   0xb   : > { %241 = vperm.xlu1 (!%p138_p2), %383, %v231_v2  }
   0xd   : > { %s505_s13 = smov (!%p161_p3, %s357_s13), 1 }
   0xe   : > { %s368_s18 = sshll.u32 %s505_s13, 5 }
   0xf   : > { %s165_s21 = scalar_lea.vmem %s500_s0, %s368_s18  ;;  %251 = vperm.xlu1 %383, %v233_v11   ;;  %s170_s11 = scalar_lea.vmem %s503_s3, %s368_s18 }
  0x10   : > { %v438_v3 = vld [vmem:[%s165_s21] sm:$0xff]  ;;  %v440_v4 = vld [vmem:[%s165_s21 + $0x8] sm:$0xff]  ;;  %v442_v5 = vld [vmem:[%s165_s21 + $0x10] sm:$0xff] }
  0x11   : > { %v444_v6 = vld [vmem:[%s165_s21 + $0x18] sm:$0xff]  ;;  %v176_v7 = vsel %vm175_vm0, %v438_v3, 0.0  ;;  %v177_v8 = vsel %vm175_vm0, %v440_v4, 0.0  ;;  %v179_v9 = vsel %vm175_vm0, %v442_v5, 0.0  ;;  %v195_v10 = vmul.f32 %v438_v3, %v438_v3 }
  0x12   : > { %v178_v12 = vadd.f32 %v177_v8, %v176_v7  ;;  %v196_v13 = vmul.f32 %v440_v4, %v440_v4  ;;  %v197_v14 = vmul.f32 %v442_v5, %v442_v5  ;;  %v181_v15 = vsel %vm175_vm0, %v444_v6, 0.0 }
  0x13   : > { %v198_v16 = vmul.f32 %v444_v6, %v444_v6  ;;  %v199_v17 = vsel %vm175_vm0, %v195_v10, 0.0  ;;  %264 = vperm.xlu1 %383, %v258_v22  }
  0x14   : > { %v180_v18 = vadd.f32 %v179_v9, %v178_v12  ;;  %v200_v19 = vsel %vm175_vm0, %v196_v13, 0.0  ;;  %v202_v20 = vsel %vm175_vm0, %v197_v14, 0.0 }
  0x15   : > { %v201_v21 = vadd.f32 %v200_v19, %v199_v17  ;;  %v204_v24 = vsel %vm175_vm0, %v198_v16, 0.0 }
  0x16   : > { %v182_v23 = vadd.f32 %v181_v15, %v180_v18 }
  0x17   : > { %v203_v25 = vadd.f32 %v202_v20, %v201_v21  ;;  %269 = vperm.xlu1 %383, %v259_v27  }
  0x18   : > { %183 = vadd.xlane.f32.xlu0 %v182_v23 }
  0x19   : > { %v205_v26 = vadd.f32 %v204_v24, %v203_v25 }
  0x1b   : > { %274 = vperm.xlu1 %383, %v260_v28  }
  0x1c   : > { %206 = vadd.xlane.f32.xlu0 %v205_v26 }
  0x1f   : > { %279 = vperm.xlu1 %383, %v261_v29  }
  0x32   : > { %246 = vperm.xlu0 %384, %v232_v30  }
  0x86   : > { %v237_v45 = vpop.permute.xlu1 %236 }
  0x8a   : > { %v242_v46 = vpop.permute.xlu1 %241 }
  0x8e   : > { %v252_v49 = vpop.permute.xlu1 %251 }
  0x92   : > { %v265_v54 = vpop.permute.xlu1 %264 }
  0x96   : > { %v270_v57 = vpop.permute.xlu1 %269 }
  0x9a   : > { %v275_v58 = vpop.permute.xlu1 %274 }
  0x9e   : > { %v280_v13 = vpop.permute.xlu1 %279 }
  0xa5   : > { %v184_v31 = vpop.xlane.xlu0 %183 }
  0xa6   : > { %v185_v32 = vrot.slane %v184_v31, 4 }
  0xa8   : > { %v186_v33 = vadd.f32 %v185_v32, %v184_v31 }
  0xa9   : > { %v207_v34 = vpop.xlane.xlu0 %206 }
  0xaa   : > { %v187_v35 = vrot.slane %v186_v33, 2  ;;  %v208_v36 = vrot.slane %v207_v34, 4 }
  0xac   : > { %v209_v37 = vadd.f32 %v208_v36, %v207_v34  ;;  %v188_v38 = vadd.f32 %v187_v35, %v186_v33 }
  0xae   : > { %v210_v39 = vrot.slane %v209_v37, 2  ;;  %v189_v40 = vrot.slane %v188_v38, 1 }
  0xb0   : > { %v190_v41 = vadd.f32 %v189_v40, %v188_v38  ;;  %v211_v42 = vadd.f32 %v210_v39, %v209_v37 }
  0xb1   : > { %v247_v0 = vpop.permute.xlu0 %246 }
  0xb2   : > { %370 = vpush %v190_v41  ;;  %v212_v43 = vrot.slane %v211_v42, 1 }
  0xb4   : > { %v213_v44 = vadd.f32 %v212_v43, %v211_v42 }
  0xb6   : > { %372 = vpush %v213_v44 }
  0xe3   : > { %s371_s7 = spop %370 }
  0xe4   : > { %v192_v47 = vstv %s371_s7 }
  0xe5   : > { %v194_v48 = vmul.f32 0.001953125, %v192_v47 }
  0xe7   : > { %s373_s8 = spop %372  ;;  %v217_v52 = vmul.f32 %v194_v48, %v194_v48  ;;  %v220_v59 = vsub.f32 %v438_v3, %v194_v48  ;;  %v221_v60 = vsub.f32 %v440_v4, %v194_v48  ;;  %v223_v61 = vsub.f32 %v444_v6, %v194_v48 }
  0xe8   : > { %v215_v50 = vstv %s373_s8  ;;  %v222_v62 = vsub.f32 %v442_v5, %v194_v48 }
  0xe9   : > { %v216_v51 = vmul.f32 0.001953125, %v215_v50 }
  0xeb   : > { %v218_v53 = vsub.f32 %v216_v51, %v217_v52 }
  0xed   : > { %v219_v55 = vmax.f32 %v218_v53, 0.0 }
  0xef   : > { %v224_v56 = vadd.f32 1e-05, %v219_v55 }
  0xf1   : > { %385 = vrsqrt.f32 %v224_v56 }
  0xfb   : > { %v386_v63 = vpop.eup %385 }
  0xfc   : > { %v226_v1 = vmul.f32 %v386_v63, %v220_v59  ;;  %v227_v2 = vmul.f32 %v386_v63, %v221_v60  ;;  %v229_v7 = vmul.f32 %v386_v63, %v223_v61  ;;  %v228_v8 = vmul.f32 %v386_v63, %v222_v62 }
  0xfe   : > { %v254_v9 = vmul.f32 %v237_v45, %v226_v1  ;;  %v255_v10 = vmul.f32 %v242_v46, %v227_v2  ;;  %v257_v11 = vmul.f32 %v252_v49, %v229_v7  ;;  %v256_v12 = vmul.f32 %v247_v0, %v228_v8 }
 0x100   : > { %v282_v14 = vadd.f32 %v265_v54, %v254_v9  ;;  %v283_v3 = vadd.f32 %v270_v57, %v255_v10  ;;  %v285_v15 = vadd.f32 %v280_v13, %v257_v11  ;;  %v284_v4 = vadd.f32 %v275_v58, %v256_v12 }
 0x102   : > { %vm286_vm1 = vcmp.ge.f32.partialorder %v282_v14, 0.0  ;;  %vm287_vm2 = vcmp.ge.f32.partialorder %v283_v3, 0.0  ;;  %vm289_vm3 = vcmp.ge.f32.partialorder %v285_v15, 0.0  ;;  %v290_v5 = vmul.f32 0.2, %v282_v14 }
 0x103   : > { %v291_v6 = vmul.f32 0.2, %v283_v3  ;;  %v293_v16 = vmul.f32 0.2, %v285_v15  ;;  %vm288_vm4 = vcmp.ge.f32.partialorder %v284_v4, 0.0 }
 0x104   : > { %v294_v17 = vsel %vm286_vm1, %v282_v14, %v290_v5  ;;  %v292_v18 = vmul.f32 0.2, %v284_v4 }
 0x105   : > { %v295_v19 = vsel %vm287_vm2, %v283_v3, %v291_v6  ;;  %v297_v20 = vsel %vm289_vm3, %v285_v15, %v293_v16  ;;  %298 = vst.msk [vmem:[%s170_s11] sm:$0xff] %vm175_vm0, %v294_v17 }
 0x106   : > { %299 = vst.msk [vmem:[%s170_s11 + $0x8] sm:$0xff] %vm175_vm0, %v295_v19  ;;  %301 = vst.msk [vmem:[%s170_s11 + $0x18] sm:$0xff] %vm175_vm0, %v297_v20  ;;  %v296_v21 = vsel %vm288_vm4, %v284_v4, %v292_v18 }
 0x107   : > { %300 = vst.msk [vmem:[%s170_s11 + $0x10] sm:$0xff] %vm175_vm0, %v296_v21 }
 0x108 PF: > { %s13_s12 = sadd.s32 1, %s393_s12  }
 0x109   : > { %p10_p4 = scmp.ge.s32.totalorder %s13_s12, 4  }
 0x10b   :  { %12 = sbr.rel (!%p10_p4) target bundleno = 1 (0x1), region = 62 }

// kernel: vnet_forward.58
= control target key start
LH: loop header
LB: loop body
LE: loop exit
PB: predicated region body
PF: predicated region fallthrough
CT: control target
= control target key end

     0   :  { %s481_s12 = smov 0   ;;  %s584_s0 = inlined_call_operand.vmem [shape: f32[2,144,16], index: 0, kind: input, shape index: {}]   ;;  %s585_s1 = inlined_call_operand.vmem [shape: f32[32,144], index: 1, kind: input, shape index: {}]   ;;  %s586_s2 = inlined_call_operand.vmem [shape: f32[32,1], index: 2, kind: input, shape index: {}]   ;;  %s587_s3 = inlined_call_operand.vmem [shape: f32[2,32,16], index: 3, kind: output, shape index: {}]  }
   0x1 LB: > { %s378_s13 = sadd.s32 4294967295, %s457_s12   ;;  %p382_p0 = scmp.ge.s32.totalorder %s457_s12, 1  ;;  %s457_s12 = sphi %s481_s12, %s13_s12  }
   0x2   : > { %p137_p1 = scmp.lt.s32.totalorder %s457_s12, 3 }
   0x4   : > { %p138_p2 = pnand %p382_p0, %p137_p1 }
   0x5   : > { %p161_p3 = scmp.lt.s32.totalorder (!%p138_p2), %s378_s13, 1  ;;  %v172_v0 = vld [vmem:[%s585_s1 + $0x8] sm:$0xff] (!%p138_p2)  ;;  %vm221_vm0 = vcmask (!%p138_p2), 130048   ;;  %v459_v2 = vmov (!%p138_p2), 0.0|0.0   ;;  %v199_v3 = vld [vmem:[%s586_s2 + $0x10] sm:$0xff] (!%p138_p2)  ;;  %v460_v4 = vmov (!%p138_p2), 0  }
   0x6   : > { %141 = sbr.rel (%p138_p2) target bundleno = 274 (0x112), region = 32  ;;  %v176_v1 = vld [vmem:[%s585_s1 + $0x28] sm:$0xff] (!%p138_p2)  ;;  %393 = vmatprep.subr.bf16.mxu0 (!%p138_p2), %v459_v2  ;;  %420 = vmatprep.subr.bf16.mxu1 (!%p138_p2), %v459_v2  ;;  %v197_v5 = vld [vmem:[%s586_s2] sm:$0xff] (!%p138_p2)  ;;  %v200_v6 = vld [vmem:[%s586_s2 + $0x18] sm:$0xff] (!%p138_p2) }
   0x7   : > { %386 = vmatprep.mubr.msk.f32.mxu0 (!%p138_p2), %vm221_vm0, %v172_v0  ;;  %388 = vmatprep.mubr.msk.f32.mxu1 (!%p138_p2), %vm221_vm0, %v176_v1  ;;  %v198_v7 = vld [vmem:[%s586_s2 + $0x8] sm:$0xff] (!%p138_p2)  ;;  %v171_v35 = vld [vmem:[%s585_s1] sm:$0xff] (!%p138_p2)  ;;  %v174_v37 = vld [vmem:[%s585_s1 + $0x18] sm:$0xff] (!%p138_p2) }
   0x8   : > { %450 = vset.pattern.permute.xlu1 (!%p138_p2), %v460_v4  ;;  %449 = vset.pattern.permute.xlu0 (!%p138_p2), %v460_v4  ;;  %v175_v36 = vld [vmem:[%s585_s1 + $0x20] sm:$0xff] (!%p138_p2)  ;;  %v178_v38 = vld [vmem:[%s585_s1 + $0x38] sm:$0xff] (!%p138_p2)  ;;  %v173_v39 = vld [vmem:[%s585_s1 + $0x10] sm:$0xff] (!%p138_p2) }
   0x9   : > { %213 = vperm.xlu1 (!%p138_p2), %450, %v199_v3   ;;  %203 = vperm.xlu0 (!%p138_p2), %449, %v197_v5   ;;  %v177_v40 = vld [vmem:[%s585_s1 + $0x30] sm:$0xff] (!%p138_p2) }
   0xd   : > { %s589_s13 = smov (!%p161_p3, %s378_s13), 1  ;;  %218 = vperm.xlu1 %450, %v200_v6   ;;  %208 = vperm.xlu0 %449, %v198_v7  }
   0xe   : > { %s438_s22 = smul.u32 144, %s589_s13  ;;  %s392_s17 = sshll.u32 %s589_s13, 5 }
   0xf   : > { %s170_s20 = scalar_lea.vmem %s587_s3, %s392_s17 }
  0x10   : > { %s517_s29 = scalar_lea.vmem %s584_s0, %s438_s22 }
  0x11   : > { %v179_v8 = vld [vmem:[%s517_s29] sm:$0xff]  ;;  %v180_v9 = vld [vmem:[%s517_s29 + $0x8] sm:$0xff]  ;;  %v181_v10 = vld [vmem:[%s517_s29 + $0x10] sm:$0xff] }
  0x12   : > { %v394_v11 = vpack.c.bf16 %v180_v9, %v179_v8  ;;  %v182_v12 = vld [vmem:[%s517_s29 + $0x18] sm:$0xff]  ;;  %v183_v14 = vld [vmem:[%s517_s29 + $0x20] sm:$0xff]  ;;  %v184_v15 = vld [vmem:[%s517_s29 + $0x28] sm:$0xff] }
  0x13   : > { %v397_v13 = vpack.c.bf16 %v182_v12, %v181_v10  ;;  %v400_v16 = vpack.c.bf16 %v184_v15, %v183_v14  ;;  %v185_v17 = vld [vmem:[%s517_s29 + $0x30] sm:$0xff]  ;;  %v186_v18 = vld [vmem:[%s517_s29 + $0x38] sm:$0xff]  ;;  %v187_v20 = vld [vmem:[%s517_s29 + $0x40] sm:$0xff] }
  0x14   : > { %395 = vmatpush1.bf16.msra.mxu0 %v394_v11  ;;  %429 = vmatpush1.bf16.msra.mxu1 %v394_v11  ;;  %v403_v19 = vpack.c.bf16 %v186_v18, %v185_v17  ;;  %v188_v21 = vld [vmem:[%s517_s29 + $0x48] sm:$0xff]  ;;  %v189_v23 = vld [vmem:[%s517_s29 + $0x50] sm:$0xff]  ;;  %v190_v24 = vld [vmem:[%s517_s29 + $0x58] sm:$0xff] }
  0x15   : > { %396 = vmatprep.subr.bf16.mxu0 %v459_v2  ;;  %421 = vmatprep.subr.bf16.mxu1 %v459_v2  ;;  %v406_v22 = vpack.c.bf16 %v188_v21, %v187_v20  ;;  %v409_v25 = vpack.c.bf16 %v190_v24, %v189_v23  ;;  %v191_v26 = vld [vmem:[%s517_s29 + $0x60] sm:$0xff]  ;;  %v192_v27 = vld [vmem:[%s517_s29 + $0x68] sm:$0xff]  ;;  %v193_v29 = vld [vmem:[%s517_s29 + $0x70] sm:$0xff] }
  0x16   : > { %v412_v28 = vpack.c.bf16 %v192_v27, %v191_v26  ;;  %v194_v30 = vld [vmem:[%s517_s29 + $0x78] sm:$0xff]  ;;  %v195_v32 = vld [vmem:[%s517_s29 + $0x80] sm:$0xff]  ;;  %v196_v33 = vld [vmem:[%s517_s29 + $0x88] sm:$0xff] }
  0x17   : > { %v415_v31 = vpack.c.bf16 %v194_v30, %v193_v29  ;;  %v418_v34 = vpack.c.bf16 %v196_v33, %v195_v32 }
  0x18   : > { %398 = vmatpush1.bf16.msra.mxu0 %v397_v13  ;;  %430 = vmatpush1.bf16.msra.mxu1 %v397_v13 }
  0x19   : > { %399 = vmatprep.subr.bf16.mxu0 %v459_v2  ;;  %422 = vmatprep.subr.bf16.mxu1 %v459_v2 }
  0x1c   : > { %401 = vmatpush1.bf16.msra.mxu0 %v400_v16  ;;  %431 = vmatpush1.bf16.msra.mxu1 %v400_v16 }
  0x1d   : > { %402 = vmatprep.subr.bf16.mxu0 %v459_v2  ;;  %423 = vmatprep.subr.bf16.mxu1 %v459_v2 }
  0x20   : > { %404 = vmatpush1.bf16.msra.mxu0 %v403_v19  ;;  %432 = vmatpush1.bf16.msra.mxu1 %v403_v19 }
  0x21   : > { %405 = vmatprep.subr.bf16.mxu0 %v459_v2  ;;  %424 = vmatprep.subr.bf16.mxu1 %v459_v2 }
  0x24   : > { %407 = vmatpush1.bf16.msra.mxu0 %v406_v22  ;;  %433 = vmatpush1.bf16.msra.mxu1 %v406_v22 }
  0x25   : > { %408 = vmatprep.subr.bf16.mxu0 %v459_v2  ;;  %425 = vmatprep.subr.bf16.mxu1 %v459_v2 }
  0x28   : > { %410 = vmatpush1.bf16.msra.mxu0 %v409_v25  ;;  %434 = vmatpush1.bf16.msra.mxu1 %v409_v25 }
  0x29   : > { %411 = vmatprep.subr.bf16.mxu0 %v459_v2  ;;  %426 = vmatprep.subr.bf16.mxu1 %v459_v2 }
  0x2c   : > { %413 = vmatpush1.bf16.msra.mxu0 %v412_v28  ;;  %435 = vmatpush1.bf16.msra.mxu1 %v412_v28 }
  0x2d   : > { %414 = vmatprep.subr.bf16.mxu0 %v459_v2  ;;  %427 = vmatprep.subr.bf16.mxu1 %v459_v2 }
  0x30   : > { %416 = vmatpush1.bf16.msra.mxu0 %v415_v31  ;;  %436 = vmatpush1.bf16.msra.mxu1 %v415_v31 }
  0x31   : > { %417 = vmatprep.subr.bf16.mxu0 %v459_v2  ;;  %428 = vmatprep.subr.bf16.mxu1 %v459_v2 }
  0x34   : > { %419 = vmatpush1.bf16.msra.mxu0 %v418_v34  ;;  %437 = vmatpush1.bf16.msra.mxu1 %v418_v34 }
  0x37   : > { %299 = vmatmul.mubr.f32.vlgmr.msra.gmra.mrb[0].mxu0 %v171_v35  ;;  %309 = vmatmul.mubr.f32.vlgmr.msra.gmra.mrb[0].mxu1 %v175_v36 }
  0x38   : > { %387 = vmatprep.mubr.msk.f32.mxu0 %vm221_vm0, %v174_v37  ;;  %389 = vmatprep.mubr.msk.f32.mxu1 %vm221_vm0, %v178_v38 }
  0x3b   : > { %304 = vmatmul.mubr.f32.gmra.mrb[2].mxu0 %v173_v39  ;;  %314 = vmatmul.mubr.f32.gmra.mrb[2].mxu1 %v177_v40 }
  0x88   : > { %v214_v41 = vpop.permute.xlu1 %213  ;;  %v204_v42 = vpop.permute.xlu0 %203 }
  0x8c   : > { %v219_v49 = vpop.permute.xlu1 %218  ;;  %v209_v50 = vpop.permute.xlu0 %208 }
 0x10a   : > { %v300_v43 = vpop.f32.mrb[0].mxu0  ;;  %v310_v44 = vpop.f32.mrb[0].mxu1 }
 0x10b   : > { %v301_v45 = vadd.f32 %v300_v43, %v204_v42  ;;  %v311_v46 = vadd.f32 %v310_v44, %v214_v41  ;;  %v302_v47 = vpop.f32.mrb[1].mxu0  ;;  %v312_v48 = vpop.f32.mrb[1].mxu1 }
 0x10d   : > { %319 = vst.msk [vmem:[%s170_s20] sm:$0xff] %vm221_vm0, %v301_v45  ;;  %321 = vst.msk [vmem:[%s170_s20 + $0x10] sm:$0xff] %vm221_vm0, %v311_v46 }
 0x10e   : > { %v305_v51 = vpop.f32.mrb[2].mxu0  ;;  %v315_v52 = vpop.f32.mrb[2].mxu1 }
 0x10f   : > { %v306_v53 = vadd.f32 %v305_v51, %v209_v50  ;;  %v316_v54 = vadd.f32 %v315_v52, %v219_v49  ;;  %v307_v55 = vpop.f32.mrb[3].mxu0  ;;  %v317_v56 = vpop.f32.mrb[3].mxu1 }
 0x111   : > { %320 = vst.msk [vmem:[%s170_s20 + $0x8] sm:$0xff] %vm221_vm0, %v306_v53  ;;  %322 = vst.msk [vmem:[%s170_s20 + $0x18] sm:$0xff] %vm221_vm0, %v316_v54 }
 0x112 PF: > { %s13_s12 = sadd.s32 1, %s457_s12  }
 0x113   : > { %p10_p4 = scmp.ge.s32.totalorder %s13_s12, 4  }
 0x115   :  { %12 = sbr.rel (!%p10_p4) target bundleno = 1 (0x1), region = 62 }

// kernel: vnet_forward.61
= control target key start
LH: loop header
LB: loop body
LE: loop exit
PB: predicated region body
PF: predicated region fallthrough
CT: control target
= control target key end

     0   :  { %s723_s15 = smov 0   ;;  %s841_s0 = inlined_call_operand.vmem [shape: f32[2,288,16], index: 0, kind: input, shape index: {}]   ;;  %s842_s1 = inlined_call_operand.vmem [shape: f32[32,288], index: 1, kind: input, shape index: {}]   ;;  %s843_s2 = inlined_call_operand.vmem [shape: f32[32,1], index: 2, kind: input, shape index: {}]   ;;  %s844_s3 = inlined_call_operand.vmem [shape: f32[2,32,16], index: 3, kind: input, shape index: {}]   ;;  %s845_s4 = inlined_call_operand.vmem [shape: f32[2,32,16], index: 4, kind: output, shape index: {}]  }
   0x1 LB: > { %s553_s16 = sadd.s32 4294967295, %s695_s15   ;;  %p557_p0 = scmp.ge.s32.totalorder %s695_s15, 1  ;;  %s695_s15 = sphi %s723_s15, %s14_s15  }
   0x2   : > { %p172_p1 = scmp.lt.s32.totalorder %s695_s15, 3 }
   0x4   : > { %p173_p2 = pnand %p557_p0, %p172_p1 }
   0x5   : > { %p203_p3 = scmp.lt.s32.totalorder (!%p173_p2), %s553_s16, 1  ;;  %v219_v0 = vld [vmem:[%s842_s1 + $0x8] sm:$0xff] (!%p173_p2)  ;;  %vm290_vm0 = vcmask (!%p173_p2), 261120   ;;  %v220_v1 = vld [vmem:[%s842_s1 + $0x10] sm:$0xff] (!%p173_p2)  ;;  %v697_v2 = vmov (!%p173_p2), 0   ;;  %v266_v3 = vld [vmem:[%s843_s2] sm:$0xff] (!%p173_p2) }
   0x6   : > { %176 = sbr.rel (%p173_p2) target bundleno = 286 (0x11e), region = 36  ;;  %367 = vmatprep.mubr.f32.mxu0 (!%p173_p2), %v219_v0  ;;  %687 = vset.pattern.permute.xlu0 (!%p173_p2), %v697_v2  ;;  %v268_v4 = vld [vmem:[%s843_s2 + $0x10] sm:$0xff] (!%p173_p2)  ;;  %v267_v5 = vld [vmem:[%s843_s2 + $0x8] sm:$0xff] (!%p173_p2)  ;;  %v269_v6 = vld [vmem:[%s843_s2 + $0x18] sm:$0xff] (!%p173_p2)  ;;  %vm481_vm1 = vcmask (!%p173_p2), 130048  }
   0x7   : > { %631 = vmatprep.mubr.msk.f32.mxu1 (!%p173_p2), %vm290_vm0, %v220_v1  ;;  %688 = vset.pattern.permute.xlu1 (!%p173_p2), %v697_v2  ;;  %v223_v50 = vld [vmem:[%s842_s1 + $0x28] sm:$0xff] (!%p173_p2)  ;;  %v226_v51 = vld [vmem:[%s842_s1 + $0x40] sm:$0xff] (!%p173_p2)  ;;  %v229_v58 = vld [vmem:[%s842_s1 + $0x58] sm:$0xff] (!%p173_p2) }
   0x8   : > { %272 = vperm.xlu0 (!%p173_p2), %687, %v266_v3   ;;  %282 = vperm.xlu1 (!%p173_p2), %688, %v268_v4   ;;  %v218_v0 = vld [vmem:[%s842_s1] sm:$0xff] (!%p173_p2)  ;;  %v221_v2 = vld [vmem:[%s842_s1 + $0x18] sm:$0xff] (!%p173_p2)  ;;  %v224_v4 = vld [vmem:[%s842_s1 + $0x30] sm:$0xff] (!%p173_p2) }
   0x9   : > { %v222_v1 = vld [vmem:[%s842_s1 + $0x20] sm:$0xff] (!%p173_p2)  ;;  %v225_v3 = vld [vmem:[%s842_s1 + $0x38] sm:$0xff] (!%p173_p2) }
   0xc   : > { %277 = vperm.xlu0 (!%p173_p2), %687, %v267_v5   ;;  %287 = vperm.xlu1 (!%p173_p2), %688, %v269_v6   ;;  %v228_v5 = vld [vmem:[%s842_s1 + $0x50] sm:$0xff] (!%p173_p2)  ;;  %v227_v6 = vld [vmem:[%s842_s1 + $0x48] sm:$0xff] (!%p173_p2) }
   0xd   : > { %s847_s16 = smov (!%p203_p3, %s553_s16), 1 }
   0xe   : > { %s677_s21 = smul.u32 288, %s847_s16  ;;  %s569_s29 = sshll.u32 %s847_s16, 5 }
   0xf   : > { %s212_s6 = scalar_lea.vmem %s844_s3, %s569_s29  ;;  %s217_s9 = scalar_lea.vmem %s845_s4, %s569_s29 }
  0x10   : > { %s750_s28 = scalar_lea.vmem %s841_s0, %s677_s21 }
  0x11   : > { %v246_v7 = vld [vmem:[%s750_s28 + $0x80] sm:$0xff]  ;;  %v247_v8 = vld [vmem:[%s750_s28 + $0x88] sm:$0xff]  ;;  %v248_v12 = vld [vmem:[%s750_s28 + $0x90] sm:$0xff] }
  0x12   : > { %v230_v9 = vld [vmem:[%s750_s28] sm:$0xff]  ;;  %v637_v10 = vpack.c.bf16 %v247_v8, %v246_v7  ;;  %v231_v11 = vld [vmem:[%s750_s28 + $0x8] sm:$0xff]  ;;  %v249_v13 = vld [vmem:[%s750_s28 + $0x98] sm:$0xff] }
  0x13   : > { %v639_v14 = vpack.c.bf16 %v231_v11, %v230_v9  ;;  %v641_v15 = vpack.c.bf16 %v249_v13, %v248_v12  ;;  %v232_v16 = vld [vmem:[%s750_s28 + $0x10] sm:$0xff]  ;;  %v233_v17 = vld [vmem:[%s750_s28 + $0x18] sm:$0xff]  ;;  %v250_v18 = vld [vmem:[%s750_s28 + $0xa0] sm:$0xff] }
  0x14   : > { %638 = vmatprep.subr.bf16.mxu0 %v637_v10  ;;  %v251_v19 = vld [vmem:[%s750_s28 + $0xa8] sm:$0xff]  ;;  %v643_v20 = vpack.c.bf16 %v233_v17, %v232_v16  ;;  %v234_v22 = vld [vmem:[%s750_s28 + $0x20] sm:$0xff]  ;;  %v252_v24 = vld [vmem:[%s750_s28 + $0xb0] sm:$0xff] }
  0x15   : > { %640 = vmatpush3.bf16.msra.mxu0 %v639_v14  ;;  %v645_v21 = vpack.c.bf16 %v251_v19, %v250_v18  ;;  %v235_v23 = vld [vmem:[%s750_s28 + $0x28] sm:$0xff]  ;;  %v253_v25 = vld [vmem:[%s750_s28 + $0xb8] sm:$0xff]  ;;  %v236_v28 = vld [vmem:[%s750_s28 + $0x30] sm:$0xff] }
  0x16   : > { %642 = vmatprep.subr.bf16.mxu0 %v641_v15  ;;  %v647_v26 = vpack.c.bf16 %v235_v23, %v234_v22  ;;  %v649_v27 = vpack.c.bf16 %v253_v25, %v252_v24  ;;  %v237_v29 = vld [vmem:[%s750_s28 + $0x38] sm:$0xff]  ;;  %v254_v30 = vld [vmem:[%s750_s28 + $0xc0] sm:$0xff]  ;;  %v255_v31 = vld [vmem:[%s750_s28 + $0xc8] sm:$0xff] }
  0x17   : > { %v262_v32 = vld [vmem:[%s750_s28 + $0x100] sm:$0xff]  ;;  %v263_v33 = vld [vmem:[%s750_s28 + $0x108] sm:$0xff]  ;;  %v264_v35 = vld [vmem:[%s750_s28 + $0x110] sm:$0xff]  ;;  %v651_v37 = vpack.c.bf16 %v237_v29, %v236_v28  ;;  %v653_v39 = vpack.c.bf16 %v255_v31, %v254_v30 }
  0x18   : > { %v669_v34 = vpack.c.bf16 %v263_v33, %v262_v32  ;;  %v265_v36 = vld [vmem:[%s750_s28 + $0x118] sm:$0xff]  ;;  %v238_v40 = vld [vmem:[%s750_s28 + $0x40] sm:$0xff]  ;;  %v239_v41 = vld [vmem:[%s750_s28 + $0x48] sm:$0xff] }
  0x19   : > { %644 = vmatpush3.bf16.msra.mxu0 %v643_v20  ;;  %v673_v38 = vpack.c.bf16 %v265_v36, %v264_v35  ;;  %v256_v42 = vld [vmem:[%s750_s28 + $0xd0] sm:$0xff]  ;;  %v257_v43 = vld [vmem:[%s750_s28 + $0xd8] sm:$0xff]  ;;  %v655_v44 = vpack.c.bf16 %v239_v41, %v238_v40  ;;  %v258_v48 = vld [vmem:[%s750_s28 + $0xe0] sm:$0xff] }
  0x1a   : > { %646 = vmatprep.subr.bf16.mxu0 %v645_v21  ;;  %670 = vmatprep.subr.bf16.mxu1 %v669_v34  ;;  %v657_v45 = vpack.c.bf16 %v257_v43, %v256_v42  ;;  %v240_v46 = vld [vmem:[%s750_s28 + $0x50] sm:$0xff]  ;;  %v241_v47 = vld [vmem:[%s750_s28 + $0x58] sm:$0xff]  ;;  %v259_v49 = vld [vmem:[%s750_s28 + $0xe8] sm:$0xff] }
  0x1b   : > { %672 = vmatpush3.bf16.msra.mxu1 %v669_v34  ;;  %v659_v52 = vpack.c.bf16 %v241_v47, %v240_v46  ;;  %v661_v53 = vpack.c.bf16 %v259_v49, %v258_v48  ;;  %v242_v54 = vld [vmem:[%s750_s28 + $0x60] sm:$0xff]  ;;  %v243_v55 = vld [vmem:[%s750_s28 + $0x68] sm:$0xff]  ;;  %v260_v56 = vld [vmem:[%s750_s28 + $0xf0] sm:$0xff] }
  0x1c   : > { %674 = vmatprep.subr.bf16.mxu1 %v673_v38  ;;  %v261_v57 = vld [vmem:[%s750_s28 + $0xf8] sm:$0xff]  ;;  %v663_v59 = vpack.c.bf16 %v243_v55, %v242_v54  ;;  %v244_v61 = vld [vmem:[%s750_s28 + $0x70] sm:$0xff]  ;;  %v473_v18 = vld [vmem:[%s212_s6] sm:$0xff] }
  0x1d   : > { %648 = vmatpush3.bf16.msra.mxu0 %v647_v26  ;;  %v665_v60 = vpack.c.bf16 %v261_v57, %v260_v56  ;;  %v245_v62 = vld [vmem:[%s750_s28 + $0x78] sm:$0xff]  ;;  %v474_v26 = vld [vmem:[%s212_s6 + $0x8] sm:$0xff]  ;;  %v475_v34 = vld [vmem:[%s212_s6 + $0x10] sm:$0xff] }
  0x1e   : > { %650 = vmatprep.subr.bf16.mxu0 %v649_v27  ;;  %v667_v63 = vpack.c.bf16 %v245_v62, %v244_v61  ;;  %v476_v40 = vld [vmem:[%s212_s6 + $0x18] sm:$0xff] }
  0x1f   : > { %676 = vmatpush3.bf16.msra.mxu1 %v673_v38 }
  0x21   : > { %652 = vmatpush3.bf16.msra.mxu0 %v651_v37 }
  0x22   : > { %654 = vmatprep.subr.bf16.mxu0 %v653_v39  ;;  %632 = vmatmul.mubr.msk.f32.vlgmr.msra.gmra.mrb[0].mxu1 %vm290_vm0, %v223_v50 }
  0x23   : > { %634 = vmatprep.mubr.msk.f32.mxu1 %vm290_vm0, %v226_v51 }
  0x25   : > { %656 = vmatpush3.bf16.msra.mxu0 %v655_v44 }
  0x26   : > { %658 = vmatprep.subr.bf16.mxu0 %v657_v45  ;;  %635 = vmatmul.mubr.msk.f32.gmra.mrb[2].mxu1 %vm290_vm0, %v229_v58 }
  0x29   : > { %660 = vmatpush3.bf16.msra.mxu0 %v659_v52 }
  0x2a   : > { %662 = vmatprep.subr.bf16.mxu0 %v661_v53 }
  0x2d   : > { %664 = vmatpush3.bf16.msra.mxu0 %v663_v59 }
  0x2e   : > { %666 = vmatprep.subr.bf16.mxu0 %v665_v60 }
  0x31   : > { %668 = vmatpush3.bf16.msra.mxu0 %v667_v63 }
  0x34   : > { %368 = vmatmul.mubr.f32.vlgmr.msra.gmra.mrb[0].mxu0 %v218_v0 }
  0x35   : > { %372 = vmatprep.mubr.f32.mxu0 %v222_v1 }
  0x38   : > { %373 = vmatmul.mubr.f32.gmra.mrb[2].mxu0 %v221_v2 }
  0x39   : > { %377 = vmatprep.mubr.f32.mxu0 %v225_v3 }
  0x3c   : > { %378 = vmatmul.mubr.f32.gmra.mrb[4].mxu0 %v224_v4 }
  0x3d   : > { %382 = vmatprep.mubr.f32.mxu0 %v228_v5 }
  0x40   : > { %383 = vmatmul.mubr.f32.gmra.mrb[6].mxu0 %v227_v6 }
  0x87   : > { %v273_v11 = vpop.permute.xlu0 %272  ;;  %v283_v25 = vpop.permute.xlu1 %282 }
  0x8b   : > { %v278_v19 = vpop.permute.xlu0 %277  ;;  %v288_v37 = vpop.permute.xlu1 %287 }
  0xf5   : > { %v633_v7 = vpop.f32.mrb[0].mxu1 }
  0xf6   : > { %v454_v8 = vpop.f32.mrb[1].mxu1 }
  0xf9   : > { %v636_v9 = vpop.f32.mrb[2].mxu1 }
  0xfa   : > { %v464_v10 = vpop.f32.mrb[3].mxu1 }
 0x107   : > { %v603_v12 = vpop.f32.mrb[0].mxu0 }
 0x108   : > { %v604_v13 = vpop.f32.mrb[1].mxu0 }
 0x109   : > { %v605_v14 = vadd.f32 %v604_v13, %v603_v12 }
 0x10b   : > { %v370_v15 = vadd.f32 %v605_v14, %v273_v11  ;;  %v606_v16 = vpop.f32.mrb[2].mxu0 }
 0x10c   : > { %v607_v17 = vpop.f32.mrb[3].mxu0 }
 0x10d   : > { %v608_v20 = vadd.f32 %v607_v17, %v606_v16  ;;  %v455_v21 = vadd.f32 %v454_v8, %v370_v15 }
 0x10f   : > { %v477_v22 = vadd.f32 %v473_v18, %v455_v21  ;;  %v375_v23 = vadd.f32 %v608_v20, %v278_v19  ;;  %v609_v24 = vpop.f32.mrb[4].mxu0 }
 0x110   : > { %v610_v27 = vpop.f32.mrb[5].mxu0 }
 0x111   : > { %482 = vst.msk [vmem:[%s217_s9] sm:$0xff] %vm481_vm1, %v477_v22  ;;  %v460_v28 = vadd.f32 %v633_v7, %v375_v23  ;;  %v611_v29 = vadd.f32 %v610_v27, %v609_v24 }
 0x113   : > { %v478_v30 = vadd.f32 %v474_v26, %v460_v28  ;;  %v612_v31 = vpop.f32.mrb[6].mxu0  ;;  %v380_v32 = vadd.f32 %v611_v29, %v283_v25 }
 0x114   : > { %v613_v33 = vpop.f32.mrb[7].mxu0 }
 0x115   : > { %483 = vst.msk [vmem:[%s217_s9 + $0x8] sm:$0xff] %vm481_vm1, %v478_v30  ;;  %v614_v35 = vadd.f32 %v613_v33, %v612_v31  ;;  %v465_v36 = vadd.f32 %v464_v10, %v380_v32 }
 0x117   : > { %v385_v38 = vadd.f32 %v614_v35, %v288_v37  ;;  %v479_v39 = vadd.f32 %v475_v34, %v465_v36 }
 0x119   : > { %v470_v41 = vadd.f32 %v636_v9, %v385_v38  ;;  %484 = vst.msk [vmem:[%s217_s9 + $0x10] sm:$0xff] %vm481_vm1, %v479_v39 }
 0x11b   : > { %v480_v42 = vadd.f32 %v476_v40, %v470_v41 }
 0x11d   : > { %485 = vst.msk [vmem:[%s217_s9 + $0x18] sm:$0xff] %vm481_vm1, %v480_v42 }
 0x11e PF: > { %s14_s15 = sadd.s32 1, %s695_s15  }
 0x11f   : > { %p11_p4 = scmp.ge.s32.totalorder %s14_s15, 4  }
 0x121   :  { %13 = sbr.rel (!%p11_p4) target bundleno = 1 (0x1), region = 69 }

// kernel: vnet_forward.60
= control target key start
LH: loop header
LB: loop body
LE: loop exit
PB: predicated region body
PF: predicated region fallthrough
CT: control target
= control target key end

     0   :  { %s840_s18 = smov 0   ;;  %s1011_s0 = inlined_call_operand.vmem [shape: f32[2,288,16], index: 0, kind: input, shape index: {}]   ;;  %s1012_s1 = inlined_call_operand.vmem [shape: f32[32,288], index: 1, kind: input, shape index: {}]   ;;  %s1013_s2 = inlined_call_operand.vmem [shape: f32[32,1], index: 2, kind: input, shape index: {}]   ;;  %s1014_s3 = inlined_call_operand.vmem [shape: f32[32,1], index: 3, kind: input, shape index: {}]   ;;  %s1015_s4 = inlined_call_operand.vmem [shape: f32[32,1], index: 4, kind: input, shape index: {}]   ;;  %s1016_s5 = inlined_call_operand.vmem [shape: f32[2,32,16], index: 5, kind: output, shape index: {}]  }
   0x1 LB: > { %s662_s19 = sadd.s32 4294967295, %s807_s18   ;;  %p666_p0 = scmp.ge.s32.totalorder %s807_s18, 1  ;;  %s807_s18 = sphi %s840_s18, %s15_s18  }
   0x2   : > { %p187_p1 = scmp.lt.s32.totalorder %s807_s18, 3 }
   0x4   : > { %p188_p2 = pnand %p666_p0, %p187_p1 }
   0x5   : > { %p215_p3 = scmp.lt.s32.totalorder (!%p188_p2), %s662_s19, 1  ;;  %v226_v0 = vld [vmem:[%s1012_s1 + $0x8] sm:$0xff] (!%p188_p2)  ;;  %vm297_vm0 = vcmask (!%p188_p2), 261120   ;;  %v227_v1 = vld [vmem:[%s1012_s1 + $0x10] sm:$0xff] (!%p188_p2)  ;;  %v809_v2 = vmov (!%p188_p2), 0   ;;  %v273_v3 = vld [vmem:[%s1013_s2] sm:$0xff] (!%p188_p2) }
   0x6   : > { %191 = sbr.rel (%p188_p2) target bundleno = 524 (0x20c), region = 40  ;;  %374 = vmatprep.mubr.f32.mxu0 (!%p188_p2), %v226_v0  ;;  %797 = vset.pattern.permute.xlu0 (!%p188_p2), %v809_v2  ;;  %v275_v4 = vld [vmem:[%s1013_s2 + $0x10] sm:$0xff] (!%p188_p2)  ;;  %v274_v5 = vld [vmem:[%s1013_s2 + $0x8] sm:$0xff] (!%p188_p2)  ;;  %v276_v6 = vld [vmem:[%s1013_s2 + $0x18] sm:$0xff] (!%p188_p2)  ;;  %vm480_vm1 = vcmask (!%p188_p2), 130048  }
   0x7   : > { %737 = vmatprep.mubr.msk.f32.mxu1 (!%p188_p2), %vm297_vm0, %v227_v1  ;;  %798 = vset.pattern.permute.xlu1 (!%p188_p2), %v809_v2  ;;  %v230_v50 = vld [vmem:[%s1012_s1 + $0x28] sm:$0xff] (!%p188_p2)  ;;  %v233_v51 = vld [vmem:[%s1012_s1 + $0x40] sm:$0xff] (!%p188_p2)  ;;  %v236_v58 = vld [vmem:[%s1012_s1 + $0x58] sm:$0xff] (!%p188_p2) }
   0x8   : > { %279 = vperm.xlu0 (!%p188_p2), %797, %v273_v3   ;;  %289 = vperm.xlu1 (!%p188_p2), %798, %v275_v4   ;;  %v225_v0 = vld [vmem:[%s1012_s1] sm:$0xff] (!%p188_p2)  ;;  %v228_v2 = vld [vmem:[%s1012_s1 + $0x18] sm:$0xff] (!%p188_p2)  ;;  %v231_v4 = vld [vmem:[%s1012_s1 + $0x30] sm:$0xff] (!%p188_p2) }
   0x9   : > { %v229_v1 = vld [vmem:[%s1012_s1 + $0x20] sm:$0xff] (!%p188_p2)  ;;  %v232_v3 = vld [vmem:[%s1012_s1 + $0x38] sm:$0xff] (!%p188_p2) }
   0xc   : > { %284 = vperm.xlu0 (!%p188_p2), %797, %v274_v5   ;;  %294 = vperm.xlu1 (!%p188_p2), %798, %v276_v6   ;;  %v235_v5 = vld [vmem:[%s1012_s1 + $0x50] sm:$0xff] (!%p188_p2)  ;;  %v234_v6 = vld [vmem:[%s1012_s1 + $0x48] sm:$0xff] (!%p188_p2) }
   0xd   : > { %s1018_s19 = smov (!%p215_p3, %s662_s19), 1 }
   0xe   : > { %s783_s24 = smul.u32 288, %s1018_s19  ;;  %s676_s28 = sshll.u32 %s1018_s19, 5 }
  0x10   : > { %s867_s6 = scalar_lea.vmem %s1011_s0, %s783_s24 }
  0x11   : > { %v253_v7 = vld [vmem:[%s867_s6 + $0x80] sm:$0xff]  ;;  %v254_v8 = vld [vmem:[%s867_s6 + $0x88] sm:$0xff]  ;;  %v255_v12 = vld [vmem:[%s867_s6 + $0x90] sm:$0xff] }
  0x12   : > { %v237_v9 = vld [vmem:[%s867_s6] sm:$0xff]  ;;  %v743_v10 = vpack.c.bf16 %v254_v8, %v253_v7  ;;  %v238_v11 = vld [vmem:[%s867_s6 + $0x8] sm:$0xff]  ;;  %v256_v13 = vld [vmem:[%s867_s6 + $0x98] sm:$0xff] }
  0x13   : > { %v745_v14 = vpack.c.bf16 %v238_v11, %v237_v9  ;;  %v747_v15 = vpack.c.bf16 %v256_v13, %v255_v12  ;;  %v239_v16 = vld [vmem:[%s867_s6 + $0x10] sm:$0xff]  ;;  %v240_v17 = vld [vmem:[%s867_s6 + $0x18] sm:$0xff]  ;;  %v257_v18 = vld [vmem:[%s867_s6 + $0xa0] sm:$0xff] }
  0x14   : > { %744 = vmatprep.subr.bf16.mxu0 %v743_v10  ;;  %v258_v19 = vld [vmem:[%s867_s6 + $0xa8] sm:$0xff]  ;;  %v749_v20 = vpack.c.bf16 %v240_v17, %v239_v16  ;;  %v241_v22 = vld [vmem:[%s867_s6 + $0x20] sm:$0xff]  ;;  %v259_v24 = vld [vmem:[%s867_s6 + $0xb0] sm:$0xff] }
  0x15   : > { %746 = vmatpush3.bf16.msra.mxu0 %v745_v14  ;;  %v751_v21 = vpack.c.bf16 %v258_v19, %v257_v18  ;;  %v242_v23 = vld [vmem:[%s867_s6 + $0x28] sm:$0xff]  ;;  %v260_v25 = vld [vmem:[%s867_s6 + $0xb8] sm:$0xff]  ;;  %v243_v28 = vld [vmem:[%s867_s6 + $0x30] sm:$0xff] }
  0x16   : > { %748 = vmatprep.subr.bf16.mxu0 %v747_v15  ;;  %v753_v26 = vpack.c.bf16 %v242_v23, %v241_v22  ;;  %v755_v27 = vpack.c.bf16 %v260_v25, %v259_v24  ;;  %v244_v29 = vld [vmem:[%s867_s6 + $0x38] sm:$0xff]  ;;  %v261_v30 = vld [vmem:[%s867_s6 + $0xc0] sm:$0xff]  ;;  %v262_v31 = vld [vmem:[%s867_s6 + $0xc8] sm:$0xff] }
  0x17   : > { %v269_v32 = vld [vmem:[%s867_s6 + $0x100] sm:$0xff]  ;;  %v270_v33 = vld [vmem:[%s867_s6 + $0x108] sm:$0xff]  ;;  %v271_v35 = vld [vmem:[%s867_s6 + $0x110] sm:$0xff]  ;;  %v757_v37 = vpack.c.bf16 %v244_v29, %v243_v28  ;;  %v759_v39 = vpack.c.bf16 %v262_v31, %v261_v30 }
  0x18   : > { %v775_v34 = vpack.c.bf16 %v270_v33, %v269_v32  ;;  %v272_v36 = vld [vmem:[%s867_s6 + $0x118] sm:$0xff]  ;;  %v245_v40 = vld [vmem:[%s867_s6 + $0x40] sm:$0xff]  ;;  %v246_v41 = vld [vmem:[%s867_s6 + $0x48] sm:$0xff] }
  0x19   : > { %750 = vmatpush3.bf16.msra.mxu0 %v749_v20  ;;  %v779_v38 = vpack.c.bf16 %v272_v36, %v271_v35  ;;  %v263_v42 = vld [vmem:[%s867_s6 + $0xd0] sm:$0xff]  ;;  %v264_v43 = vld [vmem:[%s867_s6 + $0xd8] sm:$0xff]  ;;  %v761_v44 = vpack.c.bf16 %v246_v41, %v245_v40  ;;  %v265_v48 = vld [vmem:[%s867_s6 + $0xe0] sm:$0xff] }
  0x1a   : > { %752 = vmatprep.subr.bf16.mxu0 %v751_v21  ;;  %776 = vmatprep.subr.bf16.mxu1 %v775_v34  ;;  %v763_v45 = vpack.c.bf16 %v264_v43, %v263_v42  ;;  %v247_v46 = vld [vmem:[%s867_s6 + $0x50] sm:$0xff]  ;;  %v248_v47 = vld [vmem:[%s867_s6 + $0x58] sm:$0xff]  ;;  %v266_v49 = vld [vmem:[%s867_s6 + $0xe8] sm:$0xff] }
  0x1b   : > { %778 = vmatpush3.bf16.msra.mxu1 %v775_v34  ;;  %v765_v52 = vpack.c.bf16 %v248_v47, %v247_v46  ;;  %v767_v53 = vpack.c.bf16 %v266_v49, %v265_v48  ;;  %v249_v54 = vld [vmem:[%s867_s6 + $0x60] sm:$0xff]  ;;  %v250_v55 = vld [vmem:[%s867_s6 + $0x68] sm:$0xff]  ;;  %v267_v56 = vld [vmem:[%s867_s6 + $0xf0] sm:$0xff] }
  0x1c   : > { %780 = vmatprep.subr.bf16.mxu1 %v779_v38  ;;  %v268_v57 = vld [vmem:[%s867_s6 + $0xf8] sm:$0xff]  ;;  %v769_v59 = vpack.c.bf16 %v250_v55, %v249_v54  ;;  %v251_v61 = vld [vmem:[%s867_s6 + $0x70] sm:$0xff]  ;;  %v535_v54 = vld [vmem:[%s1014_s3] sm:$0xff] }
  0x1d   : > { %754 = vmatpush3.bf16.msra.mxu0 %v753_v26  ;;  %v771_v60 = vpack.c.bf16 %v268_v57, %v267_v56  ;;  %v252_v62 = vld [vmem:[%s867_s6 + $0x78] sm:$0xff]  ;;  %v537_v56 = vld [vmem:[%s1014_s3 + $0x10] sm:$0xff]  ;;  %v564_v57 = vld [vmem:[%s1015_s4 + $0x8] sm:$0xff]  ;;  %s224_s6 = scalar_lea.vmem %s1016_s5, %s676_s28 }
  0x1e   : > { %756 = vmatprep.subr.bf16.mxu0 %v755_v27  ;;  %v773_v63 = vpack.c.bf16 %v252_v62, %v251_v61  ;;  %v538_v55 = vld [vmem:[%s1014_s3 + $0x18] sm:$0xff] }
  0x1f   : > { %782 = vmatpush3.bf16.msra.mxu1 %v779_v38 }
  0x21   : > { %758 = vmatpush3.bf16.msra.mxu0 %v757_v37 }
  0x22   : > { %760 = vmatprep.subr.bf16.mxu0 %v759_v39  ;;  %738 = vmatmul.mubr.msk.f32.vlgmr.msra.gmra.mrb[0].mxu1 %vm297_vm0, %v230_v50 }
  0x23   : > { %740 = vmatprep.mubr.msk.f32.mxu1 %vm297_vm0, %v233_v51 }
  0x25   : > { %762 = vmatpush3.bf16.msra.mxu0 %v761_v44 }
  0x26   : > { %764 = vmatprep.subr.bf16.mxu0 %v763_v45  ;;  %741 = vmatmul.mubr.msk.f32.gmra.mrb[2].mxu1 %vm297_vm0, %v236_v58  ;;  %v563_v58 = vld [vmem:[%s1015_s4] sm:$0xff] }
  0x29   : > { %766 = vmatpush3.bf16.msra.mxu0 %v765_v52 }
  0x2a   : > { %768 = vmatprep.subr.bf16.mxu0 %v767_v53  ;;  %v536_v53 = vld [vmem:[%s1014_s3 + $0x8] sm:$0xff] }
  0x2d   : > { %770 = vmatpush3.bf16.msra.mxu0 %v769_v59  ;;  %v566_v59 = vld [vmem:[%s1015_s4 + $0x18] sm:$0xff] }
  0x2e   : > { %772 = vmatprep.subr.bf16.mxu0 %v771_v60  ;;  %v565_v60 = vld [vmem:[%s1015_s4 + $0x10] sm:$0xff] }
  0x31   : > { %774 = vmatpush3.bf16.msra.mxu0 %v773_v63 }
  0x34   : > { %375 = vmatmul.mubr.f32.vlgmr.msra.gmra.mrb[0].mxu0 %v225_v0 }
  0x35   : > { %379 = vmatprep.mubr.f32.mxu0 %v229_v1 }
  0x38   : > { %380 = vmatmul.mubr.f32.gmra.mrb[2].mxu0 %v228_v2 }
  0x39   : > { %384 = vmatprep.mubr.f32.mxu0 %v232_v3 }
  0x3c   : > { %385 = vmatmul.mubr.f32.gmra.mrb[4].mxu0 %v231_v4 }
  0x3d   : > { %389 = vmatprep.mubr.f32.mxu0 %v235_v5 }
  0x40   : > { %390 = vmatmul.mubr.f32.gmra.mrb[6].mxu0 %v234_v6 }
  0x87   : > { %v280_v11 = vpop.permute.xlu0 %279  ;;  %v290_v23 = vpop.permute.xlu1 %289 }
  0x8b   : > { %v285_v18 = vpop.permute.xlu0 %284  ;;  %v295_v36 = vpop.permute.xlu1 %294 }
  0xf5   : > { %v739_v7 = vpop.f32.mrb[0].mxu1 }
  0xf6   : > { %v461_v8 = vpop.f32.mrb[1].mxu1 }
  0xf9   : > { %v742_v9 = vpop.f32.mrb[2].mxu1 }
  0xfa   : > { %v471_v10 = vpop.f32.mrb[3].mxu1 }
 0x107   : > { %v709_v12 = vpop.f32.mrb[0].mxu0 }
 0x108   : > { %v710_v13 = vpop.f32.mrb[1].mxu0 }
 0x109   : > { %v711_v14 = vadd.f32 %v710_v13, %v709_v12 }
 0x10b   : > { %v377_v15 = vadd.f32 %v711_v14, %v280_v11  ;;  %v712_v16 = vpop.f32.mrb[2].mxu0 }
 0x10c   : > { %v713_v17 = vpop.f32.mrb[3].mxu0 }
 0x10d   : > { %v714_v19 = vadd.f32 %v713_v17, %v712_v16  ;;  %v944_v20 = vadd.f32 %v461_v8, %v377_v15 }
 0x10f   : > { %v382_v21 = vadd.f32 %v714_v19, %v285_v18  ;;  %v715_v22 = vpop.f32.mrb[4].mxu0  ;;  %v500_v31 = vmul.f32 %v944_v20, %v944_v20  ;;  %v481_v35 = vsel %vm480_vm1, %v944_v20, 0.0 }
 0x110   : > { %v716_v24 = vpop.f32.mrb[5].mxu0 }
 0x111   : > { %v946_v25 = vadd.f32 %v739_v7, %v382_v21  ;;  %v717_v26 = vadd.f32 %v716_v24, %v715_v22  ;;  %v504_v43 = vsel %vm480_vm1, %v500_v31, 0.0 }
 0x113   : > { %v501_v27 = vmul.f32 %v946_v25, %v946_v25  ;;  %v718_v28 = vpop.f32.mrb[6].mxu0  ;;  %v387_v29 = vadd.f32 %v717_v26, %v290_v23  ;;  %v482_v34 = vsel %vm480_vm1, %v946_v25, 0.0 }
 0x114   : > { %v719_v30 = vpop.f32.mrb[7].mxu0  ;;  %v483_v41 = vadd.f32 %v482_v34, %v481_v35 }
 0x115   : > { %v720_v32 = vadd.f32 %v719_v30, %v718_v28  ;;  %v952_v33 = vadd.f32 %v471_v10, %v387_v29  ;;  %v505_v40 = vsel %vm480_vm1, %v501_v27, 0.0 }
 0x116   : > { %v506_v46 = vadd.f32 %v505_v40, %v504_v43 }
 0x117   : > { %v392_v37 = vadd.f32 %v720_v32, %v295_v36  ;;  %v502_v38 = vmul.f32 %v952_v33, %v952_v33  ;;  %v484_v39 = vsel %vm480_vm1, %v952_v33, 0.0 }
 0x118   : > { %v485_v45 = vadd.f32 %v484_v39, %v483_v41 }
 0x119   : > { %v963_v42 = vadd.f32 %v742_v9, %v392_v37  ;;  %v507_v44 = vsel %vm480_vm1, %v502_v38, 0.0 }
 0x11a   : > { %v508_v50 = vadd.f32 %v507_v44, %v506_v46 }
 0x11b   : > { %v486_v47 = vsel %vm480_vm1, %v963_v42, 0.0  ;;  %v503_v48 = vmul.f32 %v963_v42, %v963_v42 }
 0x11c   : > { %v487_v49 = vadd.f32 %v486_v47, %v485_v45 }
 0x11d   : > { %v509_v51 = vsel %vm480_vm1, %v503_v48, 0.0 }
 0x11e   : > { %488 = vadd.xlane.f32.xlu0 %v487_v49  ;;  %v510_v52 = vadd.f32 %v509_v51, %v508_v50 }
 0x120   : > { %511 = vadd.xlane.f32.xlu1 %v510_v52 }
 0x131   : > { %546 = vperm.xlu1 %798, %v536_v53  }
 0x134   : > { %541 = vperm.xlu0 %797, %v535_v54  }
 0x135   : > { %556 = vperm.xlu1 %798, %v538_v55  }
 0x138   : > { %551 = vperm.xlu0 %797, %v537_v56  }
 0x139   : > { %574 = vperm.xlu1 %798, %v564_v57  }
 0x13c   : > { %569 = vperm.xlu0 %797, %v563_v58  }
 0x13d   : > { %584 = vperm.xlu1 %798, %v566_v59  }
 0x140   : > { %579 = vperm.xlu0 %797, %v565_v60  }
 0x1ab   : > { %v489_v61 = vpop.xlane.xlu0 %488 }
 0x1ac   : > { %v490_v62 = vrot.slane %v489_v61, 4 }
 0x1ad   : > { %v512_v63 = vpop.xlane.xlu1 %511 }
 0x1ae   : > { %v491_v0 = vadd.f32 %v490_v62, %v489_v61  ;;  %v513_v1 = vrot.slane %v512_v63, 4 }
 0x1b0   : > { %v492_v2 = vrot.slane %v491_v0, 2  ;;  %v514_v3 = vadd.f32 %v513_v1, %v512_v63 }
 0x1b1   : > { %v547_v17 = vpop.permute.xlu1 %546 }
 0x1b2   : > { %v515_v4 = vrot.slane %v514_v3, 2  ;;  %v493_v5 = vadd.f32 %v492_v2, %v491_v0 }
 0x1b3   : > { %v542_v18 = vpop.permute.xlu0 %541 }
 0x1b4   : > { %v494_v6 = vrot.slane %v493_v5, 1  ;;  %v516_v7 = vadd.f32 %v515_v4, %v514_v3 }
 0x1b5   : > { %v557_v22 = vpop.permute.xlu1 %556 }
 0x1b6   : > { %v495_v8 = vadd.f32 %v494_v6, %v493_v5  ;;  %v517_v9 = vrot.slane %v516_v7, 1 }
 0x1b7   : > { %v552_v23 = vpop.permute.xlu0 %551 }
 0x1b8   : > { %784 = vpush %v495_v8  ;;  %v518_v10 = vadd.f32 %v517_v9, %v516_v7 }
 0x1b9   : > { %v575_v24 = vpop.permute.xlu1 %574 }
 0x1ba   : > { %786 = vpush %v518_v10 }
 0x1bb   : > { %v570_v26 = vpop.permute.xlu0 %569 }
 0x1bd   : > { %v585_v41 = vpop.permute.xlu1 %584 }
 0x1bf   : > { %v580_v43 = vpop.permute.xlu0 %579 }
 0x1e9   : > { %s785_s26 = spop %784 }
 0x1ea   : > { %v497_v11 = vstv %s785_s26 }
 0x1eb   : > { %v499_v12 = vmul.f32 0.001953125, %v497_v11  ;;  %s787_s27 = spop %786 }
 0x1ec   : > { %v520_v13 = vstv %s787_s27 }
 0x1ed   : > { %v521_v14 = vmul.f32 0.001953125, %v520_v13  ;;  %v522_v15 = vmul.f32 %v499_v12, %v499_v12  ;;  %v525_v27 = vsub.f32 %v944_v20, %v499_v12  ;;  %v526_v28 = vsub.f32 %v946_v25, %v499_v12 }
 0x1ee   : > { %v527_v29 = vsub.f32 %v952_v33, %v499_v12  ;;  %v528_v30 = vsub.f32 %v963_v42, %v499_v12 }
 0x1ef   : > { %v523_v16 = vsub.f32 %v521_v14, %v522_v15 }
 0x1f1   : > { %v524_v19 = vmax.f32 %v523_v16, 0.0 }
 0x1f3   : > { %v529_v21 = vadd.f32 1e-05, %v524_v19 }
 0x1f5   : > { %799 = vrsqrt.f32 %v529_v21 }
 0x1ff   : > { %v800_v31 = vpop.eup %799 }
 0x200   : > { %v531_v32 = vmul.f32 %v800_v31, %v525_v27  ;;  %v532_v34 = vmul.f32 %v800_v31, %v526_v28  ;;  %v533_v35 = vmul.f32 %v800_v31, %v527_v29  ;;  %v534_v36 = vmul.f32 %v800_v31, %v528_v30 }
 0x202   : > { %v559_v37 = vmul.f32 %v542_v18, %v531_v32  ;;  %v560_v38 = vmul.f32 %v547_v17, %v532_v34  ;;  %v561_v39 = vmul.f32 %v552_v23, %v533_v35  ;;  %v562_v40 = vmul.f32 %v557_v22, %v534_v36 }
 0x204   : > { %v587_v44 = vadd.f32 %v570_v26, %v559_v37  ;;  %v588_v20 = vadd.f32 %v575_v24, %v560_v38  ;;  %v589_v45 = vadd.f32 %v580_v43, %v561_v39  ;;  %v590_v25 = vadd.f32 %v585_v41, %v562_v40 }
 0x206   : > { %vm591_vm2 = vcmp.ge.f32.partialorder %v587_v44, 0.0  ;;  %vm592_vm3 = vcmp.ge.f32.partialorder %v588_v20, 0.0  ;;  %vm593_vm4 = vcmp.ge.f32.partialorder %v589_v45, 0.0  ;;  %vm594_vm5 = vcmp.ge.f32.partialorder %v590_v25, 0.0 }
 0x207   : > { %v595_v33 = vmul.f32 0.2, %v587_v44  ;;  %v596_v42 = vmul.f32 0.2, %v588_v20  ;;  %v597_v46 = vmul.f32 0.2, %v589_v45 }
 0x208   : > { %v598_v47 = vmul.f32 0.2, %v590_v25 }
 0x209   : > { %v599_v48 = vsel %vm591_vm2, %v587_v44, %v595_v33  ;;  %v600_v49 = vsel %vm592_vm3, %v588_v20, %v596_v42  ;;  %v601_v50 = vsel %vm593_vm4, %v589_v45, %v597_v46 }
 0x20a   : > { %v602_v51 = vsel %vm594_vm5, %v590_v25, %v598_v47  ;;  %603 = vst.msk [vmem:[%s224_s6] sm:$0xff] %vm480_vm1, %v599_v48  ;;  %604 = vst.msk [vmem:[%s224_s6 + $0x8] sm:$0xff] %vm480_vm1, %v600_v49 }
 0x20b   : > { %605 = vst.msk [vmem:[%s224_s6 + $0x10] sm:$0xff] %vm480_vm1, %v601_v50  ;;  %606 = vst.msk [vmem:[%s224_s6 + $0x18] sm:$0xff] %vm480_vm1, %v602_v51 }
 0x20c PF: > { %s15_s18 = sadd.s32 1, %s807_s18  }
 0x20d   : > { %p12_p4 = scmp.ge.s32.totalorder %s15_s18, 4  }
 0x20f   :  { %14 = sbr.rel (!%p12_p4) target bundleno = 1 (0x1), region = 70 }

// kernel: vnet_forward.66
= control target key start
LH: loop header
LB: loop body
LE: loop exit
PB: predicated region body
PF: predicated region fallthrough
CT: control target
= control target key end

     0   :  { %s520_s12 = smov 0   ;;  %s675_s0 = inlined_call_operand.vmem [shape: f32[2,64,4], index: 0, kind: input, shape index: {}]   ;;  %s676_s1 = inlined_call_operand.vmem [shape: f32[64,1], index: 1, kind: input, shape index: {}]   ;;  %s677_s2 = inlined_call_operand.vmem [shape: f32[64,1], index: 2, kind: input, shape index: {}]   ;;  %s678_s3 = inlined_call_operand.vmem [shape: f32[2,64,4], index: 3, kind: output, shape index: {}]  }
   0x1 LB: > { %s461_s13 = sadd.s32 4294967295, %s497_s12   ;;  %p465_p0 = scmp.ge.s32.totalorder %s497_s12, 1  ;;  %s497_s12 = sphi %s520_s12, %s13_s12  }
   0x2   : > { %p137_p1 = scmp.lt.s32.totalorder %s497_s12, 3 }
   0x4   : > { %p138_p2 = pnand %p465_p0, %p137_p1 }
   0x5   : > { %v262_v0 = vld [vmem:[%s676_s1] sm:$0xff] (!%p138_p2)  ;;  %p161_p3 = scmp.lt.s32.totalorder (!%p138_p2), %s461_s13, 1  ;;  %v499_v1 = vmov (!%p138_p2), 0   ;;  %v263_v2 = vld [vmem:[%s676_s1 + $0x8] sm:$0xff] (!%p138_p2)  ;;  %vm179_vm0 = vcmask (!%p138_p2), 31744   ;;  %v265_v11 = vld [vmem:[%s676_s1 + $0x18] sm:$0xff] (!%p138_p2) }
   0x6   : > { %141 = sbr.rel (%p138_p2) target bundleno = 275 (0x113), region = 32  ;;  %487 = vset.pattern.permute.xlu1 (!%p138_p2), %v499_v1  ;;  %488 = vset.pattern.permute.xlu0 (!%p138_p2), %v499_v1  ;;  %v266_v24 = vld [vmem:[%s676_s1 + $0x20] sm:$0xff] (!%p138_p2)  ;;  %v267_v38 = vld [vmem:[%s676_s1 + $0x28] sm:$0xff] (!%p138_p2)  ;;  %v268_v47 = vld [vmem:[%s676_s1 + $0x30] sm:$0xff] (!%p138_p2) }
   0x7   : > { %272 = vperm.xlu1 (!%p138_p2), %487, %v262_v0   ;;  %v269_v52 = vld [vmem:[%s676_s1 + $0x38] sm:$0xff] (!%p138_p2)  ;;  %v318_v54 = vld [vmem:[%s677_s2] sm:$0xff] (!%p138_p2)  ;;  %v319_v55 = vld [vmem:[%s677_s2 + $0x8] sm:$0xff] (!%p138_p2) }
   0x8   : > { %v320_v56 = vld [vmem:[%s677_s2 + $0x10] sm:$0xff] (!%p138_p2)  ;;  %v321_v57 = vld [vmem:[%s677_s2 + $0x18] sm:$0xff] (!%p138_p2)  ;;  %v322_v58 = vld [vmem:[%s677_s2 + $0x20] sm:$0xff] (!%p138_p2) }
   0x9   : > { %v264_v59 = vld [vmem:[%s676_s1 + $0x10] sm:$0xff] (!%p138_p2)  ;;  %v323_v60 = vld [vmem:[%s677_s2 + $0x28] sm:$0xff] (!%p138_p2)  ;;  %v325_v62 = vld [vmem:[%s677_s2 + $0x38] sm:$0xff] (!%p138_p2) }
   0xa   : > { %v324_v61 = vld [vmem:[%s677_s2 + $0x30] sm:$0xff] (!%p138_p2) }
   0xb   : > { %277 = vperm.xlu1 (!%p138_p2), %487, %v263_v2  }
   0xd   : > { %s680_s13 = smov (!%p161_p3, %s461_s13), 1 }
   0xe   : > { %s472_s18 = sshll.u32 %s680_s13, 6 }
   0xf   : > { %s542_s21 = scalar_lea.vmem %s675_s0, %s472_s18  ;;  %287 = vperm.xlu1 %487, %v265_v11   ;;  %s170_s30 = scalar_lea.vmem %s678_s3, %s472_s18 }
  0x10   : > { %v545_v3 = vld [vmem:[%s542_s21] sm:$0xff]  ;;  %v548_v4 = vld [vmem:[%s542_s21 + $0x8] sm:$0xff]  ;;  %v551_v5 = vld [vmem:[%s542_s21 + $0x10] sm:$0xff] }
  0x11   : > { %v554_v6 = vld [vmem:[%s542_s21 + $0x18] sm:$0xff]  ;;  %v180_v7 = vsel %vm179_vm0, %v545_v3, 0.0  ;;  %v181_v8 = vsel %vm179_vm0, %v548_v4, 0.0  ;;  %v183_v9 = vsel %vm179_vm0, %v551_v5, 0.0  ;;  %v207_v10 = vmul.f32 %v545_v3, %v545_v3  ;;  %v568_v12 = vld [vmem:[%s542_s21 + $0x20] sm:$0xff]  ;;  %v577_v17 = vld [vmem:[%s542_s21 + $0x28] sm:$0xff] }
  0x12   : > { %v182_v13 = vadd.f32 %v181_v8, %v180_v7  ;;  %v185_v14 = vsel %vm179_vm0, %v554_v6, 0.0  ;;  %v208_v15 = vmul.f32 %v548_v4, %v548_v4  ;;  %v209_v16 = vmul.f32 %v551_v5, %v551_v5  ;;  %v591_v25 = vld [vmem:[%s542_s21 + $0x30] sm:$0xff]  ;;  %v600_v32 = vld [vmem:[%s542_s21 + $0x38] sm:$0xff] }
  0x13   : > { %v210_v19 = vmul.f32 %v554_v6, %v554_v6  ;;  %v187_v20 = vsel %vm179_vm0, %v568_v12, 0.0  ;;  %v211_v21 = vmul.f32 %v568_v12, %v568_v12  ;;  %v215_v22 = vsel %vm179_vm0, %v207_v10, 0.0  ;;  %292 = vperm.xlu1 %487, %v266_v24  }
  0x14   : > { %v184_v18 = vadd.f32 %v183_v9, %v182_v13  ;;  %v216_v23 = vsel %vm179_vm0, %v208_v15, 0.0  ;;  %v218_v28 = vsel %vm179_vm0, %v209_v16, 0.0  ;;  %v189_v29 = vsel %vm179_vm0, %v577_v17, 0.0 }
  0x15   : > { %v217_v27 = vadd.f32 %v216_v23, %v215_v22  ;;  %v212_v30 = vmul.f32 %v577_v17, %v577_v17  ;;  %v220_v31 = vsel %vm179_vm0, %v210_v19, 0.0  ;;  %v191_v35 = vsel %vm179_vm0, %v591_v25, 0.0 }
  0x16   : > { %v186_v26 = vadd.f32 %v185_v14, %v184_v18  ;;  %v213_v36 = vmul.f32 %v591_v25, %v591_v25  ;;  %v222_v37 = vsel %vm179_vm0, %v211_v21, 0.0  ;;  %v193_v41 = vsel %vm179_vm0, %v600_v32, 0.0 }
  0x17   : > { %v219_v34 = vadd.f32 %v218_v28, %v217_v27  ;;  %v214_v42 = vmul.f32 %v600_v32, %v600_v32  ;;  %v224_v43 = vsel %vm179_vm0, %v212_v30, 0.0  ;;  %297 = vperm.xlu1 %487, %v267_v38  }
  0x18   : > { %v188_v33 = vadd.f32 %v187_v20, %v186_v26  ;;  %v226_v46 = vsel %vm179_vm0, %v213_v36, 0.0 }
  0x19   : > { %v221_v40 = vadd.f32 %v220_v31, %v219_v34  ;;  %v228_v50 = vsel %vm179_vm0, %v214_v42, 0.0 }
  0x1a   : > { %v190_v39 = vadd.f32 %v189_v29, %v188_v33 }
  0x1b   : > { %v223_v45 = vadd.f32 %v222_v37, %v221_v40  ;;  %302 = vperm.xlu1 %487, %v268_v47  }
  0x1c   : > { %v192_v44 = vadd.f32 %v191_v35, %v190_v39 }
  0x1d   : > { %v225_v49 = vadd.f32 %v224_v43, %v223_v45 }
  0x1e   : > { %v194_v48 = vadd.f32 %v193_v41, %v192_v44 }
  0x1f   : > { %v227_v51 = vadd.f32 %v226_v46, %v225_v49  ;;  %307 = vperm.xlu1 %487, %v269_v52  }
  0x20   : > { %195 = vadd.xlane.f32.xlu0 %v194_v48 }
  0x21   : > { %v229_v53 = vadd.f32 %v228_v50, %v227_v51 }
  0x23   : > { %328 = vperm.xlu1 %487, %v318_v54  }
  0x24   : > { %230 = vadd.xlane.f32.xlu0 %v229_v53 }
  0x27   : > { %333 = vperm.xlu1 %487, %v319_v55  }
  0x2b   : > { %338 = vperm.xlu1 %487, %v320_v56  }
  0x2f   : > { %343 = vperm.xlu1 %487, %v321_v57  }
  0x33   : > { %348 = vperm.xlu1 %487, %v322_v58  }
  0x37   : > { %353 = vperm.xlu1 %487, %v323_v60  }
  0x3a   : > { %282 = vperm.xlu0 %488, %v264_v59  }
  0x3b   : > { %363 = vperm.xlu1 %487, %v325_v62  }
  0x3e   : > { %358 = vperm.xlu0 %488, %v324_v61  }
  0x86   : > { %v273_v16 = vpop.permute.xlu1 %272 }
  0x8a   : > { %v278_v20 = vpop.permute.xlu1 %277 }
  0x8e   : > { %v288_v21 = vpop.permute.xlu1 %287 }
  0x92   : > { %v293_v22 = vpop.permute.xlu1 %292 }
  0x96   : > { %v298_v23 = vpop.permute.xlu1 %297 }
  0x9a   : > { %v303_v24 = vpop.permute.xlu1 %302 }
  0x9e   : > { %v308_v26 = vpop.permute.xlu1 %307 }
  0xa2   : > { %v329_v27 = vpop.permute.xlu1 %328 }
  0xa6   : > { %v334_v28 = vpop.permute.xlu1 %333 }
  0xaa   : > { %v339_v31 = vpop.permute.xlu1 %338 }
  0xad   : > { %v196_v63 = vpop.xlane.xlu0 %195 }
  0xae   : > { %v197_v0 = vrot.slane %v196_v63, 4  ;;  %v344_v38 = vpop.permute.xlu1 %343 }
  0xb0   : > { %v198_v1 = vadd.f32 %v197_v0, %v196_v63 }
  0xb1   : > { %v231_v2 = vpop.xlane.xlu0 %230 }
  0xb2   : > { %v199_v7 = vrot.slane %v198_v1, 2  ;;  %v232_v8 = vrot.slane %v231_v2, 4  ;;  %v349_v40 = vpop.permute.xlu1 %348 }
  0xb4   : > { %v233_v9 = vadd.f32 %v232_v8, %v231_v2  ;;  %v200_v10 = vadd.f32 %v199_v7, %v198_v1 }
  0xb6   : > { %v234_v11 = vrot.slane %v233_v9, 2  ;;  %v201_v13 = vrot.slane %v200_v10, 1  ;;  %v354_v41 = vpop.permute.xlu1 %353 }
  0xb8   : > { %v202_v14 = vadd.f32 %v201_v13, %v200_v10  ;;  %v235_v15 = vadd.f32 %v234_v11, %v233_v9 }
  0xb9   : > { %v283_v46 = vpop.permute.xlu0 %282 }
  0xba   : > { %474 = vpush %v202_v14  ;;  %v236_v18 = vrot.slane %v235_v15, 1 }
  0xbc   : > { %v237_v19 = vadd.f32 %v236_v18, %v235_v15 }
  0xbd   : > { %v359_v1 = vpop.permute.xlu0 %358 }
  0xbe   : > { %476 = vpush %v237_v19 }
  0xeb   : > { %s475_s26 = spop %474 }
  0xec   : > { %v204_v29 = vstv %s475_s26 }
  0xed   : > { %v206_v30 = vmul.f32 0.00390625, %v204_v29 }
  0xef   : > { %s477_s27 = spop %476  ;;  %v241_v35 = vmul.f32 %v206_v30, %v206_v30  ;;  %v244_v42 = vsub.f32 %v545_v3, %v206_v30  ;;  %v245_v43 = vsub.f32 %v548_v4, %v206_v30  ;;  %v247_v44 = vsub.f32 %v554_v6, %v206_v30 }
  0xf0   : > { %v239_v33 = vstv %s477_s27  ;;  %v248_v45 = vsub.f32 %v568_v12, %v206_v30  ;;  %v249_v48 = vsub.f32 %v577_v17, %v206_v30  ;;  %v251_v49 = vsub.f32 %v600_v32, %v206_v30 }
  0xf1   : > { %v240_v34 = vmul.f32 0.00390625, %v239_v33  ;;  %v246_v50 = vsub.f32 %v551_v5, %v206_v30  ;;  %v250_v51 = vsub.f32 %v591_v25, %v206_v30  ;;  %v364_v5 = vpop.permute.xlu1 %363 }
  0xf3   : > { %v242_v36 = vsub.f32 %v240_v34, %v241_v35 }
  0xf5   : > { %v243_v37 = vmax.f32 %v242_v36, 0.0 }
  0xf7   : > { %v252_v39 = vadd.f32 1e-05, %v243_v37 }
  0xf9   : > { %489 = vrsqrt.f32 %v252_v39 }
 0x103   : > { %v490_v47 = vpop.eup %489 }
 0x104   : > { %v254_v52 = vmul.f32 %v490_v47, %v244_v42  ;;  %v255_v53 = vmul.f32 %v490_v47, %v245_v43  ;;  %v257_v54 = vmul.f32 %v490_v47, %v247_v44  ;;  %v258_v3 = vmul.f32 %v490_v47, %v248_v45 }
 0x105   : > { %v259_v55 = vmul.f32 %v490_v47, %v249_v48  ;;  %v261_v4 = vmul.f32 %v490_v47, %v251_v49  ;;  %v256_v56 = vmul.f32 %v490_v47, %v246_v50  ;;  %v260_v6 = vmul.f32 %v490_v47, %v250_v51 }
 0x106   : > { %v310_v57 = vmul.f32 %v273_v16, %v254_v52  ;;  %v311_v12 = vmul.f32 %v278_v20, %v255_v53  ;;  %v313_v58 = vmul.f32 %v288_v21, %v257_v54  ;;  %v314_v59 = vmul.f32 %v293_v22, %v258_v3 }
 0x107   : > { %v315_v60 = vmul.f32 %v298_v23, %v259_v55  ;;  %v317_v17 = vmul.f32 %v308_v26, %v261_v4  ;;  %v312_v61 = vmul.f32 %v283_v46, %v256_v56  ;;  %v316_v32 = vmul.f32 %v303_v24, %v260_v6 }
 0x108   : > { %v366_v62 = vadd.f32 %v329_v27, %v310_v57  ;;  %v367_v25 = vadd.f32 %v334_v28, %v311_v12  ;;  %v369_v63 = vadd.f32 %v344_v38, %v313_v58  ;;  %v370_v0 = vadd.f32 %v349_v40, %v314_v59 }
 0x109   : > { %v371_v2 = vadd.f32 %v354_v41, %v315_v60  ;;  %v373_v7 = vadd.f32 %v364_v5, %v317_v17  ;;  %v368_v8 = vadd.f32 %v339_v31, %v312_v61  ;;  %v372_v9 = vadd.f32 %v359_v1, %v316_v32 }
 0x10a   : > { %vm374_vm1 = vcmp.ge.f32.partialorder %v366_v62, 0.0  ;;  %vm375_vm2 = vcmp.ge.f32.partialorder %v367_v25, 0.0  ;;  %vm377_vm3 = vcmp.ge.f32.partialorder %v369_v63, 0.0  ;;  %vm378_vm4 = vcmp.ge.f32.partialorder %v370_v0, 0.0 }
 0x10b   : > { %vm379_vm5 = vcmp.ge.f32.partialorder %v371_v2, 0.0  ;;  %vm381_vm6 = vcmp.ge.f32.partialorder %v373_v7, 0.0  ;;  %v382_v10 = vmul.f32 0.2, %v366_v62  ;;  %v383_v11 = vmul.f32 0.2, %v367_v25 }
 0x10c   : > { %v385_v13 = vmul.f32 0.2, %v369_v63  ;;  %v386_v14 = vmul.f32 0.2, %v370_v0  ;;  %v387_v15 = vmul.f32 0.2, %v371_v2 }
 0x10d   : > { %v389_v16 = vmul.f32 0.2, %v373_v7  ;;  %v390_v18 = vsel %vm374_vm1, %v366_v62, %v382_v10  ;;  %v391_v19 = vsel %vm375_vm2, %v367_v25, %v383_v11  ;;  %vm376_vm7 = vcmp.ge.f32.partialorder %v368_v8, 0.0 }
 0x10e   : > { %v393_v20 = vsel %vm377_vm3, %v369_v63, %v385_v13  ;;  %v394_v21 = vsel %vm378_vm4, %v370_v0, %v386_v14  ;;  %v395_v22 = vsel %vm379_vm5, %v371_v2, %v387_v15  ;;  %398 = vst.msk [vmem:[%s170_s30] sm:$0xff] %vm179_vm0, %v390_v18  ;;  %399 = vst.msk [vmem:[%s170_s30 + $0x8] sm:$0xff] %vm179_vm0, %v391_v19  ;;  %v384_v23 = vmul.f32 0.2, %v368_v8 }
 0x10f   : > { %v397_v24 = vsel %vm381_vm6, %v373_v7, %v389_v16  ;;  %401 = vst.msk [vmem:[%s170_s30 + $0x18] sm:$0xff] %vm179_vm0, %v393_v20  ;;  %402 = vst.msk [vmem:[%s170_s30 + $0x20] sm:$0xff] %vm179_vm0, %v394_v21  ;;  %vm380_vm8 = vcmp.ge.f32.partialorder %v372_v9, 0.0  ;;  %v388_v26 = vmul.f32 0.2, %v372_v9 }
 0x110   : > { %403 = vst.msk [vmem:[%s170_s30 + $0x28] sm:$0xff] %vm179_vm0, %v395_v22  ;;  %405 = vst.msk [vmem:[%s170_s30 + $0x38] sm:$0xff] %vm179_vm0, %v397_v24  ;;  %v392_v27 = vsel %vm376_vm7, %v368_v8, %v384_v23 }
 0x111   : > { %400 = vst.msk [vmem:[%s170_s30 + $0x10] sm:$0xff] %vm179_vm0, %v392_v27  ;;  %v396_v28 = vsel %vm380_vm8, %v372_v9, %v388_v26 }
 0x112   : > { %404 = vst.msk [vmem:[%s170_s30 + $0x30] sm:$0xff] %vm179_vm0, %v396_v28 }
 0x113 PF: > { %s13_s12 = sadd.s32 1, %s497_s12  }
 0x114   : > { %p10_p4 = scmp.ge.s32.totalorder %s13_s12, 4  }
 0x116   :  { %12 = sbr.rel (!%p10_p4) target bundleno = 1 (0x1), region = 62 }

// kernel: vnet_forward.65
= control target key start
LH: loop header
LB: loop body
LE: loop exit
PB: predicated region body
PF: predicated region fallthrough
CT: control target
= control target key end

     0   :  { %s782_s12 = smov 0   ;;  %s963_s0 = inlined_call_operand.vmem [shape: f32[2,288,4], index: 0, kind: input, shape index: {}]   ;;  %s964_s1 = inlined_call_operand.vmem [shape: f32[64,288], index: 1, kind: input, shape index: {}]   ;;  %s965_s2 = inlined_call_operand.vmem [shape: f32[64,1], index: 2, kind: input, shape index: {}]   ;;  %s966_s3 = inlined_call_operand.vmem [shape: f32[2,64,4], index: 3, kind: output, shape index: {}]  }
   0x1 LB: > { %s578_s13 = sadd.s32 4294967295, %s759_s12   ;;  %p582_p0 = scmp.ge.s32.totalorder %s759_s12, 1  ;;  %s759_s12 = sphi %s782_s12, %s13_s12  }
   0x2   : > { %p137_p1 = scmp.lt.s32.totalorder %s759_s12, 3 }
   0x4   : > { %p138_p2 = pnand %p582_p0, %p137_p1 }
   0x5   : > { %p161_p3 = scmp.lt.s32.totalorder (!%p138_p2), %s578_s13, 1  ;;  %v172_v0 = vld [vmem:[%s964_s1 + $0x8] sm:$0xff] (!%p138_p2)  ;;  %v190_v1 = vld [vmem:[%s964_s1 + $0x98] sm:$0xff] (!%p138_p2)  ;;  %v761_v2 = vmov (!%p138_p2), 0   ;;  %v231_v32 = vld [vmem:[%s965_s2] sm:$0xff] (!%p138_p2)  ;;  %vm279_vm0 = vcmask (!%p138_p2), 261120  }
   0x6   : > { %141 = sbr.rel (%p138_p2) target bundleno = 292 (0x124), region = 32  ;;  %368 = vmatprep.mubr.f32.mxu0 (!%p138_p2), %v172_v0  ;;  %398 = vmatprep.mubr.f32.mxu1 (!%p138_p2), %v190_v1  ;;  %v233_v33 = vld [vmem:[%s965_s2 + $0x10] sm:$0xff] (!%p138_p2)  ;;  %v232_v36 = vld [vmem:[%s965_s2 + $0x8] sm:$0xff] (!%p138_p2)  ;;  %v234_v37 = vld [vmem:[%s965_s2 + $0x18] sm:$0xff] (!%p138_p2)  ;;  %vm514_vm1 = vcmask (!%p138_p2), 31744  }
   0x7   : > { %751 = vset.pattern.permute.xlu0 (!%p138_p2), %v761_v2  ;;  %752 = vset.pattern.permute.xlu1 (!%p138_p2), %v761_v2  ;;  %v235_v44 = vld [vmem:[%s965_s2 + $0x20] sm:$0xff] (!%p138_p2)  ;;  %v236_v45 = vld [vmem:[%s965_s2 + $0x28] sm:$0xff] (!%p138_p2)  ;;  %v237_v52 = vld [vmem:[%s965_s2 + $0x30] sm:$0xff] (!%p138_p2) }
   0x8   : > { %241 = vperm.xlu0 (!%p138_p2), %751, %v231_v32   ;;  %251 = vperm.xlu1 (!%p138_p2), %752, %v233_v33   ;;  %v238_v53 = vld [vmem:[%s965_s2 + $0x38] sm:$0xff] (!%p138_p2)  ;;  %v171_v0 = vld [vmem:[%s964_s1] sm:$0xff] (!%p138_p2)  ;;  %v189_v1 = vld [vmem:[%s964_s1 + $0x90] sm:$0xff] (!%p138_p2) }
   0x9   : > { %v175_v2 = vld [vmem:[%s964_s1 + $0x20] sm:$0xff] (!%p138_p2) }
   0xc   : > { %246 = vperm.xlu0 (!%p138_p2), %751, %v232_v36   ;;  %256 = vperm.xlu1 (!%p138_p2), %752, %v234_v37  }
   0xd   : > { %s968_s13 = smov (!%p161_p3, %s578_s13), 1 }
   0xe   : > { %s741_s18 = smul.u32 288, %s968_s13  ;;  %s596_s5 = sshll.u32 %s968_s13, 6 }
   0xf   : > { %s942_s8 = scalar_lea.vmem %s966_s3, %s596_s5 }
  0x10   : > { %s802_s21 = scalar_lea.vmem %s963_s0, %s741_s18  ;;  %261 = vperm.xlu0 %751, %v235_v44   ;;  %266 = vperm.xlu1 %752, %v236_v45  }
  0x11   : > { %v211_v3 = vld [vmem:[%s802_s21 + $0x80] sm:$0xff]  ;;  %v212_v4 = vld [vmem:[%s802_s21 + $0x88] sm:$0xff]  ;;  %v213_v8 = vld [vmem:[%s802_s21 + $0x90] sm:$0xff] }
  0x12   : > { %v195_v5 = vld [vmem:[%s802_s21] sm:$0xff]  ;;  %v685_v6 = vpack.c.bf16 %v212_v4, %v211_v3  ;;  %v196_v7 = vld [vmem:[%s802_s21 + $0x8] sm:$0xff]  ;;  %v214_v9 = vld [vmem:[%s802_s21 + $0x98] sm:$0xff] }
  0x13   : > { %v687_v10 = vpack.c.bf16 %v196_v7, %v195_v5  ;;  %v689_v11 = vpack.c.bf16 %v214_v9, %v213_v8  ;;  %v197_v12 = vld [vmem:[%s802_s21 + $0x10] sm:$0xff]  ;;  %v198_v13 = vld [vmem:[%s802_s21 + $0x18] sm:$0xff]  ;;  %v215_v14 = vld [vmem:[%s802_s21 + $0xa0] sm:$0xff] }
  0x14   : > { %686 = vmatprep.subr.bf16.mxu0 %v685_v6  ;;  %725 = vmatprep.subr.bf16.mxu1 %v685_v6  ;;  %v216_v15 = vld [vmem:[%s802_s21 + $0xa8] sm:$0xff]  ;;  %v691_v16 = vpack.c.bf16 %v198_v13, %v197_v12  ;;  %v199_v18 = vld [vmem:[%s802_s21 + $0x20] sm:$0xff]  ;;  %v217_v20 = vld [vmem:[%s802_s21 + $0xb0] sm:$0xff] }
  0x15   : > { %688 = vmatpush3.bf16.msra.mxu0 %v687_v10  ;;  %733 = vmatpush3.bf16.msra.mxu1 %v687_v10  ;;  %v693_v17 = vpack.c.bf16 %v216_v15, %v215_v14  ;;  %v200_v19 = vld [vmem:[%s802_s21 + $0x28] sm:$0xff]  ;;  %v218_v21 = vld [vmem:[%s802_s21 + $0xb8] sm:$0xff]  ;;  %v201_v24 = vld [vmem:[%s802_s21 + $0x30] sm:$0xff] }
  0x16   : > { %690 = vmatprep.subr.bf16.mxu0 %v689_v11  ;;  %726 = vmatprep.subr.bf16.mxu1 %v689_v11  ;;  %v695_v22 = vpack.c.bf16 %v200_v19, %v199_v18  ;;  %v697_v23 = vpack.c.bf16 %v218_v21, %v217_v20  ;;  %v202_v25 = vld [vmem:[%s802_s21 + $0x38] sm:$0xff]  ;;  %v219_v26 = vld [vmem:[%s802_s21 + $0xc0] sm:$0xff]  ;;  %v220_v27 = vld [vmem:[%s802_s21 + $0xc8] sm:$0xff] }
  0x17   : > { %v699_v28 = vpack.c.bf16 %v202_v25, %v201_v24  ;;  %v203_v29 = vld [vmem:[%s802_s21 + $0x40] sm:$0xff]  ;;  %v701_v30 = vpack.c.bf16 %v220_v27, %v219_v26  ;;  %v204_v31 = vld [vmem:[%s802_s21 + $0x48] sm:$0xff]  ;;  %v221_v34 = vld [vmem:[%s802_s21 + $0xd0] sm:$0xff]  ;;  %271 = vperm.xlu0 %751, %v237_v52   ;;  %276 = vperm.xlu1 %752, %v238_v53  }
  0x18   : > { %v222_v35 = vld [vmem:[%s802_s21 + $0xd8] sm:$0xff]  ;;  %v703_v38 = vpack.c.bf16 %v204_v31, %v203_v29  ;;  %v205_v40 = vld [vmem:[%s802_s21 + $0x50] sm:$0xff]  ;;  %v223_v42 = vld [vmem:[%s802_s21 + $0xe0] sm:$0xff] }
  0x19   : > { %692 = vmatpush3.bf16.msra.mxu0 %v691_v16  ;;  %734 = vmatpush3.bf16.msra.mxu1 %v691_v16  ;;  %v705_v39 = vpack.c.bf16 %v222_v35, %v221_v34  ;;  %v206_v41 = vld [vmem:[%s802_s21 + $0x58] sm:$0xff]  ;;  %v224_v43 = vld [vmem:[%s802_s21 + $0xe8] sm:$0xff]  ;;  %v207_v48 = vld [vmem:[%s802_s21 + $0x60] sm:$0xff] }
  0x1a   : > { %694 = vmatprep.subr.bf16.mxu0 %v693_v17  ;;  %727 = vmatprep.subr.bf16.mxu1 %v693_v17  ;;  %v707_v46 = vpack.c.bf16 %v206_v41, %v205_v40  ;;  %v709_v47 = vpack.c.bf16 %v224_v43, %v223_v42  ;;  %v208_v49 = vld [vmem:[%s802_s21 + $0x68] sm:$0xff]  ;;  %v225_v50 = vld [vmem:[%s802_s21 + $0xf0] sm:$0xff]  ;;  %v226_v51 = vld [vmem:[%s802_s21 + $0xf8] sm:$0xff] }
  0x1b   : > { %v711_v54 = vpack.c.bf16 %v208_v49, %v207_v48  ;;  %v713_v55 = vpack.c.bf16 %v226_v51, %v225_v50  ;;  %v209_v56 = vld [vmem:[%s802_s21 + $0x70] sm:$0xff]  ;;  %v210_v57 = vld [vmem:[%s802_s21 + $0x78] sm:$0xff]  ;;  %v227_v58 = vld [vmem:[%s802_s21 + $0x100] sm:$0xff] }
  0x1c   : > { %v228_v59 = vld [vmem:[%s802_s21 + $0x108] sm:$0xff]  ;;  %v715_v60 = vpack.c.bf16 %v210_v57, %v209_v56  ;;  %v229_v62 = vld [vmem:[%s802_s21 + $0x110] sm:$0xff]  ;;  %v230_v63 = vld [vmem:[%s802_s21 + $0x118] sm:$0xff] }
  0x1d   : > { %696 = vmatpush3.bf16.msra.mxu0 %v695_v22  ;;  %735 = vmatpush3.bf16.msra.mxu1 %v695_v22  ;;  %v717_v61 = vpack.c.bf16 %v228_v59, %v227_v58  ;;  %v721_v3 = vpack.c.bf16 %v230_v63, %v229_v62  ;;  %v193_v4 = vld [vmem:[%s964_s1 + $0xb0] sm:$0xff]  ;;  %v174_v5 = vld [vmem:[%s964_s1 + $0x18] sm:$0xff]  ;;  %v192_v6 = vld [vmem:[%s964_s1 + $0xa8] sm:$0xff] }
  0x1e   : > { %698 = vmatprep.subr.bf16.mxu0 %v697_v23  ;;  %728 = vmatprep.subr.bf16.mxu1 %v697_v23  ;;  %v178_v7 = vld [vmem:[%s964_s1 + $0x38] sm:$0xff]  ;;  %v173_v8 = vld [vmem:[%s964_s1 + $0x10] sm:$0xff]  ;;  %v176_v10 = vld [vmem:[%s964_s1 + $0x28] sm:$0xff] }
  0x1f   : > { %v177_v9 = vld [vmem:[%s964_s1 + $0x30] sm:$0xff]  ;;  %v179_v12 = vld [vmem:[%s964_s1 + $0x40] sm:$0xff]  ;;  %v180_v13 = vld [vmem:[%s964_s1 + $0x48] sm:$0xff] }
  0x20   : > { %v181_v11 = vld [vmem:[%s964_s1 + $0x50] sm:$0xff]  ;;  %v182_v14 = vld [vmem:[%s964_s1 + $0x58] sm:$0xff]  ;;  %v184_v15 = vld [vmem:[%s964_s1 + $0x68] sm:$0xff] }
  0x21   : > { %700 = vmatpush3.bf16.msra.mxu0 %v699_v28  ;;  %736 = vmatpush3.bf16.msra.mxu1 %v699_v28  ;;  %v185_v16 = vld [vmem:[%s964_s1 + $0x70] sm:$0xff]  ;;  %v183_v17 = vld [vmem:[%s964_s1 + $0x60] sm:$0xff]  ;;  %v188_v18 = vld [vmem:[%s964_s1 + $0x88] sm:$0xff] }
  0x22   : > { %702 = vmatprep.subr.bf16.mxu0 %v701_v30  ;;  %729 = vmatprep.subr.bf16.mxu1 %v701_v30  ;;  %v187_v19 = vld [vmem:[%s964_s1 + $0x80] sm:$0xff]  ;;  %v186_v21 = vld [vmem:[%s964_s1 + $0x78] sm:$0xff] }
  0x23   : > { %v191_v20 = vld [vmem:[%s964_s1 + $0xa0] sm:$0xff]  ;;  %v194_v22 = vld [vmem:[%s964_s1 + $0xb8] sm:$0xff] }
  0x25   : > { %704 = vmatpush3.bf16.msra.mxu0 %v703_v38  ;;  %737 = vmatpush3.bf16.msra.mxu1 %v703_v38 }
  0x26   : > { %706 = vmatprep.subr.bf16.mxu0 %v705_v39  ;;  %730 = vmatprep.subr.bf16.mxu1 %v705_v39 }
  0x29   : > { %708 = vmatpush3.bf16.msra.mxu0 %v707_v46  ;;  %738 = vmatpush3.bf16.msra.mxu1 %v707_v46 }
  0x2a   : > { %710 = vmatprep.subr.bf16.mxu0 %v709_v47  ;;  %731 = vmatprep.subr.bf16.mxu1 %v709_v47 }
  0x2d   : > { %712 = vmatpush3.bf16.msra.mxu0 %v711_v54  ;;  %739 = vmatpush3.bf16.msra.mxu1 %v711_v54 }
  0x2e   : > { %714 = vmatprep.subr.bf16.mxu0 %v713_v55  ;;  %732 = vmatprep.subr.bf16.mxu1 %v713_v55 }
  0x31   : > { %716 = vmatpush3.bf16.msra.mxu0 %v715_v60  ;;  %740 = vmatpush3.bf16.msra.mxu1 %v715_v60 }
  0x32   : > { %718 = vmatprep.subr.bf16.mxu1 %v717_v61 }
  0x34   : > { %369 = vmatmul.mubr.f32.vlgmr.msra.gmra.mrb[0].mxu0 %v171_v0  ;;  %399 = vmatmul.mubr.f32.vlgmr.msra.gmra.mrb[0].mxu1 %v189_v1 }
  0x35   : > { %720 = vmatpush3.bf16.msra.mxu1 %v717_v61  ;;  %373 = vmatprep.mubr.f32.mxu0 %v175_v2 }
  0x36   : > { %403 = vmatprep.mubr.f32.mxu1 %v193_v4  ;;  %722 = vmatprep.subr.bf16.mxu1 %v721_v3 }
  0x38   : > { %374 = vmatmul.mubr.f32.gmra.mrb[2].mxu0 %v174_v5  ;;  %404 = vmatmul.mubr.f32.gmra.mrb[2].mxu1 %v192_v6 }
  0x39   : > { %724 = vmatpush3.bf16.msra.mxu1 %v721_v3  ;;  %378 = vmatprep.mubr.f32.mxu0 %v178_v7 }
  0x3a   : > { %673 = vmatprep.mubr.msk.f32.mxu1 %vm279_vm0, %v173_v8 }
  0x3c   : > { %379 = vmatmul.mubr.f32.gmra.mrb[4].mxu0 %v177_v9  ;;  %674 = vmatmul.mubr.msk.f32.vlgmr.msra.gmra.mrb[4].mxu1 %vm279_vm0, %v176_v10 }
  0x3d   : > { %383 = vmatprep.mubr.f32.mxu0 %v181_v11  ;;  %676 = vmatprep.mubr.msk.f32.mxu1 %vm279_vm0, %v179_v12 }
  0x40   : > { %384 = vmatmul.mubr.f32.gmra.mrb[6].mxu0 %v180_v13  ;;  %677 = vmatmul.mubr.msk.f32.gmra.mrb[6].mxu1 %vm279_vm0, %v182_v14 }
  0x41   : > { %388 = vmatprep.mubr.f32.mxu0 %v184_v15  ;;  %679 = vmatprep.mubr.msk.f32.mxu1 %vm279_vm0, %v185_v16 }
  0x44   : > { %389 = vmatmul.mubr.f32.gmra.mrb[8].mxu0 %v183_v17  ;;  %680 = vmatmul.mubr.msk.f32.gmra.mrb[8].mxu1 %vm279_vm0, %v188_v18 }
  0x45   : > { %393 = vmatprep.mubr.f32.mxu0 %v187_v19  ;;  %682 = vmatprep.mubr.msk.f32.mxu1 %vm279_vm0, %v191_v20 }
  0x48   : > { %394 = vmatmul.mubr.f32.gmra.mrb[10].mxu0 %v186_v21  ;;  %683 = vmatmul.mubr.msk.f32.gmra.mrb[10].mxu1 %vm279_vm0, %v194_v22 }
  0x87   : > { %v242_v23 = vpop.permute.xlu0 %241  ;;  %v252_v24 = vpop.permute.xlu1 %251 }
  0x8b   : > { %v247_v25 = vpop.permute.xlu0 %246  ;;  %v257_v26 = vpop.permute.xlu1 %256 }
  0x8f   : > { %v262_v39 = vpop.permute.xlu0 %261  ;;  %v267_v40 = vpop.permute.xlu1 %266 }
  0x96   : > { %v272_v57 = vpop.permute.xlu0 %271  ;;  %v277_v58 = vpop.permute.xlu1 %276 }
 0x107   : > { %v629_v27 = vpop.f32.mrb[0].mxu0  ;;  %v647_v28 = vpop.f32.mrb[0].mxu1 }
 0x108   : > { %v630_v29 = vpop.f32.mrb[1].mxu0  ;;  %v648_v30 = vpop.f32.mrb[1].mxu1 }
 0x109   : > { %v631_v31 = vadd.f32 %v630_v29, %v629_v27  ;;  %v649_v32 = vadd.f32 %v648_v30, %v647_v28 }
 0x10b   : > { %v632_v33 = vpop.f32.mrb[2].mxu0  ;;  %v650_v34 = vpop.f32.mrb[2].mxu1  ;;  %v371_v44 = vadd.f32 %v631_v31, %v242_v23  ;;  %v401_v3 = vadd.f32 %v649_v32, %v272_v57 }
 0x10c   : > { %v633_v35 = vpop.f32.mrb[3].mxu0  ;;  %v651_v36 = vpop.f32.mrb[3].mxu1 }
 0x10d   : > { %v634_v37 = vadd.f32 %v633_v35, %v632_v33  ;;  %v652_v38 = vadd.f32 %v651_v36, %v650_v34 }
 0x10f   : > { %v635_v41 = vpop.f32.mrb[4].mxu0  ;;  %v376_v42 = vadd.f32 %v634_v37, %v247_v25  ;;  %v675_v43 = vpop.f32.mrb[4].mxu1  ;;  %v406_v2 = vadd.f32 %v652_v38, %v277_v58 }
 0x110   : > { %v636_v45 = vpop.f32.mrb[5].mxu0  ;;  %v475_v46 = vpop.f32.mrb[5].mxu1 }
 0x111   : > { %v481_v47 = vadd.f32 %v675_v43, %v376_v42  ;;  %v637_v48 = vadd.f32 %v636_v45, %v635_v41  ;;  %v476_v49 = vadd.f32 %v475_v46, %v371_v44 }
 0x113   : > { %516 = vst.msk [vmem:[%s942_s8 + $0x8] sm:$0xff] %vm514_vm1, %v481_v47  ;;  %515 = vst.msk [vmem:[%s942_s8] sm:$0xff] %vm514_vm1, %v476_v49  ;;  %v638_v50 = vpop.f32.mrb[6].mxu0  ;;  %v678_v51 = vpop.f32.mrb[6].mxu1  ;;  %v381_v52 = vadd.f32 %v637_v48, %v252_v24 }
 0x114   : > { %v639_v53 = vpop.f32.mrb[7].mxu0  ;;  %v485_v54 = vpop.f32.mrb[7].mxu1 }
 0x115   : > { %v640_v55 = vadd.f32 %v639_v53, %v638_v50  ;;  %v486_v56 = vadd.f32 %v485_v54, %v381_v52 }
 0x117   : > { %v386_v59 = vadd.f32 %v640_v55, %v257_v26  ;;  %517 = vst.msk [vmem:[%s942_s8 + $0x10] sm:$0xff] %vm514_vm1, %v486_v56  ;;  %v641_v60 = vpop.f32.mrb[8].mxu0  ;;  %v681_v61 = vpop.f32.mrb[8].mxu1 }
 0x118   : > { %v642_v62 = vpop.f32.mrb[9].mxu0  ;;  %v495_v63 = vpop.f32.mrb[9].mxu1 }
 0x119   : > { %v491_v0 = vadd.f32 %v678_v51, %v386_v59  ;;  %v643_v1 = vadd.f32 %v642_v62, %v641_v60 }
 0x11b   : > { %518 = vst.msk [vmem:[%s942_s8 + $0x18] sm:$0xff] %vm514_vm1, %v491_v0  ;;  %v391_v4 = vadd.f32 %v643_v1, %v262_v39  ;;  %v644_v5 = vpop.f32.mrb[10].mxu0  ;;  %v684_v6 = vpop.f32.mrb[10].mxu1 }
 0x11c   : > { %v511_v7 = vadd.f32 %v684_v6, %v406_v2  ;;  %v645_v8 = vpop.f32.mrb[11].mxu0  ;;  %v505_v9 = vpop.f32.mrb[11].mxu1 }
 0x11d   : > { %v496_v10 = vadd.f32 %v495_v63, %v391_v4  ;;  %v646_v11 = vadd.f32 %v645_v8, %v644_v5  ;;  %v506_v12 = vadd.f32 %v505_v9, %v401_v3 }
 0x11e   : > { %522 = vst.msk [vmem:[%s942_s8 + $0x38] sm:$0xff] %vm514_vm1, %v511_v7 }
 0x11f   : > { %519 = vst.msk [vmem:[%s942_s8 + $0x20] sm:$0xff] %vm514_vm1, %v496_v10  ;;  %v396_v13 = vadd.f32 %v646_v11, %v267_v40  ;;  %521 = vst.msk [vmem:[%s942_s8 + $0x30] sm:$0xff] %vm514_vm1, %v506_v12 }
 0x121   : > { %v501_v14 = vadd.f32 %v681_v61, %v396_v13 }
 0x123   : > { %520 = vst.msk [vmem:[%s942_s8 + $0x28] sm:$0xff] %vm514_vm1, %v501_v14 }
 0x124 PF: > { %s13_s12 = sadd.s32 1, %s759_s12  }
 0x125   : > { %p10_p4 = scmp.ge.s32.totalorder %s13_s12, 4  }
 0x127   :  { %12 = sbr.rel (!%p10_p4) target bundleno = 1 (0x1), region = 62 }

// kernel: vnet_forward.78
= control target key start
LH: loop header
LB: loop body
LE: loop exit
PB: predicated region body
PF: predicated region fallthrough
CT: control target
= control target key end

     0   :  { %s480_s12 = smov 0   ;;  %s529_s0 = inlined_call_operand.vmem [shape: f32[2,64,4], index: 0, kind: input, shape index: {}]   ;;  %s530_s1 = inlined_call_operand.vmem [shape: f32[32,64], index: 1, kind: input, shape index: {}]   ;;  %s531_s2 = inlined_call_operand.vmem [shape: f32[32,1], index: 2, kind: input, shape index: {}]   ;;  %s532_s3 = inlined_call_operand.vmem [shape: f32[2,32,4], index: 3, kind: output, shape index: {}]  }
   0x1 LB: > { %s365_s13 = sadd.s32 4294967295, %s457_s12   ;;  %p369_p0 = scmp.ge.s32.totalorder %s457_s12, 1  ;;  %s457_s12 = sphi %s480_s12, %s13_s12  }
   0x2   : > { %p137_p1 = scmp.lt.s32.totalorder %s457_s12, 3 }
   0x4   : > { %p138_p2 = pnand %p369_p0, %p137_p1 }
   0x5   : > { %p161_p3 = scmp.lt.s32.totalorder (!%p138_p2), %s365_s13, 1  ;;  %v171_v0 = vld [vmem:[%s530_s1] sm:$0xff] (!%p138_p2)  ;;  %vm207_vm0 = vcmask (!%p138_p2), 523264   ;;  %v173_v1 = vld [vmem:[%s530_s1 + $0x10] sm:$0xff] (!%p138_p2)  ;;  %v459_v4 = vmov (!%p138_p2), 0   ;;  %v186_v5 = vld [vmem:[%s531_s2 + $0x18] sm:$0xff] (!%p138_p2) }
   0x6   : > { %141 = sbr.rel (%p138_p2) target bundleno = 251 (0xfb), region = 32  ;;  %410 = vmatprep.mubr.msk.f32.mxu0 (!%p138_p2), %vm207_vm0, %v171_v0  ;;  %413 = vmatprep.mubr.msk.f32.mxu1 (!%p138_p2), %vm207_vm0, %v173_v1  ;;  %v185_v2 = vld [vmem:[%s531_s2 + $0x10] sm:$0xff] (!%p138_p2)  ;;  %v183_v3 = vld [vmem:[%s531_s2] sm:$0xff] (!%p138_p2)  ;;  %v184_v6 = vld [vmem:[%s531_s2 + $0x8] sm:$0xff] (!%p138_p2)  ;;  %vm305_vm1 = vcmask (!%p138_p2), 31744  }
   0x7   : > { %450 = vset.pattern.permute.xlu1 (!%p138_p2), %v459_v4  ;;  %449 = vset.pattern.permute.xlu0 (!%p138_p2), %v459_v4  ;;  %v172_v19 = vld [vmem:[%s530_s1 + $0x8] sm:$0xff] (!%p138_p2)  ;;  %v174_v20 = vld [vmem:[%s530_s1 + $0x18] sm:$0xff] (!%p138_p2) }
   0x8   : > { %199 = vperm.xlu1 (!%p138_p2), %450, %v185_v2   ;;  %189 = vperm.xlu0 (!%p138_p2), %449, %v183_v3  }
   0xc   : > { %204 = vperm.xlu1 (!%p138_p2), %450, %v186_v5   ;;  %194 = vperm.xlu0 (!%p138_p2), %449, %v184_v6  }
   0xd   : > { %s534_s13 = smov (!%p161_p3, %s365_s13), 1 }
   0xe   : > { %s380_s22 = sshll.u32 %s534_s13, 6  ;;  %s381_s7 = sshll.u32 %s534_s13, 5 }
   0xf   : > { %s165_s29 = scalar_lea.vmem %s529_s0, %s380_s22  ;;  %s170_s10 = scalar_lea.vmem %s532_s3, %s381_s7 }
  0x10   : > { %v175_v7 = vld [vmem:[%s165_s29] sm:$0xff]  ;;  %v176_v8 = vld [vmem:[%s165_s29 + $0x8] sm:$0xff]  ;;  %v177_v9 = vld [vmem:[%s165_s29 + $0x10] sm:$0xff] }
  0x11   : > { %v416_v10 = vpack.c.bf16 %v176_v8, %v175_v7  ;;  %v178_v11 = vld [vmem:[%s165_s29 + $0x18] sm:$0xff]  ;;  %v179_v13 = vld [vmem:[%s165_s29 + $0x20] sm:$0xff]  ;;  %v180_v14 = vld [vmem:[%s165_s29 + $0x28] sm:$0xff] }
  0x12   : > { %v420_v12 = vpack.c.bf16 %v178_v11, %v177_v9  ;;  %v424_v15 = vpack.c.bf16 %v180_v14, %v179_v13  ;;  %v181_v16 = vld [vmem:[%s165_s29 + $0x30] sm:$0xff]  ;;  %v182_v17 = vld [vmem:[%s165_s29 + $0x38] sm:$0xff] }
  0x13   : > { %417 = vmatprep.subr.bf16.mxu0 %v416_v10  ;;  %432 = vmatprep.subr.bf16.mxu1 %v416_v10  ;;  %v428_v18 = vpack.c.bf16 %v182_v17, %v181_v16 }
  0x14   : > { %419 = vmatpush3.bf16.msra.mxu0 %v416_v10  ;;  %436 = vmatpush3.bf16.msra.mxu1 %v416_v10 }
  0x15   : > { %421 = vmatprep.subr.bf16.mxu0 %v420_v12  ;;  %433 = vmatprep.subr.bf16.mxu1 %v420_v12 }
  0x18   : > { %423 = vmatpush3.bf16.msra.mxu0 %v420_v12  ;;  %437 = vmatpush3.bf16.msra.mxu1 %v420_v12 }
  0x19   : > { %425 = vmatprep.subr.bf16.mxu0 %v424_v15  ;;  %434 = vmatprep.subr.bf16.mxu1 %v424_v15 }
  0x1c   : > { %427 = vmatpush3.bf16.msra.mxu0 %v424_v15  ;;  %438 = vmatpush3.bf16.msra.mxu1 %v424_v15 }
  0x1d   : > { %429 = vmatprep.subr.bf16.mxu0 %v428_v18  ;;  %435 = vmatprep.subr.bf16.mxu1 %v428_v18 }
  0x20   : > { %431 = vmatpush3.bf16.msra.mxu0 %v428_v18  ;;  %439 = vmatpush3.bf16.msra.mxu1 %v428_v18 }
  0x23   : > { %411 = vmatmul.mubr.msk.f32.vlgmr.msra.gmra.mrb[0].mxu0 %vm207_vm0, %v172_v19  ;;  %414 = vmatmul.mubr.msk.f32.vlgmr.msra.gmra.mrb[0].mxu1 %vm207_vm0, %v174_v20 }
  0x87   : > { %v200_v21 = vpop.permute.xlu1 %199  ;;  %v190_v22 = vpop.permute.xlu0 %189 }
  0x8b   : > { %v205_v23 = vpop.permute.xlu1 %204  ;;  %v195_v24 = vpop.permute.xlu0 %194 }
  0xf6   : > { %v412_v25 = vpop.f32.mrb[0].mxu0  ;;  %v415_v26 = vpop.f32.mrb[0].mxu1 }
  0xf7   : > { %v292_v27 = vadd.f32 %v412_v25, %v195_v24  ;;  %v302_v28 = vadd.f32 %v415_v26, %v205_v23  ;;  %v286_v29 = vpop.f32.mrb[1].mxu0  ;;  %v296_v30 = vpop.f32.mrb[1].mxu1 }
  0xf8   : > { %v287_v31 = vadd.f32 %v286_v29, %v190_v22  ;;  %v297_v32 = vadd.f32 %v296_v30, %v200_v21 }
  0xf9   : > { %307 = vst.msk [vmem:[%s170_s10 + $0x8] sm:$0xff] %vm305_vm1, %v292_v27  ;;  %309 = vst.msk [vmem:[%s170_s10 + $0x18] sm:$0xff] %vm305_vm1, %v302_v28 }
  0xfa   : > { %306 = vst.msk [vmem:[%s170_s10] sm:$0xff] %vm305_vm1, %v287_v31  ;;  %308 = vst.msk [vmem:[%s170_s10 + $0x10] sm:$0xff] %vm305_vm1, %v297_v32 }
  0xfb PF: > { %s13_s12 = sadd.s32 1, %s457_s12  }
  0xfc   : > { %p10_p4 = scmp.ge.s32.totalorder %s13_s12, 4  }
  0xfe   :  { %12 = sbr.rel (!%p10_p4) target bundleno = 1 (0x1), region = 62 }

// kernel: vnet_forward.68
= control target key start
LH: loop header
LB: loop body
LE: loop exit
PB: predicated region body
PF: predicated region fallthrough
CT: control target
= control target key end

     0   :  { %s1122_s15 = smov 0   ;;  %s1406_s0 = inlined_call_operand.vmem [shape: f32[2,576,4], index: 0, kind: input, shape index: {}]   ;;  %s1407_s1 = inlined_call_operand.vmem [shape: f32[64,576], index: 1, kind: input, shape index: {}]   ;;  %s1408_s2 = inlined_call_operand.vmem [shape: f32[64,1], index: 2, kind: input, shape index: {}]   ;;  %s1409_s3 = inlined_call_operand.vmem [shape: f32[2,64,4], index: 3, kind: input, shape index: {}]   ;;  %s1410_s4 = inlined_call_operand.vmem [shape: f32[2,64,4], index: 4, kind: output, shape index: {}]  }
   0x1 LB: > { %s810_s16 = sadd.s32 4294967295, %s1094_s15   ;;  %p814_p0 = scmp.ge.s32.totalorder %s1094_s15, 1  ;;  %s1094_s15 = sphi %s1122_s15, %s14_s15  }
   0x2   : > { %p172_p1 = scmp.lt.s32.totalorder %s1094_s15, 3 }
   0x4   : > { %p173_p2 = pnand %p814_p0, %p172_p1 }
   0x5   : > { %p203_p3 = scmp.lt.s32.totalorder (!%p173_p2), %s810_s16, 1  ;;  %v219_v0 = vld [vmem:[%s1407_s1 + $0x8] sm:$0xff] (!%p173_p2)  ;;  %v221_v1 = vld [vmem:[%s1407_s1 + $0x18] sm:$0xff] (!%p173_p2)  ;;  %v1096_v2 = vmov (!%p173_p2), 0   ;;  %vm378_vm0 = vcmask (!%p173_p2), 523264   ;;  %vm734_vm1 = vcmask (!%p173_p2), 31744  }
   0x6   : > { %176 = sbr.rel (%p173_p2) target bundleno = 308 (0x134), region = 36  ;;  %467 = vmatprep.mubr.f32.mxu0 (!%p173_p2), %v219_v0  ;;  %572 = vmatprep.mubr.f32.mxu1 (!%p173_p2), %v221_v1 }
   0x7   : > { %1086 = vset.pattern.permute.xlu0 (!%p173_p2), %v1096_v2  ;;  %1087 = vset.pattern.permute.xlu1 (!%p173_p2), %v1096_v2 }
   0xd   : > { %s1412_s16 = smov (!%p203_p3, %s810_s16), 1 }
   0xe   : > { %s1076_s21 = smul.u32 576, %s1412_s16 }
  0x10   : > { %s1142_s24 = scalar_lea.vmem %s1406_s0, %s1076_s21  ;;  %s830_s21 = sshll.u32 %s1412_s16, 6 }
  0x11   : > { %v274_v3 = vld [vmem:[%s1142_s24 + $0x80] sm:$0xff]  ;;  %v275_v4 = vld [vmem:[%s1142_s24 + $0x88] sm:$0xff]  ;;  %v276_v14 = vld [vmem:[%s1142_s24 + $0x90] sm:$0xff]  ;;  %s1370_s25 = scalar_lea.vmem %s1409_s3, %s830_s21  ;;  %s1378_s27 = scalar_lea.vmem %s1410_s4, %s830_s21 }
  0x12   : > { %v306_v5 = vld [vmem:[%s1142_s24 + $0x180] sm:$0xff]  ;;  %v988_v6 = vpack.c.bf16 %v275_v4, %v274_v3  ;;  %v307_v7 = vld [vmem:[%s1142_s24 + $0x188] sm:$0xff]  ;;  %v277_v16 = vld [vmem:[%s1142_s24 + $0x98] sm:$0xff] }
  0x13   : > { %v258_v8 = vld [vmem:[%s1142_s24] sm:$0xff]  ;;  %v259_v9 = vld [vmem:[%s1142_s24 + $0x8] sm:$0xff]  ;;  %v1020_v10 = vpack.c.bf16 %v307_v7, %v306_v5  ;;  %v308_v17 = vld [vmem:[%s1142_s24 + $0x190] sm:$0xff]  ;;  %v992_v19 = vpack.c.bf16 %v277_v16, %v276_v14 }
  0x14   : > { %v990_v11 = vpack.c.bf16 %v259_v9, %v258_v8  ;;  %v290_v12 = vld [vmem:[%s1142_s24 + $0x100] sm:$0xff]  ;;  %v291_v13 = vld [vmem:[%s1142_s24 + $0x108] sm:$0xff]  ;;  %989 = vmatprep.subr.bf16.mxu0 %v988_v6  ;;  %v309_v18 = vld [vmem:[%s1142_s24 + $0x198] sm:$0xff] }
  0x15   : > { %v1022_v15 = vpack.c.bf16 %v291_v13, %v290_v12  ;;  %1021 = vmatprep.subr.bf16.mxu1 %v1020_v10  ;;  %v1024_v20 = vpack.c.bf16 %v309_v18, %v308_v17  ;;  %v260_v21 = vld [vmem:[%s1142_s24 + $0x10] sm:$0xff]  ;;  %v261_v22 = vld [vmem:[%s1142_s24 + $0x18] sm:$0xff]  ;;  %v278_v26 = vld [vmem:[%s1142_s24 + $0xa0] sm:$0xff] }
  0x16   : > { %991 = vmatpush3.bf16.msra.mxu0 %v990_v11  ;;  %v292_v23 = vld [vmem:[%s1142_s24 + $0x110] sm:$0xff]  ;;  %v994_v24 = vpack.c.bf16 %v261_v22, %v260_v21  ;;  %v293_v25 = vld [vmem:[%s1142_s24 + $0x118] sm:$0xff]  ;;  %v279_v27 = vld [vmem:[%s1142_s24 + $0xa8] sm:$0xff] }
  0x17   : > { %1023 = vmatpush3.bf16.msra.mxu1 %v1022_v15  ;;  %993 = vmatprep.subr.bf16.mxu0 %v992_v19  ;;  %v1026_v28 = vpack.c.bf16 %v293_v25, %v292_v23  ;;  %v996_v29 = vpack.c.bf16 %v279_v27, %v278_v26  ;;  %v310_v30 = vld [vmem:[%s1142_s24 + $0x1a0] sm:$0xff]  ;;  %v311_v31 = vld [vmem:[%s1142_s24 + $0x1a8] sm:$0xff]  ;;  %v280_v38 = vld [vmem:[%s1142_s24 + $0xb0] sm:$0xff] }
  0x18   : > { %1025 = vmatprep.subr.bf16.mxu1 %v1024_v20  ;;  %v262_v32 = vld [vmem:[%s1142_s24 + $0x20] sm:$0xff]  ;;  %v1028_v33 = vpack.c.bf16 %v311_v31, %v310_v30  ;;  %v263_v34 = vld [vmem:[%s1142_s24 + $0x28] sm:$0xff]  ;;  %v281_v39 = vld [vmem:[%s1142_s24 + $0xb8] sm:$0xff] }
  0x19   : > { %v294_v35 = vld [vmem:[%s1142_s24 + $0x120] sm:$0xff]  ;;  %v295_v36 = vld [vmem:[%s1142_s24 + $0x128] sm:$0xff]  ;;  %v998_v37 = vpack.c.bf16 %v263_v34, %v262_v32  ;;  %v312_v40 = vld [vmem:[%s1142_s24 + $0x1b0] sm:$0xff]  ;;  %v1000_v42 = vpack.c.bf16 %v281_v39, %v280_v38 }
  0x1a   : > { %995 = vmatpush3.bf16.msra.mxu0 %v994_v24  ;;  %v1030_v41 = vpack.c.bf16 %v295_v36, %v294_v35  ;;  %v313_v43 = vld [vmem:[%s1142_s24 + $0x1b8] sm:$0xff]  ;;  %v264_v44 = vld [vmem:[%s1142_s24 + $0x30] sm:$0xff]  ;;  %v282_v49 = vld [vmem:[%s1142_s24 + $0xc0] sm:$0xff] }
  0x1b   : > { %1027 = vmatpush3.bf16.msra.mxu1 %v1026_v28  ;;  %997 = vmatprep.subr.bf16.mxu0 %v996_v29  ;;  %v265_v45 = vld [vmem:[%s1142_s24 + $0x38] sm:$0xff]  ;;  %v1032_v46 = vpack.c.bf16 %v313_v43, %v312_v40  ;;  %v296_v47 = vld [vmem:[%s1142_s24 + $0x130] sm:$0xff]  ;;  %v283_v50 = vld [vmem:[%s1142_s24 + $0xc8] sm:$0xff] }
  0x1c   : > { %1029 = vmatprep.subr.bf16.mxu1 %v1028_v33  ;;  %v297_v48 = vld [vmem:[%s1142_s24 + $0x138] sm:$0xff]  ;;  %v314_v51 = vld [vmem:[%s1142_s24 + $0x1c0] sm:$0xff]  ;;  %v315_v52 = vld [vmem:[%s1142_s24 + $0x1c8] sm:$0xff]  ;;  %v1002_v53 = vpack.c.bf16 %v265_v45, %v264_v44  ;;  %v1004_v55 = vpack.c.bf16 %v283_v50, %v282_v49 }
  0x1d   : > { %v1034_v54 = vpack.c.bf16 %v297_v48, %v296_v47  ;;  %v266_v56 = vld [vmem:[%s1142_s24 + $0x40] sm:$0xff]  ;;  %v267_v57 = vld [vmem:[%s1142_s24 + $0x48] sm:$0xff]  ;;  %v1036_v59 = vpack.c.bf16 %v315_v52, %v314_v51  ;;  %v284_v61 = vld [vmem:[%s1142_s24 + $0xd0] sm:$0xff] }
  0x1e   : > { %999 = vmatpush3.bf16.msra.mxu0 %v998_v37  ;;  %v298_v58 = vld [vmem:[%s1142_s24 + $0x140] sm:$0xff]  ;;  %v299_v60 = vld [vmem:[%s1142_s24 + $0x148] sm:$0xff]  ;;  %v285_v62 = vld [vmem:[%s1142_s24 + $0xd8] sm:$0xff]  ;;  %v1006_v1 = vpack.c.bf16 %v267_v57, %v266_v56 }
  0x1f   : > { %1031 = vmatpush3.bf16.msra.mxu1 %v1030_v41  ;;  %1001 = vmatprep.subr.bf16.mxu0 %v1000_v42  ;;  %v316_v63 = vld [vmem:[%s1142_s24 + $0x1d0] sm:$0xff]  ;;  %v317_v0 = vld [vmem:[%s1142_s24 + $0x1d8] sm:$0xff]  ;;  %v1038_v2 = vpack.c.bf16 %v299_v60, %v298_v58  ;;  %v1008_v3 = vpack.c.bf16 %v285_v62, %v284_v61  ;;  %v286_v9 = vld [vmem:[%s1142_s24 + $0xe0] sm:$0xff] }
  0x20   : > { %1033 = vmatprep.subr.bf16.mxu1 %v1032_v46  ;;  %v268_v4 = vld [vmem:[%s1142_s24 + $0x50] sm:$0xff]  ;;  %v269_v5 = vld [vmem:[%s1142_s24 + $0x58] sm:$0xff]  ;;  %v1040_v7 = vpack.c.bf16 %v317_v0, %v316_v63  ;;  %v287_v10 = vld [vmem:[%s1142_s24 + $0xe8] sm:$0xff] }
  0x21   : > { %v300_v6 = vld [vmem:[%s1142_s24 + $0x150] sm:$0xff]  ;;  %v301_v8 = vld [vmem:[%s1142_s24 + $0x158] sm:$0xff]  ;;  %v318_v11 = vld [vmem:[%s1142_s24 + $0x1e0] sm:$0xff]  ;;  %v1010_v13 = vpack.c.bf16 %v269_v5, %v268_v4  ;;  %v1012_v15 = vpack.c.bf16 %v287_v10, %v286_v9 }
  0x22   : > { %1003 = vmatpush3.bf16.msra.mxu0 %v1002_v53  ;;  %v319_v12 = vld [vmem:[%s1142_s24 + $0x1e8] sm:$0xff]  ;;  %v1042_v14 = vpack.c.bf16 %v301_v8, %v300_v6  ;;  %v270_v16 = vld [vmem:[%s1142_s24 + $0x60] sm:$0xff]  ;;  %v288_v21 = vld [vmem:[%s1142_s24 + $0xf0] sm:$0xff] }
  0x23   : > { %1035 = vmatpush3.bf16.msra.mxu1 %v1034_v54  ;;  %1005 = vmatprep.subr.bf16.mxu0 %v1004_v55  ;;  %v271_v17 = vld [vmem:[%s1142_s24 + $0x68] sm:$0xff]  ;;  %v302_v18 = vld [vmem:[%s1142_s24 + $0x160] sm:$0xff]  ;;  %v1044_v19 = vpack.c.bf16 %v319_v12, %v318_v11  ;;  %v289_v22 = vld [vmem:[%s1142_s24 + $0xf8] sm:$0xff] }
  0x24   : > { %1037 = vmatprep.subr.bf16.mxu1 %v1036_v59  ;;  %v303_v20 = vld [vmem:[%s1142_s24 + $0x168] sm:$0xff]  ;;  %v320_v23 = vld [vmem:[%s1142_s24 + $0x1f0] sm:$0xff]  ;;  %v321_v24 = vld [vmem:[%s1142_s24 + $0x1f8] sm:$0xff]  ;;  %v1014_v25 = vpack.c.bf16 %v271_v17, %v270_v16  ;;  %v1016_v27 = vpack.c.bf16 %v289_v22, %v288_v21 }
  0x25   : > { %v1046_v26 = vpack.c.bf16 %v303_v20, %v302_v18  ;;  %v272_v28 = vld [vmem:[%s1142_s24 + $0x70] sm:$0xff]  ;;  %v273_v29 = vld [vmem:[%s1142_s24 + $0x78] sm:$0xff]  ;;  %v1048_v31 = vpack.c.bf16 %v321_v24, %v320_v23  ;;  %v322_v33 = vld [vmem:[%s1142_s24 + $0x200] sm:$0xff] }
  0x26   : > { %1007 = vmatpush3.bf16.msra.mxu0 %v1006_v1  ;;  %v304_v30 = vld [vmem:[%s1142_s24 + $0x170] sm:$0xff]  ;;  %v305_v32 = vld [vmem:[%s1142_s24 + $0x178] sm:$0xff]  ;;  %v323_v34 = vld [vmem:[%s1142_s24 + $0x208] sm:$0xff]  ;;  %v1018_v35 = vpack.c.bf16 %v273_v29, %v272_v28 }
  0x27   : > { %1039 = vmatpush3.bf16.msra.mxu1 %v1038_v2  ;;  %1009 = vmatprep.subr.bf16.mxu0 %v1008_v3  ;;  %v1050_v36 = vpack.c.bf16 %v305_v32, %v304_v30  ;;  %v1052_v37 = vpack.c.bf16 %v323_v34, %v322_v33  ;;  %v330_v38 = vld [vmem:[%s1408_s2] sm:$0xff]  ;;  %v324_v39 = vld [vmem:[%s1142_s24 + $0x210] sm:$0xff]  ;;  %v325_v40 = vld [vmem:[%s1142_s24 + $0x218] sm:$0xff] }
  0x28   : > { %1041 = vmatprep.subr.bf16.mxu1 %v1040_v7  ;;  %340 = vperm.xlu0 %1086, %v330_v38   ;;  %v332_v41 = vld [vmem:[%s1408_s2 + $0x10] sm:$0xff]  ;;  %v218_v42 = vld [vmem:[%s1407_s1] sm:$0xff]  ;;  %v331_v43 = vld [vmem:[%s1408_s2 + $0x8] sm:$0xff]  ;;  %v1056_v46 = vpack.c.bf16 %v325_v40, %v324_v39 }
  0x29   : > { %350 = vperm.xlu1 %1087, %v332_v41   ;;  %v220_v44 = vld [vmem:[%s1407_s1 + $0x10] sm:$0xff]  ;;  %v226_v47 = vld [vmem:[%s1407_s1 + $0x40] sm:$0xff]  ;;  %v327_v49 = vld [vmem:[%s1142_s24 + $0x228] sm:$0xff] }
  0x2a   : > { %1011 = vmatpush3.bf16.msra.mxu0 %v1010_v13  ;;  %v224_v45 = vld [vmem:[%s1407_s1 + $0x30] sm:$0xff]  ;;  %v326_v48 = vld [vmem:[%s1142_s24 + $0x220] sm:$0xff]  ;;  %v223_v50 = vld [vmem:[%s1407_s1 + $0x28] sm:$0xff] }
  0x2b   : > { %1043 = vmatpush3.bf16.msra.mxu1 %v1042_v14  ;;  %1013 = vmatprep.subr.bf16.mxu0 %v1012_v15  ;;  %v225_v51 = vld [vmem:[%s1407_s1 + $0x38] sm:$0xff]  ;;  %v231_v53 = vld [vmem:[%s1407_s1 + $0x68] sm:$0xff]  ;;  %v1060_v54 = vpack.c.bf16 %v327_v49, %v326_v48  ;;  %v328_v55 = vld [vmem:[%s1142_s24 + $0x230] sm:$0xff] }
  0x2c   : > { %1045 = vmatprep.subr.bf16.mxu1 %v1044_v19  ;;  %345 = vperm.xlu0 %1086, %v331_v43   ;;  %v229_v52 = vld [vmem:[%s1407_s1 + $0x58] sm:$0xff]  ;;  %v228_v57 = vld [vmem:[%s1407_s1 + $0x50] sm:$0xff]  ;;  %v230_v58 = vld [vmem:[%s1407_s1 + $0x60] sm:$0xff] }
  0x2d   : > { %v329_v56 = vld [vmem:[%s1142_s24 + $0x238] sm:$0xff]  ;;  %v234_v59 = vld [vmem:[%s1407_s1 + $0x80] sm:$0xff]  ;;  %v236_v60 = vld [vmem:[%s1407_s1 + $0x90] sm:$0xff] }
  0x2e   : > { %1015 = vmatpush3.bf16.msra.mxu0 %v1014_v25  ;;  %v1064_v61 = vpack.c.bf16 %v329_v56, %v328_v55  ;;  %v233_v62 = vld [vmem:[%s1407_s1 + $0x78] sm:$0xff]  ;;  %v235_v63 = vld [vmem:[%s1407_s1 + $0x88] sm:$0xff]  ;;  %v238_v3 = vld [vmem:[%s1407_s1 + $0xa0] sm:$0xff] }
  0x2f   : > { %1047 = vmatpush3.bf16.msra.mxu1 %v1046_v26  ;;  %1017 = vmatprep.subr.bf16.mxu0 %v1016_v27  ;;  %v239_v0 = vld [vmem:[%s1407_s1 + $0xa8] sm:$0xff]  ;;  %v241_v1 = vld [vmem:[%s1407_s1 + $0xb8] sm:$0xff]  ;;  %v334_v4 = vld [vmem:[%s1408_s2 + $0x20] sm:$0xff] }
  0x30   : > { %1049 = vmatprep.subr.bf16.mxu1 %v1048_v31  ;;  %v333_v2 = vld [vmem:[%s1408_s2 + $0x18] sm:$0xff]  ;;  %v240_v5 = vld [vmem:[%s1407_s1 + $0xb0] sm:$0xff]  ;;  %v246_v7 = vld [vmem:[%s1407_s1 + $0xe0] sm:$0xff]  ;;  %360 = vperm.xlu0 %1086, %v334_v4  }
  0x31   : > { %v244_v6 = vld [vmem:[%s1407_s1 + $0xd0] sm:$0xff]  ;;  %355 = vperm.xlu1 %1087, %v333_v2   ;;  %v335_v8 = vld [vmem:[%s1408_s2 + $0x28] sm:$0xff]  ;;  %v245_v11 = vld [vmem:[%s1407_s1 + $0xd8] sm:$0xff] }
  0x32   : > { %1019 = vmatpush3.bf16.msra.mxu0 %v1018_v35  ;;  %v243_v9 = vld [vmem:[%s1407_s1 + $0xc8] sm:$0xff]  ;;  %v336_v10 = vld [vmem:[%s1408_s2 + $0x30] sm:$0xff]  ;;  %v249_v12 = vld [vmem:[%s1407_s1 + $0xf8] sm:$0xff] }
  0x33   : > { %1051 = vmatpush3.bf16.msra.mxu1 %v1050_v36  ;;  %1053 = vmatprep.subr.bf16.mxu0 %v1052_v37  ;;  %v251_v13 = vld [vmem:[%s1407_s1 + $0x108] sm:$0xff]  ;;  %v337_v14 = vld [vmem:[%s1408_s2 + $0x38] sm:$0xff]  ;;  %v248_v15 = vld [vmem:[%s1407_s1 + $0xf0] sm:$0xff] }
  0x34   : > { %1068 = vmatprep.subr.bf16.mxu1 %v1052_v37  ;;  %370 = vperm.xlu0 %1086, %v336_v10   ;;  %v250_v16 = vld [vmem:[%s1407_s1 + $0x100] sm:$0xff]  ;;  %v256_v18 = vld [vmem:[%s1407_s1 + $0x130] sm:$0xff]  ;;  %v253_v19 = vld [vmem:[%s1407_s1 + $0x118] sm:$0xff] }
  0x35   : > { %468 = vmatmul.mubr.f32.vlgmr.msra.gmra.mrb[0].mxu0 %v218_v42  ;;  %365 = vperm.xlu1 %1087, %v335_v8   ;;  %v254_v17 = vld [vmem:[%s1407_s1 + $0x120] sm:$0xff]  ;;  %v255_v20 = vld [vmem:[%s1407_s1 + $0x128] sm:$0xff]  ;;  %v232_v25 = vld [vmem:[%s1407_s1 + $0x70] sm:$0xff] }
  0x36   : > { %573 = vmatmul.mubr.f32.vlgmr.msra.gmra.mrb[0].mxu1 %v220_v44  ;;  %1055 = vmatpush3.bf16.msra.mxu0 %v1052_v37  ;;  %v222_v21 = vld [vmem:[%s1407_s1 + $0x20] sm:$0xff]  ;;  %v227_v23 = vld [vmem:[%s1407_s1 + $0x48] sm:$0xff]  ;;  %v252_v26 = vld [vmem:[%s1407_s1 + $0x110] sm:$0xff] }
  0x37   : > { %1072 = vmatpush3.bf16.msra.mxu1 %v1052_v37  ;;  %472 = vmatprep.mubr.f32.mxu0 %v224_v45  ;;  %v242_v22 = vld [vmem:[%s1407_s1 + $0xc0] sm:$0xff]  ;;  %v247_v24 = vld [vmem:[%s1407_s1 + $0xe8] sm:$0xff]  ;;  %v237_v27 = vld [vmem:[%s1407_s1 + $0x98] sm:$0xff] }
  0x38   : > { %577 = vmatprep.mubr.f32.mxu1 %v226_v47  ;;  %1057 = vmatprep.subr.bf16.mxu0 %v1056_v46  ;;  %v257_v28 = vld [vmem:[%s1407_s1 + $0x138] sm:$0xff] }
  0x39   : > { %473 = vmatmul.mubr.f32.gmra.mrb[2].mxu0 %v223_v50  ;;  %1069 = vmatprep.subr.bf16.mxu1 %v1056_v46 }
  0x3a   : > { %578 = vmatmul.mubr.f32.gmra.mrb[2].mxu1 %v225_v51  ;;  %477 = vmatprep.mubr.f32.mxu0 %v229_v52 }
  0x3b   : > { %582 = vmatprep.mubr.f32.mxu1 %v231_v53  ;;  %1059 = vmatpush3.bf16.msra.mxu0 %v1056_v46 }
  0x3c   : > { %1073 = vmatpush3.bf16.msra.mxu1 %v1056_v46  ;;  %1061 = vmatprep.subr.bf16.mxu0 %v1060_v54 }
  0x3d   : > { %478 = vmatmul.mubr.f32.gmra.mrb[4].mxu0 %v228_v57  ;;  %1070 = vmatprep.subr.bf16.mxu1 %v1060_v54 }
  0x3e   : > { %583 = vmatmul.mubr.f32.gmra.mrb[4].mxu1 %v230_v58  ;;  %482 = vmatprep.mubr.f32.mxu0 %v234_v59 }
  0x3f   : > { %587 = vmatprep.mubr.f32.mxu1 %v236_v60  ;;  %1063 = vmatpush3.bf16.msra.mxu0 %v1060_v54 }
  0x40   : > { %1074 = vmatpush3.bf16.msra.mxu1 %v1060_v54  ;;  %1065 = vmatprep.subr.bf16.mxu0 %v1064_v61 }
  0x41   : > { %483 = vmatmul.mubr.f32.gmra.mrb[6].mxu0 %v233_v62  ;;  %1071 = vmatprep.subr.bf16.mxu1 %v1064_v61 }
  0x42   : > { %588 = vmatmul.mubr.f32.gmra.mrb[6].mxu1 %v235_v63  ;;  %487 = vmatprep.mubr.f32.mxu0 %v239_v0 }
  0x43   : > { %592 = vmatprep.mubr.f32.mxu1 %v241_v1  ;;  %1067 = vmatpush3.bf16.msra.mxu0 %v1064_v61 }
  0x44   : > { %1075 = vmatpush3.bf16.msra.mxu1 %v1064_v61  ;;  %375 = vperm.xlu1 %1087, %v337_v14  }
  0x45   : > { %488 = vmatmul.mubr.f32.gmra.mrb[8].mxu0 %v238_v3 }
  0x46   : > { %593 = vmatmul.mubr.f32.gmra.mrb[8].mxu1 %v240_v5  ;;  %492 = vmatprep.mubr.f32.mxu0 %v244_v6 }
  0x47   : > { %597 = vmatprep.mubr.f32.mxu1 %v246_v7 }
  0x49   : > { %493 = vmatmul.mubr.f32.gmra.mrb[10].mxu0 %v243_v9 }
  0x4a   : > { %598 = vmatmul.mubr.f32.gmra.mrb[10].mxu1 %v245_v11  ;;  %497 = vmatprep.mubr.f32.mxu0 %v249_v12 }
  0x4b   : > { %602 = vmatprep.mubr.f32.mxu1 %v251_v13 }
  0x4d   : > { %498 = vmatmul.mubr.f32.gmra.mrb[12].mxu0 %v248_v15 }
  0x4e   : > { %603 = vmatmul.mubr.f32.gmra.mrb[12].mxu1 %v250_v16  ;;  %502 = vmatprep.mubr.f32.mxu0 %v254_v17 }
  0x4f   : > { %607 = vmatprep.mubr.f32.mxu1 %v256_v18 }
  0x51   : > { %503 = vmatmul.mubr.f32.gmra.mrb[14].mxu0 %v253_v19 }
  0x52   : > { %608 = vmatmul.mubr.f32.gmra.mrb[14].mxu1 %v255_v20  ;;  %976 = vmatprep.mubr.msk.f32.mxu0 %vm378_vm0, %v222_v21 }
  0x53   : > { %982 = vmatprep.mubr.msk.f32.mxu1 %vm378_vm0, %v242_v22 }
  0x55   : > { %977 = vmatmul.mubr.msk.f32.vlgmr.msra.gmra.mrb[16].mxu0 %vm378_vm0, %v227_v23 }
  0x56   : > { %983 = vmatmul.mubr.msk.f32.vlgmr.msra.gmra.mrb[16].mxu1 %vm378_vm0, %v247_v24  ;;  %979 = vmatprep.mubr.msk.f32.mxu0 %vm378_vm0, %v232_v25 }
  0x57   : > { %985 = vmatprep.mubr.msk.f32.mxu1 %vm378_vm0, %v252_v26 }
  0x59   : > { %980 = vmatmul.mubr.msk.f32.gmra.mrb[18].mxu0 %vm378_vm0, %v237_v27 }
  0x5a   : > { %986 = vmatmul.mubr.msk.f32.gmra.mrb[18].mxu1 %vm378_vm0, %v257_v28 }
  0xa7   : > { %v341_v29 = vpop.permute.xlu0 %340 }
  0xa8   : > { %v351_v47 = vpop.permute.xlu1 %350 }
  0xab   : > { %v346_v38 = vpop.permute.xlu0 %345 }
  0xaf   : > { %v361_v7 = vpop.permute.xlu0 %360 }
  0xb0   : > { %v356_v62 = vpop.permute.xlu1 %355 }
  0xb3   : > { %v371_v24 = vpop.permute.xlu0 %370 }
  0xb4   : > { %v366_v15 = vpop.permute.xlu1 %365 }
 0x108   : > { %v864_v30 = vpop.f32.mrb[0].mxu0 }
 0x109   : > { %v920_v31 = vpop.f32.mrb[0].mxu1  ;;  %v865_v32 = vpop.f32.mrb[1].mxu0 }
 0x10a   : > { %v866_v33 = vadd.f32 %v865_v32, %v864_v30  ;;  %v921_v34 = vpop.f32.mrb[1].mxu1 }
 0x10b   : > { %v922_v35 = vadd.f32 %v921_v34, %v920_v31 }
 0x10c   : > { %v470_v36 = vadd.f32 %v866_v33, %v341_v29  ;;  %v867_v37 = vpop.f32.mrb[2].mxu0  ;;  %v376_v33 = vpop.permute.xlu1 %375 }
 0x10d   : > { %v923_v39 = vpop.f32.mrb[2].mxu1  ;;  %v868_v40 = vpop.f32.mrb[3].mxu0 }
 0x10e   : > { %v869_v41 = vadd.f32 %v868_v40, %v867_v37  ;;  %v924_v42 = vpop.f32.mrb[3].mxu1  ;;  %v1362_v43 = vadd.f32 %v922_v35, %v470_v36  ;;  %v719_v37 = vld [vmem:[%s1370_s25 + $0x8] sm:$0xff] }
 0x10f   : > { %v925_v44 = vadd.f32 %v924_v42, %v923_v39  ;;  %v723_v40 = vld [vmem:[%s1370_s25 + $0x28] sm:$0xff]  ;;  %v718_v42 = vld [vmem:[%s1370_s25] sm:$0xff] }
 0x110   : > { %v475_v45 = vadd.f32 %v869_v41, %v346_v38  ;;  %v870_v46 = vpop.f32.mrb[4].mxu0 }
 0x111   : > { %v926_v48 = vpop.f32.mrb[4].mxu1  ;;  %v871_v49 = vpop.f32.mrb[5].mxu0 }
 0x112   : > { %v872_v50 = vadd.f32 %v871_v49, %v870_v46  ;;  %v927_v51 = vpop.f32.mrb[5].mxu1  ;;  %v580_v52 = vadd.f32 %v925_v44, %v475_v45 }
 0x113   : > { %v928_v53 = vadd.f32 %v927_v51, %v926_v48 }
 0x114   : > { %v480_v54 = vadd.f32 %v872_v50, %v351_v47  ;;  %v873_v55 = vpop.f32.mrb[6].mxu0  ;;  %v722_v47 = vld [vmem:[%s1370_s25 + $0x20] sm:$0xff] }
 0x115   : > { %v929_v56 = vpop.f32.mrb[6].mxu1  ;;  %v874_v57 = vpop.f32.mrb[7].mxu0 }
 0x116   : > { %v875_v58 = vadd.f32 %v874_v57, %v873_v55  ;;  %v930_v59 = vpop.f32.mrb[7].mxu1  ;;  %v1364_v60 = vadd.f32 %v928_v53, %v480_v54  ;;  %v721_v54 = vld [vmem:[%s1370_s25 + $0x18] sm:$0xff] }
 0x117   : > { %v931_v61 = vadd.f32 %v930_v59, %v929_v56  ;;  %v725_v57 = vld [vmem:[%s1370_s25 + $0x38] sm:$0xff]  ;;  %v720_v59 = vld [vmem:[%s1370_s25 + $0x10] sm:$0xff] }
 0x118   : > { %v485_v63 = vadd.f32 %v875_v58, %v356_v62  ;;  %v876_v0 = vpop.f32.mrb[8].mxu0 }
 0x119   : > { %v932_v1 = vpop.f32.mrb[8].mxu1  ;;  %v877_v2 = vpop.f32.mrb[9].mxu0 }
 0x11a   : > { %v878_v3 = vadd.f32 %v877_v2, %v876_v0  ;;  %v933_v4 = vpop.f32.mrb[9].mxu1  ;;  %v590_v5 = vadd.f32 %v931_v61, %v485_v63  ;;  %v724_v0 = vld [vmem:[%s1370_s25 + $0x30] sm:$0xff] }
 0x11b   : > { %v934_v6 = vadd.f32 %v933_v4, %v932_v1 }
 0x11c   : > { %v490_v8 = vadd.f32 %v878_v3, %v361_v7  ;;  %v879_v9 = vpop.f32.mrb[10].mxu0 }
 0x11d   : > { %v935_v10 = vpop.f32.mrb[10].mxu1  ;;  %v880_v11 = vpop.f32.mrb[11].mxu0 }
 0x11e   : > { %v881_v12 = vadd.f32 %v880_v11, %v879_v9  ;;  %v936_v13 = vpop.f32.mrb[11].mxu1  ;;  %v595_v14 = vadd.f32 %v934_v6, %v490_v8 }
 0x11f   : > { %v937_v16 = vadd.f32 %v936_v13, %v935_v10 }
 0x120   : > { %v495_v17 = vadd.f32 %v881_v12, %v366_v15  ;;  %v882_v18 = vpop.f32.mrb[12].mxu0 }
 0x121   : > { %v938_v19 = vpop.f32.mrb[12].mxu1  ;;  %v883_v20 = vpop.f32.mrb[13].mxu0 }
 0x122   : > { %v884_v21 = vadd.f32 %v883_v20, %v882_v18  ;;  %v939_v22 = vpop.f32.mrb[13].mxu1  ;;  %v600_v23 = vadd.f32 %v937_v16, %v495_v17 }
 0x123   : > { %v940_v25 = vadd.f32 %v939_v22, %v938_v19 }
 0x124   : > { %v500_v26 = vadd.f32 %v884_v21, %v371_v24  ;;  %v885_v27 = vpop.f32.mrb[14].mxu0 }
 0x125   : > { %v941_v28 = vpop.f32.mrb[14].mxu1  ;;  %v886_v29 = vpop.f32.mrb[15].mxu0 }
 0x126   : > { %v887_v30 = vadd.f32 %v886_v29, %v885_v27  ;;  %v942_v31 = vpop.f32.mrb[15].mxu1  ;;  %v605_v32 = vadd.f32 %v940_v25, %v500_v26 }
 0x127   : > { %v943_v34 = vadd.f32 %v942_v31, %v941_v28 }
 0x128   : > { %v505_v35 = vadd.f32 %v887_v30, %v376_v33  ;;  %v978_v36 = vpop.f32.mrb[16].mxu0 }
 0x129   : > { %v685_v38 = vadd.f32 %v978_v36, %v580_v52  ;;  %v984_v39 = vpop.f32.mrb[16].mxu1  ;;  %v679_v41 = vpop.f32.mrb[17].mxu0 }
 0x12a   : > { %v705_v44 = vadd.f32 %v984_v39, %v600_v23  ;;  %v680_v45 = vadd.f32 %v679_v41, %v1362_v43  ;;  %v699_v46 = vpop.f32.mrb[17].mxu1  ;;  %v610_v48 = vadd.f32 %v943_v34, %v505_v35 }
 0x12b   : > { %v727_v49 = vadd.f32 %v719_v37, %v685_v38  ;;  %v700_v50 = vadd.f32 %v699_v46, %v595_v14 }
 0x12c   : > { %v731_v51 = vadd.f32 %v723_v40, %v705_v44  ;;  %v726_v52 = vadd.f32 %v718_v42, %v680_v45  ;;  %v981_v53 = vpop.f32.mrb[18].mxu0 }
 0x12d   : > { %736 = vst.msk [vmem:[%s1378_s27 + $0x8] sm:$0xff] %vm734_vm1, %v727_v49  ;;  %v730_v55 = vadd.f32 %v722_v47, %v700_v50  ;;  %v695_v56 = vadd.f32 %v981_v53, %v590_v5  ;;  %v987_v43 = vpop.f32.mrb[18].mxu1  ;;  %v689_v58 = vpop.f32.mrb[19].mxu0 }
 0x12e   : > { %740 = vst.msk [vmem:[%s1378_s27 + $0x28] sm:$0xff] %vm734_vm1, %v731_v51  ;;  %735 = vst.msk [vmem:[%s1378_s27] sm:$0xff] %vm734_vm1, %v726_v52  ;;  %v715_v61 = vadd.f32 %v987_v43, %v610_v48  ;;  %v690_v62 = vadd.f32 %v689_v58, %v1364_v60  ;;  %v709_v63 = vpop.f32.mrb[19].mxu1 }
 0x12f   : > { %739 = vst.msk [vmem:[%s1378_s27 + $0x20] sm:$0xff] %vm734_vm1, %v730_v55  ;;  %v729_v1 = vadd.f32 %v721_v54, %v695_v56  ;;  %v710_v2 = vadd.f32 %v709_v63, %v605_v32 }
 0x130   : > { %v733_v3 = vadd.f32 %v725_v57, %v715_v61  ;;  %v728_v4 = vadd.f32 %v720_v59, %v690_v62 }
 0x131   : > { %738 = vst.msk [vmem:[%s1378_s27 + $0x18] sm:$0xff] %vm734_vm1, %v729_v1  ;;  %v732_v5 = vadd.f32 %v724_v0, %v710_v2 }
 0x132   : > { %742 = vst.msk [vmem:[%s1378_s27 + $0x38] sm:$0xff] %vm734_vm1, %v733_v3  ;;  %737 = vst.msk [vmem:[%s1378_s27 + $0x10] sm:$0xff] %vm734_vm1, %v728_v4 }
 0x133   : > { %741 = vst.msk [vmem:[%s1378_s27 + $0x30] sm:$0xff] %vm734_vm1, %v732_v5 }
 0x134 PF: > { %s14_s15 = sadd.s32 1, %s1094_s15  }
 0x135   : > { %p11_p4 = scmp.ge.s32.totalorder %s14_s15, 4  }
 0x137   :  { %13 = sbr.rel (!%p11_p4) target bundleno = 1 (0x1), region = 69 }

// kernel: vnet_forward.67
= control target key start
LH: loop header
LB: loop body
LE: loop exit
PB: predicated region body
PF: predicated region fallthrough
CT: control target
= control target key end

     0   :  { %s1327_s18 = smov 0   ;;  %s1702_s0 = inlined_call_operand.vmem [shape: f32[2,576,4], index: 0, kind: input, shape index: {}]   ;;  %s1703_s1 = inlined_call_operand.vmem [shape: f32[64,576], index: 1, kind: input, shape index: {}]   ;;  %s1704_s2 = inlined_call_operand.vmem [shape: f32[64,1], index: 2, kind: input, shape index: {}]   ;;  %s1705_s3 = inlined_call_operand.vmem [shape: f32[64,1], index: 3, kind: input, shape index: {}]   ;;  %s1706_s4 = inlined_call_operand.vmem [shape: f32[64,1], index: 4, kind: input, shape index: {}]   ;;  %s1707_s5 = inlined_call_operand.vmem [shape: f32[2,64,4], index: 5, kind: output, shape index: {}]  }
   0x1 LB: > { %s1007_s19 = sadd.s32 4294967295, %s1294_s18   ;;  %p1011_p0 = scmp.ge.s32.totalorder %s1294_s18, 1  ;;  %s1294_s18 = sphi %s1327_s18, %s15_s18  }
   0x2   : > { %p187_p1 = scmp.lt.s32.totalorder %s1294_s18, 3 }
   0x4   : > { %p188_p2 = pnand %p1011_p0, %p187_p1 }
   0x5   : > { %p215_p3 = scmp.lt.s32.totalorder (!%p188_p2), %s1007_s19, 1  ;;  %v226_v0 = vld [vmem:[%s1703_s1 + $0x8] sm:$0xff] (!%p188_p2)  ;;  %v228_v1 = vld [vmem:[%s1703_s1 + $0x18] sm:$0xff] (!%p188_p2)  ;;  %v1296_v2 = vmov (!%p188_p2), 0   ;;  %vm385_vm0 = vcmask (!%p188_p2), 523264   ;;  %vm725_vm1 = vcmask (!%p188_p2), 31744  }
   0x6   : > { %191 = sbr.rel (%p188_p2) target bundleno = 559 (0x22f), region = 40  ;;  %474 = vmatprep.mubr.f32.mxu0 (!%p188_p2), %v226_v0  ;;  %579 = vmatprep.mubr.f32.mxu1 (!%p188_p2), %v228_v1 }
   0x7   : > { %1284 = vset.pattern.permute.xlu0 (!%p188_p2), %v1296_v2  ;;  %1285 = vset.pattern.permute.xlu1 (!%p188_p2), %v1296_v2 }
   0xd   : > { %s1709_s19 = smov (!%p215_p3, %s1007_s19), 1 }
   0xe   : > { %s1270_s24 = smul.u32 576, %s1709_s19  ;;  %s1025_s14 = sshll.u32 %s1709_s19, 6 }
   0xf   : > { %s224_s17 = scalar_lea.vmem %s1707_s5, %s1025_s14 }
  0x10   : > { %s1347_s27 = scalar_lea.vmem %s1702_s0, %s1270_s24 }
  0x11   : > { %v281_v3 = vld [vmem:[%s1347_s27 + $0x80] sm:$0xff]  ;;  %v282_v4 = vld [vmem:[%s1347_s27 + $0x88] sm:$0xff]  ;;  %v283_v14 = vld [vmem:[%s1347_s27 + $0x90] sm:$0xff] }
  0x12   : > { %v313_v5 = vld [vmem:[%s1347_s27 + $0x180] sm:$0xff]  ;;  %v1182_v6 = vpack.c.bf16 %v282_v4, %v281_v3  ;;  %v314_v7 = vld [vmem:[%s1347_s27 + $0x188] sm:$0xff]  ;;  %v284_v16 = vld [vmem:[%s1347_s27 + $0x98] sm:$0xff] }
  0x13   : > { %v265_v8 = vld [vmem:[%s1347_s27] sm:$0xff]  ;;  %v266_v9 = vld [vmem:[%s1347_s27 + $0x8] sm:$0xff]  ;;  %v1214_v10 = vpack.c.bf16 %v314_v7, %v313_v5  ;;  %v315_v17 = vld [vmem:[%s1347_s27 + $0x190] sm:$0xff]  ;;  %v1186_v19 = vpack.c.bf16 %v284_v16, %v283_v14 }
  0x14   : > { %v1184_v11 = vpack.c.bf16 %v266_v9, %v265_v8  ;;  %v297_v12 = vld [vmem:[%s1347_s27 + $0x100] sm:$0xff]  ;;  %v298_v13 = vld [vmem:[%s1347_s27 + $0x108] sm:$0xff]  ;;  %1183 = vmatprep.subr.bf16.mxu0 %v1182_v6  ;;  %v316_v18 = vld [vmem:[%s1347_s27 + $0x198] sm:$0xff] }
  0x15   : > { %v1216_v15 = vpack.c.bf16 %v298_v13, %v297_v12  ;;  %1215 = vmatprep.subr.bf16.mxu1 %v1214_v10  ;;  %v1218_v20 = vpack.c.bf16 %v316_v18, %v315_v17  ;;  %v267_v21 = vld [vmem:[%s1347_s27 + $0x10] sm:$0xff]  ;;  %v268_v22 = vld [vmem:[%s1347_s27 + $0x18] sm:$0xff]  ;;  %v285_v26 = vld [vmem:[%s1347_s27 + $0xa0] sm:$0xff] }
  0x16   : > { %1185 = vmatpush3.bf16.msra.mxu0 %v1184_v11  ;;  %v299_v23 = vld [vmem:[%s1347_s27 + $0x110] sm:$0xff]  ;;  %v1188_v24 = vpack.c.bf16 %v268_v22, %v267_v21  ;;  %v300_v25 = vld [vmem:[%s1347_s27 + $0x118] sm:$0xff]  ;;  %v286_v27 = vld [vmem:[%s1347_s27 + $0xa8] sm:$0xff] }
  0x17   : > { %1217 = vmatpush3.bf16.msra.mxu1 %v1216_v15  ;;  %1187 = vmatprep.subr.bf16.mxu0 %v1186_v19  ;;  %v1220_v28 = vpack.c.bf16 %v300_v25, %v299_v23  ;;  %v1190_v29 = vpack.c.bf16 %v286_v27, %v285_v26  ;;  %v317_v30 = vld [vmem:[%s1347_s27 + $0x1a0] sm:$0xff]  ;;  %v318_v31 = vld [vmem:[%s1347_s27 + $0x1a8] sm:$0xff]  ;;  %v287_v38 = vld [vmem:[%s1347_s27 + $0xb0] sm:$0xff] }
  0x18   : > { %1219 = vmatprep.subr.bf16.mxu1 %v1218_v20  ;;  %v269_v32 = vld [vmem:[%s1347_s27 + $0x20] sm:$0xff]  ;;  %v1222_v33 = vpack.c.bf16 %v318_v31, %v317_v30  ;;  %v270_v34 = vld [vmem:[%s1347_s27 + $0x28] sm:$0xff]  ;;  %v288_v39 = vld [vmem:[%s1347_s27 + $0xb8] sm:$0xff] }
  0x19   : > { %v301_v35 = vld [vmem:[%s1347_s27 + $0x120] sm:$0xff]  ;;  %v302_v36 = vld [vmem:[%s1347_s27 + $0x128] sm:$0xff]  ;;  %v1192_v37 = vpack.c.bf16 %v270_v34, %v269_v32  ;;  %v319_v40 = vld [vmem:[%s1347_s27 + $0x1b0] sm:$0xff]  ;;  %v1194_v42 = vpack.c.bf16 %v288_v39, %v287_v38 }
  0x1a   : > { %1189 = vmatpush3.bf16.msra.mxu0 %v1188_v24  ;;  %v1224_v41 = vpack.c.bf16 %v302_v36, %v301_v35  ;;  %v320_v43 = vld [vmem:[%s1347_s27 + $0x1b8] sm:$0xff]  ;;  %v271_v44 = vld [vmem:[%s1347_s27 + $0x30] sm:$0xff]  ;;  %v289_v49 = vld [vmem:[%s1347_s27 + $0xc0] sm:$0xff] }
  0x1b   : > { %1221 = vmatpush3.bf16.msra.mxu1 %v1220_v28  ;;  %1191 = vmatprep.subr.bf16.mxu0 %v1190_v29  ;;  %v272_v45 = vld [vmem:[%s1347_s27 + $0x38] sm:$0xff]  ;;  %v1226_v46 = vpack.c.bf16 %v320_v43, %v319_v40  ;;  %v303_v47 = vld [vmem:[%s1347_s27 + $0x130] sm:$0xff]  ;;  %v290_v50 = vld [vmem:[%s1347_s27 + $0xc8] sm:$0xff] }
  0x1c   : > { %1223 = vmatprep.subr.bf16.mxu1 %v1222_v33  ;;  %v304_v48 = vld [vmem:[%s1347_s27 + $0x138] sm:$0xff]  ;;  %v321_v51 = vld [vmem:[%s1347_s27 + $0x1c0] sm:$0xff]  ;;  %v322_v52 = vld [vmem:[%s1347_s27 + $0x1c8] sm:$0xff]  ;;  %v1196_v53 = vpack.c.bf16 %v272_v45, %v271_v44  ;;  %v1198_v55 = vpack.c.bf16 %v290_v50, %v289_v49 }
  0x1d   : > { %v1228_v54 = vpack.c.bf16 %v304_v48, %v303_v47  ;;  %v273_v56 = vld [vmem:[%s1347_s27 + $0x40] sm:$0xff]  ;;  %v274_v57 = vld [vmem:[%s1347_s27 + $0x48] sm:$0xff]  ;;  %v1230_v59 = vpack.c.bf16 %v322_v52, %v321_v51  ;;  %v291_v61 = vld [vmem:[%s1347_s27 + $0xd0] sm:$0xff] }
  0x1e   : > { %1193 = vmatpush3.bf16.msra.mxu0 %v1192_v37  ;;  %v305_v58 = vld [vmem:[%s1347_s27 + $0x140] sm:$0xff]  ;;  %v306_v60 = vld [vmem:[%s1347_s27 + $0x148] sm:$0xff]  ;;  %v292_v62 = vld [vmem:[%s1347_s27 + $0xd8] sm:$0xff]  ;;  %v1200_v1 = vpack.c.bf16 %v274_v57, %v273_v56 }
  0x1f   : > { %1225 = vmatpush3.bf16.msra.mxu1 %v1224_v41  ;;  %1195 = vmatprep.subr.bf16.mxu0 %v1194_v42  ;;  %v323_v63 = vld [vmem:[%s1347_s27 + $0x1d0] sm:$0xff]  ;;  %v324_v0 = vld [vmem:[%s1347_s27 + $0x1d8] sm:$0xff]  ;;  %v1232_v2 = vpack.c.bf16 %v306_v60, %v305_v58  ;;  %v1202_v3 = vpack.c.bf16 %v292_v62, %v291_v61  ;;  %v293_v9 = vld [vmem:[%s1347_s27 + $0xe0] sm:$0xff] }
  0x20   : > { %1227 = vmatprep.subr.bf16.mxu1 %v1226_v46  ;;  %v275_v4 = vld [vmem:[%s1347_s27 + $0x50] sm:$0xff]  ;;  %v276_v5 = vld [vmem:[%s1347_s27 + $0x58] sm:$0xff]  ;;  %v1234_v7 = vpack.c.bf16 %v324_v0, %v323_v63  ;;  %v294_v10 = vld [vmem:[%s1347_s27 + $0xe8] sm:$0xff] }
  0x21   : > { %v307_v6 = vld [vmem:[%s1347_s27 + $0x150] sm:$0xff]  ;;  %v308_v8 = vld [vmem:[%s1347_s27 + $0x158] sm:$0xff]  ;;  %v325_v11 = vld [vmem:[%s1347_s27 + $0x1e0] sm:$0xff]  ;;  %v1204_v13 = vpack.c.bf16 %v276_v5, %v275_v4  ;;  %v1206_v15 = vpack.c.bf16 %v294_v10, %v293_v9 }
  0x22   : > { %1197 = vmatpush3.bf16.msra.mxu0 %v1196_v53  ;;  %v326_v12 = vld [vmem:[%s1347_s27 + $0x1e8] sm:$0xff]  ;;  %v1236_v14 = vpack.c.bf16 %v308_v8, %v307_v6  ;;  %v277_v16 = vld [vmem:[%s1347_s27 + $0x60] sm:$0xff]  ;;  %v295_v21 = vld [vmem:[%s1347_s27 + $0xf0] sm:$0xff] }
  0x23   : > { %1229 = vmatpush3.bf16.msra.mxu1 %v1228_v54  ;;  %1199 = vmatprep.subr.bf16.mxu0 %v1198_v55  ;;  %v278_v17 = vld [vmem:[%s1347_s27 + $0x68] sm:$0xff]  ;;  %v309_v18 = vld [vmem:[%s1347_s27 + $0x160] sm:$0xff]  ;;  %v1238_v19 = vpack.c.bf16 %v326_v12, %v325_v11  ;;  %v296_v22 = vld [vmem:[%s1347_s27 + $0xf8] sm:$0xff] }
  0x24   : > { %1231 = vmatprep.subr.bf16.mxu1 %v1230_v59  ;;  %v310_v20 = vld [vmem:[%s1347_s27 + $0x168] sm:$0xff]  ;;  %v327_v23 = vld [vmem:[%s1347_s27 + $0x1f0] sm:$0xff]  ;;  %v328_v24 = vld [vmem:[%s1347_s27 + $0x1f8] sm:$0xff]  ;;  %v1208_v25 = vpack.c.bf16 %v278_v17, %v277_v16  ;;  %v1210_v27 = vpack.c.bf16 %v296_v22, %v295_v21 }
  0x25   : > { %v1240_v26 = vpack.c.bf16 %v310_v20, %v309_v18  ;;  %v279_v28 = vld [vmem:[%s1347_s27 + $0x70] sm:$0xff]  ;;  %v280_v29 = vld [vmem:[%s1347_s27 + $0x78] sm:$0xff]  ;;  %v1242_v31 = vpack.c.bf16 %v328_v24, %v327_v23  ;;  %v329_v33 = vld [vmem:[%s1347_s27 + $0x200] sm:$0xff] }
  0x26   : > { %1201 = vmatpush3.bf16.msra.mxu0 %v1200_v1  ;;  %v311_v30 = vld [vmem:[%s1347_s27 + $0x170] sm:$0xff]  ;;  %v312_v32 = vld [vmem:[%s1347_s27 + $0x178] sm:$0xff]  ;;  %v330_v34 = vld [vmem:[%s1347_s27 + $0x208] sm:$0xff]  ;;  %v1212_v35 = vpack.c.bf16 %v280_v29, %v279_v28 }
  0x27   : > { %1233 = vmatpush3.bf16.msra.mxu1 %v1232_v2  ;;  %1203 = vmatprep.subr.bf16.mxu0 %v1202_v3  ;;  %v1244_v36 = vpack.c.bf16 %v312_v32, %v311_v30  ;;  %v1246_v37 = vpack.c.bf16 %v330_v34, %v329_v33  ;;  %v337_v38 = vld [vmem:[%s1704_s2] sm:$0xff]  ;;  %v331_v39 = vld [vmem:[%s1347_s27 + $0x210] sm:$0xff]  ;;  %v332_v40 = vld [vmem:[%s1347_s27 + $0x218] sm:$0xff] }
  0x28   : > { %1235 = vmatprep.subr.bf16.mxu1 %v1234_v7  ;;  %347 = vperm.xlu0 %1284, %v337_v38   ;;  %v339_v41 = vld [vmem:[%s1704_s2 + $0x10] sm:$0xff]  ;;  %v225_v42 = vld [vmem:[%s1703_s1] sm:$0xff]  ;;  %v338_v43 = vld [vmem:[%s1704_s2 + $0x8] sm:$0xff]  ;;  %v1250_v47 = vpack.c.bf16 %v332_v40, %v331_v39 }
  0x29   : > { %357 = vperm.xlu1 %1285, %v339_v41   ;;  %v227_v44 = vld [vmem:[%s1703_s1 + $0x10] sm:$0xff]  ;;  %v233_v46 = vld [vmem:[%s1703_s1 + $0x40] sm:$0xff]  ;;  %v334_v49 = vld [vmem:[%s1347_s27 + $0x228] sm:$0xff] }
  0x2a   : > { %1205 = vmatpush3.bf16.msra.mxu0 %v1204_v13  ;;  %v231_v45 = vld [vmem:[%s1703_s1 + $0x30] sm:$0xff]  ;;  %v333_v48 = vld [vmem:[%s1347_s27 + $0x220] sm:$0xff]  ;;  %v230_v50 = vld [vmem:[%s1703_s1 + $0x28] sm:$0xff] }
  0x2b   : > { %1237 = vmatpush3.bf16.msra.mxu1 %v1236_v14  ;;  %1207 = vmatprep.subr.bf16.mxu0 %v1206_v15  ;;  %v232_v51 = vld [vmem:[%s1703_s1 + $0x38] sm:$0xff]  ;;  %v238_v53 = vld [vmem:[%s1703_s1 + $0x68] sm:$0xff]  ;;  %v1254_v54 = vpack.c.bf16 %v334_v49, %v333_v48  ;;  %v335_v55 = vld [vmem:[%s1347_s27 + $0x230] sm:$0xff] }
  0x2c   : > { %1239 = vmatprep.subr.bf16.mxu1 %v1238_v19  ;;  %352 = vperm.xlu0 %1284, %v338_v43   ;;  %v236_v52 = vld [vmem:[%s1703_s1 + $0x58] sm:$0xff]  ;;  %v235_v57 = vld [vmem:[%s1703_s1 + $0x50] sm:$0xff]  ;;  %v237_v58 = vld [vmem:[%s1703_s1 + $0x60] sm:$0xff] }
  0x2d   : > { %v336_v56 = vld [vmem:[%s1347_s27 + $0x238] sm:$0xff]  ;;  %v241_v59 = vld [vmem:[%s1703_s1 + $0x80] sm:$0xff]  ;;  %v243_v60 = vld [vmem:[%s1703_s1 + $0x90] sm:$0xff] }
  0x2e   : > { %1209 = vmatpush3.bf16.msra.mxu0 %v1208_v25  ;;  %v1258_v61 = vpack.c.bf16 %v336_v56, %v335_v55  ;;  %v240_v62 = vld [vmem:[%s1703_s1 + $0x78] sm:$0xff]  ;;  %v242_v63 = vld [vmem:[%s1703_s1 + $0x88] sm:$0xff]  ;;  %v245_v3 = vld [vmem:[%s1703_s1 + $0xa0] sm:$0xff] }
  0x2f   : > { %1241 = vmatpush3.bf16.msra.mxu1 %v1240_v26  ;;  %1211 = vmatprep.subr.bf16.mxu0 %v1210_v27  ;;  %v246_v0 = vld [vmem:[%s1703_s1 + $0xa8] sm:$0xff]  ;;  %v248_v1 = vld [vmem:[%s1703_s1 + $0xb8] sm:$0xff]  ;;  %v341_v4 = vld [vmem:[%s1704_s2 + $0x20] sm:$0xff] }
  0x30   : > { %1243 = vmatprep.subr.bf16.mxu1 %v1242_v31  ;;  %v340_v2 = vld [vmem:[%s1704_s2 + $0x18] sm:$0xff]  ;;  %v247_v5 = vld [vmem:[%s1703_s1 + $0xb0] sm:$0xff]  ;;  %v253_v7 = vld [vmem:[%s1703_s1 + $0xe0] sm:$0xff]  ;;  %367 = vperm.xlu0 %1284, %v341_v4  }
  0x31   : > { %v251_v6 = vld [vmem:[%s1703_s1 + $0xd0] sm:$0xff]  ;;  %362 = vperm.xlu1 %1285, %v340_v2   ;;  %v342_v8 = vld [vmem:[%s1704_s2 + $0x28] sm:$0xff]  ;;  %v252_v11 = vld [vmem:[%s1703_s1 + $0xd8] sm:$0xff] }
  0x32   : > { %1213 = vmatpush3.bf16.msra.mxu0 %v1212_v35  ;;  %v250_v9 = vld [vmem:[%s1703_s1 + $0xc8] sm:$0xff]  ;;  %v343_v10 = vld [vmem:[%s1704_s2 + $0x30] sm:$0xff]  ;;  %v256_v12 = vld [vmem:[%s1703_s1 + $0xf8] sm:$0xff] }
  0x33   : > { %1245 = vmatpush3.bf16.msra.mxu1 %v1244_v36  ;;  %1247 = vmatprep.subr.bf16.mxu0 %v1246_v37  ;;  %v258_v13 = vld [vmem:[%s1703_s1 + $0x108] sm:$0xff]  ;;  %v344_v14 = vld [vmem:[%s1704_s2 + $0x38] sm:$0xff]  ;;  %v255_v15 = vld [vmem:[%s1703_s1 + $0xf0] sm:$0xff] }
  0x34   : > { %1262 = vmatprep.subr.bf16.mxu1 %v1246_v37  ;;  %377 = vperm.xlu0 %1284, %v343_v10   ;;  %v257_v16 = vld [vmem:[%s1703_s1 + $0x100] sm:$0xff]  ;;  %v263_v18 = vld [vmem:[%s1703_s1 + $0x130] sm:$0xff]  ;;  %v260_v19 = vld [vmem:[%s1703_s1 + $0x118] sm:$0xff] }
  0x35   : > { %475 = vmatmul.mubr.f32.vlgmr.msra.gmra.mrb[0].mxu0 %v225_v42  ;;  %372 = vperm.xlu1 %1285, %v342_v8   ;;  %v261_v17 = vld [vmem:[%s1703_s1 + $0x120] sm:$0xff]  ;;  %v262_v20 = vld [vmem:[%s1703_s1 + $0x128] sm:$0xff]  ;;  %v239_v25 = vld [vmem:[%s1703_s1 + $0x70] sm:$0xff] }
  0x36   : > { %580 = vmatmul.mubr.f32.vlgmr.msra.gmra.mrb[0].mxu1 %v227_v44  ;;  %1249 = vmatpush3.bf16.msra.mxu0 %v1246_v37  ;;  %v229_v21 = vld [vmem:[%s1703_s1 + $0x20] sm:$0xff]  ;;  %v234_v23 = vld [vmem:[%s1703_s1 + $0x48] sm:$0xff]  ;;  %v259_v26 = vld [vmem:[%s1703_s1 + $0x110] sm:$0xff] }
  0x37   : > { %479 = vmatprep.mubr.f32.mxu0 %v231_v45  ;;  %584 = vmatprep.mubr.f32.mxu1 %v233_v46  ;;  %v249_v22 = vld [vmem:[%s1703_s1 + $0xc0] sm:$0xff]  ;;  %v254_v24 = vld [vmem:[%s1703_s1 + $0xe8] sm:$0xff]  ;;  %v244_v27 = vld [vmem:[%s1703_s1 + $0x98] sm:$0xff] }
  0x38   : > { %1251 = vmatprep.subr.bf16.mxu0 %v1250_v47  ;;  %1266 = vmatpush3.bf16.msra.mxu1 %v1246_v37  ;;  %v264_v28 = vld [vmem:[%s1703_s1 + $0x138] sm:$0xff] }
  0x39   : > { %480 = vmatmul.mubr.f32.gmra.mrb[2].mxu0 %v230_v50  ;;  %1263 = vmatprep.subr.bf16.mxu1 %v1250_v47 }
  0x3a   : > { %585 = vmatmul.mubr.f32.gmra.mrb[2].mxu1 %v232_v51  ;;  %484 = vmatprep.mubr.f32.mxu0 %v236_v52 }
  0x3b   : > { %589 = vmatprep.mubr.f32.mxu1 %v238_v53  ;;  %1253 = vmatpush3.bf16.msra.mxu0 %v1250_v47 }
  0x3c   : > { %1255 = vmatprep.subr.bf16.mxu0 %v1254_v54  ;;  %1267 = vmatpush3.bf16.msra.mxu1 %v1250_v47 }
  0x3d   : > { %485 = vmatmul.mubr.f32.gmra.mrb[4].mxu0 %v235_v57  ;;  %1264 = vmatprep.subr.bf16.mxu1 %v1254_v54 }
  0x3e   : > { %590 = vmatmul.mubr.f32.gmra.mrb[4].mxu1 %v237_v58  ;;  %489 = vmatprep.mubr.f32.mxu0 %v241_v59 }
  0x3f   : > { %594 = vmatprep.mubr.f32.mxu1 %v243_v60  ;;  %1257 = vmatpush3.bf16.msra.mxu0 %v1254_v54 }
  0x40   : > { %1259 = vmatprep.subr.bf16.mxu0 %v1258_v61  ;;  %1268 = vmatpush3.bf16.msra.mxu1 %v1254_v54 }
  0x41   : > { %490 = vmatmul.mubr.f32.gmra.mrb[6].mxu0 %v240_v62  ;;  %1265 = vmatprep.subr.bf16.mxu1 %v1258_v61 }
  0x42   : > { %595 = vmatmul.mubr.f32.gmra.mrb[6].mxu1 %v242_v63  ;;  %494 = vmatprep.mubr.f32.mxu0 %v246_v0 }
  0x43   : > { %599 = vmatprep.mubr.f32.mxu1 %v248_v1  ;;  %1261 = vmatpush3.bf16.msra.mxu0 %v1258_v61 }
  0x44   : > { %1269 = vmatpush3.bf16.msra.mxu1 %v1258_v61  ;;  %382 = vperm.xlu1 %1285, %v344_v14  }
  0x45   : > { %495 = vmatmul.mubr.f32.gmra.mrb[8].mxu0 %v245_v3 }
  0x46   : > { %600 = vmatmul.mubr.f32.gmra.mrb[8].mxu1 %v247_v5  ;;  %499 = vmatprep.mubr.f32.mxu0 %v251_v6 }
  0x47   : > { %604 = vmatprep.mubr.f32.mxu1 %v253_v7 }
  0x49   : > { %500 = vmatmul.mubr.f32.gmra.mrb[10].mxu0 %v250_v9 }
  0x4a   : > { %605 = vmatmul.mubr.f32.gmra.mrb[10].mxu1 %v252_v11  ;;  %504 = vmatprep.mubr.f32.mxu0 %v256_v12 }
  0x4b   : > { %609 = vmatprep.mubr.f32.mxu1 %v258_v13 }
  0x4d   : > { %505 = vmatmul.mubr.f32.gmra.mrb[12].mxu0 %v255_v15 }
  0x4e   : > { %610 = vmatmul.mubr.f32.gmra.mrb[12].mxu1 %v257_v16  ;;  %509 = vmatprep.mubr.f32.mxu0 %v261_v17 }
  0x4f   : > { %614 = vmatprep.mubr.f32.mxu1 %v263_v18 }
  0x51   : > { %510 = vmatmul.mubr.f32.gmra.mrb[14].mxu0 %v260_v19 }
  0x52   : > { %615 = vmatmul.mubr.f32.gmra.mrb[14].mxu1 %v262_v20  ;;  %1170 = vmatprep.mubr.msk.f32.mxu0 %vm385_vm0, %v229_v21 }
  0x53   : > { %1176 = vmatprep.mubr.msk.f32.mxu1 %vm385_vm0, %v249_v22 }
  0x55   : > { %1171 = vmatmul.mubr.msk.f32.vlgmr.msra.gmra.mrb[16].mxu0 %vm385_vm0, %v234_v23 }
  0x56   : > { %1177 = vmatmul.mubr.msk.f32.vlgmr.msra.gmra.mrb[16].mxu1 %vm385_vm0, %v254_v24  ;;  %1173 = vmatprep.mubr.msk.f32.mxu0 %vm385_vm0, %v239_v25 }
  0x57   : > { %1179 = vmatprep.mubr.msk.f32.mxu1 %vm385_vm0, %v259_v26 }
  0x59   : > { %1174 = vmatmul.mubr.msk.f32.gmra.mrb[18].mxu0 %vm385_vm0, %v244_v27 }
  0x5a   : > { %1180 = vmatmul.mubr.msk.f32.gmra.mrb[18].mxu1 %vm385_vm0, %v264_v28 }
  0xa7   : > { %v348_v29 = vpop.permute.xlu0 %347 }
  0xa8   : > { %v358_v43 = vpop.permute.xlu1 %357 }
  0xab   : > { %v353_v38 = vpop.permute.xlu0 %352 }
  0xaf   : > { %v368_v1 = vpop.permute.xlu0 %367 }
  0xb0   : > { %v363_v56 = vpop.permute.xlu1 %362 }
  0xb3   : > { %v378_v19 = vpop.permute.xlu0 %377 }
  0xb4   : > { %v373_v10 = vpop.permute.xlu1 %372 }
  0xc3   : > { %v383_v28 = vpop.permute.xlu1 %382 }
 0x108   : > { %v1058_v30 = vpop.f32.mrb[0].mxu0 }
 0x109   : > { %v1059_v31 = vpop.f32.mrb[1].mxu0  ;;  %v1114_v32 = vpop.f32.mrb[0].mxu1 }
 0x10a   : > { %v1060_v33 = vadd.f32 %v1059_v31, %v1058_v30  ;;  %v1115_v34 = vpop.f32.mrb[1].mxu1 }
 0x10b   : > { %v1116_v35 = vadd.f32 %v1115_v34, %v1114_v32 }
 0x10c   : > { %v477_v36 = vadd.f32 %v1060_v33, %v348_v29  ;;  %v1061_v37 = vpop.f32.mrb[2].mxu0 }
 0x10d   : > { %v1062_v39 = vpop.f32.mrb[3].mxu0  ;;  %v1117_v40 = vpop.f32.mrb[2].mxu1 }
 0x10e   : > { %v1063_v41 = vadd.f32 %v1062_v39, %v1061_v37  ;;  %v1118_v42 = vpop.f32.mrb[3].mxu1  ;;  %v582_v44 = vadd.f32 %v1116_v35, %v477_v36 }
 0x10f   : > { %v1119_v45 = vadd.f32 %v1118_v42, %v1117_v40 }
 0x110   : > { %v482_v46 = vadd.f32 %v1063_v41, %v353_v38  ;;  %v1064_v47 = vpop.f32.mrb[4].mxu0 }
 0x111   : > { %v1065_v48 = vpop.f32.mrb[5].mxu0  ;;  %v1120_v49 = vpop.f32.mrb[4].mxu1 }
 0x112   : > { %v1066_v50 = vadd.f32 %v1065_v48, %v1064_v47  ;;  %v1121_v51 = vpop.f32.mrb[5].mxu1  ;;  %v587_v52 = vadd.f32 %v1119_v45, %v482_v46 }
 0x113   : > { %v1122_v53 = vadd.f32 %v1121_v51, %v1120_v49 }
 0x114   : > { %v487_v54 = vadd.f32 %v1066_v50, %v358_v43  ;;  %v1067_v55 = vpop.f32.mrb[6].mxu0 }
 0x115   : > { %v1068_v57 = vpop.f32.mrb[7].mxu0  ;;  %v1123_v58 = vpop.f32.mrb[6].mxu1 }
 0x116   : > { %v1069_v59 = vadd.f32 %v1068_v57, %v1067_v55  ;;  %v1124_v60 = vpop.f32.mrb[7].mxu1  ;;  %v592_v61 = vadd.f32 %v1122_v53, %v487_v54 }
 0x117   : > { %v1125_v62 = vadd.f32 %v1124_v60, %v1123_v58 }
 0x118   : > { %v492_v63 = vadd.f32 %v1069_v59, %v363_v56  ;;  %v1070_v0 = vpop.f32.mrb[8].mxu0 }
 0x119   : > { %v1071_v2 = vpop.f32.mrb[9].mxu0  ;;  %v1126_v3 = vpop.f32.mrb[8].mxu1 }
 0x11a   : > { %v1072_v4 = vadd.f32 %v1071_v2, %v1070_v0  ;;  %v1127_v5 = vpop.f32.mrb[9].mxu1  ;;  %v597_v6 = vadd.f32 %v1125_v62, %v492_v63 }
 0x11b   : > { %v1128_v7 = vadd.f32 %v1127_v5, %v1126_v3 }
 0x11c   : > { %v497_v8 = vadd.f32 %v1072_v4, %v368_v1  ;;  %v1073_v9 = vpop.f32.mrb[10].mxu0 }
 0x11d   : > { %v1074_v11 = vpop.f32.mrb[11].mxu0  ;;  %v1129_v12 = vpop.f32.mrb[10].mxu1 }
 0x11e   : > { %v1075_v13 = vadd.f32 %v1074_v11, %v1073_v9  ;;  %v1130_v14 = vpop.f32.mrb[11].mxu1  ;;  %v602_v15 = vadd.f32 %v1128_v7, %v497_v8 }
 0x11f   : > { %v1131_v16 = vadd.f32 %v1130_v14, %v1129_v12 }
 0x120   : > { %v502_v17 = vadd.f32 %v1075_v13, %v373_v10  ;;  %v1076_v18 = vpop.f32.mrb[12].mxu0 }
 0x121   : > { %v1077_v20 = vpop.f32.mrb[13].mxu0  ;;  %v1132_v21 = vpop.f32.mrb[12].mxu1 }
 0x122   : > { %v1078_v22 = vadd.f32 %v1077_v20, %v1076_v18  ;;  %v1133_v23 = vpop.f32.mrb[13].mxu1  ;;  %v607_v24 = vadd.f32 %v1131_v16, %v502_v17 }
 0x123   : > { %v1134_v25 = vadd.f32 %v1133_v23, %v1132_v21 }
 0x124   : > { %v507_v26 = vadd.f32 %v1078_v22, %v378_v19  ;;  %v1079_v27 = vpop.f32.mrb[14].mxu0 }
 0x125   : > { %v1080_v29 = vpop.f32.mrb[15].mxu0  ;;  %v1135_v30 = vpop.f32.mrb[14].mxu1 }
 0x126   : > { %v1081_v31 = vadd.f32 %v1080_v29, %v1079_v27  ;;  %v1136_v32 = vpop.f32.mrb[15].mxu1  ;;  %v612_v33 = vadd.f32 %v1134_v25, %v507_v26  ;;  %v809_v27 = vld [vmem:[%s1705_s3 + $0x8] sm:$0xff]  ;;  %v811_v29 = vld [vmem:[%s1705_s3 + $0x18] sm:$0xff] }
 0x127   : > { %v1137_v34 = vadd.f32 %v1136_v32, %v1135_v30  ;;  %v810_v30 = vld [vmem:[%s1705_s3 + $0x10] sm:$0xff]  ;;  %v812_v32 = vld [vmem:[%s1705_s3 + $0x20] sm:$0xff] }
 0x128   : > { %v512_v35 = vadd.f32 %v1081_v31, %v383_v28  ;;  %v1172_v36 = vpop.f32.mrb[16].mxu0  ;;  %v808_v28 = vld [vmem:[%s1705_s3] sm:$0xff]  ;;  %v813_v31 = vld [vmem:[%s1705_s3 + $0x28] sm:$0xff] }
 0x129   : > { %v1567_v37 = vadd.f32 %v1172_v36, %v587_v52  ;;  %v1178_v38 = vpop.f32.mrb[16].mxu1  ;;  %v686_v39 = vpop.f32.mrb[17].mxu0  ;;  %v864_v36 = vld [vmem:[%s1706_s4] sm:$0xff] }
 0x12a   : > { %v1569_v40 = vadd.f32 %v1178_v38, %v607_v24  ;;  %v1571_v41 = vadd.f32 %v686_v39, %v582_v44  ;;  %v706_v42 = vpop.f32.mrb[17].mxu1  ;;  %v617_v43 = vadd.f32 %v1137_v34, %v512_v35  ;;  %v814_v34 = vld [vmem:[%s1705_s3 + $0x30] sm:$0xff]  ;;  %v865_v35 = vld [vmem:[%s1706_s4 + $0x8] sm:$0xff]  ;;  %v867_v38 = vld [vmem:[%s1706_s4 + $0x18] sm:$0xff] }
 0x12b   : > { %v754_v45 = vmul.f32 %v1567_v37, %v1567_v37  ;;  %v1575_v46 = vadd.f32 %v706_v42, %v602_v15  ;;  %v727_v47 = vsel %vm725_vm1, %v1567_v37, 0.0  ;;  %v866_v39 = vld [vmem:[%s1706_s4 + $0x10] sm:$0xff]  ;;  %v869_v42 = vld [vmem:[%s1706_s4 + $0x28] sm:$0xff] }
 0x12c   : > { %v726_v48 = vsel %vm725_vm1, %v1571_v41, 0.0  ;;  %v753_v49 = vmul.f32 %v1571_v41, %v1571_v41  ;;  %v1175_v50 = vpop.f32.mrb[18].mxu0  ;;  %v735_v11 = vsel %vm725_vm1, %v1569_v40, 0.0 }
 0x12d   : > { %v762_v44 = vsel %vm725_vm1, %v754_v45, 0.0  ;;  %v1181_v51 = vpop.f32.mrb[18].mxu1  ;;  %v696_v52 = vpop.f32.mrb[19].mxu0  ;;  %v1585_v54 = vadd.f32 %v1175_v50, %v597_v6  ;;  %v728_v58 = vadd.f32 %v727_v47, %v726_v48  ;;  %v757_v2 = vmul.f32 %v1575_v46, %v1575_v46  ;;  %v871_v45 = vld [vmem:[%s1706_s4 + $0x38] sm:$0xff]  ;;  %v870_v47 = vld [vmem:[%s1706_s4 + $0x30] sm:$0xff] }
 0x12e   : > { %v761_v53 = vsel %vm725_vm1, %v753_v49, 0.0  ;;  %v1587_v55 = vadd.f32 %v1181_v51, %v617_v43  ;;  %v1589_v56 = vadd.f32 %v696_v52, %v592_v61  ;;  %v716_v57 = vpop.f32.mrb[19].mxu1  ;;  %v758_v6 = vmul.f32 %v1569_v40, %v1569_v40  ;;  %v868_v43 = vld [vmem:[%s1706_s4 + $0x20] sm:$0xff] }
 0x12f   : > { %v1591_v59 = vadd.f32 %v716_v57, %v612_v33  ;;  %v756_v60 = vmul.f32 %v1585_v54, %v1585_v54  ;;  %v763_v0 = vadd.f32 %v762_v44, %v761_v53  ;;  %v731_v61 = vsel %vm725_vm1, %v1585_v54, 0.0  ;;  %v815_v33 = vld [vmem:[%s1705_s3 + $0x38] sm:$0xff] }
 0x130   : > { %v729_v62 = vsel %vm725_vm1, %v1589_v56, 0.0  ;;  %v755_v63 = vmul.f32 %v1589_v56, %v1589_v56  ;;  %v733_v7 = vsel %vm725_vm1, %v1575_v46, 0.0  ;;  %v768_v12 = vsel %vm725_vm1, %v757_v2, 0.0 }
 0x131   : > { %v730_v1 = vadd.f32 %v729_v62, %v728_v58  ;;  %v766_v8 = vsel %vm725_vm1, %v756_v60, 0.0  ;;  %v759_v13 = vmul.f32 %v1591_v59, %v1591_v59  ;;  %v737_v16 = vsel %vm725_vm1, %v1591_v59, 0.0 }
 0x132   : > { %v764_v3 = vsel %vm725_vm1, %v755_v63, 0.0  ;;  %v760_v17 = vmul.f32 %v1587_v55, %v1587_v55  ;;  %v770_v18 = vsel %vm725_vm1, %v758_v6, 0.0  ;;  %v739_v21 = vsel %vm725_vm1, %v1587_v55, 0.0 }
 0x133   : > { %v732_v4 = vadd.f32 %v731_v61, %v730_v1  ;;  %v765_v5 = vadd.f32 %v764_v3, %v763_v0  ;;  %v772_v22 = vsel %vm725_vm1, %v759_v13, 0.0 }
 0x134   : > { %v774_v25 = vsel %vm725_vm1, %v760_v17, 0.0 }
 0x135   : > { %v734_v9 = vadd.f32 %v733_v7, %v732_v4  ;;  %v767_v10 = vadd.f32 %v766_v8, %v765_v5 }
 0x137   : > { %v736_v14 = vadd.f32 %v735_v11, %v734_v9  ;;  %v769_v15 = vadd.f32 %v768_v12, %v767_v10 }
 0x139   : > { %v738_v19 = vadd.f32 %v737_v16, %v736_v14  ;;  %v771_v20 = vadd.f32 %v770_v18, %v769_v15 }
 0x13b   : > { %v740_v23 = vadd.f32 %v739_v21, %v738_v19  ;;  %v773_v24 = vadd.f32 %v772_v22, %v771_v20 }
 0x13d   : > { %741 = vadd.xlane.f32.xlu0 %v740_v23  ;;  %v775_v26 = vadd.f32 %v774_v25, %v773_v24 }
 0x13f   : > { %776 = vadd.xlane.f32.xlu1 %v775_v26 }
 0x150   : > { %823 = vperm.xlu1 %1285, %v809_v27  }
 0x153   : > { %818 = vperm.xlu0 %1284, %v808_v28  }
 0x154   : > { %833 = vperm.xlu1 %1285, %v811_v29  }
 0x157   : > { %828 = vperm.xlu0 %1284, %v810_v30  }
 0x158   : > { %843 = vperm.xlu1 %1285, %v813_v31  }
 0x15b   : > { %838 = vperm.xlu0 %1284, %v812_v32  }
 0x15c   : > { %853 = vperm.xlu1 %1285, %v815_v33  }
 0x15f   : > { %848 = vperm.xlu0 %1284, %v814_v34  }
 0x160   : > { %879 = vperm.xlu1 %1285, %v865_v35  }
 0x163   : > { %874 = vperm.xlu0 %1284, %v864_v36  }
 0x164   : > { %889 = vperm.xlu1 %1285, %v867_v38  }
 0x167   : > { %884 = vperm.xlu0 %1284, %v866_v39  }
 0x168   : > { %899 = vperm.xlu1 %1285, %v869_v42  }
 0x16b   : > { %894 = vperm.xlu0 %1284, %v868_v43  }
 0x16c   : > { %909 = vperm.xlu1 %1285, %v871_v45  }
 0x16f   : > { %904 = vperm.xlu0 %1284, %v870_v47  }
 0x1ca   : > { %v742_v48 = vpop.xlane.xlu0 %741 }
 0x1cb   : > { %v743_v49 = vrot.slane %v742_v48, 4 }
 0x1cc   : > { %v777_v50 = vpop.xlane.xlu1 %776 }
 0x1cd   : > { %v744_v44 = vadd.f32 %v743_v49, %v742_v48  ;;  %v778_v51 = vrot.slane %v777_v50, 4 }
 0x1cf   : > { %v745_v52 = vrot.slane %v744_v44, 2  ;;  %v779_v53 = vadd.f32 %v778_v51, %v777_v50 }
 0x1d0   : > { %v824_v2 = vpop.permute.xlu1 %823 }
 0x1d1   : > { %v780_v57 = vrot.slane %v779_v53, 2  ;;  %v746_v58 = vadd.f32 %v745_v52, %v744_v44 }
 0x1d2   : > { %v819_v61 = vpop.permute.xlu0 %818 }
 0x1d3   : > { %v747_v60 = vrot.slane %v746_v58, 1  ;;  %v781_v62 = vadd.f32 %v780_v57, %v779_v53 }
 0x1d4   : > { %v834_v3 = vpop.permute.xlu1 %833 }
 0x1d5   : > { %v748_v63 = vadd.f32 %v747_v60, %v746_v58  ;;  %v782_v0 = vrot.slane %v781_v62, 1 }
 0x1d6   : > { %v829_v4 = vpop.permute.xlu0 %828 }
 0x1d7   : > { %1271 = vpush %v748_v63  ;;  %v783_v1 = vadd.f32 %v782_v0, %v781_v62 }
 0x1d8   : > { %v844_v5 = vpop.permute.xlu1 %843 }
 0x1d9   : > { %1273 = vpush %v783_v1 }
 0x1da   : > { %v839_v6 = vpop.permute.xlu0 %838 }
 0x1dc   : > { %v854_v10 = vpop.permute.xlu1 %853 }
 0x1de   : > { %v849_v11 = vpop.permute.xlu0 %848 }
 0x1e0   : > { %v880_v16 = vpop.permute.xlu1 %879 }
 0x1e2   : > { %v875_v17 = vpop.permute.xlu0 %874 }
 0x1e4   : > { %v890_v19 = vpop.permute.xlu1 %889 }
 0x1e6   : > { %v885_v20 = vpop.permute.xlu0 %884 }
 0x1e8   : > { %v900_v21 = vpop.permute.xlu1 %899 }
 0x1ea   : > { %v895_v22 = vpop.permute.xlu0 %894 }
 0x1ee   : > { %v905_v47 = vpop.permute.xlu0 %904 }
 0x208   : > { %s1272_s12 = spop %1271 }
 0x209   : > { %v750_v7 = vstv %s1272_s12 }
 0x20a   : > { %v752_v8 = vmul.f32 0.00390625, %v750_v7  ;;  %s1274_s13 = spop %1273 }
 0x20b   : > { %v785_v9 = vstv %s1274_s13 }
 0x20c   : > { %v786_v12 = vmul.f32 0.00390625, %v785_v9  ;;  %v787_v13 = vmul.f32 %v752_v8, %v752_v8  ;;  %v790_v23 = vsub.f32 %v1571_v41, %v752_v8  ;;  %v791_v24 = vsub.f32 %v1567_v37, %v752_v8 }
 0x20d   : > { %v792_v25 = vsub.f32 %v1589_v56, %v752_v8  ;;  %v793_v26 = vsub.f32 %v1585_v54, %v752_v8  ;;  %v794_v28 = vsub.f32 %v1575_v46, %v752_v8  ;;  %v795_v29 = vsub.f32 %v1569_v40, %v752_v8 }
 0x20e   : > { %v788_v14 = vsub.f32 %v786_v12, %v787_v13  ;;  %v796_v30 = vsub.f32 %v1591_v59, %v752_v8  ;;  %v797_v31 = vsub.f32 %v1587_v55, %v752_v8  ;;  %v910_v59 = vpop.permute.xlu1 %909 }
 0x210   : > { %v789_v15 = vmax.f32 %v788_v14, 0.0 }
 0x212   : > { %v798_v18 = vadd.f32 1e-05, %v789_v15 }
 0x214   : > { %1286 = vrsqrt.f32 %v798_v18 }
 0x21e   : > { %v1287_v27 = vpop.eup %1286 }
 0x21f   : > { %v800_v32 = vmul.f32 %v1287_v27, %v790_v23  ;;  %v801_v33 = vmul.f32 %v1287_v27, %v791_v24  ;;  %v802_v34 = vmul.f32 %v1287_v27, %v792_v25  ;;  %v803_v35 = vmul.f32 %v1287_v27, %v793_v26 }
 0x220   : > { %v804_v41 = vmul.f32 %v1287_v27, %v794_v28  ;;  %v805_v36 = vmul.f32 %v1287_v27, %v795_v29  ;;  %v806_v37 = vmul.f32 %v1287_v27, %v796_v30  ;;  %v807_v56 = vmul.f32 %v1287_v27, %v797_v31 }
 0x221   : > { %v856_v38 = vmul.f32 %v819_v61, %v800_v32  ;;  %v857_v54 = vmul.f32 %v824_v2, %v801_v33  ;;  %v858_v39 = vmul.f32 %v829_v4, %v802_v34  ;;  %v859_v42 = vmul.f32 %v834_v3, %v803_v35 }
 0x222   : > { %v860_v46 = vmul.f32 %v839_v6, %v804_v41  ;;  %v861_v43 = vmul.f32 %v844_v5, %v805_v36  ;;  %v862_v40 = vmul.f32 %v849_v11, %v806_v37  ;;  %v863_v45 = vmul.f32 %v854_v10, %v807_v56 }
 0x223   : > { %v912_v55 = vadd.f32 %v875_v17, %v856_v38  ;;  %v913_v48 = vadd.f32 %v880_v16, %v857_v54  ;;  %v914_v49 = vadd.f32 %v885_v20, %v858_v39  ;;  %v915_v50 = vadd.f32 %v890_v19, %v859_v42 }
 0x224   : > { %v916_v44 = vadd.f32 %v895_v22, %v860_v46  ;;  %v917_v51 = vadd.f32 %v900_v21, %v861_v43  ;;  %v918_v52 = vadd.f32 %v905_v47, %v862_v40  ;;  %v919_v53 = vadd.f32 %v910_v59, %v863_v45 }
 0x225   : > { %vm920_vm2 = vcmp.ge.f32.partialorder %v912_v55, 0.0  ;;  %vm921_vm3 = vcmp.ge.f32.partialorder %v913_v48, 0.0  ;;  %vm922_vm4 = vcmp.ge.f32.partialorder %v914_v49, 0.0  ;;  %vm923_vm5 = vcmp.ge.f32.partialorder %v915_v50, 0.0 }
 0x226   : > { %vm924_vm6 = vcmp.ge.f32.partialorder %v916_v44, 0.0  ;;  %vm925_vm7 = vcmp.ge.f32.partialorder %v917_v51, 0.0  ;;  %vm926_vm8 = vcmp.ge.f32.partialorder %v918_v52, 0.0  ;;  %vm927_vm9 = vcmp.ge.f32.partialorder %v919_v53, 0.0 }
 0x227   : > { %v928_v57 = vmul.f32 0.2, %v912_v55  ;;  %v929_v58 = vmul.f32 0.2, %v913_v48  ;;  %v930_v60 = vmul.f32 0.2, %v914_v49 }
 0x228   : > { %v931_v62 = vmul.f32 0.2, %v915_v50  ;;  %v932_v63 = vmul.f32 0.2, %v916_v44  ;;  %v933_v0 = vmul.f32 0.2, %v917_v51 }
 0x229   : > { %v934_v1 = vmul.f32 0.2, %v918_v52  ;;  %v935_v2 = vmul.f32 0.2, %v919_v53  ;;  %v936_v61 = vsel %vm920_vm2, %v912_v55, %v928_v57  ;;  %v937_v3 = vsel %vm921_vm3, %v913_v48, %v929_v58 }
 0x22a   : > { %v938_v4 = vsel %vm922_vm4, %v914_v49, %v930_v60  ;;  %v939_v5 = vsel %vm923_vm5, %v915_v50, %v931_v62  ;;  %v940_v6 = vsel %vm924_vm6, %v916_v44, %v932_v63  ;;  %v941_v7 = vsel %vm925_vm7, %v917_v51, %v933_v0  ;;  %944 = vst.msk [vmem:[%s224_s17] sm:$0xff] %vm725_vm1, %v936_v61 }
 0x22b   : > { %945 = vst.msk [vmem:[%s224_s17 + $0x8] sm:$0xff] %vm725_vm1, %v937_v3  ;;  %v942_v8 = vsel %vm926_vm8, %v918_v52, %v934_v1  ;;  %v943_v9 = vsel %vm927_vm9, %v919_v53, %v935_v2  ;;  %946 = vst.msk [vmem:[%s224_s17 + $0x10] sm:$0xff] %vm725_vm1, %v938_v4 }
 0x22c   : > { %947 = vst.msk [vmem:[%s224_s17 + $0x18] sm:$0xff] %vm725_vm1, %v939_v5  ;;  %948 = vst.msk [vmem:[%s224_s17 + $0x20] sm:$0xff] %vm725_vm1, %v940_v6 }
 0x22d   : > { %949 = vst.msk [vmem:[%s224_s17 + $0x28] sm:$0xff] %vm725_vm1, %v941_v7  ;;  %950 = vst.msk [vmem:[%s224_s17 + $0x30] sm:$0xff] %vm725_vm1, %v942_v8 }
 0x22e   : > { %951 = vst.msk [vmem:[%s224_s17 + $0x38] sm:$0xff] %vm725_vm1, %v943_v9 }
 0x22f PF: > { %s15_s18 = sadd.s32 1, %s1294_s18  }
 0x230   : > { %p12_p4 = scmp.ge.s32.totalorder %s15_s18, 4  }
 0x232   :  { %14 = sbr.rel (!%p12_p4) target bundleno = 1 (0x1), region = 70 }

// kernel: vnet_forward.83
= control target key start
LH: loop header
LB: loop body
LE: loop exit
PB: predicated region body
PF: predicated region fallthrough
CT: control target
= control target key end

     0   :  { %s408_s12 = smov 0   ;;  %s439_s0 = inlined_call_operand.vmem [shape: f32[2,32,16], index: 0, kind: input, shape index: {}]   ;;  %s440_s1 = inlined_call_operand.vmem [shape: f32[16,32], index: 1, kind: input, shape index: {}]   ;;  %s441_s2 = inlined_call_operand.vmem [shape: f32[16,1], index: 2, kind: input, shape index: {}]   ;;  %s442_s3 = inlined_call_operand.vmem [shape: f32[2,16,16], index: 3, kind: output, shape index: {}]  }
   0x1 LB: > { %s329_s13 = sadd.s32 4294967295, %s385_s12   ;;  %p333_p0 = scmp.ge.s32.totalorder %s385_s12, 1  ;;  %s385_s12 = sphi %s408_s12, %s13_s12  }
   0x2   : > { %p137_p1 = scmp.lt.s32.totalorder %s385_s12, 3 }
   0x4   : > { %p138_p2 = pnand %p333_p0, %p137_p1 }
   0x5   : > { %p161_p3 = scmp.lt.s32.totalorder (!%p138_p2), %s329_s13, 1  ;;  %v171_v0 = vld [vmem:[%s440_s1] sm:$0xff] (!%p138_p2)  ;;  %vm189_vm0 = vcmask (!%p138_p2), 261120   ;;  %v387_v2 = vmov (!%p138_p2), 0   ;;  %v178_v3 = vld [vmem:[%s441_s2 + $0x8] sm:$0xff] (!%p138_p2)  ;;  %vm271_vm1 = vcmask (!%p138_p2), 130048  }
   0x6   : > { %141 = sbr.rel (%p138_p2) target bundleno = 243 (0xf3), region = 32  ;;  %v177_v1 = vld [vmem:[%s441_s2] sm:$0xff] (!%p138_p2)  ;;  %358 = vmatprep.mubr.msk.f32.mxu0 (!%p138_p2), %vm189_vm0, %v171_v0  ;;  %378 = vset.pattern.permute.xlu0 (!%p138_p2), %v387_v2  ;;  %v172_v10 = vld [vmem:[%s440_s1 + $0x8] sm:$0xff] (!%p138_p2) }
   0x7   : > { %181 = vperm.xlu0 (!%p138_p2), %378, %v177_v1  }
   0xb   : > { %186 = vperm.xlu0 (!%p138_p2), %378, %v178_v3  }
   0xd   : > { %s444_s13 = smov (!%p161_p3, %s329_s13), 1 }
   0xe   : > { %s342_s20 = sshll.u32 %s444_s13, 5  ;;  %s343_s26 = sshll.u32 %s444_s13, 4 }
   0xf   : > { %s165_s23 = scalar_lea.vmem %s439_s0, %s342_s20  ;;  %s170_s29 = scalar_lea.vmem %s442_s3, %s343_s26 }
  0x10   : > { %v173_v4 = vld [vmem:[%s165_s23] sm:$0xff]  ;;  %v174_v5 = vld [vmem:[%s165_s23 + $0x8] sm:$0xff]  ;;  %v175_v6 = vld [vmem:[%s165_s23 + $0x10] sm:$0xff] }
  0x11   : > { %v361_v7 = vpack.c.bf16 %v174_v5, %v173_v4  ;;  %v176_v8 = vld [vmem:[%s165_s23 + $0x18] sm:$0xff] }
  0x12   : > { %v365_v9 = vpack.c.bf16 %v176_v8, %v175_v6 }
  0x13   : > { %362 = vmatprep.subr.bf16.mxu0 %v361_v7 }
  0x14   : > { %364 = vmatpush3.bf16.msra.mxu0 %v361_v7 }
  0x15   : > { %366 = vmatprep.subr.bf16.mxu0 %v365_v9 }
  0x18   : > { %368 = vmatpush3.bf16.msra.mxu0 %v365_v9 }
  0x1b   : > { %359 = vmatmul.mubr.msk.f32.vlgmr.msra.gmra.mrb[0].mxu0 %vm189_vm0, %v172_v10 }
  0x86   : > { %v182_v11 = vpop.permute.xlu0 %181 }
  0x8a   : > { %v187_v12 = vpop.permute.xlu0 %186 }
  0xee   : > { %v360_v13 = vpop.f32.mrb[0].mxu0 }
  0xef   : > { %v268_v14 = vadd.f32 %v360_v13, %v187_v12  ;;  %v262_v15 = vpop.f32.mrb[1].mxu0 }
  0xf0   : > { %v263_v16 = vadd.f32 %v262_v15, %v182_v11 }
  0xf1   : > { %273 = vst.msk [vmem:[%s170_s29 + $0x8] sm:$0xff] %vm271_vm1, %v268_v14 }
  0xf2   : > { %272 = vst.msk [vmem:[%s170_s29] sm:$0xff] %vm271_vm1, %v263_v16 }
  0xf3 PF: > { %s13_s12 = sadd.s32 1, %s385_s12  }
  0xf4   : > { %p10_p4 = scmp.ge.s32.totalorder %s13_s12, 4  }
  0xf6   :  { %12 = sbr.rel (!%p10_p4) target bundleno = 1 (0x1), region = 62 }

// kernel: vnet_forward.88
= control target key start
LH: loop header
LB: loop body
LE: loop exit
PB: predicated region body
PF: predicated region fallthrough
CT: control target
= control target key end

     0   :  { %s377_s12 = smov 0   ;;  %s400_s0 = inlined_call_operand.vmem [shape: f32[2,16,64], index: 0, kind: input, shape index: {}]   ;;  %s401_s1 = inlined_call_operand.vmem [shape: f32[8,16], index: 1, kind: input, shape index: {}]   ;;  %s402_s2 = inlined_call_operand.vmem [shape: f32[8,1], index: 2, kind: input, shape index: {}]   ;;  %s403_s3 = inlined_call_operand.vmem [shape: f32[2,8,64], index: 3, kind: output, shape index: {}]  }
   0x1 LB: > { %s307_s13 = sadd.s32 4294967295, %s351_s12   ;;  %p311_p0 = scmp.ge.s32.totalorder %s351_s12, 1  ;;  %s351_s12 = sphi %s377_s12, %s13_s12  }
   0x2   : > { %p137_p1 = scmp.lt.s32.totalorder %s351_s12, 3 }
   0x4   : > { %p138_p2 = pnand %p311_p0, %p137_p1 }
   0x5   : > { %p160_p3 = scmp.lt.s32.totalorder (!%p138_p2), %s307_s13, 1  ;;  %v353_v0 = vmov (!%p138_p2), 0.0|0.0   ;;  %vm354_vm0 = vmmov (!%p138_p2), 0   ;;  %v355_v1 = vmov (!%p138_p2), 0.0   ;;  %v172_v2 = vld [vmem:[%s402_s2] sm:$0xff] (!%p138_p2)  ;;  %v356_v3 = vmov (!%p138_p2), 0  }
   0x6   : > { %141 = sbr.rel (%p138_p2) target bundleno = 237 (0xed), region = 32  ;;  %329 = vmatprep.subr.bf16.mxu0 (!%p138_p2), %v353_v0  ;;  %326 = vmatprep.mubr.msk.f32.mxu0 (!%p138_p2), %vm354_vm0, %v355_v1  ;;  %v169_v7 = vld [vmem:[%s401_s1] sm:$0xff] (!%p138_p2)  ;;  %vm178_vm1 = vcmask (!%p138_p2), 130048   ;;  %vm252_vm2 = vcmask (!%p138_p2), 523264  }
   0x7   : > { %344 = vset.pattern.permute.xlu0 (!%p138_p2), %v356_v3 }
   0x8   : > { %175 = vperm.xlu0 (!%p138_p2), %344, %v172_v2  }
   0xd   : > { %s405_s13 = smov (!%p160_p3, %s307_s13), 1 }
   0xe   : > { %s318_s16 = sshll.u32 %s405_s13, 4  ;;  %s314_s22 = sshll.u32 %s405_s13, 3 }
   0xf   : > { %s164_s19 = scalar_lea.vmem %s400_s0, %s318_s16  ;;  %s168_s25 = scalar_lea.vmem %s403_s3, %s314_s22 }
  0x10   : > { %v170_v4 = vld [vmem:[%s164_s19] sm:$0xff]  ;;  %v171_v5 = vld [vmem:[%s164_s19 + $0x8] sm:$0xff] }
  0x11   : > { %v330_v6 = vpack.c.bf16 %v171_v5, %v170_v4 }
  0x13   : > { %331 = vmatpush3.bf16.msra.mxu0 %v330_v6 }
  0x16   : > { %327 = vmatmul.mubr.msk.f32.vlgmr.msra.gmra.mrb[0].mxu0 %vm178_vm1, %v169_v7 }
  0x87   : > { %v176_v8 = vpop.permute.xlu0 %175 }
  0xe9   : > { %v248_v9 = vpop.f32.mrb[0].mxu0 }
  0xea   : > { %v249_v10 = vadd.f32 %v248_v9, %v176_v8  ;;  %v328_v11 = vpop.f32.mrb[1].mxu0 }
  0xec   : > { %253 = vst.msk [vmem:[%s168_s25] sm:$0xff] %vm252_vm2, %v249_v10 }
  0xed PF: > { %s13_s12 = sadd.s32 1, %s351_s12  }
  0xee   : > { %p10_p4 = scmp.ge.s32.totalorder %s13_s12, 4  }
  0xf0   :  { %12 = sbr.rel (!%p10_p4) target bundleno = 1 (0x1), region = 62 }

// kernel: vnet_forward.84
= control target key start
LH: loop header
LB: loop body
LE: loop exit
PB: predicated region body
PF: predicated region fallthrough
CT: control target
= control target key end

     0   :  { %s3149_s15 = smov 0   ;;  %s3499_s0 = inlined_call_operand.vmem [shape: f32[2,16,4,4], index: 0, kind: input, shape index: {}]   ;;  %s3500_s1 = inlined_call_operand.vmem [shape: f32[16,4,8], index: 1, kind: input, shape index: {}]   ;;  %s3501_s2 = inlined_call_operand.vmem [shape: f32[16,8,4], index: 2, kind: input, shape index: {}]   ;;  %s3502_s3 = inlined_call_operand.vmem [shape: f32[2,16,8,8], index: 3, kind: input, shape index: {}]   ;;  %s3503_s4 = inlined_call_operand.vmem [shape: f32[2,16,8,8], index: 4, kind: output, shape index: {}]  }
   0x1 LB: > { %s2800_s16 = sadd.s32 4294967295, %s3120_s15   ;;  %p2804_p0 = scmp.ge.s32.totalorder %s3120_s15, 1  ;;  %s3120_s15 = sphi %s3149_s15, %s14_s15  }
   0x2   : > { %p172_p1 = scmp.lt.s32.totalorder %s3120_s15, 3 }
   0x4   : > { %p173_p2 = pnand %p2804_p0, %p172_p1 }
   0x5   : > { %v234_v0 = vld [vmem:[%s3500_s1] sm:$0xf] (!%p173_p2)  ;;  %vm254_vm0 = vcmask (!%p173_p2), 1043456   ;;  %p203_p3 = scmp.lt.s32.totalorder (!%p173_p2), %s2800_s16, 1  ;;  %v3122_v1 = vmov (!%p173_p2), 0.0   ;;  %vm3123_vm1 = vmmov (!%p173_p2), 0  }
   0x6   : > { %176 = sbr.rel (%p173_p2) target bundleno = 473 (0x1d9), region = 36  ;;  %2944 = vmatprep.subr.mxu0 (!%p173_p2), %v3122_v1  ;;  %2949 = vmatprep.subr.mxu1 (!%p173_p2), %v3122_v1  ;;  %v235_v2 = vld [vmem:[%s3500_s1 + $0x4] sm:$0xf] (!%p173_p2)  ;;  %vm250_vm2 = vcmask (!%p173_p2), 31744   ;;  %v236_v3 = vld [vmem:[%s3500_s1 + $0x8] sm:$0xf] (!%p173_p2) }
   0x7   : > { %2945 = vmatpush3.msk.msra.mxu0 (!%p173_p2), %vm254_vm0, %v234_v0  ;;  %2946 = vmatprep.mubr.msk.f32.mxu0 (!%p173_p2), %vm3123_vm1, %v3122_v1  ;;  %v237_v6 = vld [vmem:[%s3500_s1 + $0xc] sm:$0xf] (!%p173_p2)  ;;  %v238_v9 = vld [vmem:[%s3500_s1 + $0x10] sm:$0xf] (!%p173_p2)  ;;  %v239_v10 = vld [vmem:[%s3500_s1 + $0x14] sm:$0xf] (!%p173_p2) }
   0x8   : > { %2950 = vmatpush3.msk.msra.mxu1 (!%p173_p2), %vm254_vm0, %v235_v2  ;;  %2951 = vmatprep.mubr.msk.f32.mxu1 (!%p173_p2), %vm3123_vm1, %v3122_v1  ;;  %v240_v13 = vld [vmem:[%s3500_s1 + $0x18] sm:$0xf] (!%p173_p2)  ;;  %v241_v14 = vld [vmem:[%s3500_s1 + $0x1c] sm:$0xf] (!%p173_p2)  ;;  %v242_v17 = vld [vmem:[%s3500_s1 + $0x20] sm:$0xf] (!%p173_p2) }
   0x9   : > { %2954 = vmatprep.subr.mxu0 (!%p173_p2), %v3122_v1  ;;  %2959 = vmatprep.subr.mxu1 (!%p173_p2), %v3122_v1  ;;  %v243_v18 = vld [vmem:[%s3500_s1 + $0x24] sm:$0xf] (!%p173_p2)  ;;  %v244_v21 = vld [vmem:[%s3500_s1 + $0x28] sm:$0xf] (!%p173_p2)  ;;  %v245_v22 = vld [vmem:[%s3500_s1 + $0x2c] sm:$0xf] (!%p173_p2) }
   0xa   : > { %v246_v25 = vld [vmem:[%s3500_s1 + $0x30] sm:$0xf] (!%p173_p2)  ;;  %v247_v26 = vld [vmem:[%s3500_s1 + $0x34] sm:$0xf] (!%p173_p2)  ;;  %v248_v29 = vld [vmem:[%s3500_s1 + $0x38] sm:$0xf] (!%p173_p2) }
   0xb   : > { %v249_v30 = vld [vmem:[%s3500_s1 + $0x3c] sm:$0xf] (!%p173_p2)  ;;  %v1468_v33 = vld [vmem:[%s3501_s2] sm:$0xff] (!%p173_p2)  ;;  %v1469_v34 = vld [vmem:[%s3501_s2 + $0x8] sm:$0xff] (!%p173_p2)  ;;  %vm2716_vm3 = vcmask (!%p173_p2), 64512  }
   0xc   : > { %v1470_v39 = vld [vmem:[%s3501_s2 + $0x10] sm:$0xff] (!%p173_p2)  ;;  %v1471_v40 = vld [vmem:[%s3501_s2 + $0x18] sm:$0xff] (!%p173_p2)  ;;  %v1472_v45 = vld [vmem:[%s3501_s2 + $0x20] sm:$0xff] (!%p173_p2) }
   0xd   : > { %s3505_s16 = smov (!%p203_p3, %s2800_s16), 1  ;;  %v1473_v46 = vld [vmem:[%s3501_s2 + $0x28] sm:$0xff]  ;;  %v1474_v51 = vld [vmem:[%s3501_s2 + $0x30] sm:$0xff]  ;;  %v1475_v52 = vld [vmem:[%s3501_s2 + $0x38] sm:$0xff] }
   0xe   : > { %s2877_s21 = sshll.u32 %s3505_s16, 6  ;;  %v1476_v57 = vld [vmem:[%s3501_s2 + $0x40] sm:$0xff]  ;;  %v1477_v58 = vld [vmem:[%s3501_s2 + $0x48] sm:$0xff]  ;;  %v1478_v63 = vld [vmem:[%s3501_s2 + $0x50] sm:$0xff]  ;;  %s2878_s11 = sshll.u32 %s3505_s16, 7 }
   0xf   : > { %s3179_s24 = scalar_lea.vmem %s3499_s0, %s2877_s21  ;;  %v1479_v0 = vld [vmem:[%s3501_s2 + $0x58] sm:$0xff]  ;;  %s3441_s14 = scalar_lea.vmem %s3502_s3, %s2878_s11 }
  0x10   : > { %v218_v4 = vld [vmem:[%s3179_s24] sm:$0xf]  ;;  %v219_v5 = vld [vmem:[%s3179_s24 + $0x4] sm:$0xf]  ;;  %v220_v7 = vld [vmem:[%s3179_s24 + $0x8] sm:$0xf]  ;;  %s3448_s19 = scalar_lea.vmem %s3503_s4, %s2878_s11 }
  0x11   : > { %2947 = vmatmul.mubr.msk.f32.vlgmr.msra.gmra.mrb[0].mxu0 %vm250_vm2, %v218_v4  ;;  %2952 = vmatmul.mubr.msk.f32.vlgmr.msra.gmra.mrb[0].mxu1 %vm250_vm2, %v219_v5  ;;  %v221_v8 = vld [vmem:[%s3179_s24 + $0xc] sm:$0xf]  ;;  %v222_v11 = vld [vmem:[%s3179_s24 + $0x10] sm:$0xf]  ;;  %v223_v12 = vld [vmem:[%s3179_s24 + $0x14] sm:$0xf] }
  0x12   : > { %2955 = vmatpush3.msk.msra.mxu0 %vm254_vm0, %v236_v3  ;;  %2956 = vmatprep.mubr.msk.f32.mxu0 %vm3123_vm1, %v3122_v1  ;;  %v224_v15 = vld [vmem:[%s3179_s24 + $0x18] sm:$0xf]  ;;  %v225_v16 = vld [vmem:[%s3179_s24 + $0x1c] sm:$0xf]  ;;  %v226_v19 = vld [vmem:[%s3179_s24 + $0x20] sm:$0xf] }
  0x13   : > { %2960 = vmatpush3.msk.msra.mxu1 %vm254_vm0, %v237_v6  ;;  %2961 = vmatprep.mubr.msk.f32.mxu1 %vm3123_vm1, %v3122_v1  ;;  %v227_v20 = vld [vmem:[%s3179_s24 + $0x24] sm:$0xf]  ;;  %v228_v23 = vld [vmem:[%s3179_s24 + $0x28] sm:$0xf]  ;;  %v229_v24 = vld [vmem:[%s3179_s24 + $0x2c] sm:$0xf] }
  0x14   : > { %2964 = vmatprep.subr.mxu0 %v3122_v1  ;;  %2969 = vmatprep.subr.mxu1 %v3122_v1  ;;  %v230_v27 = vld [vmem:[%s3179_s24 + $0x30] sm:$0xf]  ;;  %v231_v28 = vld [vmem:[%s3179_s24 + $0x34] sm:$0xf]  ;;  %v232_v31 = vld [vmem:[%s3179_s24 + $0x38] sm:$0xf] }
  0x15   : > { %2957 = vmatmul.mubr.msk.f32.vlgmr.msra.gmra.mrb[2].mxu0 %vm250_vm2, %v220_v7  ;;  %2962 = vmatmul.mubr.msk.f32.vlgmr.msra.gmra.mrb[2].mxu1 %vm250_vm2, %v221_v8  ;;  %v233_v32 = vld [vmem:[%s3179_s24 + $0x3c] sm:$0xf]  ;;  %v1480_v6 = vld [vmem:[%s3501_s2 + $0x60] sm:$0xff]  ;;  %v1481_v7 = vld [vmem:[%s3501_s2 + $0x68] sm:$0xff] }
  0x16   : > { %2965 = vmatpush3.msk.msra.mxu0 %vm254_vm0, %v238_v9  ;;  %2966 = vmatprep.mubr.msk.f32.mxu0 %vm3123_vm1, %v3122_v1 }
  0x17   : > { %2970 = vmatpush3.msk.msra.mxu1 %vm254_vm0, %v239_v10  ;;  %2971 = vmatprep.mubr.msk.f32.mxu1 %vm3123_vm1, %v3122_v1 }
  0x18   : > { %2974 = vmatprep.subr.mxu0 %v3122_v1  ;;  %2979 = vmatprep.subr.mxu1 %v3122_v1 }
  0x19   : > { %2967 = vmatmul.mubr.msk.f32.vlgmr.msra.gmra.mrb[4].mxu0 %vm250_vm2, %v222_v11  ;;  %2972 = vmatmul.mubr.msk.f32.vlgmr.msra.gmra.mrb[4].mxu1 %vm250_vm2, %v223_v12  ;;  %v1482_v12 = vld [vmem:[%s3501_s2 + $0x70] sm:$0xff] }
  0x1a   : > { %2975 = vmatpush3.msk.msra.mxu0 %vm254_vm0, %v240_v13  ;;  %2976 = vmatprep.mubr.msk.f32.mxu0 %vm3123_vm1, %v3122_v1  ;;  %v1483_v13 = vld [vmem:[%s3501_s2 + $0x78] sm:$0xff] }
  0x1b   : > { %2980 = vmatpush3.msk.msra.mxu1 %vm254_vm0, %v241_v14  ;;  %2981 = vmatprep.mubr.msk.f32.mxu1 %vm3123_vm1, %v3122_v1 }
  0x1c   : > { %2984 = vmatprep.subr.mxu0 %v3122_v1  ;;  %2989 = vmatprep.subr.mxu1 %v3122_v1 }
  0x1d   : > { %2977 = vmatmul.mubr.msk.f32.vlgmr.msra.gmra.mrb[6].mxu0 %vm250_vm2, %v224_v15  ;;  %2982 = vmatmul.mubr.msk.f32.vlgmr.msra.gmra.mrb[6].mxu1 %vm250_vm2, %v225_v16 }
  0x1e   : > { %2985 = vmatpush3.msk.msra.mxu0 %vm254_vm0, %v242_v17  ;;  %2986 = vmatprep.mubr.msk.f32.mxu0 %vm3123_vm1, %v3122_v1 }
  0x1f   : > { %2990 = vmatpush3.msk.msra.mxu1 %vm254_vm0, %v243_v18  ;;  %2991 = vmatprep.mubr.msk.f32.mxu1 %vm3123_vm1, %v3122_v1  ;;  %v1485_v18 = vld [vmem:[%s3441_s14 + $0x8] sm:$0xff] }
  0x20   : > { %2994 = vmatprep.subr.mxu0 %v3122_v1  ;;  %2999 = vmatprep.subr.mxu1 %v3122_v1 }
  0x21   : > { %2987 = vmatmul.mubr.msk.f32.vlgmr.msra.gmra.mrb[8].mxu0 %vm250_vm2, %v226_v19  ;;  %2992 = vmatmul.mubr.msk.f32.vlgmr.msra.gmra.mrb[8].mxu1 %vm250_vm2, %v227_v20 }
  0x22   : > { %2995 = vmatpush3.msk.msra.mxu0 %vm254_vm0, %v244_v21  ;;  %2996 = vmatprep.mubr.msk.f32.mxu0 %vm3123_vm1, %v3122_v1 }
  0x23   : > { %3000 = vmatpush3.msk.msra.mxu1 %vm254_vm0, %v245_v22  ;;  %3001 = vmatprep.mubr.msk.f32.mxu1 %vm3123_vm1, %v3122_v1 }
  0x24   : > { %3004 = vmatprep.subr.mxu0 %v3122_v1  ;;  %3009 = vmatprep.subr.mxu1 %v3122_v1 }
  0x25   : > { %2997 = vmatmul.mubr.msk.f32.vlgmr.msra.gmra.mrb[10].mxu0 %vm250_vm2, %v228_v23  ;;  %3002 = vmatmul.mubr.msk.f32.vlgmr.msra.gmra.mrb[10].mxu1 %vm250_vm2, %v229_v24 }
  0x26   : > { %3005 = vmatpush3.msk.msra.mxu0 %vm254_vm0, %v246_v25  ;;  %3006 = vmatprep.mubr.msk.f32.mxu0 %vm3123_vm1, %v3122_v1  ;;  %v1486_v25 = vld [vmem:[%s3441_s14 + $0x10] sm:$0xff] }
  0x27   : > { %3010 = vmatpush3.msk.msra.mxu1 %vm254_vm0, %v247_v26  ;;  %3011 = vmatprep.mubr.msk.f32.mxu1 %vm3123_vm1, %v3122_v1  ;;  %v1487_v26 = vld [vmem:[%s3441_s14 + $0x18] sm:$0xff] }
  0x28   : > { %3014 = vmatprep.subr.mxu0 %v3122_v1  ;;  %3019 = vmatprep.subr.mxu1 %v3122_v1 }
  0x29   : > { %3007 = vmatmul.mubr.msk.f32.vlgmr.msra.gmra.mrb[12].mxu0 %vm250_vm2, %v230_v27  ;;  %3012 = vmatmul.mubr.msk.f32.vlgmr.msra.gmra.mrb[12].mxu1 %vm250_vm2, %v231_v28 }
  0x2a   : > { %3015 = vmatpush3.msk.msra.mxu0 %vm254_vm0, %v248_v29  ;;  %3016 = vmatprep.mubr.msk.f32.mxu0 %vm3123_vm1, %v3122_v1 }
  0x2b   : > { %3020 = vmatpush3.msk.msra.mxu1 %vm254_vm0, %v249_v30  ;;  %3021 = vmatprep.mubr.msk.f32.mxu1 %vm3123_vm1, %v3122_v1 }
  0x2c   : > { %3024 = vmatprep.subr.mxu0 %v3122_v1  ;;  %3029 = vmatprep.subr.mxu1 %v3122_v1 }
  0x2d   : > { %3017 = vmatmul.mubr.msk.f32.vlgmr.msra.gmra.mrb[14].mxu0 %vm250_vm2, %v232_v31  ;;  %3022 = vmatmul.mubr.msk.f32.vlgmr.msra.gmra.mrb[14].mxu1 %vm250_vm2, %v233_v32 }
  0x2e   : > { %3026 = vmatprep.mubr.msk.f32.mxu0 %vm3123_vm1, %v3122_v1  ;;  %3031 = vmatprep.mubr.msk.f32.mxu1 %vm3123_vm1, %v3122_v1 }
  0xe4   : > { %v324_v35 = vpop.f32.mrb[0].mxu0  ;;  %v400_v36 = vpop.f32.mrb[0].mxu1 }
  0xe5   : > { %v2948_v37 = vpop.f32.mrb[1].mxu0  ;;  %v2953_v38 = vpop.f32.mrb[1].mxu1  ;;  %3025 = vmatpush3.msk.msra.mxu0 %vm254_vm0, %v324_v35  ;;  %3030 = vmatpush3.msk.msra.mxu1 %vm254_vm0, %v400_v36 }
  0xe6   : > { %3027 = vmatmul.mubr.msk.f32.vlgmr.msra.gmra.mrb[16].mxu0 %vm250_vm2, %v1468_v33  ;;  %3032 = vmatmul.mubr.msk.f32.vlgmr.msra.gmra.mrb[16].mxu1 %vm250_vm2, %v1469_v34  ;;  %v1488_v33 = vld [vmem:[%s3441_s14 + $0x20] sm:$0xff]  ;;  %v1489_v34 = vld [vmem:[%s3441_s14 + $0x28] sm:$0xff] }
  0xe7   : > { %3034 = vmatprep.subr.mxu0 %v3122_v1  ;;  %3039 = vmatprep.subr.mxu1 %v3122_v1 }
  0xe8   : > { %v476_v41 = vpop.f32.mrb[2].mxu0  ;;  %v552_v42 = vpop.f32.mrb[2].mxu1  ;;  %3036 = vmatprep.mubr.msk.f32.mxu0 %vm3123_vm1, %v3122_v1  ;;  %3041 = vmatprep.mubr.msk.f32.mxu1 %vm3123_vm1, %v3122_v1 }
  0xe9   : > { %v2958_v43 = vpop.f32.mrb[3].mxu0  ;;  %v2963_v44 = vpop.f32.mrb[3].mxu1  ;;  %3035 = vmatpush3.msk.msra.mxu0 %vm254_vm0, %v476_v41  ;;  %3040 = vmatpush3.msk.msra.mxu1 %vm254_vm0, %v552_v42  ;;  %v1490_v41 = vld [vmem:[%s3441_s14 + $0x30] sm:$0xff]  ;;  %v1491_v42 = vld [vmem:[%s3441_s14 + $0x38] sm:$0xff] }
  0xea   : > { %3037 = vmatmul.mubr.msk.f32.vlgmr.msra.gmra.mrb[18].mxu0 %vm250_vm2, %v1470_v39  ;;  %3042 = vmatmul.mubr.msk.f32.vlgmr.msra.gmra.mrb[18].mxu1 %vm250_vm2, %v1471_v40 }
  0xeb   : > { %3044 = vmatprep.subr.mxu0 %v3122_v1  ;;  %3049 = vmatprep.subr.mxu1 %v3122_v1 }
  0xec   : > { %v628_v47 = vpop.f32.mrb[4].mxu0  ;;  %v704_v48 = vpop.f32.mrb[4].mxu1  ;;  %3046 = vmatprep.mubr.msk.f32.mxu0 %vm3123_vm1, %v3122_v1  ;;  %3051 = vmatprep.mubr.msk.f32.mxu1 %vm3123_vm1, %v3122_v1 }
  0xed   : > { %v2968_v49 = vpop.f32.mrb[5].mxu0  ;;  %v2973_v50 = vpop.f32.mrb[5].mxu1  ;;  %3045 = vmatpush3.msk.msra.mxu0 %vm254_vm0, %v628_v47  ;;  %3050 = vmatpush3.msk.msra.mxu1 %vm254_vm0, %v704_v48 }
  0xee   : > { %3047 = vmatmul.mubr.msk.f32.vlgmr.msra.gmra.mrb[20].mxu0 %vm250_vm2, %v1472_v45  ;;  %3052 = vmatmul.mubr.msk.f32.vlgmr.msra.gmra.mrb[20].mxu1 %vm250_vm2, %v1473_v46  ;;  %v1492_v49 = vld [vmem:[%s3441_s14 + $0x40] sm:$0xff]  ;;  %v1493_v50 = vld [vmem:[%s3441_s14 + $0x48] sm:$0xff] }
  0xef   : > { %3054 = vmatprep.subr.mxu0 %v3122_v1  ;;  %3059 = vmatprep.subr.mxu1 %v3122_v1 }
  0xf0   : > { %v780_v53 = vpop.f32.mrb[6].mxu0  ;;  %v856_v54 = vpop.f32.mrb[6].mxu1  ;;  %3056 = vmatprep.mubr.msk.f32.mxu0 %vm3123_vm1, %v3122_v1  ;;  %3061 = vmatprep.mubr.msk.f32.mxu1 %vm3123_vm1, %v3122_v1 }
  0xf1   : > { %v2978_v55 = vpop.f32.mrb[7].mxu0  ;;  %v2983_v56 = vpop.f32.mrb[7].mxu1  ;;  %3055 = vmatpush3.msk.msra.mxu0 %vm254_vm0, %v780_v53  ;;  %3060 = vmatpush3.msk.msra.mxu1 %vm254_vm0, %v856_v54 }
  0xf2   : > { %3057 = vmatmul.mubr.msk.f32.vlgmr.msra.gmra.mrb[22].mxu0 %vm250_vm2, %v1474_v51  ;;  %3062 = vmatmul.mubr.msk.f32.vlgmr.msra.gmra.mrb[22].mxu1 %vm250_vm2, %v1475_v52 }
  0xf3   : > { %3064 = vmatprep.subr.mxu0 %v3122_v1  ;;  %3069 = vmatprep.subr.mxu1 %v3122_v1 }
  0xf4   : > { %v932_v59 = vpop.f32.mrb[8].mxu0  ;;  %v1008_v60 = vpop.f32.mrb[8].mxu1  ;;  %3066 = vmatprep.mubr.msk.f32.mxu0 %vm3123_vm1, %v3122_v1  ;;  %3071 = vmatprep.mubr.msk.f32.mxu1 %vm3123_vm1, %v3122_v1 }
  0xf5   : > { %v2988_v61 = vpop.f32.mrb[9].mxu0  ;;  %v2993_v62 = vpop.f32.mrb[9].mxu1  ;;  %3065 = vmatpush3.msk.msra.mxu0 %vm254_vm0, %v932_v59  ;;  %3070 = vmatpush3.msk.msra.mxu1 %vm254_vm0, %v1008_v60 }
  0xf6   : > { %3067 = vmatmul.mubr.msk.f32.vlgmr.msra.gmra.mrb[24].mxu0 %vm250_vm2, %v1476_v57  ;;  %3072 = vmatmul.mubr.msk.f32.vlgmr.msra.gmra.mrb[24].mxu1 %vm250_vm2, %v1477_v58  ;;  %v1494_v57 = vld [vmem:[%s3441_s14 + $0x50] sm:$0xff]  ;;  %v1495_v58 = vld [vmem:[%s3441_s14 + $0x58] sm:$0xff] }
  0xf7   : > { %3074 = vmatprep.subr.mxu0 %v3122_v1  ;;  %3079 = vmatprep.subr.mxu1 %v3122_v1 }
  0xf8   : > { %v1084_v2 = vpop.f32.mrb[10].mxu0  ;;  %v1160_v3 = vpop.f32.mrb[10].mxu1  ;;  %3076 = vmatprep.mubr.msk.f32.mxu0 %vm3123_vm1, %v3122_v1  ;;  %3081 = vmatprep.mubr.msk.f32.mxu1 %vm3123_vm1, %v3122_v1 }
  0xf9   : > { %v2998_v4 = vpop.f32.mrb[11].mxu0  ;;  %v3003_v5 = vpop.f32.mrb[11].mxu1  ;;  %3075 = vmatpush3.msk.msra.mxu0 %vm254_vm0, %v1084_v2  ;;  %3080 = vmatpush3.msk.msra.mxu1 %vm254_vm0, %v1160_v3  ;;  %v1496_v2 = vld [vmem:[%s3441_s14 + $0x60] sm:$0xff]  ;;  %v1497_v3 = vld [vmem:[%s3441_s14 + $0x68] sm:$0xff] }
  0xfa   : > { %3077 = vmatmul.mubr.msk.f32.vlgmr.msra.gmra.mrb[26].mxu0 %vm250_vm2, %v1478_v63  ;;  %3082 = vmatmul.mubr.msk.f32.vlgmr.msra.gmra.mrb[26].mxu1 %vm250_vm2, %v1479_v0 }
  0xfb   : > { %3084 = vmatprep.subr.mxu0 %v3122_v1  ;;  %3089 = vmatprep.subr.mxu1 %v3122_v1 }
  0xfc   : > { %v1236_v8 = vpop.f32.mrb[12].mxu0  ;;  %v1312_v9 = vpop.f32.mrb[12].mxu1  ;;  %3086 = vmatprep.mubr.msk.f32.mxu0 %vm3123_vm1, %v3122_v1  ;;  %3091 = vmatprep.mubr.msk.f32.mxu1 %vm3123_vm1, %v3122_v1 }
  0xfd   : > { %v3008_v10 = vpop.f32.mrb[13].mxu0  ;;  %v3013_v11 = vpop.f32.mrb[13].mxu1  ;;  %3085 = vmatpush3.msk.msra.mxu0 %vm254_vm0, %v1236_v8  ;;  %3090 = vmatpush3.msk.msra.mxu1 %vm254_vm0, %v1312_v9 }
  0xfe   : > { %3087 = vmatmul.mubr.msk.f32.vlgmr.msra.gmra.mrb[28].mxu0 %vm250_vm2, %v1480_v6  ;;  %3092 = vmatmul.mubr.msk.f32.vlgmr.msra.gmra.mrb[28].mxu1 %vm250_vm2, %v1481_v7  ;;  %v1498_v10 = vld [vmem:[%s3441_s14 + $0x70] sm:$0xff]  ;;  %v1499_v11 = vld [vmem:[%s3441_s14 + $0x78] sm:$0xff] }
  0xff   : > { %3094 = vmatprep.subr.mxu0 %v3122_v1  ;;  %3099 = vmatprep.subr.mxu1 %v3122_v1 }
 0x100   : > { %v1388_v14 = vpop.f32.mrb[14].mxu0  ;;  %v1464_v15 = vpop.f32.mrb[14].mxu1  ;;  %3096 = vmatprep.mubr.msk.f32.mxu0 %vm3123_vm1, %v3122_v1  ;;  %3101 = vmatprep.mubr.msk.f32.mxu1 %vm3123_vm1, %v3122_v1  ;;  %v1484_v1 = vld [vmem:[%s3441_s14] sm:$0xff] }
 0x101   : > { %v3018_v16 = vpop.f32.mrb[15].mxu0  ;;  %v3023_v17 = vpop.f32.mrb[15].mxu1  ;;  %3095 = vmatpush3.msk.msra.mxu0 %vm254_vm0, %v1388_v14  ;;  %3100 = vmatpush3.msk.msra.mxu1 %vm254_vm0, %v1464_v15 }
 0x102   : > { %3097 = vmatmul.mubr.msk.f32.vlgmr.msra.gmra.mrb[30].mxu0 %vm250_vm2, %v1482_v12  ;;  %3102 = vmatmul.mubr.msk.f32.vlgmr.msra.gmra.mrb[30].mxu1 %vm250_vm2, %v1483_v13 }
 0x1b9   : > { %v1572_v19 = vpop.f32.mrb[16].mxu0  ;;  %v1648_v20 = vpop.f32.mrb[16].mxu1 }
 0x1ba   : > { %v1573_v21 = vadd.f32 %v1572_v19, %v1484_v1  ;;  %v1649_v22 = vadd.f32 %v1648_v20, %v1485_v18  ;;  %v3028_v23 = vpop.f32.mrb[17].mxu0  ;;  %v3033_v24 = vpop.f32.mrb[17].mxu1 }
 0x1bc   : > { %2717 = vst.msk [vmem:[%s3448_s19] sm:$0xff] %vm2716_vm3, %v1573_v21  ;;  %2718 = vst.msk [vmem:[%s3448_s19 + $0x8] sm:$0xff] %vm2716_vm3, %v1649_v22 }
 0x1bd   : > { %v1724_v27 = vpop.f32.mrb[18].mxu0  ;;  %v1800_v28 = vpop.f32.mrb[18].mxu1 }
 0x1be   : > { %v1725_v29 = vadd.f32 %v1724_v27, %v1486_v25  ;;  %v1801_v30 = vadd.f32 %v1800_v28, %v1487_v26  ;;  %v3038_v31 = vpop.f32.mrb[19].mxu0  ;;  %v3043_v32 = vpop.f32.mrb[19].mxu1 }
 0x1c0   : > { %2719 = vst.msk [vmem:[%s3448_s19 + $0x10] sm:$0xff] %vm2716_vm3, %v1725_v29  ;;  %2720 = vst.msk [vmem:[%s3448_s19 + $0x18] sm:$0xff] %vm2716_vm3, %v1801_v30 }
 0x1c1   : > { %v1876_v35 = vpop.f32.mrb[20].mxu0  ;;  %v1952_v36 = vpop.f32.mrb[20].mxu1 }
 0x1c2   : > { %v1877_v37 = vadd.f32 %v1876_v35, %v1488_v33  ;;  %v1953_v38 = vadd.f32 %v1952_v36, %v1489_v34  ;;  %v3048_v39 = vpop.f32.mrb[21].mxu0  ;;  %v3053_v40 = vpop.f32.mrb[21].mxu1 }
 0x1c4   : > { %2721 = vst.msk [vmem:[%s3448_s19 + $0x20] sm:$0xff] %vm2716_vm3, %v1877_v37  ;;  %2722 = vst.msk [vmem:[%s3448_s19 + $0x28] sm:$0xff] %vm2716_vm3, %v1953_v38 }
 0x1c5   : > { %v2028_v43 = vpop.f32.mrb[22].mxu0  ;;  %v2104_v44 = vpop.f32.mrb[22].mxu1 }
 0x1c6   : > { %v2029_v45 = vadd.f32 %v2028_v43, %v1490_v41  ;;  %v2105_v46 = vadd.f32 %v2104_v44, %v1491_v42  ;;  %v3058_v47 = vpop.f32.mrb[23].mxu0  ;;  %v3063_v48 = vpop.f32.mrb[23].mxu1 }
 0x1c8   : > { %2723 = vst.msk [vmem:[%s3448_s19 + $0x30] sm:$0xff] %vm2716_vm3, %v2029_v45  ;;  %2724 = vst.msk [vmem:[%s3448_s19 + $0x38] sm:$0xff] %vm2716_vm3, %v2105_v46 }
 0x1c9   : > { %v2180_v51 = vpop.f32.mrb[24].mxu0  ;;  %v2256_v52 = vpop.f32.mrb[24].mxu1 }
 0x1ca   : > { %v2181_v53 = vadd.f32 %v2180_v51, %v1492_v49  ;;  %v2257_v54 = vadd.f32 %v2256_v52, %v1493_v50  ;;  %v3068_v55 = vpop.f32.mrb[25].mxu0  ;;  %v3073_v56 = vpop.f32.mrb[25].mxu1 }
 0x1cc   : > { %2725 = vst.msk [vmem:[%s3448_s19 + $0x40] sm:$0xff] %vm2716_vm3, %v2181_v53  ;;  %2726 = vst.msk [vmem:[%s3448_s19 + $0x48] sm:$0xff] %vm2716_vm3, %v2257_v54 }
 0x1cd   : > { %v2332_v59 = vpop.f32.mrb[26].mxu0  ;;  %v2408_v60 = vpop.f32.mrb[26].mxu1 }
 0x1ce   : > { %v2333_v61 = vadd.f32 %v2332_v59, %v1494_v57  ;;  %v2409_v62 = vadd.f32 %v2408_v60, %v1495_v58  ;;  %v3078_v63 = vpop.f32.mrb[27].mxu0  ;;  %v3083_v0 = vpop.f32.mrb[27].mxu1 }
 0x1d0   : > { %2727 = vst.msk [vmem:[%s3448_s19 + $0x50] sm:$0xff] %vm2716_vm3, %v2333_v61  ;;  %2728 = vst.msk [vmem:[%s3448_s19 + $0x58] sm:$0xff] %vm2716_vm3, %v2409_v62 }
 0x1d1   : > { %v2484_v4 = vpop.f32.mrb[28].mxu0  ;;  %v2560_v5 = vpop.f32.mrb[28].mxu1 }
 0x1d2   : > { %v2485_v6 = vadd.f32 %v2484_v4, %v1496_v2  ;;  %v2561_v7 = vadd.f32 %v2560_v5, %v1497_v3  ;;  %v3088_v8 = vpop.f32.mrb[29].mxu0  ;;  %v3093_v9 = vpop.f32.mrb[29].mxu1 }
 0x1d4   : > { %2729 = vst.msk [vmem:[%s3448_s19 + $0x60] sm:$0xff] %vm2716_vm3, %v2485_v6  ;;  %2730 = vst.msk [vmem:[%s3448_s19 + $0x68] sm:$0xff] %vm2716_vm3, %v2561_v7 }
 0x1d5   : > { %v2636_v12 = vpop.f32.mrb[30].mxu0  ;;  %v2712_v13 = vpop.f32.mrb[30].mxu1 }
 0x1d6   : > { %v2637_v14 = vadd.f32 %v2636_v12, %v1498_v10  ;;  %v2713_v15 = vadd.f32 %v2712_v13, %v1499_v11  ;;  %v3098_v16 = vpop.f32.mrb[31].mxu0  ;;  %v3103_v17 = vpop.f32.mrb[31].mxu1 }
 0x1d8   : > { %2731 = vst.msk [vmem:[%s3448_s19 + $0x70] sm:$0xff] %vm2716_vm3, %v2637_v14  ;;  %2732 = vst.msk [vmem:[%s3448_s19 + $0x78] sm:$0xff] %vm2716_vm3, %v2713_v15 }
 0x1d9 PF: > { %s14_s15 = sadd.s32 1, %s3120_s15  }
 0x1da   : > { %p11_p4 = scmp.ge.s32.totalorder %s14_s15, 4  }
 0x1dc   :  { %13 = sbr.rel (!%p11_p4) target bundleno = 1 (0x1), region = 69 }

// kernel: vnet_forward.89
= control target key start
LH: loop header
LB: loop body
LE: loop exit
PB: predicated region body
PF: predicated region fallthrough
CT: control target
= control target key end

     0   :  { %s1788_s15 = smov 0   ;;  %s1978_s0 = inlined_call_operand.vmem [shape: f32[2,8,8,8], index: 0, kind: input, shape index: {}]   ;;  %s1979_s1 = inlined_call_operand.vmem [shape: f32[8,8,16], index: 1, kind: input, shape index: {}]   ;;  %s1980_s2 = inlined_call_operand.vmem [shape: f32[8,16,8], index: 2, kind: input, shape index: {}]   ;;  %s1981_s3 = inlined_call_operand.vmem [shape: f32[2,8,16,16], index: 3, kind: input, shape index: {}]   ;;  %s1982_s4 = inlined_call_operand.vmem [shape: f32[2,8,16,16], index: 4, kind: output, shape index: {}]  }
   0x1 LB: > { %s1583_s16 = sadd.s32 4294967295, %s1759_s15   ;;  %p1587_p0 = scmp.ge.s32.totalorder %s1759_s15, 1  ;;  %s1759_s15 = sphi %s1788_s15, %s14_s15  }
   0x2   : > { %p172_p1 = scmp.lt.s32.totalorder %s1759_s15, 3 }
   0x4   : > { %p173_p2 = pnand %p1587_p0, %p172_p1 }
   0x5   : > { %v226_v0 = vld [vmem:[%s1979_s1] sm:$0xff] (!%p173_p2)  ;;  %v227_v1 = vld [vmem:[%s1979_s1 + $0x8] sm:$0xff] (!%p173_p2)  ;;  %p203_p3 = scmp.lt.s32.totalorder (!%p173_p2), %s1583_s16, 1  ;;  %v1761_v2 = vmov (!%p173_p2), 0.0   ;;  %vm1762_vm0 = vmmov (!%p173_p2), 0   ;;  %vm234_vm1 = vcmask (!%p173_p2), 64512  }
   0x6   : > { %176 = sbr.rel (%p173_p2) target bundleno = 459 (0x1cb), region = 36  ;;  %1663 = vmatprep.subr.mxu0 (!%p173_p2), %v1761_v2  ;;  %1668 = vmatprep.subr.mxu1 (!%p173_p2), %v1761_v2  ;;  %v228_v3 = vld [vmem:[%s1979_s1 + $0x10] sm:$0xff] (!%p173_p2)  ;;  %v229_v6 = vld [vmem:[%s1979_s1 + $0x18] sm:$0xff] (!%p173_p2)  ;;  %v230_v9 = vld [vmem:[%s1979_s1 + $0x20] sm:$0xff] (!%p173_p2)  ;;  %vm1499_vm2 = vcmask (!%p173_p2), 130048  }
   0x7   : > { %1664 = vmatpush3.msra.mxu0 (!%p173_p2), %v226_v0  ;;  %1665 = vmatprep.mubr.msk.f32.mxu0 (!%p173_p2), %vm1762_vm0, %v1761_v2  ;;  %v231_v10 = vld [vmem:[%s1979_s1 + $0x28] sm:$0xff] (!%p173_p2)  ;;  %v232_v13 = vld [vmem:[%s1979_s1 + $0x30] sm:$0xff] (!%p173_p2)  ;;  %v233_v14 = vld [vmem:[%s1979_s1 + $0x38] sm:$0xff] (!%p173_p2) }
   0x8   : > { %1669 = vmatpush3.msra.mxu1 (!%p173_p2), %v227_v1  ;;  %1670 = vmatprep.mubr.msk.f32.mxu1 (!%p173_p2), %vm1762_vm0, %v1761_v2  ;;  %v819_v17 = vld [vmem:[%s1980_s2] sm:$0xff] (!%p173_p2)  ;;  %v821_v18 = vld [vmem:[%s1980_s2 + $0x10] sm:$0xff] (!%p173_p2)  ;;  %v820_v21 = vld [vmem:[%s1980_s2 + $0x8] sm:$0xff] (!%p173_p2) }
   0x9   : > { %1673 = vmatprep.subr.mxu0 (!%p173_p2), %v1761_v2  ;;  %1678 = vmatprep.subr.mxu1 (!%p173_p2), %v1761_v2  ;;  %v822_v22 = vld [vmem:[%s1980_s2 + $0x18] sm:$0xff] (!%p173_p2)  ;;  %v823_v25 = vld [vmem:[%s1980_s2 + $0x20] sm:$0xff] (!%p173_p2)  ;;  %v825_v26 = vld [vmem:[%s1980_s2 + $0x30] sm:$0xff] (!%p173_p2) }
   0xa   : > { %v824_v29 = vld [vmem:[%s1980_s2 + $0x28] sm:$0xff] (!%p173_p2)  ;;  %v826_v30 = vld [vmem:[%s1980_s2 + $0x38] sm:$0xff] (!%p173_p2)  ;;  %v827_v33 = vld [vmem:[%s1980_s2 + $0x40] sm:$0xff] (!%p173_p2) }
   0xb   : > { %v829_v34 = vld [vmem:[%s1980_s2 + $0x50] sm:$0xff] (!%p173_p2)  ;;  %v828_v37 = vld [vmem:[%s1980_s2 + $0x48] sm:$0xff] (!%p173_p2)  ;;  %v830_v38 = vld [vmem:[%s1980_s2 + $0x58] sm:$0xff] (!%p173_p2) }
   0xc   : > { %v831_v41 = vld [vmem:[%s1980_s2 + $0x60] sm:$0xff] (!%p173_p2)  ;;  %v833_v42 = vld [vmem:[%s1980_s2 + $0x70] sm:$0xff] (!%p173_p2)  ;;  %v832_v45 = vld [vmem:[%s1980_s2 + $0x68] sm:$0xff] (!%p173_p2) }
   0xd   : > { %s1984_s16 = smov (!%p203_p3, %s1583_s16), 1  ;;  %v834_v46 = vld [vmem:[%s1980_s2 + $0x78] sm:$0xff] }
   0xe   : > { %s1620_s21 = sshll.u32 %s1984_s16, 6 }
   0xf   : > { %s1810_s24 = scalar_lea.vmem %s1978_s0, %s1620_s21  ;;  %s1621_s21 = sshll.u32 %s1984_s16, 7 }
  0x10   : > { %v218_v4 = vld [vmem:[%s1810_s24] sm:$0xff]  ;;  %v219_v5 = vld [vmem:[%s1810_s24 + $0x8] sm:$0xff]  ;;  %v220_v7 = vld [vmem:[%s1810_s24 + $0x10] sm:$0xff]  ;;  %s1929_s16 = scalar_lea.vmem %s1982_s4, %s1621_s21 }
  0x11   : > { %1666 = vmatmul.mubr.msk.f32.vlgmr.msra.gmra.mrb[0].mxu0 %vm234_vm1, %v218_v4  ;;  %1671 = vmatmul.mubr.msk.f32.vlgmr.msra.gmra.mrb[0].mxu1 %vm234_vm1, %v219_v5  ;;  %v221_v8 = vld [vmem:[%s1810_s24 + $0x18] sm:$0xff]  ;;  %v222_v11 = vld [vmem:[%s1810_s24 + $0x20] sm:$0xff]  ;;  %v223_v12 = vld [vmem:[%s1810_s24 + $0x28] sm:$0xff] }
  0x12   : > { %1674 = vmatpush3.msra.mxu0 %v228_v3  ;;  %1675 = vmatprep.mubr.msk.f32.mxu0 %vm1762_vm0, %v1761_v2  ;;  %v224_v15 = vld [vmem:[%s1810_s24 + $0x30] sm:$0xff]  ;;  %v225_v16 = vld [vmem:[%s1810_s24 + $0x38] sm:$0xff]  ;;  %s1920_s24 = scalar_lea.vmem %s1981_s3, %s1621_s21 }
  0x13   : > { %1679 = vmatpush3.msra.mxu1 %v229_v6  ;;  %1680 = vmatprep.mubr.msk.f32.mxu1 %vm1762_vm0, %v1761_v2  ;;  %v836_v49 = vld [vmem:[%s1920_s24 + $0x8] sm:$0xff]  ;;  %v838_v50 = vld [vmem:[%s1920_s24 + $0x18] sm:$0xff]  ;;  %v835_v51 = vld [vmem:[%s1920_s24] sm:$0xff] }
  0x14   : > { %1683 = vmatprep.subr.mxu0 %v1761_v2  ;;  %1688 = vmatprep.subr.mxu1 %v1761_v2  ;;  %v837_v52 = vld [vmem:[%s1920_s24 + $0x10] sm:$0xff]  ;;  %v840_v61 = vld [vmem:[%s1920_s24 + $0x28] sm:$0xff]  ;;  %v842_v62 = vld [vmem:[%s1920_s24 + $0x38] sm:$0xff] }
  0x15   : > { %1676 = vmatmul.mubr.msk.f32.vlgmr.msra.gmra.mrb[2].mxu0 %vm234_vm1, %v220_v7  ;;  %1681 = vmatmul.mubr.msk.f32.vlgmr.msra.gmra.mrb[2].mxu1 %vm234_vm1, %v221_v8  ;;  %v839_v63 = vld [vmem:[%s1920_s24 + $0x20] sm:$0xff]  ;;  %v841_v0 = vld [vmem:[%s1920_s24 + $0x30] sm:$0xff] }
  0x16   : > { %1684 = vmatpush3.msra.mxu0 %v230_v9  ;;  %1685 = vmatprep.mubr.msk.f32.mxu0 %vm1762_vm0, %v1761_v2  ;;  %v844_v9 = vld [vmem:[%s1920_s24 + $0x48] sm:$0xff] }
  0x17   : > { %1689 = vmatpush3.msra.mxu1 %v231_v10  ;;  %1690 = vmatprep.mubr.msk.f32.mxu1 %vm1762_vm0, %v1761_v2  ;;  %v846_v10 = vld [vmem:[%s1920_s24 + $0x58] sm:$0xff] }
  0x18   : > { %1693 = vmatprep.subr.mxu0 %v1761_v2  ;;  %1698 = vmatprep.subr.mxu1 %v1761_v2 }
  0x19   : > { %1686 = vmatmul.mubr.msk.f32.vlgmr.msra.gmra.mrb[4].mxu0 %vm234_vm1, %v222_v11  ;;  %1691 = vmatmul.mubr.msk.f32.vlgmr.msra.gmra.mrb[4].mxu1 %vm234_vm1, %v223_v12  ;;  %v843_v11 = vld [vmem:[%s1920_s24 + $0x40] sm:$0xff]  ;;  %v845_v12 = vld [vmem:[%s1920_s24 + $0x50] sm:$0xff] }
  0x1a   : > { %1694 = vmatpush3.msra.mxu0 %v232_v13  ;;  %1695 = vmatprep.mubr.msk.f32.mxu0 %vm1762_vm0, %v1761_v2 }
  0x1b   : > { %1699 = vmatpush3.msra.mxu1 %v233_v14  ;;  %1700 = vmatprep.mubr.msk.f32.mxu1 %vm1762_vm0, %v1761_v2 }
  0x1d   : > { %1696 = vmatmul.mubr.msk.f32.vlgmr.msra.gmra.mrb[6].mxu0 %vm234_vm1, %v224_v15  ;;  %1701 = vmatmul.mubr.msk.f32.vlgmr.msra.gmra.mrb[6].mxu1 %vm234_vm1, %v225_v16 }
  0x1e   : > { %1705 = vmatprep.mubr.msk.f32.mxu0 %vm234_vm1, %v819_v17  ;;  %1710 = vmatprep.mubr.msk.f32.mxu1 %vm234_vm1, %v821_v18 }
  0xe4   : > { %v304_v19 = vpop.f32.mrb[0].mxu0  ;;  %v377_v20 = vpop.f32.mrb[0].mxu1 }
  0xe5   : > { %v1667_v23 = vpop.f32.mrb[1].mxu0  ;;  %v1672_v24 = vpop.f32.mrb[1].mxu1  ;;  %1703 = vmatprep.subr.mxu0 %v304_v19  ;;  %1708 = vmatprep.subr.mxu1 %v377_v20 }
  0xe6   : > { %1704 = vmatpush3.msra.mxu0 %v304_v19  ;;  %1709 = vmatpush3.msra.mxu1 %v377_v20  ;;  %v847_v23 = vld [vmem:[%s1920_s24 + $0x60] sm:$0xff]  ;;  %v849_v24 = vld [vmem:[%s1920_s24 + $0x70] sm:$0xff] }
  0xe7   : > { %1706 = vmatmul.mubr.msk.f32.vlgmr.msra.gmra.mrb[8].mxu0 %vm234_vm1, %v820_v21  ;;  %1711 = vmatmul.mubr.msk.f32.vlgmr.msra.gmra.mrb[8].mxu1 %vm234_vm1, %v822_v22  ;;  %v848_v21 = vld [vmem:[%s1920_s24 + $0x68] sm:$0xff]  ;;  %v850_v22 = vld [vmem:[%s1920_s24 + $0x78] sm:$0xff] }
  0xe8   : > { %v450_v27 = vpop.f32.mrb[2].mxu0  ;;  %v523_v28 = vpop.f32.mrb[2].mxu1  ;;  %1715 = vmatprep.mubr.msk.f32.mxu0 %vm234_vm1, %v823_v25  ;;  %1720 = vmatprep.mubr.msk.f32.mxu1 %vm234_vm1, %v825_v26 }
  0xe9   : > { %v1677_v31 = vpop.f32.mrb[3].mxu0  ;;  %v1682_v32 = vpop.f32.mrb[3].mxu1  ;;  %1713 = vmatprep.subr.mxu0 %v450_v27  ;;  %1718 = vmatprep.subr.mxu1 %v523_v28 }
  0xea   : > { %1714 = vmatpush3.msra.mxu0 %v450_v27  ;;  %1719 = vmatpush3.msra.mxu1 %v523_v28 }
  0xeb   : > { %1716 = vmatmul.mubr.msk.f32.vlgmr.msra.gmra.mrb[10].mxu0 %vm234_vm1, %v824_v29  ;;  %1721 = vmatmul.mubr.msk.f32.vlgmr.msra.gmra.mrb[10].mxu1 %vm234_vm1, %v826_v30 }
  0xec   : > { %v596_v35 = vpop.f32.mrb[4].mxu0  ;;  %v669_v36 = vpop.f32.mrb[4].mxu1  ;;  %1725 = vmatprep.mubr.msk.f32.mxu0 %vm234_vm1, %v827_v33  ;;  %1730 = vmatprep.mubr.msk.f32.mxu1 %vm234_vm1, %v829_v34 }
  0xed   : > { %v1687_v39 = vpop.f32.mrb[5].mxu0  ;;  %v1692_v40 = vpop.f32.mrb[5].mxu1  ;;  %1723 = vmatprep.subr.mxu0 %v596_v35  ;;  %1728 = vmatprep.subr.mxu1 %v669_v36 }
  0xee   : > { %1724 = vmatpush3.msra.mxu0 %v596_v35  ;;  %1729 = vmatpush3.msra.mxu1 %v669_v36 }
  0xef   : > { %1726 = vmatmul.mubr.msk.f32.vlgmr.msra.gmra.mrb[12].mxu0 %vm234_vm1, %v828_v37  ;;  %1731 = vmatmul.mubr.msk.f32.vlgmr.msra.gmra.mrb[12].mxu1 %vm234_vm1, %v830_v38 }
  0xf0   : > { %v742_v43 = vpop.f32.mrb[6].mxu0  ;;  %v815_v44 = vpop.f32.mrb[6].mxu1  ;;  %1735 = vmatprep.mubr.msk.f32.mxu0 %vm234_vm1, %v831_v41  ;;  %1740 = vmatprep.mubr.msk.f32.mxu1 %vm234_vm1, %v833_v42 }
  0xf1   : > { %v1697_v47 = vpop.f32.mrb[7].mxu0  ;;  %v1702_v48 = vpop.f32.mrb[7].mxu1  ;;  %1733 = vmatprep.subr.mxu0 %v742_v43  ;;  %1738 = vmatprep.subr.mxu1 %v815_v44 }
  0xf2   : > { %1734 = vmatpush3.msra.mxu0 %v742_v43  ;;  %1739 = vmatpush3.msra.mxu1 %v815_v44 }
  0xf3   : > { %1736 = vmatmul.mubr.msk.f32.vlgmr.msra.gmra.mrb[14].mxu0 %vm234_vm1, %v832_v45  ;;  %1741 = vmatmul.mubr.msk.f32.vlgmr.msra.gmra.mrb[14].mxu1 %vm234_vm1, %v834_v46 }
 0x1ba   : > { %v1707_v53 = vpop.f32.mrb[8].mxu0  ;;  %v1712_v54 = vpop.f32.mrb[8].mxu1 }
 0x1bb   : > { %v929_v55 = vadd.f32 %v1707_v53, %v836_v49  ;;  %v1010_v56 = vadd.f32 %v1712_v54, %v838_v50  ;;  %v923_v57 = vpop.f32.mrb[9].mxu0  ;;  %v1004_v58 = vpop.f32.mrb[9].mxu1 }
 0x1bc   : > { %v924_v59 = vadd.f32 %v923_v57, %v835_v51  ;;  %v1005_v60 = vadd.f32 %v1004_v58, %v837_v52 }
 0x1bd   : > { %1501 = vst.msk [vmem:[%s1929_s16 + $0x8] sm:$0xff] %vm1499_vm2, %v929_v55  ;;  %1503 = vst.msk [vmem:[%s1929_s16 + $0x18] sm:$0xff] %vm1499_vm2, %v1010_v56 }
 0x1be   : > { %1500 = vst.msk [vmem:[%s1929_s16] sm:$0xff] %vm1499_vm2, %v924_v59  ;;  %1502 = vst.msk [vmem:[%s1929_s16 + $0x10] sm:$0xff] %vm1499_vm2, %v1005_v60  ;;  %v1717_v1 = vpop.f32.mrb[10].mxu0  ;;  %v1722_v2 = vpop.f32.mrb[10].mxu1 }
 0x1bf   : > { %v1091_v3 = vadd.f32 %v1717_v1, %v840_v61  ;;  %v1172_v4 = vadd.f32 %v1722_v2, %v842_v62  ;;  %v1085_v5 = vpop.f32.mrb[11].mxu0  ;;  %v1166_v6 = vpop.f32.mrb[11].mxu1 }
 0x1c0   : > { %v1086_v7 = vadd.f32 %v1085_v5, %v839_v63  ;;  %v1167_v8 = vadd.f32 %v1166_v6, %v841_v0 }
 0x1c1   : > { %1505 = vst.msk [vmem:[%s1929_s16 + $0x28] sm:$0xff] %vm1499_vm2, %v1091_v3  ;;  %1507 = vst.msk [vmem:[%s1929_s16 + $0x38] sm:$0xff] %vm1499_vm2, %v1172_v4 }
 0x1c2   : > { %1504 = vst.msk [vmem:[%s1929_s16 + $0x20] sm:$0xff] %vm1499_vm2, %v1086_v7  ;;  %1506 = vst.msk [vmem:[%s1929_s16 + $0x30] sm:$0xff] %vm1499_vm2, %v1167_v8  ;;  %v1727_v13 = vpop.f32.mrb[12].mxu0  ;;  %v1732_v14 = vpop.f32.mrb[12].mxu1 }
 0x1c3   : > { %v1253_v15 = vadd.f32 %v1727_v13, %v844_v9  ;;  %v1334_v16 = vadd.f32 %v1732_v14, %v846_v10  ;;  %v1247_v17 = vpop.f32.mrb[13].mxu0  ;;  %v1328_v18 = vpop.f32.mrb[13].mxu1 }
 0x1c4   : > { %v1248_v19 = vadd.f32 %v1247_v17, %v843_v11  ;;  %v1329_v20 = vadd.f32 %v1328_v18, %v845_v12 }
 0x1c5   : > { %1509 = vst.msk [vmem:[%s1929_s16 + $0x48] sm:$0xff] %vm1499_vm2, %v1253_v15  ;;  %1511 = vst.msk [vmem:[%s1929_s16 + $0x58] sm:$0xff] %vm1499_vm2, %v1334_v16 }
 0x1c6   : > { %1508 = vst.msk [vmem:[%s1929_s16 + $0x40] sm:$0xff] %vm1499_vm2, %v1248_v19  ;;  %1510 = vst.msk [vmem:[%s1929_s16 + $0x50] sm:$0xff] %vm1499_vm2, %v1329_v20  ;;  %v1737_v25 = vpop.f32.mrb[14].mxu0  ;;  %v1742_v26 = vpop.f32.mrb[14].mxu1 }
 0x1c7   : > { %v1415_v27 = vadd.f32 %v1737_v25, %v848_v21  ;;  %v1496_v28 = vadd.f32 %v1742_v26, %v850_v22  ;;  %v1409_v29 = vpop.f32.mrb[15].mxu0  ;;  %v1490_v30 = vpop.f32.mrb[15].mxu1 }
 0x1c8   : > { %v1410_v31 = vadd.f32 %v1409_v29, %v847_v23  ;;  %v1491_v32 = vadd.f32 %v1490_v30, %v849_v24 }
 0x1c9   : > { %1513 = vst.msk [vmem:[%s1929_s16 + $0x68] sm:$0xff] %vm1499_vm2, %v1415_v27  ;;  %1515 = vst.msk [vmem:[%s1929_s16 + $0x78] sm:$0xff] %vm1499_vm2, %v1496_v28 }
 0x1ca   : > { %1512 = vst.msk [vmem:[%s1929_s16 + $0x60] sm:$0xff] %vm1499_vm2, %v1410_v31  ;;  %1514 = vst.msk [vmem:[%s1929_s16 + $0x70] sm:$0xff] %vm1499_vm2, %v1491_v32 }
 0x1cb PF: > { %s14_s15 = sadd.s32 1, %s1759_s15  }
 0x1cc   : > { %p11_p4 = scmp.ge.s32.totalorder %s14_s15, 4  }
 0x1ce   :  { %13 = sbr.rel (!%p11_p4) target bundleno = 1 (0x1), region = 69 }

// kernel: vnet_forward.79
= control target key start
LH: loop header
LB: loop body
LE: loop exit
PB: predicated region body
PF: predicated region fallthrough
CT: control target
= control target key end

     0   :  { %s5949_s15 = smov 0   ;;  %s6619_s0 = inlined_call_operand.vmem [shape: f32[2,32,2,2], index: 0, kind: input, shape index: {}]   ;;  %s6620_s1 = inlined_call_operand.vmem [shape: f32[32,2,4], index: 1, kind: input, shape index: {}]   ;;  %s6621_s2 = inlined_call_operand.vmem [shape: f32[32,4,2], index: 2, kind: input, shape index: {}]   ;;  %s6622_s3 = inlined_call_operand.vmem [shape: f32[2,32,4,4], index: 3, kind: input, shape index: {}]   ;;  %s6623_s4 = inlined_call_operand.vmem [shape: f32[2,32,4,4], index: 4, kind: output, shape index: {}]  }
   0x1 LB: > { %s5312_s16 = sadd.s32 4294967295, %s5920_s15   ;;  %p5316_p0 = scmp.ge.s32.totalorder %s5920_s15, 1  ;;  %s5920_s15 = sphi %s5949_s15, %s14_s15  }
   0x2   : > { %p172_p1 = scmp.lt.s32.totalorder %s5920_s15, 3 }
   0x4   : > { %p173_p2 = pnand %p5316_p0, %p172_p1 }
   0x5   : > { %v250_v0 = vld [vmem:[%s6620_s1] sm:$0x3] (!%p173_p2)  ;;  %vm286_vm0 = vcmask (!%p173_p2), 1041408   ;;  %p203_p3 = scmp.lt.s32.totalorder (!%p173_p2), %s5312_s16, 1  ;;  %v5922_v1 = vmov (!%p173_p2), 0.0   ;;  %vm5923_vm1 = vmmov (!%p173_p2), 0  }
   0x6   : > { %176 = sbr.rel (%p173_p2) target bundleno = 505 (0x1f9), region = 36  ;;  %5584 = vmatprep.subr.mxu0 (!%p173_p2), %v5922_v1  ;;  %5589 = vmatprep.subr.mxu1 (!%p173_p2), %v5922_v1  ;;  %v251_v2 = vld [vmem:[%s6620_s1 + $0x2] sm:$0x3] (!%p173_p2)  ;;  %vm282_vm2 = vcmask (!%p173_p2), 15360   ;;  %v252_v3 = vld [vmem:[%s6620_s1 + $0x4] sm:$0x3] (!%p173_p2) }
   0x7   : > { %5585 = vmatpush3.msk.msra.mxu0 (!%p173_p2), %vm286_vm0, %v250_v0  ;;  %5586 = vmatprep.mubr.msk.f32.mxu0 (!%p173_p2), %vm5923_vm1, %v5922_v1  ;;  %v253_v6 = vld [vmem:[%s6620_s1 + $0x6] sm:$0x3] (!%p173_p2)  ;;  %v254_v9 = vld [vmem:[%s6620_s1 + $0x8] sm:$0x3] (!%p173_p2)  ;;  %v255_v10 = vld [vmem:[%s6620_s1 + $0xa] sm:$0x3] (!%p173_p2) }
   0x8   : > { %5590 = vmatpush3.msk.msra.mxu1 (!%p173_p2), %vm286_vm0, %v251_v2  ;;  %5591 = vmatprep.mubr.msk.f32.mxu1 (!%p173_p2), %vm5923_vm1, %v5922_v1  ;;  %v256_v13 = vld [vmem:[%s6620_s1 + $0xc] sm:$0x3] (!%p173_p2)  ;;  %v257_v14 = vld [vmem:[%s6620_s1 + $0xe] sm:$0x3] (!%p173_p2)  ;;  %v258_v17 = vld [vmem:[%s6620_s1 + $0x10] sm:$0x3] (!%p173_p2) }
   0x9   : > { %5594 = vmatprep.subr.mxu0 (!%p173_p2), %v5922_v1  ;;  %5599 = vmatprep.subr.mxu1 (!%p173_p2), %v5922_v1  ;;  %v259_v18 = vld [vmem:[%s6620_s1 + $0x12] sm:$0x3] (!%p173_p2)  ;;  %v260_v21 = vld [vmem:[%s6620_s1 + $0x14] sm:$0x3] (!%p173_p2)  ;;  %v261_v22 = vld [vmem:[%s6620_s1 + $0x16] sm:$0x3] (!%p173_p2) }
   0xa   : > { %v262_v25 = vld [vmem:[%s6620_s1 + $0x18] sm:$0x3] (!%p173_p2)  ;;  %v263_v26 = vld [vmem:[%s6620_s1 + $0x1a] sm:$0x3] (!%p173_p2)  ;;  %v264_v29 = vld [vmem:[%s6620_s1 + $0x1c] sm:$0x3] (!%p173_p2) }
   0xb   : > { %v265_v30 = vld [vmem:[%s6620_s1 + $0x1e] sm:$0x3] (!%p173_p2)  ;;  %v266_v33 = vld [vmem:[%s6620_s1 + $0x20] sm:$0x3] (!%p173_p2)  ;;  %v267_v34 = vld [vmem:[%s6620_s1 + $0x22] sm:$0x3] (!%p173_p2) }
   0xc   : > { %v268_v37 = vld [vmem:[%s6620_s1 + $0x24] sm:$0x3] (!%p173_p2)  ;;  %v269_v38 = vld [vmem:[%s6620_s1 + $0x26] sm:$0x3] (!%p173_p2)  ;;  %v270_v41 = vld [vmem:[%s6620_s1 + $0x28] sm:$0x3] (!%p173_p2) }
   0xd   : > { %s6625_s16 = smov (!%p203_p3, %s5312_s16), 1  ;;  %v271_v42 = vld [vmem:[%s6620_s1 + $0x2a] sm:$0x3]  ;;  %v272_v45 = vld [vmem:[%s6620_s1 + $0x2c] sm:$0x3]  ;;  %vm5212_vm3 = vcmask 27648  }
   0xe   : > { %s5453_s21 = sshll.u32 %s6625_s16, 6  ;;  %v273_v46 = vld [vmem:[%s6620_s1 + $0x2e] sm:$0x3]  ;;  %v274_v49 = vld [vmem:[%s6620_s1 + $0x30] sm:$0x3]  ;;  %s5454_s5 = sshll.u32 %s6625_s16, 7 }
   0xf   : > { %s5979_s24 = scalar_lea.vmem %s6619_s0, %s5453_s21  ;;  %v275_v50 = vld [vmem:[%s6620_s1 + $0x32] sm:$0x3]  ;;  %v276_v53 = vld [vmem:[%s6620_s1 + $0x34] sm:$0x3]  ;;  %v277_v54 = vld [vmem:[%s6620_s1 + $0x36] sm:$0x3]  ;;  %s6513_s8 = scalar_lea.vmem %s6622_s3, %s5454_s5 }
  0x10   : > { %v218_v4 = vld [vmem:[%s5979_s24] sm:$0x3]  ;;  %v219_v5 = vld [vmem:[%s5979_s24 + $0x2] sm:$0x3]  ;;  %v220_v7 = vld [vmem:[%s5979_s24 + $0x4] sm:$0x3]  ;;  %s6520_s11 = scalar_lea.vmem %s6623_s4, %s5454_s5 }
  0x11   : > { %5587 = vmatmul.mubr.msk.f32.vlgmr.msra.gmra.mrb[0].mxu0 %vm282_vm2, %v218_v4  ;;  %5592 = vmatmul.mubr.msk.f32.vlgmr.msra.gmra.mrb[0].mxu1 %vm282_vm2, %v219_v5  ;;  %v221_v8 = vld [vmem:[%s5979_s24 + $0x6] sm:$0x3]  ;;  %v222_v11 = vld [vmem:[%s5979_s24 + $0x8] sm:$0x3]  ;;  %v223_v12 = vld [vmem:[%s5979_s24 + $0xa] sm:$0x3] }
  0x12   : > { %5595 = vmatpush3.msk.msra.mxu0 %vm286_vm0, %v252_v3  ;;  %5596 = vmatprep.mubr.msk.f32.mxu0 %vm5923_vm1, %v5922_v1  ;;  %v224_v15 = vld [vmem:[%s5979_s24 + $0xc] sm:$0x3]  ;;  %v225_v16 = vld [vmem:[%s5979_s24 + $0xe] sm:$0x3]  ;;  %v226_v19 = vld [vmem:[%s5979_s24 + $0x10] sm:$0x3] }
  0x13   : > { %5600 = vmatpush3.msk.msra.mxu1 %vm286_vm0, %v253_v6  ;;  %5601 = vmatprep.mubr.msk.f32.mxu1 %vm5923_vm1, %v5922_v1  ;;  %v227_v20 = vld [vmem:[%s5979_s24 + $0x12] sm:$0x3]  ;;  %v228_v23 = vld [vmem:[%s5979_s24 + $0x14] sm:$0x3]  ;;  %v229_v24 = vld [vmem:[%s5979_s24 + $0x16] sm:$0x3] }
  0x14   : > { %5604 = vmatprep.subr.mxu0 %v5922_v1  ;;  %5609 = vmatprep.subr.mxu1 %v5922_v1  ;;  %v230_v27 = vld [vmem:[%s5979_s24 + $0x18] sm:$0x3]  ;;  %v231_v28 = vld [vmem:[%s5979_s24 + $0x1a] sm:$0x3]  ;;  %v232_v31 = vld [vmem:[%s5979_s24 + $0x1c] sm:$0x3] }
  0x15   : > { %5597 = vmatmul.mubr.msk.f32.vlgmr.msra.gmra.mrb[2].mxu0 %vm282_vm2, %v220_v7  ;;  %5602 = vmatmul.mubr.msk.f32.vlgmr.msra.gmra.mrb[2].mxu1 %vm282_vm2, %v221_v8  ;;  %v233_v32 = vld [vmem:[%s5979_s24 + $0x1e] sm:$0x3]  ;;  %v234_v35 = vld [vmem:[%s5979_s24 + $0x20] sm:$0x3]  ;;  %v235_v36 = vld [vmem:[%s5979_s24 + $0x22] sm:$0x3] }
  0x16   : > { %5605 = vmatpush3.msk.msra.mxu0 %vm286_vm0, %v254_v9  ;;  %5606 = vmatprep.mubr.msk.f32.mxu0 %vm5923_vm1, %v5922_v1  ;;  %v236_v39 = vld [vmem:[%s5979_s24 + $0x24] sm:$0x3]  ;;  %v237_v40 = vld [vmem:[%s5979_s24 + $0x26] sm:$0x3]  ;;  %v238_v43 = vld [vmem:[%s5979_s24 + $0x28] sm:$0x3] }
  0x17   : > { %5610 = vmatpush3.msk.msra.mxu1 %vm286_vm0, %v255_v10  ;;  %5611 = vmatprep.mubr.msk.f32.mxu1 %vm5923_vm1, %v5922_v1  ;;  %v239_v44 = vld [vmem:[%s5979_s24 + $0x2a] sm:$0x3]  ;;  %v240_v47 = vld [vmem:[%s5979_s24 + $0x2c] sm:$0x3]  ;;  %v241_v48 = vld [vmem:[%s5979_s24 + $0x2e] sm:$0x3] }
  0x18   : > { %5614 = vmatprep.subr.mxu0 %v5922_v1  ;;  %5619 = vmatprep.subr.mxu1 %v5922_v1  ;;  %v242_v51 = vld [vmem:[%s5979_s24 + $0x30] sm:$0x3]  ;;  %v243_v52 = vld [vmem:[%s5979_s24 + $0x32] sm:$0x3]  ;;  %v244_v55 = vld [vmem:[%s5979_s24 + $0x34] sm:$0x3] }
  0x19   : > { %5607 = vmatmul.mubr.msk.f32.vlgmr.msra.gmra.mrb[4].mxu0 %vm282_vm2, %v222_v11  ;;  %5612 = vmatmul.mubr.msk.f32.vlgmr.msra.gmra.mrb[4].mxu1 %vm282_vm2, %v223_v12  ;;  %v245_v56 = vld [vmem:[%s5979_s24 + $0x36] sm:$0x3]  ;;  %v278_v57 = vld [vmem:[%s6620_s1 + $0x38] sm:$0x3]  ;;  %v279_v58 = vld [vmem:[%s6620_s1 + $0x3a] sm:$0x3] }
  0x1a   : > { %5615 = vmatpush3.msk.msra.mxu0 %vm286_vm0, %v256_v13  ;;  %5616 = vmatprep.mubr.msk.f32.mxu0 %vm5923_vm1, %v5922_v1  ;;  %v246_v59 = vld [vmem:[%s5979_s24 + $0x38] sm:$0x3]  ;;  %v247_v60 = vld [vmem:[%s5979_s24 + $0x3a] sm:$0x3]  ;;  %v280_v61 = vld [vmem:[%s6620_s1 + $0x3c] sm:$0x3] }
  0x1b   : > { %5620 = vmatpush3.msk.msra.mxu1 %vm286_vm0, %v257_v14  ;;  %5621 = vmatprep.mubr.msk.f32.mxu1 %vm5923_vm1, %v5922_v1  ;;  %v281_v62 = vld [vmem:[%s6620_s1 + $0x3e] sm:$0x3]  ;;  %v248_v63 = vld [vmem:[%s5979_s24 + $0x3c] sm:$0x3]  ;;  %v2716_v2 = vld [vmem:[%s6621_s2] sm:$0xf] }
  0x1c   : > { %5624 = vmatprep.subr.mxu0 %v5922_v1  ;;  %5629 = vmatprep.subr.mxu1 %v5922_v1  ;;  %v249_v0 = vld [vmem:[%s5979_s24 + $0x3e] sm:$0x3]  ;;  %v2717_v3 = vld [vmem:[%s6621_s2 + $0x4] sm:$0xf]  ;;  %v2718_v8 = vld [vmem:[%s6621_s2 + $0x8] sm:$0xf] }
  0x1d   : > { %5617 = vmatmul.mubr.msk.f32.vlgmr.msra.gmra.mrb[6].mxu0 %vm282_vm2, %v224_v15  ;;  %5622 = vmatmul.mubr.msk.f32.vlgmr.msra.gmra.mrb[6].mxu1 %vm282_vm2, %v225_v16  ;;  %v2719_v9 = vld [vmem:[%s6621_s2 + $0xc] sm:$0xf]  ;;  %v2720_v14 = vld [vmem:[%s6621_s2 + $0x10] sm:$0xf]  ;;  %v2721_v15 = vld [vmem:[%s6621_s2 + $0x14] sm:$0xf] }
  0x1e   : > { %5625 = vmatpush3.msk.msra.mxu0 %vm286_vm0, %v258_v17  ;;  %5626 = vmatprep.mubr.msk.f32.mxu0 %vm5923_vm1, %v5922_v1 }
  0x1f   : > { %5630 = vmatpush3.msk.msra.mxu1 %vm286_vm0, %v259_v18  ;;  %5631 = vmatprep.mubr.msk.f32.mxu1 %vm5923_vm1, %v5922_v1 }
  0x20   : > { %5634 = vmatprep.subr.mxu0 %v5922_v1  ;;  %5639 = vmatprep.subr.mxu1 %v5922_v1 }
  0x21   : > { %5627 = vmatmul.mubr.msk.f32.vlgmr.msra.gmra.mrb[8].mxu0 %vm282_vm2, %v226_v19  ;;  %5632 = vmatmul.mubr.msk.f32.vlgmr.msra.gmra.mrb[8].mxu1 %vm282_vm2, %v227_v20  ;;  %v2722_v20 = vld [vmem:[%s6621_s2 + $0x18] sm:$0xf] }
  0x22   : > { %5635 = vmatpush3.msk.msra.mxu0 %vm286_vm0, %v260_v21  ;;  %5636 = vmatprep.mubr.msk.f32.mxu0 %vm5923_vm1, %v5922_v1  ;;  %v2723_v21 = vld [vmem:[%s6621_s2 + $0x1c] sm:$0xf] }
  0x23   : > { %5640 = vmatpush3.msk.msra.mxu1 %vm286_vm0, %v261_v22  ;;  %5641 = vmatprep.mubr.msk.f32.mxu1 %vm5923_vm1, %v5922_v1 }
  0x24   : > { %5644 = vmatprep.subr.mxu0 %v5922_v1  ;;  %5649 = vmatprep.subr.mxu1 %v5922_v1 }
  0x25   : > { %5637 = vmatmul.mubr.msk.f32.vlgmr.msra.gmra.mrb[10].mxu0 %vm282_vm2, %v228_v23  ;;  %5642 = vmatmul.mubr.msk.f32.vlgmr.msra.gmra.mrb[10].mxu1 %vm282_vm2, %v229_v24 }
  0x26   : > { %5645 = vmatpush3.msk.msra.mxu0 %vm286_vm0, %v262_v25  ;;  %5646 = vmatprep.mubr.msk.f32.mxu0 %vm5923_vm1, %v5922_v1 }
  0x27   : > { %5650 = vmatpush3.msk.msra.mxu1 %vm286_vm0, %v263_v26  ;;  %5651 = vmatprep.mubr.msk.f32.mxu1 %vm5923_vm1, %v5922_v1  ;;  %v2724_v26 = vld [vmem:[%s6621_s2 + $0x20] sm:$0xf] }
  0x28   : > { %5654 = vmatprep.subr.mxu0 %v5922_v1  ;;  %5659 = vmatprep.subr.mxu1 %v5922_v1 }
  0x29   : > { %5647 = vmatmul.mubr.msk.f32.vlgmr.msra.gmra.mrb[12].mxu0 %vm282_vm2, %v230_v27  ;;  %5652 = vmatmul.mubr.msk.f32.vlgmr.msra.gmra.mrb[12].mxu1 %vm282_vm2, %v231_v28  ;;  %v2725_v27 = vld [vmem:[%s6621_s2 + $0x24] sm:$0xf] }
  0x2a   : > { %5655 = vmatpush3.msk.msra.mxu0 %vm286_vm0, %v264_v29  ;;  %5656 = vmatprep.mubr.msk.f32.mxu0 %vm5923_vm1, %v5922_v1 }
  0x2b   : > { %5660 = vmatpush3.msk.msra.mxu1 %vm286_vm0, %v265_v30  ;;  %5661 = vmatprep.mubr.msk.f32.mxu1 %vm5923_vm1, %v5922_v1 }
  0x2c   : > { %5664 = vmatprep.subr.mxu0 %v5922_v1  ;;  %5669 = vmatprep.subr.mxu1 %v5922_v1 }
  0x2d   : > { %5657 = vmatmul.mubr.msk.f32.vlgmr.msra.gmra.mrb[14].mxu0 %vm282_vm2, %v232_v31  ;;  %5662 = vmatmul.mubr.msk.f32.vlgmr.msra.gmra.mrb[14].mxu1 %vm282_vm2, %v233_v32  ;;  %v2726_v32 = vld [vmem:[%s6621_s2 + $0x28] sm:$0xf] }
  0x2e   : > { %5665 = vmatpush3.msk.msra.mxu0 %vm286_vm0, %v266_v33  ;;  %5666 = vmatprep.mubr.msk.f32.mxu0 %vm5923_vm1, %v5922_v1  ;;  %v2727_v33 = vld [vmem:[%s6621_s2 + $0x2c] sm:$0xf] }
  0x2f   : > { %5670 = vmatpush3.msk.msra.mxu1 %vm286_vm0, %v267_v34  ;;  %5671 = vmatprep.mubr.msk.f32.mxu1 %vm5923_vm1, %v5922_v1 }
  0x30   : > { %5674 = vmatprep.subr.mxu0 %v5922_v1  ;;  %5679 = vmatprep.subr.mxu1 %v5922_v1 }
  0x31   : > { %5667 = vmatmul.mubr.msk.f32.vlgmr.msra.gmra.mrb[16].mxu0 %vm282_vm2, %v234_v35  ;;  %5672 = vmatmul.mubr.msk.f32.vlgmr.msra.gmra.mrb[16].mxu1 %vm282_vm2, %v235_v36 }
  0x32   : > { %5675 = vmatpush3.msk.msra.mxu0 %vm286_vm0, %v268_v37  ;;  %5676 = vmatprep.mubr.msk.f32.mxu0 %vm5923_vm1, %v5922_v1 }
  0x33   : > { %5680 = vmatpush3.msk.msra.mxu1 %vm286_vm0, %v269_v38  ;;  %5681 = vmatprep.mubr.msk.f32.mxu1 %vm5923_vm1, %v5922_v1  ;;  %v2728_v38 = vld [vmem:[%s6621_s2 + $0x30] sm:$0xf] }
  0x34   : > { %5684 = vmatprep.subr.mxu0 %v5922_v1  ;;  %5689 = vmatprep.subr.mxu1 %v5922_v1 }
  0x35   : > { %5677 = vmatmul.mubr.msk.f32.vlgmr.msra.gmra.mrb[18].mxu0 %vm282_vm2, %v236_v39  ;;  %5682 = vmatmul.mubr.msk.f32.vlgmr.msra.gmra.mrb[18].mxu1 %vm282_vm2, %v237_v40  ;;  %v2729_v39 = vld [vmem:[%s6621_s2 + $0x34] sm:$0xf] }
  0x36   : > { %5685 = vmatpush3.msk.msra.mxu0 %vm286_vm0, %v270_v41  ;;  %5686 = vmatprep.mubr.msk.f32.mxu0 %vm5923_vm1, %v5922_v1 }
  0x37   : > { %5690 = vmatpush3.msk.msra.mxu1 %vm286_vm0, %v271_v42  ;;  %5691 = vmatprep.mubr.msk.f32.mxu1 %vm5923_vm1, %v5922_v1 }
  0x38   : > { %5694 = vmatprep.subr.mxu0 %v5922_v1  ;;  %5699 = vmatprep.subr.mxu1 %v5922_v1 }
  0x39   : > { %5687 = vmatmul.mubr.msk.f32.vlgmr.msra.gmra.mrb[20].mxu0 %vm282_vm2, %v238_v43  ;;  %5692 = vmatmul.mubr.msk.f32.vlgmr.msra.gmra.mrb[20].mxu1 %vm282_vm2, %v239_v44  ;;  %v2730_v44 = vld [vmem:[%s6621_s2 + $0x38] sm:$0xf] }
  0x3a   : > { %5695 = vmatpush3.msk.msra.mxu0 %vm286_vm0, %v272_v45  ;;  %5696 = vmatprep.mubr.msk.f32.mxu0 %vm5923_vm1, %v5922_v1  ;;  %v2731_v45 = vld [vmem:[%s6621_s2 + $0x3c] sm:$0xf] }
  0x3b   : > { %5700 = vmatpush3.msk.msra.mxu1 %vm286_vm0, %v273_v46  ;;  %5701 = vmatprep.mubr.msk.f32.mxu1 %vm5923_vm1, %v5922_v1 }
  0x3c   : > { %5704 = vmatprep.subr.mxu0 %v5922_v1  ;;  %5709 = vmatprep.subr.mxu1 %v5922_v1 }
  0x3d   : > { %5697 = vmatmul.mubr.msk.f32.vlgmr.msra.gmra.mrb[22].mxu0 %vm282_vm2, %v240_v47  ;;  %5702 = vmatmul.mubr.msk.f32.vlgmr.msra.gmra.mrb[22].mxu1 %vm282_vm2, %v241_v48 }
  0x3e   : > { %5705 = vmatpush3.msk.msra.mxu0 %vm286_vm0, %v274_v49  ;;  %5706 = vmatprep.mubr.msk.f32.mxu0 %vm5923_vm1, %v5922_v1 }
  0x3f   : > { %5710 = vmatpush3.msk.msra.mxu1 %vm286_vm0, %v275_v50  ;;  %5711 = vmatprep.mubr.msk.f32.mxu1 %vm5923_vm1, %v5922_v1  ;;  %v2732_v50 = vld [vmem:[%s6621_s2 + $0x40] sm:$0xf] }
  0x40   : > { %5714 = vmatprep.subr.mxu0 %v5922_v1  ;;  %5719 = vmatprep.subr.mxu1 %v5922_v1 }
  0x41   : > { %5707 = vmatmul.mubr.msk.f32.vlgmr.msra.gmra.mrb[24].mxu0 %vm282_vm2, %v242_v51  ;;  %5712 = vmatmul.mubr.msk.f32.vlgmr.msra.gmra.mrb[24].mxu1 %vm282_vm2, %v243_v52  ;;  %v2733_v51 = vld [vmem:[%s6621_s2 + $0x44] sm:$0xf] }
  0x42   : > { %5715 = vmatpush3.msk.msra.mxu0 %vm286_vm0, %v276_v53  ;;  %5716 = vmatprep.mubr.msk.f32.mxu0 %vm5923_vm1, %v5922_v1 }
  0x43   : > { %5720 = vmatpush3.msk.msra.mxu1 %vm286_vm0, %v277_v54  ;;  %5721 = vmatprep.mubr.msk.f32.mxu1 %vm5923_vm1, %v5922_v1 }
  0x44   : > { %5724 = vmatprep.subr.mxu0 %v5922_v1  ;;  %5729 = vmatprep.subr.mxu1 %v5922_v1 }
  0x45   : > { %5717 = vmatmul.mubr.msk.f32.vlgmr.msra.gmra.mrb[26].mxu0 %vm282_vm2, %v244_v55  ;;  %5722 = vmatmul.mubr.msk.f32.vlgmr.msra.gmra.mrb[26].mxu1 %vm282_vm2, %v245_v56  ;;  %v2734_v56 = vld [vmem:[%s6621_s2 + $0x48] sm:$0xf] }
  0x46   : > { %5725 = vmatpush3.msk.msra.mxu0 %vm286_vm0, %v278_v57  ;;  %5726 = vmatprep.mubr.msk.f32.mxu0 %vm5923_vm1, %v5922_v1  ;;  %v2735_v57 = vld [vmem:[%s6621_s2 + $0x4c] sm:$0xf] }
  0x47   : > { %5730 = vmatpush3.msk.msra.mxu1 %vm286_vm0, %v279_v58  ;;  %5731 = vmatprep.mubr.msk.f32.mxu1 %vm5923_vm1, %v5922_v1 }
  0x48   : > { %5734 = vmatprep.subr.mxu0 %v5922_v1  ;;  %5739 = vmatprep.subr.mxu1 %v5922_v1 }
  0x49   : > { %5727 = vmatmul.mubr.msk.f32.vlgmr.msra.gmra.mrb[28].mxu0 %vm282_vm2, %v246_v59  ;;  %5732 = vmatmul.mubr.msk.f32.vlgmr.msra.gmra.mrb[28].mxu1 %vm282_vm2, %v247_v60 }
  0x4a   : > { %5735 = vmatpush3.msk.msra.mxu0 %vm286_vm0, %v280_v61  ;;  %5736 = vmatprep.mubr.msk.f32.mxu0 %vm5923_vm1, %v5922_v1 }
  0x4b   : > { %5740 = vmatpush3.msk.msra.mxu1 %vm286_vm0, %v281_v62  ;;  %5741 = vmatprep.mubr.msk.f32.mxu1 %vm5923_vm1, %v5922_v1  ;;  %v2736_v62 = vld [vmem:[%s6621_s2 + $0x50] sm:$0xf] }
  0x4c   : > { %5744 = vmatprep.subr.mxu0 %v5922_v1  ;;  %5749 = vmatprep.subr.mxu1 %v5922_v1 }
  0x4d   : > { %5737 = vmatmul.mubr.msk.f32.vlgmr.msra.gmra.mrb[30].mxu0 %vm282_vm2, %v248_v63  ;;  %5742 = vmatmul.mubr.msk.f32.vlgmr.msra.gmra.mrb[30].mxu1 %vm282_vm2, %v249_v0  ;;  %v2737_v63 = vld [vmem:[%s6621_s2 + $0x54] sm:$0xf] }
  0x4e   : > { %5746 = vmatprep.mubr.msk.f32.mxu0 %vm5923_vm1, %v5922_v1  ;;  %5751 = vmatprep.mubr.msk.f32.mxu1 %vm5923_vm1, %v5922_v1 }
  0xe4   : > { %v356_v4 = vpop.f32.mrb[0].mxu0  ;;  %v432_v5 = vpop.f32.mrb[0].mxu1 }
  0xe5   : > { %v5588_v6 = vpop.f32.mrb[1].mxu0  ;;  %v5593_v7 = vpop.f32.mrb[1].mxu1  ;;  %5745 = vmatpush3.msk.msra.mxu0 %vm286_vm0, %v356_v4  ;;  %5750 = vmatpush3.msk.msra.mxu1 %vm286_vm0, %v432_v5  ;;  %v2738_v5 = vld [vmem:[%s6621_s2 + $0x58] sm:$0xf] }
  0xe6   : > { %5747 = vmatmul.mubr.msk.f32.vlgmr.msra.gmra.mrb[32].mxu0 %vm282_vm2, %v2716_v2  ;;  %5752 = vmatmul.mubr.msk.f32.vlgmr.msra.gmra.mrb[32].mxu1 %vm282_vm2, %v2717_v3  ;;  %v2739_v6 = vld [vmem:[%s6621_s2 + $0x5c] sm:$0xf] }
  0xe7   : > { %5754 = vmatprep.subr.mxu0 %v5922_v1  ;;  %5759 = vmatprep.subr.mxu1 %v5922_v1 }
  0xe8   : > { %v508_v10 = vpop.f32.mrb[2].mxu0  ;;  %v584_v11 = vpop.f32.mrb[2].mxu1  ;;  %5756 = vmatprep.mubr.msk.f32.mxu0 %vm5923_vm1, %v5922_v1  ;;  %5761 = vmatprep.mubr.msk.f32.mxu1 %vm5923_vm1, %v5922_v1 }
  0xe9   : > { %v5598_v12 = vpop.f32.mrb[3].mxu0  ;;  %v5603_v13 = vpop.f32.mrb[3].mxu1  ;;  %5755 = vmatpush3.msk.msra.mxu0 %vm286_vm0, %v508_v10  ;;  %5760 = vmatpush3.msk.msra.mxu1 %vm286_vm0, %v584_v11  ;;  %v2740_v11 = vld [vmem:[%s6621_s2 + $0x60] sm:$0xf] }
  0xea   : > { %5757 = vmatmul.mubr.msk.f32.vlgmr.msra.gmra.mrb[34].mxu0 %vm282_vm2, %v2718_v8  ;;  %5762 = vmatmul.mubr.msk.f32.vlgmr.msra.gmra.mrb[34].mxu1 %vm282_vm2, %v2719_v9  ;;  %v2741_v12 = vld [vmem:[%s6621_s2 + $0x64] sm:$0xf] }
  0xeb   : > { %5764 = vmatprep.subr.mxu0 %v5922_v1  ;;  %5769 = vmatprep.subr.mxu1 %v5922_v1 }
  0xec   : > { %v660_v16 = vpop.f32.mrb[4].mxu0  ;;  %v736_v17 = vpop.f32.mrb[4].mxu1  ;;  %5766 = vmatprep.mubr.msk.f32.mxu0 %vm5923_vm1, %v5922_v1  ;;  %5771 = vmatprep.mubr.msk.f32.mxu1 %vm5923_vm1, %v5922_v1 }
  0xed   : > { %v5608_v18 = vpop.f32.mrb[5].mxu0  ;;  %v5613_v19 = vpop.f32.mrb[5].mxu1  ;;  %5765 = vmatpush3.msk.msra.mxu0 %vm286_vm0, %v660_v16  ;;  %5770 = vmatpush3.msk.msra.mxu1 %vm286_vm0, %v736_v17  ;;  %v2742_v17 = vld [vmem:[%s6621_s2 + $0x68] sm:$0xf] }
  0xee   : > { %5767 = vmatmul.mubr.msk.f32.vlgmr.msra.gmra.mrb[36].mxu0 %vm282_vm2, %v2720_v14  ;;  %5772 = vmatmul.mubr.msk.f32.vlgmr.msra.gmra.mrb[36].mxu1 %vm282_vm2, %v2721_v15  ;;  %v2743_v18 = vld [vmem:[%s6621_s2 + $0x6c] sm:$0xf] }
  0xef   : > { %5774 = vmatprep.subr.mxu0 %v5922_v1  ;;  %5779 = vmatprep.subr.mxu1 %v5922_v1 }
  0xf0   : > { %v812_v22 = vpop.f32.mrb[6].mxu0  ;;  %v888_v23 = vpop.f32.mrb[6].mxu1  ;;  %5776 = vmatprep.mubr.msk.f32.mxu0 %vm5923_vm1, %v5922_v1  ;;  %5781 = vmatprep.mubr.msk.f32.mxu1 %vm5923_vm1, %v5922_v1 }
  0xf1   : > { %v5618_v24 = vpop.f32.mrb[7].mxu0  ;;  %v5623_v25 = vpop.f32.mrb[7].mxu1  ;;  %5775 = vmatpush3.msk.msra.mxu0 %vm286_vm0, %v812_v22  ;;  %5780 = vmatpush3.msk.msra.mxu1 %vm286_vm0, %v888_v23  ;;  %v2744_v23 = vld [vmem:[%s6621_s2 + $0x70] sm:$0xf] }
  0xf2   : > { %5777 = vmatmul.mubr.msk.f32.vlgmr.msra.gmra.mrb[38].mxu0 %vm282_vm2, %v2722_v20  ;;  %5782 = vmatmul.mubr.msk.f32.vlgmr.msra.gmra.mrb[38].mxu1 %vm282_vm2, %v2723_v21  ;;  %v2745_v24 = vld [vmem:[%s6621_s2 + $0x74] sm:$0xf] }
  0xf3   : > { %5784 = vmatprep.subr.mxu0 %v5922_v1  ;;  %5789 = vmatprep.subr.mxu1 %v5922_v1 }
  0xf4   : > { %v964_v28 = vpop.f32.mrb[8].mxu0  ;;  %v1040_v29 = vpop.f32.mrb[8].mxu1  ;;  %5786 = vmatprep.mubr.msk.f32.mxu0 %vm5923_vm1, %v5922_v1  ;;  %5791 = vmatprep.mubr.msk.f32.mxu1 %vm5923_vm1, %v5922_v1 }
  0xf5   : > { %v5628_v30 = vpop.f32.mrb[9].mxu0  ;;  %v5633_v31 = vpop.f32.mrb[9].mxu1  ;;  %5785 = vmatpush3.msk.msra.mxu0 %vm286_vm0, %v964_v28  ;;  %5790 = vmatpush3.msk.msra.mxu1 %vm286_vm0, %v1040_v29  ;;  %v2746_v29 = vld [vmem:[%s6621_s2 + $0x78] sm:$0xf] }
  0xf6   : > { %5787 = vmatmul.mubr.msk.f32.vlgmr.msra.gmra.mrb[40].mxu0 %vm282_vm2, %v2724_v26  ;;  %5792 = vmatmul.mubr.msk.f32.vlgmr.msra.gmra.mrb[40].mxu1 %vm282_vm2, %v2725_v27  ;;  %v2747_v30 = vld [vmem:[%s6621_s2 + $0x7c] sm:$0xf] }
  0xf7   : > { %5794 = vmatprep.subr.mxu0 %v5922_v1  ;;  %5799 = vmatprep.subr.mxu1 %v5922_v1 }
  0xf8   : > { %v1116_v34 = vpop.f32.mrb[10].mxu0  ;;  %v1192_v35 = vpop.f32.mrb[10].mxu1  ;;  %5796 = vmatprep.mubr.msk.f32.mxu0 %vm5923_vm1, %v5922_v1  ;;  %5801 = vmatprep.mubr.msk.f32.mxu1 %vm5923_vm1, %v5922_v1 }
  0xf9   : > { %v5638_v36 = vpop.f32.mrb[11].mxu0  ;;  %v5643_v37 = vpop.f32.mrb[11].mxu1  ;;  %5795 = vmatpush3.msk.msra.mxu0 %vm286_vm0, %v1116_v34  ;;  %5800 = vmatpush3.msk.msra.mxu1 %vm286_vm0, %v1192_v35  ;;  %v2749_v35 = vld [vmem:[%s6513_s8 + $0x4] sm:$0xf] }
  0xfa   : > { %5797 = vmatmul.mubr.msk.f32.vlgmr.msra.gmra.mrb[42].mxu0 %vm282_vm2, %v2726_v32  ;;  %5802 = vmatmul.mubr.msk.f32.vlgmr.msra.gmra.mrb[42].mxu1 %vm282_vm2, %v2727_v33 }
  0xfb   : > { %5804 = vmatprep.subr.mxu0 %v5922_v1  ;;  %5809 = vmatprep.subr.mxu1 %v5922_v1 }
  0xfc   : > { %v1268_v40 = vpop.f32.mrb[12].mxu0  ;;  %v1344_v41 = vpop.f32.mrb[12].mxu1  ;;  %5806 = vmatprep.mubr.msk.f32.mxu0 %vm5923_vm1, %v5922_v1  ;;  %5811 = vmatprep.mubr.msk.f32.mxu1 %vm5923_vm1, %v5922_v1 }
  0xfd   : > { %v5648_v42 = vpop.f32.mrb[13].mxu0  ;;  %v5653_v43 = vpop.f32.mrb[13].mxu1  ;;  %5805 = vmatpush3.msk.msra.mxu0 %vm286_vm0, %v1268_v40  ;;  %5810 = vmatpush3.msk.msra.mxu1 %vm286_vm0, %v1344_v41 }
  0xfe   : > { %5807 = vmatmul.mubr.msk.f32.vlgmr.msra.gmra.mrb[44].mxu0 %vm282_vm2, %v2728_v38  ;;  %5812 = vmatmul.mubr.msk.f32.vlgmr.msra.gmra.mrb[44].mxu1 %vm282_vm2, %v2729_v39  ;;  %v2750_v42 = vld [vmem:[%s6513_s8 + $0x8] sm:$0xf]  ;;  %v2751_v43 = vld [vmem:[%s6513_s8 + $0xc] sm:$0xf] }
  0xff   : > { %5814 = vmatprep.subr.mxu0 %v5922_v1  ;;  %5819 = vmatprep.subr.mxu1 %v5922_v1 }
 0x100   : > { %v1420_v46 = vpop.f32.mrb[14].mxu0  ;;  %v1496_v47 = vpop.f32.mrb[14].mxu1  ;;  %5816 = vmatprep.mubr.msk.f32.mxu0 %vm5923_vm1, %v5922_v1  ;;  %5821 = vmatprep.mubr.msk.f32.mxu1 %vm5923_vm1, %v5922_v1 }
 0x101   : > { %v5658_v48 = vpop.f32.mrb[15].mxu0  ;;  %v5663_v49 = vpop.f32.mrb[15].mxu1  ;;  %5815 = vmatpush3.msk.msra.mxu0 %vm286_vm0, %v1420_v46  ;;  %5820 = vmatpush3.msk.msra.mxu1 %vm286_vm0, %v1496_v47 }
 0x102   : > { %5817 = vmatmul.mubr.msk.f32.vlgmr.msra.gmra.mrb[46].mxu0 %vm282_vm2, %v2730_v44  ;;  %5822 = vmatmul.mubr.msk.f32.vlgmr.msra.gmra.mrb[46].mxu1 %vm282_vm2, %v2731_v45 }
 0x103   : > { %5824 = vmatprep.subr.mxu0 %v5922_v1  ;;  %5829 = vmatprep.subr.mxu1 %v5922_v1 }
 0x104   : > { %v1572_v52 = vpop.f32.mrb[16].mxu0  ;;  %v1648_v53 = vpop.f32.mrb[16].mxu1  ;;  %5826 = vmatprep.mubr.msk.f32.mxu0 %vm5923_vm1, %v5922_v1  ;;  %5831 = vmatprep.mubr.msk.f32.mxu1 %vm5923_vm1, %v5922_v1 }
 0x105   : > { %v5668_v54 = vpop.f32.mrb[17].mxu0  ;;  %v5673_v55 = vpop.f32.mrb[17].mxu1  ;;  %5825 = vmatpush3.msk.msra.mxu0 %vm286_vm0, %v1572_v52  ;;  %5830 = vmatpush3.msk.msra.mxu1 %vm286_vm0, %v1648_v53 }
 0x106   : > { %5827 = vmatmul.mubr.msk.f32.vlgmr.msra.gmra.mrb[48].mxu0 %vm282_vm2, %v2732_v50  ;;  %5832 = vmatmul.mubr.msk.f32.vlgmr.msra.gmra.mrb[48].mxu1 %vm282_vm2, %v2733_v51  ;;  %v2752_v50 = vld [vmem:[%s6513_s8 + $0x10] sm:$0xf]  ;;  %v2753_v51 = vld [vmem:[%s6513_s8 + $0x14] sm:$0xf] }
 0x107   : > { %5834 = vmatprep.subr.mxu0 %v5922_v1  ;;  %5839 = vmatprep.subr.mxu1 %v5922_v1 }
 0x108   : > { %v1724_v58 = vpop.f32.mrb[18].mxu0  ;;  %v1800_v59 = vpop.f32.mrb[18].mxu1  ;;  %5836 = vmatprep.mubr.msk.f32.mxu0 %vm5923_vm1, %v5922_v1  ;;  %5841 = vmatprep.mubr.msk.f32.mxu1 %vm5923_vm1, %v5922_v1 }
 0x109   : > { %v5678_v60 = vpop.f32.mrb[19].mxu0  ;;  %v5683_v61 = vpop.f32.mrb[19].mxu1  ;;  %5835 = vmatpush3.msk.msra.mxu0 %vm286_vm0, %v1724_v58  ;;  %5840 = vmatpush3.msk.msra.mxu1 %vm286_vm0, %v1800_v59  ;;  %v2754_v58 = vld [vmem:[%s6513_s8 + $0x18] sm:$0xf]  ;;  %v2755_v59 = vld [vmem:[%s6513_s8 + $0x1c] sm:$0xf] }
 0x10a   : > { %5837 = vmatmul.mubr.msk.f32.vlgmr.msra.gmra.mrb[50].mxu0 %vm282_vm2, %v2734_v56  ;;  %5842 = vmatmul.mubr.msk.f32.vlgmr.msra.gmra.mrb[50].mxu1 %vm282_vm2, %v2735_v57 }
 0x10b   : > { %5844 = vmatprep.subr.mxu0 %v5922_v1  ;;  %5849 = vmatprep.subr.mxu1 %v5922_v1 }
 0x10c   : > { %v1876_v0 = vpop.f32.mrb[20].mxu0  ;;  %v1952_v2 = vpop.f32.mrb[20].mxu1  ;;  %5846 = vmatprep.mubr.msk.f32.mxu0 %vm5923_vm1, %v5922_v1  ;;  %5851 = vmatprep.mubr.msk.f32.mxu1 %vm5923_vm1, %v5922_v1 }
 0x10d   : > { %v5688_v3 = vpop.f32.mrb[21].mxu0  ;;  %v5693_v4 = vpop.f32.mrb[21].mxu1  ;;  %5845 = vmatpush3.msk.msra.mxu0 %vm286_vm0, %v1876_v0  ;;  %5850 = vmatpush3.msk.msra.mxu1 %vm286_vm0, %v1952_v2 }
 0x10e   : > { %5847 = vmatmul.mubr.msk.f32.vlgmr.msra.gmra.mrb[52].mxu0 %vm282_vm2, %v2736_v62  ;;  %5852 = vmatmul.mubr.msk.f32.vlgmr.msra.gmra.mrb[52].mxu1 %vm282_vm2, %v2737_v63  ;;  %v2756_v3 = vld [vmem:[%s6513_s8 + $0x20] sm:$0xf]  ;;  %v2757_v4 = vld [vmem:[%s6513_s8 + $0x24] sm:$0xf] }
 0x10f   : > { %5854 = vmatprep.subr.mxu0 %v5922_v1  ;;  %5859 = vmatprep.subr.mxu1 %v5922_v1 }
 0x110   : > { %v2028_v7 = vpop.f32.mrb[22].mxu0  ;;  %v2104_v8 = vpop.f32.mrb[22].mxu1  ;;  %5856 = vmatprep.mubr.msk.f32.mxu0 %vm5923_vm1, %v5922_v1  ;;  %5861 = vmatprep.mubr.msk.f32.mxu1 %vm5923_vm1, %v5922_v1 }
 0x111   : > { %v5698_v9 = vpop.f32.mrb[23].mxu0  ;;  %v5703_v10 = vpop.f32.mrb[23].mxu1  ;;  %5855 = vmatpush3.msk.msra.mxu0 %vm286_vm0, %v2028_v7  ;;  %5860 = vmatpush3.msk.msra.mxu1 %vm286_vm0, %v2104_v8 }
 0x112   : > { %5857 = vmatmul.mubr.msk.f32.vlgmr.msra.gmra.mrb[54].mxu0 %vm282_vm2, %v2738_v5  ;;  %5862 = vmatmul.mubr.msk.f32.vlgmr.msra.gmra.mrb[54].mxu1 %vm282_vm2, %v2739_v6 }
 0x113   : > { %5864 = vmatprep.subr.mxu0 %v5922_v1  ;;  %5869 = vmatprep.subr.mxu1 %v5922_v1 }
 0x114   : > { %v2180_v13 = vpop.f32.mrb[24].mxu0  ;;  %v2256_v14 = vpop.f32.mrb[24].mxu1  ;;  %5866 = vmatprep.mubr.msk.f32.mxu0 %vm5923_vm1, %v5922_v1  ;;  %5871 = vmatprep.mubr.msk.f32.mxu1 %vm5923_vm1, %v5922_v1 }
 0x115   : > { %v5708_v15 = vpop.f32.mrb[25].mxu0  ;;  %v5713_v16 = vpop.f32.mrb[25].mxu1  ;;  %5865 = vmatpush3.msk.msra.mxu0 %vm286_vm0, %v2180_v13  ;;  %5870 = vmatpush3.msk.msra.mxu1 %vm286_vm0, %v2256_v14 }
 0x116   : > { %5867 = vmatmul.mubr.msk.f32.vlgmr.msra.gmra.mrb[56].mxu0 %vm282_vm2, %v2740_v11  ;;  %5872 = vmatmul.mubr.msk.f32.vlgmr.msra.gmra.mrb[56].mxu1 %vm282_vm2, %v2741_v12  ;;  %v2758_v11 = vld [vmem:[%s6513_s8 + $0x28] sm:$0xf]  ;;  %v2759_v12 = vld [vmem:[%s6513_s8 + $0x2c] sm:$0xf] }
 0x117   : > { %5874 = vmatprep.subr.mxu0 %v5922_v1  ;;  %5879 = vmatprep.subr.mxu1 %v5922_v1 }
 0x118   : > { %v2332_v19 = vpop.f32.mrb[26].mxu0  ;;  %v2408_v20 = vpop.f32.mrb[26].mxu1  ;;  %5876 = vmatprep.mubr.msk.f32.mxu0 %vm5923_vm1, %v5922_v1  ;;  %5881 = vmatprep.mubr.msk.f32.mxu1 %vm5923_vm1, %v5922_v1 }
 0x119   : > { %v5718_v21 = vpop.f32.mrb[27].mxu0  ;;  %v5723_v22 = vpop.f32.mrb[27].mxu1  ;;  %5875 = vmatpush3.msk.msra.mxu0 %vm286_vm0, %v2332_v19  ;;  %5880 = vmatpush3.msk.msra.mxu1 %vm286_vm0, %v2408_v20  ;;  %v2760_v19 = vld [vmem:[%s6513_s8 + $0x30] sm:$0xf]  ;;  %v2761_v20 = vld [vmem:[%s6513_s8 + $0x34] sm:$0xf] }
 0x11a   : > { %5877 = vmatmul.mubr.msk.f32.vlgmr.msra.gmra.mrb[58].mxu0 %vm282_vm2, %v2742_v17  ;;  %5882 = vmatmul.mubr.msk.f32.vlgmr.msra.gmra.mrb[58].mxu1 %vm282_vm2, %v2743_v18 }
 0x11b   : > { %5884 = vmatprep.subr.mxu0 %v5922_v1  ;;  %5889 = vmatprep.subr.mxu1 %v5922_v1 }
 0x11c   : > { %v2484_v25 = vpop.f32.mrb[28].mxu0  ;;  %v2560_v26 = vpop.f32.mrb[28].mxu1  ;;  %5886 = vmatprep.mubr.msk.f32.mxu0 %vm5923_vm1, %v5922_v1  ;;  %5891 = vmatprep.mubr.msk.f32.mxu1 %vm5923_vm1, %v5922_v1 }
 0x11d   : > { %v5728_v27 = vpop.f32.mrb[29].mxu0  ;;  %v5733_v28 = vpop.f32.mrb[29].mxu1  ;;  %5885 = vmatpush3.msk.msra.mxu0 %vm286_vm0, %v2484_v25  ;;  %5890 = vmatpush3.msk.msra.mxu1 %vm286_vm0, %v2560_v26 }
 0x11e   : > { %5887 = vmatmul.mubr.msk.f32.vlgmr.msra.gmra.mrb[60].mxu0 %vm282_vm2, %v2744_v23  ;;  %5892 = vmatmul.mubr.msk.f32.vlgmr.msra.gmra.mrb[60].mxu1 %vm282_vm2, %v2745_v24  ;;  %v2762_v27 = vld [vmem:[%s6513_s8 + $0x38] sm:$0xf]  ;;  %v2763_v28 = vld [vmem:[%s6513_s8 + $0x3c] sm:$0xf] }
 0x11f   : > { %5894 = vmatprep.subr.mxu0 %v5922_v1  ;;  %5899 = vmatprep.subr.mxu1 %v5922_v1 }
 0x120   : > { %v2636_v31 = vpop.f32.mrb[30].mxu0  ;;  %v2712_v32 = vpop.f32.mrb[30].mxu1  ;;  %5896 = vmatprep.mubr.msk.f32.mxu0 %vm5923_vm1, %v5922_v1  ;;  %5901 = vmatprep.mubr.msk.f32.mxu1 %vm5923_vm1, %v5922_v1  ;;  %v2748_v1 = vld [vmem:[%s6513_s8] sm:$0xf] }
 0x121   : > { %v5738_v33 = vpop.f32.mrb[31].mxu0  ;;  %v5743_v34 = vpop.f32.mrb[31].mxu1  ;;  %5895 = vmatpush3.msk.msra.mxu0 %vm286_vm0, %v2636_v31  ;;  %5900 = vmatpush3.msk.msra.mxu1 %vm286_vm0, %v2712_v32 }
 0x122   : > { %5897 = vmatmul.mubr.msk.f32.vlgmr.msra.gmra.mrb[62].mxu0 %vm282_vm2, %v2746_v29  ;;  %5902 = vmatmul.mubr.msk.f32.vlgmr.msra.gmra.mrb[62].mxu1 %vm282_vm2, %v2747_v30 }
 0x1b9   : > { %v2852_v36 = vpop.f32.mrb[32].mxu0  ;;  %v2928_v37 = vpop.f32.mrb[32].mxu1 }
 0x1ba   : > { %v2853_v38 = vadd.f32 %v2852_v36, %v2748_v1  ;;  %v2929_v39 = vadd.f32 %v2928_v37, %v2749_v35  ;;  %v5748_v40 = vpop.f32.mrb[33].mxu0  ;;  %v5753_v41 = vpop.f32.mrb[33].mxu1  ;;  %v2764_v1 = vld [vmem:[%s6513_s8 + $0x40] sm:$0xf]  ;;  %v2765_v35 = vld [vmem:[%s6513_s8 + $0x44] sm:$0xf] }
 0x1bc   : > { %5213 = vst.msk [vmem:[%s6520_s11] sm:$0xf] %vm5212_vm3, %v2853_v38  ;;  %5214 = vst.msk [vmem:[%s6520_s11 + $0x4] sm:$0xf] %vm5212_vm3, %v2929_v39 }
 0x1bd   : > { %v3004_v44 = vpop.f32.mrb[34].mxu0  ;;  %v3080_v45 = vpop.f32.mrb[34].mxu1 }
 0x1be   : > { %v3005_v46 = vadd.f32 %v3004_v44, %v2750_v42  ;;  %v3081_v47 = vadd.f32 %v3080_v45, %v2751_v43  ;;  %v5758_v48 = vpop.f32.mrb[35].mxu0  ;;  %v5763_v49 = vpop.f32.mrb[35].mxu1  ;;  %v2766_v42 = vld [vmem:[%s6513_s8 + $0x48] sm:$0xf]  ;;  %v2767_v43 = vld [vmem:[%s6513_s8 + $0x4c] sm:$0xf] }
 0x1c0   : > { %5215 = vst.msk [vmem:[%s6520_s11 + $0x8] sm:$0xf] %vm5212_vm3, %v3005_v46  ;;  %5216 = vst.msk [vmem:[%s6520_s11 + $0xc] sm:$0xf] %vm5212_vm3, %v3081_v47 }
 0x1c1   : > { %v3156_v52 = vpop.f32.mrb[36].mxu0  ;;  %v3232_v53 = vpop.f32.mrb[36].mxu1 }
 0x1c2   : > { %v3157_v54 = vadd.f32 %v3156_v52, %v2752_v50  ;;  %v3233_v55 = vadd.f32 %v3232_v53, %v2753_v51  ;;  %v5768_v56 = vpop.f32.mrb[37].mxu0  ;;  %v5773_v57 = vpop.f32.mrb[37].mxu1  ;;  %v2768_v50 = vld [vmem:[%s6513_s8 + $0x50] sm:$0xf]  ;;  %v2769_v51 = vld [vmem:[%s6513_s8 + $0x54] sm:$0xf] }
 0x1c4   : > { %5217 = vst.msk [vmem:[%s6520_s11 + $0x10] sm:$0xf] %vm5212_vm3, %v3157_v54  ;;  %5218 = vst.msk [vmem:[%s6520_s11 + $0x14] sm:$0xf] %vm5212_vm3, %v3233_v55 }
 0x1c5   : > { %v3308_v60 = vpop.f32.mrb[38].mxu0  ;;  %v3384_v61 = vpop.f32.mrb[38].mxu1 }
 0x1c6   : > { %v3309_v62 = vadd.f32 %v3308_v60, %v2754_v58  ;;  %v3385_v63 = vadd.f32 %v3384_v61, %v2755_v59  ;;  %v5778_v0 = vpop.f32.mrb[39].mxu0  ;;  %v5783_v2 = vpop.f32.mrb[39].mxu1  ;;  %v2770_v58 = vld [vmem:[%s6513_s8 + $0x58] sm:$0xf]  ;;  %v2771_v59 = vld [vmem:[%s6513_s8 + $0x5c] sm:$0xf] }
 0x1c8   : > { %5219 = vst.msk [vmem:[%s6520_s11 + $0x18] sm:$0xf] %vm5212_vm3, %v3309_v62  ;;  %5220 = vst.msk [vmem:[%s6520_s11 + $0x1c] sm:$0xf] %vm5212_vm3, %v3385_v63 }
 0x1c9   : > { %v3460_v5 = vpop.f32.mrb[40].mxu0  ;;  %v3536_v6 = vpop.f32.mrb[40].mxu1 }
 0x1ca   : > { %v3461_v7 = vadd.f32 %v3460_v5, %v2756_v3  ;;  %v3537_v8 = vadd.f32 %v3536_v6, %v2757_v4  ;;  %v5788_v9 = vpop.f32.mrb[41].mxu0  ;;  %v5793_v10 = vpop.f32.mrb[41].mxu1  ;;  %v2772_v3 = vld [vmem:[%s6513_s8 + $0x60] sm:$0xf]  ;;  %v2773_v4 = vld [vmem:[%s6513_s8 + $0x64] sm:$0xf] }
 0x1cc   : > { %5221 = vst.msk [vmem:[%s6520_s11 + $0x20] sm:$0xf] %vm5212_vm3, %v3461_v7  ;;  %5222 = vst.msk [vmem:[%s6520_s11 + $0x24] sm:$0xf] %vm5212_vm3, %v3537_v8 }
 0x1cd   : > { %v3612_v13 = vpop.f32.mrb[42].mxu0  ;;  %v3688_v14 = vpop.f32.mrb[42].mxu1 }
 0x1ce   : > { %v3613_v15 = vadd.f32 %v3612_v13, %v2758_v11  ;;  %v3689_v16 = vadd.f32 %v3688_v14, %v2759_v12  ;;  %v5798_v17 = vpop.f32.mrb[43].mxu0  ;;  %v5803_v18 = vpop.f32.mrb[43].mxu1  ;;  %v2774_v11 = vld [vmem:[%s6513_s8 + $0x68] sm:$0xf]  ;;  %v2775_v12 = vld [vmem:[%s6513_s8 + $0x6c] sm:$0xf] }
 0x1d0   : > { %5223 = vst.msk [vmem:[%s6520_s11 + $0x28] sm:$0xf] %vm5212_vm3, %v3613_v15  ;;  %5224 = vst.msk [vmem:[%s6520_s11 + $0x2c] sm:$0xf] %vm5212_vm3, %v3689_v16 }
 0x1d1   : > { %v3764_v21 = vpop.f32.mrb[44].mxu0  ;;  %v3840_v22 = vpop.f32.mrb[44].mxu1 }
 0x1d2   : > { %v3765_v23 = vadd.f32 %v3764_v21, %v2760_v19  ;;  %v3841_v24 = vadd.f32 %v3840_v22, %v2761_v20  ;;  %v5808_v25 = vpop.f32.mrb[45].mxu0  ;;  %v5813_v26 = vpop.f32.mrb[45].mxu1  ;;  %v2776_v19 = vld [vmem:[%s6513_s8 + $0x70] sm:$0xf]  ;;  %v2777_v20 = vld [vmem:[%s6513_s8 + $0x74] sm:$0xf] }
 0x1d4   : > { %5225 = vst.msk [vmem:[%s6520_s11 + $0x30] sm:$0xf] %vm5212_vm3, %v3765_v23  ;;  %5226 = vst.msk [vmem:[%s6520_s11 + $0x34] sm:$0xf] %vm5212_vm3, %v3841_v24 }
 0x1d5   : > { %v3916_v29 = vpop.f32.mrb[46].mxu0  ;;  %v3992_v30 = vpop.f32.mrb[46].mxu1 }
 0x1d6   : > { %v3917_v31 = vadd.f32 %v3916_v29, %v2762_v27  ;;  %v3993_v32 = vadd.f32 %v3992_v30, %v2763_v28  ;;  %v5818_v33 = vpop.f32.mrb[47].mxu0  ;;  %v5823_v34 = vpop.f32.mrb[47].mxu1  ;;  %v2778_v27 = vld [vmem:[%s6513_s8 + $0x78] sm:$0xf]  ;;  %v2779_v28 = vld [vmem:[%s6513_s8 + $0x7c] sm:$0xf] }
 0x1d8   : > { %5227 = vst.msk [vmem:[%s6520_s11 + $0x38] sm:$0xf] %vm5212_vm3, %v3917_v31  ;;  %5228 = vst.msk [vmem:[%s6520_s11 + $0x3c] sm:$0xf] %vm5212_vm3, %v3993_v32 }
 0x1d9   : > { %v4068_v36 = vpop.f32.mrb[48].mxu0  ;;  %v4144_v37 = vpop.f32.mrb[48].mxu1 }
 0x1da   : > { %v4069_v38 = vadd.f32 %v4068_v36, %v2764_v1  ;;  %v4145_v39 = vadd.f32 %v4144_v37, %v2765_v35  ;;  %v5828_v40 = vpop.f32.mrb[49].mxu0  ;;  %v5833_v41 = vpop.f32.mrb[49].mxu1 }
 0x1dc   : > { %5229 = vst.msk [vmem:[%s6520_s11 + $0x40] sm:$0xf] %vm5212_vm3, %v4069_v38  ;;  %5230 = vst.msk [vmem:[%s6520_s11 + $0x44] sm:$0xf] %vm5212_vm3, %v4145_v39 }
 0x1dd   : > { %v4220_v44 = vpop.f32.mrb[50].mxu0  ;;  %v4296_v45 = vpop.f32.mrb[50].mxu1 }
 0x1de   : > { %v4221_v46 = vadd.f32 %v4220_v44, %v2766_v42  ;;  %v4297_v47 = vadd.f32 %v4296_v45, %v2767_v43  ;;  %v5838_v48 = vpop.f32.mrb[51].mxu0  ;;  %v5843_v49 = vpop.f32.mrb[51].mxu1 }
 0x1e0   : > { %5231 = vst.msk [vmem:[%s6520_s11 + $0x48] sm:$0xf] %vm5212_vm3, %v4221_v46  ;;  %5232 = vst.msk [vmem:[%s6520_s11 + $0x4c] sm:$0xf] %vm5212_vm3, %v4297_v47 }
 0x1e1   : > { %v4372_v52 = vpop.f32.mrb[52].mxu0  ;;  %v4448_v53 = vpop.f32.mrb[52].mxu1 }
 0x1e2   : > { %v4373_v54 = vadd.f32 %v4372_v52, %v2768_v50  ;;  %v4449_v55 = vadd.f32 %v4448_v53, %v2769_v51  ;;  %v5848_v56 = vpop.f32.mrb[53].mxu0  ;;  %v5853_v57 = vpop.f32.mrb[53].mxu1 }
 0x1e4   : > { %5233 = vst.msk [vmem:[%s6520_s11 + $0x50] sm:$0xf] %vm5212_vm3, %v4373_v54  ;;  %5234 = vst.msk [vmem:[%s6520_s11 + $0x54] sm:$0xf] %vm5212_vm3, %v4449_v55 }
 0x1e5   : > { %v4524_v60 = vpop.f32.mrb[54].mxu0  ;;  %v4600_v61 = vpop.f32.mrb[54].mxu1 }
 0x1e6   : > { %v4525_v62 = vadd.f32 %v4524_v60, %v2770_v58  ;;  %v4601_v63 = vadd.f32 %v4600_v61, %v2771_v59  ;;  %v5858_v0 = vpop.f32.mrb[55].mxu0  ;;  %v5863_v2 = vpop.f32.mrb[55].mxu1 }
 0x1e8   : > { %5235 = vst.msk [vmem:[%s6520_s11 + $0x58] sm:$0xf] %vm5212_vm3, %v4525_v62  ;;  %5236 = vst.msk [vmem:[%s6520_s11 + $0x5c] sm:$0xf] %vm5212_vm3, %v4601_v63 }
 0x1e9   : > { %v4676_v5 = vpop.f32.mrb[56].mxu0  ;;  %v4752_v6 = vpop.f32.mrb[56].mxu1 }
 0x1ea   : > { %v4677_v7 = vadd.f32 %v4676_v5, %v2772_v3  ;;  %v4753_v8 = vadd.f32 %v4752_v6, %v2773_v4  ;;  %v5868_v9 = vpop.f32.mrb[57].mxu0  ;;  %v5873_v10 = vpop.f32.mrb[57].mxu1 }
 0x1ec   : > { %5237 = vst.msk [vmem:[%s6520_s11 + $0x60] sm:$0xf] %vm5212_vm3, %v4677_v7  ;;  %5238 = vst.msk [vmem:[%s6520_s11 + $0x64] sm:$0xf] %vm5212_vm3, %v4753_v8 }
 0x1ed   : > { %v4828_v13 = vpop.f32.mrb[58].mxu0  ;;  %v4904_v14 = vpop.f32.mrb[58].mxu1 }
 0x1ee   : > { %v4829_v15 = vadd.f32 %v4828_v13, %v2774_v11  ;;  %v4905_v16 = vadd.f32 %v4904_v14, %v2775_v12  ;;  %v5878_v17 = vpop.f32.mrb[59].mxu0  ;;  %v5883_v18 = vpop.f32.mrb[59].mxu1 }
 0x1f0   : > { %5239 = vst.msk [vmem:[%s6520_s11 + $0x68] sm:$0xf] %vm5212_vm3, %v4829_v15  ;;  %5240 = vst.msk [vmem:[%s6520_s11 + $0x6c] sm:$0xf] %vm5212_vm3, %v4905_v16 }
 0x1f1   : > { %v4980_v21 = vpop.f32.mrb[60].mxu0  ;;  %v5056_v22 = vpop.f32.mrb[60].mxu1 }
 0x1f2   : > { %v4981_v23 = vadd.f32 %v4980_v21, %v2776_v19  ;;  %v5057_v24 = vadd.f32 %v5056_v22, %v2777_v20  ;;  %v5888_v25 = vpop.f32.mrb[61].mxu0  ;;  %v5893_v26 = vpop.f32.mrb[61].mxu1 }
 0x1f4   : > { %5241 = vst.msk [vmem:[%s6520_s11 + $0x70] sm:$0xf] %vm5212_vm3, %v4981_v23  ;;  %5242 = vst.msk [vmem:[%s6520_s11 + $0x74] sm:$0xf] %vm5212_vm3, %v5057_v24 }
 0x1f5   : > { %v5132_v29 = vpop.f32.mrb[62].mxu0  ;;  %v5208_v30 = vpop.f32.mrb[62].mxu1 }
 0x1f6   : > { %v5133_v31 = vadd.f32 %v5132_v29, %v2778_v27  ;;  %v5209_v32 = vadd.f32 %v5208_v30, %v2779_v28  ;;  %v5898_v33 = vpop.f32.mrb[63].mxu0  ;;  %v5903_v34 = vpop.f32.mrb[63].mxu1 }
 0x1f8   : > { %5243 = vst.msk [vmem:[%s6520_s11 + $0x78] sm:$0xf] %vm5212_vm3, %v5133_v31  ;;  %5244 = vst.msk [vmem:[%s6520_s11 + $0x7c] sm:$0xf] %vm5212_vm3, %v5209_v32 }
 0x1f9 PF: > { %s14_s15 = sadd.s32 1, %s5920_s15  }
 0x1fa   : > { %p11_p4 = scmp.ge.s32.totalorder %s14_s15, 4  }
 0x1fc   :  { %13 = sbr.rel (!%p11_p4) target bundleno = 1 (0x1), region = 69 }

// kernel: vnet_forward.93
= control target key start
LH: loop header
LB: loop body
LE: loop exit
PB: predicated region body
PF: predicated region fallthrough
CT: control target
= control target key end

     0   :  { %s446_s14 = smov 0   ;;  %s490_s0 = inlined_call_operand.vmem [shape: f32[2,72,256], index: 0, kind: input, shape index: {}]   ;;  %s491_s1 = inlined_call_operand.vmem [shape: f32[1,72], index: 1, kind: input, shape index: {}]   ;;  %s492_s2 = inlined_call_operand.<no memory space> [shape: f32[1,1], index: 2, kind: input, shape index: {}]   ;;  %s493_s3 = inlined_call_operand.vmem [shape: f32[2,1,256], index: 3, kind: output, shape index: {}]  }
   0x1   :  { %v8_v0 = vstv %s492_s2 }
   0x2   :  { %9 = vst [vmem:[#allocation2] sm:$0x1] %v8_v0 }
   0x3 LB: > { %s363_s15 = sadd.s32 4294967295, %s418_s14   ;;  %p367_p0 = scmp.ge.s32.totalorder %s418_s14, 1  ;;  %s418_s14 = sphi %s446_s14, %s15_s14  }
   0x4   : > { %p139_p1 = scmp.lt.s32.totalorder %s418_s14, 3 }
   0x6   : > { %p140_p2 = pnand %p367_p0, %p139_p1 }
   0x7   : > { %p162_p3 = scmp.lt.s32.totalorder (!%p140_p2), %s363_s15, 1  ;;  %v420_v1 = vmov (!%p140_p2), 0.0   ;;  %v421_v2 = vmov (!%p140_p2), 0   ;;  %v171_v30 = vld [vmem:[%s491_s1] sm:$0x1] (!%p140_p2)  ;;  %vm200_vm0 = vcmask (!%p140_p2), 588800   ;;  %v196_v31 = vlaneseq (!%p140_p2) }
   0x8   : > { %143 = sbr.rel (%p140_p2) target bundleno = 288 (0x120), region = 32  ;;  %268 = vmatprep.mubr.f32.mxu0 (!%p140_p2), %v420_v1  ;;  %403 = vset.pattern.permute.xlu0 (!%p140_p2), %v421_v2  ;;  %v422_v46 = vmov (!%p140_p2), 1966171168  }
   0x9   : > { %v190_v3 = vld [vmem:[#allocation2] sm:$0x1] (!%p140_p2)  ;;  %v197_v32 = vshrl.u32 (!%p140_p2), %v196_v31, 7  ;;  %v291_v47 = vunpack.c.l.s4 (!%p140_p2), %v422_v46  ;;  %vm307_vm1 = vcmp.lt.s32.totalorder (!%p140_p2), %v196_v31, 256 }
   0xa   : > { %193 = vperm.xlu0 (!%p140_p2), %403, %v190_v3  }
   0xb   : > { %v198_v33 = vsub.s32 (!%p140_p2), 0, %v197_v32  ;;  %v292_v48 = vunpack.c.0.s8 (!%p140_p2), %v291_v47 }
   0xd   : > { %v295_v50 = vsub.s32 (!%p140_p2), %v292_v48, %v197_v32 }
   0xf   : > { %s495_s15 = smov (!%p162_p3, %s363_s15), 1 }
  0x10   : > { %s391_s2 = smul.u32 144, %s495_s15  ;;  %s369_s21 = sshll.u32 %s495_s15, 1 }
  0x11   : > { %s170_s24 = scalar_lea.vmem %s493_s3, %s369_s21 }
  0x12   : > { %s460_s18 = scalar_lea.vmem %s490_s0, %s391_s2 }
  0x13   : > { %v173_v4 = vld [vmem:[%s460_s18 + $0x8] sm:$0xff]  ;;  %v175_v5 = vld [vmem:[%s460_s18 + $0x18] sm:$0xff]  ;;  %v172_v6 = vld [vmem:[%s460_s18] sm:$0xff] }
  0x14   : > { %v375_v7 = vpack.c.bf16 %v175_v5, %v173_v4  ;;  %v174_v8 = vld [vmem:[%s460_s18 + $0x10] sm:$0xff]  ;;  %v177_v9 = vld [vmem:[%s460_s18 + $0x28] sm:$0xff]  ;;  %v179_v10 = vld [vmem:[%s460_s18 + $0x38] sm:$0xff] }
  0x15   : > { %v377_v11 = vpack.c.bf16 %v174_v8, %v172_v6  ;;  %v379_v12 = vpack.c.bf16 %v179_v10, %v177_v9  ;;  %v176_v13 = vld [vmem:[%s460_s18 + $0x20] sm:$0xff]  ;;  %v178_v14 = vld [vmem:[%s460_s18 + $0x30] sm:$0xff]  ;;  %v181_v15 = vld [vmem:[%s460_s18 + $0x48] sm:$0xff] }
  0x16   : > { %376 = vmatprep.subr.bf16.mxu0 %v375_v7  ;;  %v183_v16 = vld [vmem:[%s460_s18 + $0x58] sm:$0xff]  ;;  %v381_v17 = vpack.c.bf16 %v178_v14, %v176_v13  ;;  %v180_v19 = vld [vmem:[%s460_s18 + $0x40] sm:$0xff]  ;;  %v182_v20 = vld [vmem:[%s460_s18 + $0x50] sm:$0xff] }
  0x17   : > { %378 = vmatpush1.bf16.msra.mxu0 %v377_v11  ;;  %v383_v18 = vpack.c.bf16 %v183_v16, %v181_v15  ;;  %v185_v21 = vld [vmem:[%s460_s18 + $0x68] sm:$0xff]  ;;  %v187_v22 = vld [vmem:[%s460_s18 + $0x78] sm:$0xff]  ;;  %v385_v23 = vpack.c.bf16 %v182_v20, %v180_v19  ;;  %v184_v25 = vld [vmem:[%s460_s18 + $0x60] sm:$0xff] }
  0x18   : > { %380 = vmatprep.subr.bf16.mxu0 %v379_v12  ;;  %v387_v24 = vpack.c.bf16 %v187_v22, %v185_v21  ;;  %v186_v26 = vld [vmem:[%s460_s18 + $0x70] sm:$0xff]  ;;  %v189_v28 = vld [vmem:[%s460_s18 + $0x88] sm:$0xff]  ;;  %v188_v29 = vld [vmem:[%s460_s18 + $0x80] sm:$0xff] }
  0x19   : > { %v389_v27 = vpack.c.bf16 %v186_v26, %v184_v25 }
  0x1b   : > { %382 = vmatpush1.bf16.msra.mxu0 %v381_v17 }
  0x1c   : > { %384 = vmatprep.subr.bf16.mxu0 %v383_v18 }
  0x1f   : > { %386 = vmatpush1.bf16.msra.mxu0 %v385_v23 }
  0x20   : > { %388 = vmatprep.subr.bf16.mxu0 %v387_v24 }
  0x23   : > { %390 = vmatpush1.bf16.msra.mxu0 %v389_v27 }
  0x24   : > { %220 = vmatprep.subr.mxu0 %v189_v28 }
  0x27   : > { %221 = vmatpush1.msra.mxu0 %v188_v29 }
  0x28   : > { %370 = vmatmul.mubr.msk.f32.vlgmr.msra.gmra.mrb[0].mxu0 %vm200_vm0, %v171_v30 }
  0x89   : > { %v194_v34 = vpop.permute.xlu0 %193 }
  0x8a   : > { %v199_v35 = vrot.slane %v194_v34, %v198_v33 }
  0xfb   : > { %v270_v36 = vpop.f32.mrb[0].mxu0 }
  0xfc   : > { %v271_v37 = vadd.f32 %v270_v36, %v199_v35  ;;  %v272_v38 = vpop.f32.mrb[1].mxu0 }
  0xfd   : > { %v273_v39 = vadd.f32 %v272_v38, %v199_v35 }
  0xfe   : > { %v371_v40 = vmul.f32 -1.442695, %v271_v37 }
  0xff   : > { %v372_v41 = vmul.f32 -1.442695, %v273_v39 }
 0x100   : > { %404 = vpow2.f32 %v371_v40 }
 0x101   : > { %406 = vpow2.f32 %v372_v41 }
 0x10a   : > { %v405_v42 = vpop.eup %404 }
 0x10b   : > { %v407_v43 = vpop.eup %406  ;;  %v281_v44 = vadd.f32 1.0, %v405_v42 }
 0x10c   : > { %v282_v45 = vadd.f32 1.0, %v407_v43 }
 0x10d   : > { %408 = vrcp.f32 %v281_v44 }
 0x10e   : > { %410 = vrcp.f32 %v282_v45 }
 0x117   : > { %v409_v49 = vpop.eup %408 }
 0x118   : > { %v411_v51 = vpop.eup %410 }
 0x119   : > { %v289_v52 = vcombine.low %v409_v49, %v411_v51 }
 0x11b   : > { %v296_v53 = vrot.slane %v289_v52, %v295_v50 }
 0x11d   : > { %v303_v54 = vrot.slane %v296_v53, %v295_v50 }
 0x11f   : > { %309 = vst.msk [vmem:[%s170_s24] sm:$0x3] %vm307_vm1, %v303_v54 }
 0x120 PF: > { %s15_s14 = sadd.s32 1, %s418_s14  }
 0x121   : > { %p12_p4 = scmp.ge.s32.totalorder %s15_s14, 4  }
 0x123   :  { %14 = sbr.rel (!%p12_p4) target bundleno = 3 (0x3), region = 62 }

</bundles_post_ra>
